<compile_context>
chip_gen: v7x
topology: tpu7x:2x2x1
jax: 0.10.0
libtpu: 0.0.40
codegen_flags: <defaults>
</compile_context>

<pallas_src>
import jax
import jax.numpy as jnp
from jax import lax
from jax.experimental import pallas as pl
from jax.experimental.pallas import tpu as pltpu

IMAGE_SIZE = 112
NUM_CLASSES = 36

C1, C2 = 16, 32                  # conv channel counts
HP1 = IMAGE_SIZE // 2            # 56  (after first pool)
HP2 = HP1 // 2                   # 28  (after second pool)
FC_HIDDEN = 256
FEAT = C2 * HP2 * HP2            # 25088
TK_FC = 3584                     # fc1 K tile (25088 / 7)
ROWS_PER_ITER = 4                # pooled rows per fori_loop iteration


# ----------------------------------------------------------------------------
# Conv1: 1->16, 3x3, pad 1, ReLU, 2x2 max-pool.  One image per grid step.
# Input  (1, 114, 114)  padded image, W on lanes.
# Output (1, 58, 16, 58) = (h_padded, c, w_padded) with the zero halo baked in.
# ----------------------------------------------------------------------------
def _conv1_kernel(x_ref, w_ref, b_ref, se_ref, so_ref, o_ref):
    w = w_ref[...]                                  # (16, 9)   taps (dh*3+dw)
    b = b_ref[...]                                  # (16, 1)

    zero_row = jnp.zeros((C1, HP1 + 2), jnp.float32)
    o_ref[0, 0, :, :] = zero_row                    # top halo row
    o_ref[0, HP1 + 1, :, :] = zero_row              # bottom halo row
    zero_col = jnp.zeros((C1, 1), jnp.float32)

    def conv_row(cr):                               # cr in [0, 112)
        acc = jnp.zeros((C1, IMAGE_SIZE), jnp.float32)
        for dh in range(3):
            for dw in range(3):
                t = dh * 3 + dw
                xs = x_ref[0, pl.ds(cr + dh, 1), pl.ds(dw, IMAGE_SIZE)]  # (1,112)
                acc = acc + w[:, t:t + 1] * xs       # (16,1)*(1,112) broadcast MAC
        return jnp.maximum(acc + b, 0.0)             # bias + ReLU -> (16, 112)

    def body(i, carry):
        for r in range(ROWS_PER_ITER):               # statically unrolled
            ho = i * ROWS_PER_ITER + r
            v = jnp.maximum(conv_row(2 * ho), conv_row(2 * ho + 1))   # vertical max
            pooled = jnp.maximum(                                     # horizontal max
                jnp.dot(v, se_ref[...], preferred_element_type=jnp.float32),
                jnp.dot(v, so_ref[...], preferred_element_type=jnp.float32))
            # full-width padded row (zeros in halo columns), aligned contiguous store
            o_ref[0, 1 + ho, :, :] = jnp.concatenate(
                [zero_col, pooled, zero_col], axis=1)                 # (16, 58)
        return carry

    lax.fori_loop(0, HP1 // ROWS_PER_ITER, body, 0)


# ----------------------------------------------------------------------------
# Conv2: 16->32, 3x3, pad 1, ReLU, 2x2 max-pool.  Im2col matmul (K = 144) per row.
# Input  (1, 58, 16, 58) padded (h, c, w).   Output (1, 28, 32, 28) = (h, c, w).
# ----------------------------------------------------------------------------
def _conv2_kernel(x_ref, w_ref, b_ref, se_ref, so_ref, o_ref):
    w = w_ref[...]                                  # (32, 144)  rows (dh*3+dw)*16+ci
    b = b_ref[...]                                  # (32, 1)

    def conv_row(cr):                               # cr in [0, 56)
        taps = [x_ref[0, cr + dh, :, pl.ds(dw, HP1)]          # (16, 56) each
                for dh in range(3) for dw in range(3)]
        xs = jnp.concatenate(taps, axis=0)                     # (144, 56)
        return jnp.maximum(
            jnp.dot(w, xs, preferred_element_type=jnp.float32) + b, 0.0)  # (32,56)

    def body(i, carry):
        for r in range(ROWS_PER_ITER):               # statically unrolled
            ho = i * ROWS_PER_ITER + r
            v = jnp.maximum(conv_row(2 * ho), conv_row(2 * ho + 1))
            pooled = jnp.maximum(
                jnp.dot(v, se_ref[...], preferred_element_type=jnp.float32),
                jnp.dot(v, so_ref[...], preferred_element_type=jnp.float32))
            o_ref[0, ho, :, :] = pooled              # (32, 28)
        return carry

    lax.fori_loop(0, HP2 // ROWS_PER_ITER, body, 0)


# ----------------------------------------------------------------------------
# Fused fc1 (K-tiled, VMEM accumulator) + ReLU + fc2 + biases.
# ----------------------------------------------------------------------------
def _fc_kernel(x_ref, w1_ref, b1_ref, w2_ref, b2_ref, o_ref, acc_ref):
    k = pl.program_id(0)

    @pl.when(k == 0)
    def _():
        acc_ref[...] = jnp.zeros_like(acc_ref)

    acc_ref[...] += jnp.dot(x_ref[...], w1_ref[...],
                            preferred_element_type=jnp.float32)

    @pl.when(k == pl.num_programs(0) - 1)
    def _():
        h = jnp.maximum(acc_ref[...] + b1_ref[...], 0.0)       # (B, 256)
        o_ref[...] = (jnp.dot(h, w2_ref[...], preferred_element_type=jnp.float32)
                      + b2_ref[...]).astype(o_ref.dtype)


# ----------------------------------------------------------------------------
# pallas_call wrappers
# ----------------------------------------------------------------------------
def _conv1(xpad, kp):
    B, Hp, Wp = xpad.shape                       # (B, 114, 114)
    out_h = HP1 + 2
    return pl.pallas_call(
        _conv1_kernel,
        out_shape=jax.ShapeDtypeStruct((B, out_h, C1, out_h), jnp.float32),
        grid_spec=pltpu.PrefetchScalarGridSpec(
            num_scalar_prefetch=0,
            grid=(B,),
            in_specs=[
                pl.BlockSpec((1, Hp, Wp), lambda b: (b, 0, 0)),
                pl.BlockSpec((C1, 9), lambda b: (0, 0)),
                pl.BlockSpec((C1, 1), lambda b: (0, 0)),
                pl.BlockSpec((IMAGE_SIZE, HP1), lambda b: (0, 0)),
                pl.BlockSpec((IMAGE_SIZE, HP1), lambda b: (0, 0)),
            ],
            out_specs=pl.BlockSpec((1, out_h, C1, out_h), lambda b: (b, 0, 0, 0)),
        ),
        compiler_params=pltpu.CompilerParams(dimension_semantics=("parallel",)),
    )(xpad, kp["w1"], kp["b1"], kp["se1"], kp["so1"])


def _conv2(y1, kp):
    B = y1.shape[0]
    in_h = HP1 + 2
    return pl.pallas_call(
        _conv2_kernel,
        out_shape=jax.ShapeDtypeStruct((B, HP2, C2, HP2), jnp.float32),
        grid_spec=pltpu.PrefetchScalarGridSpec(
            num_scalar_prefetch=0,
            grid=(B,),
            in_specs=[
                pl.BlockSpec((1, in_h, C1, in_h), lambda b: (b, 0, 0, 0)),
                pl.BlockSpec((C2, 9 * C1), lambda b: (0, 0)),
                pl.BlockSpec((C2, 1), lambda b: (0, 0)),
                pl.BlockSpec((HP1, HP2), lambda b: (0, 0)),
                pl.BlockSpec((HP1, HP2), lambda b: (0, 0)),
            ],
            out_specs=pl.BlockSpec((1, HP2, C2, HP2), lambda b: (b, 0, 0, 0)),
        ),
        compiler_params=pltpu.CompilerParams(dimension_semantics=("parallel",)),
    )(y1, kp["w2"], kp["b2"], kp["se2"], kp["so2"])


def _fc(h, kp):
    B, K = h.shape
    assert K == FEAT and K % TK_FC == 0
    nk = K // TK_FC
    return pl.pallas_call(
        _fc_kernel,
        out_shape=jax.ShapeDtypeStruct((B, NUM_CLASSES), jnp.float32),
        grid_spec=pltpu.PrefetchScalarGridSpec(
            num_scalar_prefetch=0,
            grid=(nk,),
            in_specs=[
                pl.BlockSpec((B, TK_FC), lambda k: (0, k)),
                pl.BlockSpec((TK_FC, FC_HIDDEN), lambda k: (k, 0)),
                pl.BlockSpec((1, FC_HIDDEN), lambda k: (0, 0)),
                pl.BlockSpec((FC_HIDDEN, NUM_CLASSES), lambda k: (0, 0)),
                pl.BlockSpec((1, NUM_CLASSES), lambda k: (0, 0)),
            ],
            out_specs=pl.BlockSpec((B, NUM_CLASSES), lambda k: (0, 0)),
            scratch_shapes=[pltpu.VMEM((B, FC_HIDDEN), jnp.float32)],
        ),
        compiler_params=pltpu.CompilerParams(dimension_semantics=("arbitrary",)),
    )(h, kp["wf1"], kp["bf1"], kp["wf2"], kp["bf2"])


# ----------------------------------------------------------------------------
# Full forward pass
# ----------------------------------------------------------------------------
def simple_cnn_forward(x_nchw, kp):
    B = x_nchw.shape[0]
    x = x_nchw.reshape(B, IMAGE_SIZE, IMAGE_SIZE)          # C=1 squeezed
    xpad = jnp.pad(x, ((0, 0), (1, 1), (1, 1)))            # tiny (~100 KB) halo pad
    y1 = _conv1(xpad, kp)                                  # (B, 58, 16, 58), halo baked
    y2 = _conv2(y1, kp)                                    # (B, 28, 32, 28) = (h, c, w)
    h = y2.reshape(B, FEAT)                                # (h, c, w) order
    return _fc(h, kp)                                      # wf1 rows pre-permuted


# ----------------------------------------------------------------------------
# Parameters (torch-canonical) + kernel-layout preparation
# ----------------------------------------------------------------------------
def init_params(key):
    ks = jax.random.split(key, 8)

    def u(k, shape, fan_in):
        bound = 1.0 / float(fan_in) ** 0.5
        return jax.random.uniform(k, shape, jnp.float32, -bound, bound)

    return dict(
        w1=u(ks[0], (C1, 1, 3, 3), 9), b1=u(ks[1], (C1,), 9),
        w2=u(ks[2], (C2, C1, 3, 3), C1 * 9), b2=u(ks[3], (C2,), C1 * 9),
        wf1=u(ks[4], (FC_HIDDEN, FEAT), FEAT), bf1=u(ks[5], (FC_HIDDEN,), FEAT),
        wf2=u(ks[6], (NUM_CLASSES, FC_HIDDEN), FC_HIDDEN),
        bf2=u(ks[7], (NUM_CLASSES,), FC_HIDDEN),
    )


def _pool_select(n):
    # 0/1 column-selection matrices: (x @ se)[:, k] = x[:, 2k],  (x @ so)[:, k] = x[:, 2k+1]
    idx = jnp.arange(n)[:, None]
    col = jnp.arange(n // 2)[None, :]
    se = (idx == 2 * col).astype(jnp.float32)
    so = (idx == 2 * col + 1).astype(jnp.float32)
    return se, so


def prepare_params(p):
    se1, so1 = _pool_select(IMAGE_SIZE)            # (112, 56)
    se2, so2 = _pool_select(HP1)                   # (56, 28)
    # fold the NCHW-flatten -> (h, c, w)-flatten permutation into fc1's rows
    wf1_rows = p["wf1"].T.reshape(C2, HP2, HP2, FC_HIDDEN)          # [c, h, w, n]
    wf1_k = jnp.transpose(wf1_rows, (1, 0, 2, 3)).reshape(FEAT, FC_HIDDEN)
    return dict(
        w1=p["w1"].reshape(C1, 9),                                   # (co, dh*3+dw)
        b1=p["b1"].reshape(C1, 1),
        w2=jnp.transpose(p["w2"], (0, 2, 3, 1)).reshape(C2, 9 * C1), # (co, (dh,dw,ci))
        b2=p["b2"].reshape(C2, 1),
        wf1=wf1_k, bf1=p["bf1"].reshape(1, FC_HIDDEN),
        wf2=p["wf2"].T, bf2=p["bf2"].reshape(1, NUM_CLASSES),
        se1=se1, so1=so1, se2=se2, so2=so2,
    )


# Pure-JAX reference (same semantics as the PyTorch module, torch-canonical params).
def ref_forward(x_nchw, p):
    def block(h, w, b):
        y = lax.conv_general_dilated(
            h, w, (1, 1), "SAME", dimension_numbers=("NCHW", "OIHW", "NCHW"))
        y = jax.nn.relu(y + b[None, :, None, None])
        return lax.reduce_window(y, -jnp.inf, lax.max,
                                 (1, 1, 2, 2), (1, 1, 2, 2), "VALID")

    h = block(x_nchw, p["w1"], p["b1"])
    h = block(h, p["w2"], p["b2"])
    B = h.shape[0]
    h = h.reshape(B, -1)
    h = jax.nn.relu(h @ p["wf1"].T + p["bf1"])
    return h @ p["wf2"].T + p["bf2"]


if __name__ == "__main__":
    key = jax.random.PRNGKey(0)
    pkey, xkey = jax.random.split(key)
    params = init_params(pkey)
    kparams = prepare_params(params)
    x = jax.random.normal(xkey, (2, 1, IMAGE_SIZE, IMAGE_SIZE), jnp.float32)

    fwd = jax.jit(simple_cnn_forward)
    out = jax.block_until_ready(fwd(x, kparams))
    assert out.shape == (2, NUM_CLASSES) and out.dtype == jnp.float32

    ref = ref_forward(x, params)
    assert jnp.allclose(out, ref, rtol=1e-2, atol=1e-2), float(
        jnp.max(jnp.abs(out - ref)))

    print("KERNEL_OK")
</pallas_src>

<mosaic_0001>
module attributes {stable_mosaic.version = 11 : i64} {
  func.func @_conv1_kernel(%arg0: i32, %arg1: memref<1x114x114xf32, #tpu.memory_space<vmem>>, %arg2: memref<16x9xf32, #tpu.memory_space<vmem>>, %arg3: memref<16x1xf32, #tpu.memory_space<vmem>>, %arg4: memref<112x56xf32, #tpu.memory_space<vmem>>, %arg5: memref<112x56xf32, #tpu.memory_space<vmem>>, %arg6: memref<1x58x16x58xf32, #tpu.memory_space<vmem>>) attributes {dimension_semantics = [#tpu.dimension_semantics<parallel>], iteration_bounds = array<i64: 2>, scalar_prefetch = 0 : i64, scratch_operands = 0 : i64, tpu.core_type = #tpu.core_type<tc>, window_params = [{transform_indices = @transform_0, window_bounds = array<i64: 1, 114, 114>}, {pipeline_mode = #tpu.pipeline_mode<synchronous>, transform_indices = @transform_1, window_bounds = array<i64: 16, 9>}, {pipeline_mode = #tpu.pipeline_mode<synchronous>, transform_indices = @transform_2, window_bounds = array<i64: 16, 1>}, {pipeline_mode = #tpu.pipeline_mode<synchronous>, transform_indices = @transform_3, window_bounds = array<i64: 112, 56>}, {pipeline_mode = #tpu.pipeline_mode<synchronous>, transform_indices = @transform_4, window_bounds = array<i64: 112, 56>}, {transform_indices = @transform_5, window_bounds = array<i64: 1, 58, 16, 58>}]} {
    %c0 = arith.constant 0 : index
    %c0_0 = arith.constant 0 : index
    %0 = vector.load %arg2[%c0, %c0_0] : memref<16x9xf32, #tpu.memory_space<vmem>>, vector<16x9xf32>
    %c0_1 = arith.constant 0 : index
    %c0_2 = arith.constant 0 : index
    %1 = vector.load %arg3[%c0_1, %c0_2] : memref<16x1xf32, #tpu.memory_space<vmem>>, vector<16x1xf32>
    %cst = arith.constant 0.000000e+00 : f32
    %2 = vector.broadcast %cst : f32 to vector<16x58xf32>
    %c0_3 = arith.constant 0 : index
    %c0_4 = arith.constant 0 : index
    %c0_5 = arith.constant 0 : index
    %c0_6 = arith.constant 0 : index
    %3 = vector.load %arg6[%c0_3, %c0_4, %c0_5, %c0_6] : memref<1x58x16x58xf32, #tpu.memory_space<vmem>>, vector<1x1x16x58xf32>
    %4 = vector.shape_cast %3 : vector<1x1x16x58xf32> to vector<16x58xf32>
    %5 = vector.shape_cast %2 : vector<16x58xf32> to vector<1x1x16x58xf32>
    tpu.vector_store %arg6[%c0_3, %c0_4, %c0_5, %c0_6], %5 {strides = array<i32>} : memref<1x58x16x58xf32, #tpu.memory_space<vmem>>, vector<1x1x16x58xf32>,
    %c0_7 = arith.constant 0 : index
    %c57 = arith.constant 57 : index
    %c0_8 = arith.constant 0 : index
    %c0_9 = arith.constant 0 : index
    %6 = vector.load %arg6[%c0_7, %c57, %c0_8, %c0_9] : memref<1x58x16x58xf32, #tpu.memory_space<vmem>>, vector<1x1x16x58xf32>
    %7 = vector.shape_cast %6 : vector<1x1x16x58xf32> to vector<16x58xf32>
    %8 = vector.shape_cast %2 : vector<16x58xf32> to vector<1x1x16x58xf32>
    tpu.vector_store %arg6[%c0_7, %c57, %c0_8, %c0_9], %8 {strides = array<i32>} : memref<1x58x16x58xf32, #tpu.memory_space<vmem>>, vector<1x1x16x58xf32>,
    %cst_10 = arith.constant 0.000000e+00 : f32
    %9 = vector.broadcast %cst_10 : f32 to vector<16x1xf32>
    %c0_i32 = arith.constant 0 : i32
    %c14_i32 = arith.constant 14 : i32
    %10 = arith.addi %c0_i32, %c14_i32 : i32
    %c1_i32 = arith.constant 1 : i32
    scf.for %arg7 = %c0_i32 to %10 step %c1_i32  : i32 {
      %c4_i32 = arith.constant 4 : i32
      %11 = arith.muli %arg7, %c4_i32 : i32
      %c0_i32_12 = arith.constant 0 : i32
      %12 = arith.addi %11, %c0_i32_12 : i32
      %c2_i32 = arith.constant 2 : i32
      %13 = arith.muli %c2_i32, %12 : i32
      %cst_13 = arith.constant 0.000000e+00 : f32
      %14 = vector.broadcast %cst_13 : f32 to vector<16x112xf32>
      %c0_i32_14 = arith.constant 0 : i32
      %15 = arith.addi %13, %c0_i32_14 : i32
      %c0_15 = arith.constant 0 : index
      %16 = arith.index_cast %15 : i32 to index
      %c0_16 = arith.constant 0 : index
      %17 = vector.load %arg1[%c0_15, %16, %c0_16] : memref<1x114x114xf32, #tpu.memory_space<vmem>>, vector<1x1x112xf32>
      %18 = vector.shape_cast %17 : vector<1x1x112xf32> to vector<1x112xf32>
      %19 = vector.extract_strided_slice %0 {offsets = [0, 0], sizes = [16, 1], strides = [1, 1]} : vector<16x9xf32> to vector<16x1xf32>
      %20 = vector.broadcast %19 : vector<16x1xf32> to vector<16x112xf32>
      %21 = vector.broadcast %18 : vector<1x112xf32> to vector<16x112xf32>
      %22 = arith.mulf %20, %21 : vector<16x112xf32>
      %23 = arith.addf %14, %22 : vector<16x112xf32>
      %c0_i32_17 = arith.constant 0 : i32
      %24 = arith.addi %13, %c0_i32_17 : i32
      %c0_18 = arith.constant 0 : index
      %25 = arith.index_cast %24 : i32 to index
      %c1 = arith.constant 1 : index
      %26 = vector.load %arg1[%c0_18, %25, %c1] : memref<1x114x114xf32, #tpu.memory_space<vmem>>, vector<1x1x112xf32>
      %27 = vector.shape_cast %26 : vector<1x1x112xf32> to vector<1x112xf32>
      %28 = vector.extract_strided_slice %0 {offsets = [0, 1], sizes = [16, 1], strides = [1, 1]} : vector<16x9xf32> to vector<16x1xf32>
      %29 = vector.broadcast %28 : vector<16x1xf32> to vector<16x112xf32>
      %30 = vector.broadcast %27 : vector<1x112xf32> to vector<16x112xf32>
      %31 = arith.mulf %29, %30 : vector<16x112xf32>
      %32 = arith.addf %23, %31 : vector<16x112xf32>
      %c0_i32_19 = arith.constant 0 : i32
      %33 = arith.addi %13, %c0_i32_19 : i32
      %c0_20 = arith.constant 0 : index
      %34 = arith.index_cast %33 : i32 to index
      %c2 = arith.constant 2 : index
      %35 = vector.load %arg1[%c0_20, %34, %c2] : memref<1x114x114xf32, #tpu.memory_space<vmem>>, vector<1x1x112xf32>
      %36 = vector.shape_cast %35 : vector<1x1x112xf32> to vector<1x112xf32>
      %37 = vector.extract_strided_slice %0 {offsets = [0, 2], sizes = [16, 1], strides = [1, 1]} : vector<16x9xf32> to vector<16x1xf32>
      %38 = vector.broadcast %37 : vector<16x1xf32> to vector<16x112xf32>
      %39 = vector.broadcast %36 : vector<1x112xf32> to vector<16x112xf32>
      %40 = arith.mulf %38, %39 : vector<16x112xf32>
      %41 = arith.addf %32, %40 : vector<16x112xf32>
      %c1_i32_21 = arith.constant 1 : i32
      %42 = arith.addi %13, %c1_i32_21 : i32
      %c0_22 = arith.constant 0 : index
      %43 = arith.index_cast %42 : i32 to index
      %c0_23 = arith.constant 0 : index
      %44 = vector.load %arg1[%c0_22, %43, %c0_23] : memref<1x114x114xf32, #tpu.memory_space<vmem>>, vector<1x1x112xf32>
      %45 = vector.shape_cast %44 : vector<1x1x112xf32> to vector<1x112xf32>
      %46 = vector.extract_strided_slice %0 {offsets = [0, 3], sizes = [16, 1], strides = [1, 1]} : vector<16x9xf32> to vector<16x1xf32>
      %47 = vector.broadcast %46 : vector<16x1xf32> to vector<16x112xf32>
      %48 = vector.broadcast %45 : vector<1x112xf32> to vector<16x112xf32>
      %49 = arith.mulf %47, %48 : vector<16x112xf32>
      %50 = arith.addf %41, %49 : vector<16x112xf32>
      %c1_i32_24 = arith.constant 1 : i32
      %51 = arith.addi %13, %c1_i32_24 : i32
      %c0_25 = arith.constant 0 : index
      %52 = arith.index_cast %51 : i32 to index
      %c1_26 = arith.constant 1 : index
      %53 = vector.load %arg1[%c0_25, %52, %c1_26] : memref<1x114x114xf32, #tpu.memory_space<vmem>>, vector<1x1x112xf32>
      %54 = vector.shape_cast %53 : vector<1x1x112xf32> to vector<1x112xf32>
      %55 = vector.extract_strided_slice %0 {offsets = [0, 4], sizes = [16, 1], strides = [1, 1]} : vector<16x9xf32> to vector<16x1xf32>
      %56 = vector.broadcast %55 : vector<16x1xf32> to vector<16x112xf32>
      %57 = vector.broadcast %54 : vector<1x112xf32> to vector<16x112xf32>
      %58 = arith.mulf %56, %57 : vector<16x112xf32>
      %59 = arith.addf %50, %58 : vector<16x112xf32>
      %c1_i32_27 = arith.constant 1 : i32
      %60 = arith.addi %13, %c1_i32_27 : i32
      %c0_28 = arith.constant 0 : index
      %61 = arith.index_cast %60 : i32 to index
      %c2_29 = arith.constant 2 : index
      %62 = vector.load %arg1[%c0_28, %61, %c2_29] : memref<1x114x114xf32, #tpu.memory_space<vmem>>, vector<1x1x112xf32>
      %63 = vector.shape_cast %62 : vector<1x1x112xf32> to vector<1x112xf32>
      %64 = vector.extract_strided_slice %0 {offsets = [0, 5], sizes = [16, 1], strides = [1, 1]} : vector<16x9xf32> to vector<16x1xf32>
      %65 = vector.broadcast %64 : vector<16x1xf32> to vector<16x112xf32>
      %66 = vector.broadcast %63 : vector<1x112xf32> to vector<16x112xf32>
      %67 = arith.mulf %65, %66 : vector<16x112xf32>
      %68 = arith.addf %59, %67 : vector<16x112xf32>
      %c2_i32_30 = arith.constant 2 : i32
      %69 = arith.addi %13, %c2_i32_30 : i32
      %c0_31 = arith.constant 0 : index
      %70 = arith.index_cast %69 : i32 to index
      %c0_32 = arith.constant 0 : index
      %71 = vector.load %arg1[%c0_31, %70, %c0_32] : memref<1x114x114xf32, #tpu.memory_space<vmem>>, vector<1x1x112xf32>
      %72 = vector.shape_cast %71 : vector<1x1x112xf32> to vector<1x112xf32>
      %73 = vector.extract_strided_slice %0 {offsets = [0, 6], sizes = [16, 1], strides = [1, 1]} : vector<16x9xf32> to vector<16x1xf32>
      %74 = vector.broadcast %73 : vector<16x1xf32> to vector<16x112xf32>
      %75 = vector.broadcast %72 : vector<1x112xf32> to vector<16x112xf32>
      %76 = arith.mulf %74, %75 : vector<16x112xf32>
      %77 = arith.addf %68, %76 : vector<16x112xf32>
      %c2_i32_33 = arith.constant 2 : i32
      %78 = arith.addi %13, %c2_i32_33 : i32
      %c0_34 = arith.constant 0 : index
      %79 = arith.index_cast %78 : i32 to index
      %c1_35 = arith.constant 1 : index
      %80 = vector.load %arg1[%c0_34, %79, %c1_35] : memref<1x114x114xf32, #tpu.memory_space<vmem>>, vector<1x1x112xf32>
      %81 = vector.shape_cast %80 : vector<1x1x112xf32> to vector<1x112xf32>
      %82 = vector.extract_strided_slice %0 {offsets = [0, 7], sizes = [16, 1], strides = [1, 1]} : vector<16x9xf32> to vector<16x1xf32>
      %83 = vector.broadcast %82 : vector<16x1xf32> to vector<16x112xf32>
      %84 = vector.broadcast %81 : vector<1x112xf32> to vector<16x112xf32>
      %85 = arith.mulf %83, %84 : vector<16x112xf32>
      %86 = arith.addf %77, %85 : vector<16x112xf32>
      %c2_i32_36 = arith.constant 2 : i32
      %87 = arith.addi %13, %c2_i32_36 : i32
      %c0_37 = arith.constant 0 : index
      %88 = arith.index_cast %87 : i32 to index
      %c2_38 = arith.constant 2 : index
      %89 = vector.load %arg1[%c0_37, %88, %c2_38] : memref<1x114x114xf32, #tpu.memory_space<vmem>>, vector<1x1x112xf32>
      %90 = vector.shape_cast %89 : vector<1x1x112xf32> to vector<1x112xf32>
      %91 = vector.extract_strided_slice %0 {offsets = [0, 8], sizes = [16, 1], strides = [1, 1]} : vector<16x9xf32> to vector<16x1xf32>
      %92 = vector.broadcast %91 : vector<16x1xf32> to vector<16x112xf32>
      %93 = vector.broadcast %90 : vector<1x112xf32> to vector<16x112xf32>
      %94 = arith.mulf %92, %93 : vector<16x112xf32>
      %95 = arith.addf %86, %94 : vector<16x112xf32>
      %96 = vector.broadcast %1 : vector<16x1xf32> to vector<16x112xf32>
      %97 = arith.addf %95, %96 : vector<16x112xf32>
      %cst_39 = arith.constant 0.000000e+00 : f32
      %98 = vector.broadcast %cst_39 : f32 to vector<16x112xf32>
      %99 = arith.maximumf %97, %98 : vector<16x112xf32>
      %c2_i32_40 = arith.constant 2 : i32
      %100 = arith.muli %c2_i32_40, %12 : i32
      %c1_i32_41 = arith.constant 1 : i32
      %101 = arith.addi %100, %c1_i32_41 : i32
      %cst_42 = arith.constant 0.000000e+00 : f32
      %102 = vector.broadcast %cst_42 : f32 to vector<16x112xf32>
      %c0_i32_43 = arith.constant 0 : i32
      %103 = arith.addi %101, %c0_i32_43 : i32
      %c0_44 = arith.constant 0 : index
      %104 = arith.index_cast %103 : i32 to index
      %c0_45 = arith.constant 0 : index
      %105 = vector.load %arg1[%c0_44, %104, %c0_45] : memref<1x114x114xf32, #tpu.memory_space<vmem>>, vector<1x1x112xf32>
      %106 = vector.shape_cast %105 : vector<1x1x112xf32> to vector<1x112xf32>
      %107 = vector.extract_strided_slice %0 {offsets = [0, 0], sizes = [16, 1], strides = [1, 1]} : vector<16x9xf32> to vector<16x1xf32>
      %108 = vector.broadcast %107 : vector<16x1xf32> to vector<16x112xf32>
      %109 = vector.broadcast %106 : vector<1x112xf32> to vector<16x112xf32>
      %110 = arith.mulf %108, %109 : vector<16x112xf32>
      %111 = arith.addf %102, %110 : vector<16x112xf32>
      %c0_i32_46 = arith.constant 0 : i32
      %112 = arith.addi %101, %c0_i32_46 : i32
      %c0_47 = arith.constant 0 : index
      %113 = arith.index_cast %112 : i32 to index
      %c1_48 = arith.constant 1 : index
      %114 = vector.load %arg1[%c0_47, %113, %c1_48] : memref<1x114x114xf32, #tpu.memory_space<vmem>>, vector<1x1x112xf32>
      %115 = vector.shape_cast %114 : vector<1x1x112xf32> to vector<1x112xf32>
      %116 = vector.extract_strided_slice %0 {offsets = [0, 1], sizes = [16, 1], strides = [1, 1]} : vector<16x9xf32> to vector<16x1xf32>
      %117 = vector.broadcast %116 : vector<16x1xf32> to vector<16x112xf32>
      %118 = vector.broadcast %115 : vector<1x112xf32> to vector<16x112xf32>
      %119 = arith.mulf %117, %118 : vector<16x112xf32>
      %120 = arith.addf %111, %119 : vector<16x112xf32>
      %c0_i32_49 = arith.constant 0 : i32
      %121 = arith.addi %101, %c0_i32_49 : i32
      %c0_50 = arith.constant 0 : index
      %122 = arith.index_cast %121 : i32 to index
      %c2_51 = arith.constant 2 : index
      %123 = vector.load %arg1[%c0_50, %122, %c2_51] : memref<1x114x114xf32, #tpu.memory_space<vmem>>, vector<1x1x112xf32>
      %124 = vector.shape_cast %123 : vector<1x1x112xf32> to vector<1x112xf32>
      %125 = vector.extract_strided_slice %0 {offsets = [0, 2], sizes = [16, 1], strides = [1, 1]} : vector<16x9xf32> to vector<16x1xf32>
      %126 = vector.broadcast %125 : vector<16x1xf32> to vector<16x112xf32>
      %127 = vector.broadcast %124 : vector<1x112xf32> to vector<16x112xf32>
      %128 = arith.mulf %126, %127 : vector<16x112xf32>
      %129 = arith.addf %120, %128 : vector<16x112xf32>
      %c1_i32_52 = arith.constant 1 : i32
      %130 = arith.addi %101, %c1_i32_52 : i32
      %c0_53 = arith.constant 0 : index
      %131 = arith.index_cast %130 : i32 to index
      %c0_54 = arith.constant 0 : index
      %132 = vector.load %arg1[%c0_53, %131, %c0_54] : memref<1x114x114xf32, #tpu.memory_space<vmem>>, vector<1x1x112xf32>
      %133 = vector.shape_cast %132 : vector<1x1x112xf32> to vector<1x112xf32>
      %134 = vector.extract_strided_slice %0 {offsets = [0, 3], sizes = [16, 1], strides = [1, 1]} : vector<16x9xf32> to vector<16x1xf32>
      %135 = vector.broadcast %134 : vector<16x1xf32> to vector<16x112xf32>
      %136 = vector.broadcast %133 : vector<1x112xf32> to vector<16x112xf32>
      %137 = arith.mulf %135, %136 : vector<16x112xf32>
      %138 = arith.addf %129, %137 : vector<16x112xf32>
      %c1_i32_55 = arith.constant 1 : i32
      %139 = arith.addi %101, %c1_i32_55 : i32
      %c0_56 = arith.constant 0 : index
      %140 = arith.index_cast %139 : i32 to index
      %c1_57 = arith.constant 1 : index
      %141 = vector.load %arg1[%c0_56, %140, %c1_57] : memref<1x114x114xf32, #tpu.memory_space<vmem>>, vector<1x1x112xf32>
      %142 = vector.shape_cast %141 : vector<1x1x112xf32> to vector<1x112xf32>
      %143 = vector.extract_strided_slice %0 {offsets = [0, 4], sizes = [16, 1], strides = [1, 1]} : vector<16x9xf32> to vector<16x1xf32>
      %144 = vector.broadcast %143 : vector<16x1xf32> to vector<16x112xf32>
      %145 = vector.broadcast %142 : vector<1x112xf32> to vector<16x112xf32>
      %146 = arith.mulf %144, %145 : vector<16x112xf32>
      %147 = arith.addf %138, %146 : vector<16x112xf32>
      %c1_i32_58 = arith.constant 1 : i32
      %148 = arith.addi %101, %c1_i32_58 : i32
      %c0_59 = arith.constant 0 : index
      %149 = arith.index_cast %148 : i32 to index
      %c2_60 = arith.constant 2 : index
      %150 = vector.load %arg1[%c0_59, %149, %c2_60] : memref<1x114x114xf32, #tpu.memory_space<vmem>>, vector<1x1x112xf32>
      %151 = vector.shape_cast %150 : vector<1x1x112xf32> to vector<1x112xf32>
      %152 = vector.extract_strided_slice %0 {offsets = [0, 5], sizes = [16, 1], strides = [1, 1]} : vector<16x9xf32> to vector<16x1xf32>
      %153 = vector.broadcast %152 : vector<16x1xf32> to vector<16x112xf32>
      %154 = vector.broadcast %151 : vector<1x112xf32> to vector<16x112xf32>
      %155 = arith.mulf %153, %154 : vector<16x112xf32>
      %156 = arith.addf %147, %155 : vector<16x112xf32>
      %c2_i32_61 = arith.constant 2 : i32
      %157 = arith.addi %101, %c2_i32_61 : i32
      %c0_62 = arith.constant 0 : index
      %158 = arith.index_cast %157 : i32 to index
      %c0_63 = arith.constant 0 : index
      %159 = vector.load %arg1[%c0_62, %158, %c0_63] : memref<1x114x114xf32, #tpu.memory_space<vmem>>, vector<1x1x112xf32>
      %160 = vector.shape_cast %159 : vector<1x1x112xf32> to vector<1x112xf32>
      %161 = vector.extract_strided_slice %0 {offsets = [0, 6], sizes = [16, 1], strides = [1, 1]} : vector<16x9xf32> to vector<16x1xf32>
      %162 = vector.broadcast %161 : vector<16x1xf32> to vector<16x112xf32>
      %163 = vector.broadcast %160 : vector<1x112xf32> to vector<16x112xf32>
      %164 = arith.mulf %162, %163 : vector<16x112xf32>
      %165 = arith.addf %156, %164 : vector<16x112xf32>
      %c2_i32_64 = arith.constant 2 : i32
      %166 = arith.addi %101, %c2_i32_64 : i32
      %c0_65 = arith.constant 0 : index
      %167 = arith.index_cast %166 : i32 to index
      %c1_66 = arith.constant 1 : index
      %168 = vector.load %arg1[%c0_65, %167, %c1_66] : memref<1x114x114xf32, #tpu.memory_space<vmem>>, vector<1x1x112xf32>
      %169 = vector.shape_cast %168 : vector<1x1x112xf32> to vector<1x112xf32>
      %170 = vector.extract_strided_slice %0 {offsets = [0, 7], sizes = [16, 1], strides = [1, 1]} : vector<16x9xf32> to vector<16x1xf32>
      %171 = vector.broadcast %170 : vector<16x1xf32> to vector<16x112xf32>
      %172 = vector.broadcast %169 : vector<1x112xf32> to vector<16x112xf32>
      %173 = arith.mulf %171, %172 : vector<16x112xf32>
      %174 = arith.addf %165, %173 : vector<16x112xf32>
      %c2_i32_67 = arith.constant 2 : i32
      %175 = arith.addi %101, %c2_i32_67 : i32
      %c0_68 = arith.constant 0 : index
      %176 = arith.index_cast %175 : i32 to index
      %c2_69 = arith.constant 2 : index
      %177 = vector.load %arg1[%c0_68, %176, %c2_69] : memref<1x114x114xf32, #tpu.memory_space<vmem>>, vector<1x1x112xf32>
      %178 = vector.shape_cast %177 : vector<1x1x112xf32> to vector<1x112xf32>
      %179 = vector.extract_strided_slice %0 {offsets = [0, 8], sizes = [16, 1], strides = [1, 1]} : vector<16x9xf32> to vector<16x1xf32>
      %180 = vector.broadcast %179 : vector<16x1xf32> to vector<16x112xf32>
      %181 = vector.broadcast %178 : vector<1x112xf32> to vector<16x112xf32>
      %182 = arith.mulf %180, %181 : vector<16x112xf32>
      %183 = arith.addf %174, %182 : vector<16x112xf32>
      %184 = vector.broadcast %1 : vector<16x1xf32> to vector<16x112xf32>
      %185 = arith.addf %183, %184 : vector<16x112xf32>
      %cst_70 = arith.constant 0.000000e+00 : f32
      %186 = vector.broadcast %cst_70 : f32 to vector<16x112xf32>
      %187 = arith.maximumf %185, %186 : vector<16x112xf32>
      %188 = arith.maximumf %99, %187 : vector<16x112xf32>
      %c0_71 = arith.constant 0 : index
      %c0_72 = arith.constant 0 : index
      %189 = vector.load %arg4[%c0_71, %c0_72] : memref<112x56xf32, #tpu.memory_space<vmem>>, vector<112x56xf32>
      %cst_73 = arith.constant dense<0.000000e+00> : vector<16x56xf32>
      %190 = tpu.matmul %188, %189, %cst_73 {dimension_numbers = #tpu.dot_dimension_numbers<[1], [0], [0], [1], [0, 0, 1, 1], [], []>} : vector<16x112xf32>, vector<112x56xf32>, vector<16x56xf32> -> vector<16x56xf32>
      %c0_74 = arith.constant 0 : index
      %c0_75 = arith.constant 0 : index
      %191 = vector.load %arg5[%c0_74, %c0_75] : memref<112x56xf32, #tpu.memory_space<vmem>>, vector<112x56xf32>
      %cst_76 = arith.constant dense<0.000000e+00> : vector<16x56xf32>
      %192 = tpu.matmul %188, %191, %cst_76 {dimension_numbers = #tpu.dot_dimension_numbers<[1], [0], [0], [1], [0, 0, 1, 1], [], []>} : vector<16x112xf32>, vector<112x56xf32>, vector<16x56xf32> -> vector<16x56xf32>
      %193 = arith.maximumf %190, %192 : vector<16x56xf32>
      %194 = tpu.concatenate %9, %193, %9 in 1 : vector<16x1xf32>, vector<16x56xf32>, vector<16x1xf32> -> vector<16x58xf32>
      %c1_i32_77 = arith.constant 1 : i32
      %195 = arith.addi %c1_i32_77, %12 : i32
      %c0_78 = arith.constant 0 : index
      %196 = arith.index_cast %195 : i32 to index
      %c0_79 = arith.constant 0 : index
      %c0_80 = arith.constant 0 : index
      %197 = vector.load %arg6[%c0_78, %196, %c0_79, %c0_80] : memref<1x58x16x58xf32, #tpu.memory_space<vmem>>, vector<1x1x16x58xf32>
      %198 = vector.shape_cast %197 : vector<1x1x16x58xf32> to vector<16x58xf32>
      %199 = vector.shape_cast %194 : vector<16x58xf32> to vector<1x1x16x58xf32>
      tpu.vector_store %arg6[%c0_78, %196, %c0_79, %c0_80], %199 {strides = array<i32>} : memref<1x58x16x58xf32, #tpu.memory_space<vmem>>, vector<1x1x16x58xf32>,
      %c4_i32_81 = arith.constant 4 : i32
      %200 = arith.muli %arg7, %c4_i32_81 : i32
      %c1_i32_82 = arith.constant 1 : i32
      %201 = arith.addi %200, %c1_i32_82 : i32
      %c2_i32_83 = arith.constant 2 : i32
      %202 = arith.muli %c2_i32_83, %201 : i32
      %cst_84 = arith.constant 0.000000e+00 : f32
      %203 = vector.broadcast %cst_84 : f32 to vector<16x112xf32>
      %c0_i32_85 = arith.constant 0 : i32
      %204 = arith.addi %202, %c0_i32_85 : i32
      %c0_86 = arith.constant 0 : index
      %205 = arith.index_cast %204 : i32 to index
      %c0_87 = arith.constant 0 : index
      %206 = vector.load %arg1[%c0_86, %205, %c0_87] : memref<1x114x114xf32, #tpu.memory_space<vmem>>, vector<1x1x112xf32>
      %207 = vector.shape_cast %206 : vector<1x1x112xf32> to vector<1x112xf32>
      %208 = vector.extract_strided_slice %0 {offsets = [0, 0], sizes = [16, 1], strides = [1, 1]} : vector<16x9xf32> to vector<16x1xf32>
      %209 = vector.broadcast %208 : vector<16x1xf32> to vector<16x112xf32>
      %210 = vector.broadcast %207 : vector<1x112xf32> to vector<16x112xf32>
      %211 = arith.mulf %209, %210 : vector<16x112xf32>
      %212 = arith.addf %203, %211 : vector<16x112xf32>
      %c0_i32_88 = arith.constant 0 : i32
      %213 = arith.addi %202, %c0_i32_88 : i32
      %c0_89 = arith.constant 0 : index
      %214 = arith.index_cast %213 : i32 to index
      %c1_90 = arith.constant 1 : index
      %215 = vector.load %arg1[%c0_89, %214, %c1_90] : memref<1x114x114xf32, #tpu.memory_space<vmem>>, vector<1x1x112xf32>
      %216 = vector.shape_cast %215 : vector<1x1x112xf32> to vector<1x112xf32>
      %217 = vector.extract_strided_slice %0 {offsets = [0, 1], sizes = [16, 1], strides = [1, 1]} : vector<16x9xf32> to vector<16x1xf32>
      %218 = vector.broadcast %217 : vector<16x1xf32> to vector<16x112xf32>
      %219 = vector.broadcast %216 : vector<1x112xf32> to vector<16x112xf32>
      %220 = arith.mulf %218, %219 : vector<16x112xf32>
      %221 = arith.addf %212, %220 : vector<16x112xf32>
      %c0_i32_91 = arith.constant 0 : i32
      %222 = arith.addi %202, %c0_i32_91 : i32
      %c0_92 = arith.constant 0 : index
      %223 = arith.index_cast %222 : i32 to index
      %c2_93 = arith.constant 2 : index
      %224 = vector.load %arg1[%c0_92, %223, %c2_93] : memref<1x114x114xf32, #tpu.memory_space<vmem>>, vector<1x1x112xf32>
      %225 = vector.shape_cast %224 : vector<1x1x112xf32> to vector<1x112xf32>
      %226 = vector.extract_strided_slice %0 {offsets = [0, 2], sizes = [16, 1], strides = [1, 1]} : vector<16x9xf32> to vector<16x1xf32>
      %227 = vector.broadcast %226 : vector<16x1xf32> to vector<16x112xf32>
      %228 = vector.broadcast %225 : vector<1x112xf32> to vector<16x112xf32>
      %229 = arith.mulf %227, %228 : vector<16x112xf32>
      %230 = arith.addf %221, %229 : vector<16x112xf32>
      %c1_i32_94 = arith.constant 1 : i32
      %231 = arith.addi %202, %c1_i32_94 : i32
      %c0_95 = arith.constant 0 : index
      %232 = arith.index_cast %231 : i32 to index
      %c0_96 = arith.constant 0 : index
      %233 = vector.load %arg1[%c0_95, %232, %c0_96] : memref<1x114x114xf32, #tpu.memory_space<vmem>>, vector<1x1x112xf32>
      %234 = vector.shape_cast %233 : vector<1x1x112xf32> to vector<1x112xf32>
      %235 = vector.extract_strided_slice %0 {offsets = [0, 3], sizes = [16, 1], strides = [1, 1]} : vector<16x9xf32> to vector<16x1xf32>
      %236 = vector.broadcast %235 : vector<16x1xf32> to vector<16x112xf32>
      %237 = vector.broadcast %234 : vector<1x112xf32> to vector<16x112xf32>
      %238 = arith.mulf %236, %237 : vector<16x112xf32>
      %239 = arith.addf %230, %238 : vector<16x112xf32>
      %c1_i32_97 = arith.constant 1 : i32
      %240 = arith.addi %202, %c1_i32_97 : i32
      %c0_98 = arith.constant 0 : index
      %241 = arith.index_cast %240 : i32 to index
      %c1_99 = arith.constant 1 : index
      %242 = vector.load %arg1[%c0_98, %241, %c1_99] : memref<1x114x114xf32, #tpu.memory_space<vmem>>, vector<1x1x112xf32>
      %243 = vector.shape_cast %242 : vector<1x1x112xf32> to vector<1x112xf32>
      %244 = vector.extract_strided_slice %0 {offsets = [0, 4], sizes = [16, 1], strides = [1, 1]} : vector<16x9xf32> to vector<16x1xf32>
      %245 = vector.broadcast %244 : vector<16x1xf32> to vector<16x112xf32>
      %246 = vector.broadcast %243 : vector<1x112xf32> to vector<16x112xf32>
      %247 = arith.mulf %245, %246 : vector<16x112xf32>
      %248 = arith.addf %239, %247 : vector<16x112xf32>
      %c1_i32_100 = arith.constant 1 : i32
      %249 = arith.addi %202, %c1_i32_100 : i32
      %c0_101 = arith.constant 0 : index
      %250 = arith.index_cast %249 : i32 to index
      %c2_102 = arith.constant 2 : index
      %251 = vector.load %arg1[%c0_101, %250, %c2_102] : memref<1x114x114xf32, #tpu.memory_space<vmem>>, vector<1x1x112xf32>
      %252 = vector.shape_cast %251 : vector<1x1x112xf32> to vector<1x112xf32>
      %253 = vector.extract_strided_slice %0 {offsets = [0, 5], sizes = [16, 1], strides = [1, 1]} : vector<16x9xf32> to vector<16x1xf32>
      %254 = vector.broadcast %253 : vector<16x1xf32> to vector<16x112xf32>
      %255 = vector.broadcast %252 : vector<1x112xf32> to vector<16x112xf32>
      %256 = arith.mulf %254, %255 : vector<16x112xf32>
      %257 = arith.addf %248, %256 : vector<16x112xf32>
      %c2_i32_103 = arith.constant 2 : i32
      %258 = arith.addi %202, %c2_i32_103 : i32
      %c0_104 = arith.constant 0 : index
      %259 = arith.index_cast %258 : i32 to index
      %c0_105 = arith.constant 0 : index
      %260 = vector.load %arg1[%c0_104, %259, %c0_105] : memref<1x114x114xf32, #tpu.memory_space<vmem>>, vector<1x1x112xf32>
      %261 = vector.shape_cast %260 : vector<1x1x112xf32> to vector<1x112xf32>
      %262 = vector.extract_strided_slice %0 {offsets = [0, 6], sizes = [16, 1], strides = [1, 1]} : vector<16x9xf32> to vector<16x1xf32>
      %263 = vector.broadcast %262 : vector<16x1xf32> to vector<16x112xf32>
      %264 = vector.broadcast %261 : vector<1x112xf32> to vector<16x112xf32>
      %265 = arith.mulf %263, %264 : vector<16x112xf32>
      %266 = arith.addf %257, %265 : vector<16x112xf32>
      %c2_i32_106 = arith.constant 2 : i32
      %267 = arith.addi %202, %c2_i32_106 : i32
      %c0_107 = arith.constant 0 : index
      %268 = arith.index_cast %267 : i32 to index
      %c1_108 = arith.constant 1 : index
      %269 = vector.load %arg1[%c0_107, %268, %c1_108] : memref<1x114x114xf32, #tpu.memory_space<vmem>>, vector<1x1x112xf32>
      %270 = vector.shape_cast %269 : vector<1x1x112xf32> to vector<1x112xf32>
      %271 = vector.extract_strided_slice %0 {offsets = [0, 7], sizes = [16, 1], strides = [1, 1]} : vector<16x9xf32> to vector<16x1xf32>
      %272 = vector.broadcast %271 : vector<16x1xf32> to vector<16x112xf32>
      %273 = vector.broadcast %270 : vector<1x112xf32> to vector<16x112xf32>
      %274 = arith.mulf %272, %273 : vector<16x112xf32>
      %275 = arith.addf %266, %274 : vector<16x112xf32>
      %c2_i32_109 = arith.constant 2 : i32
      %276 = arith.addi %202, %c2_i32_109 : i32
      %c0_110 = arith.constant 0 : index
      %277 = arith.index_cast %276 : i32 to index
      %c2_111 = arith.constant 2 : index
      %278 = vector.load %arg1[%c0_110, %277, %c2_111] : memref<1x114x114xf32, #tpu.memory_space<vmem>>, vector<1x1x112xf32>
      %279 = vector.shape_cast %278 : vector<1x1x112xf32> to vector<1x112xf32>
      %280 = vector.extract_strided_slice %0 {offsets = [0, 8], sizes = [16, 1], strides = [1, 1]} : vector<16x9xf32> to vector<16x1xf32>
      %281 = vector.broadcast %280 : vector<16x1xf32> to vector<16x112xf32>
      %282 = vector.broadcast %279 : vector<1x112xf32> to vector<16x112xf32>
      %283 = arith.mulf %281, %282 : vector<16x112xf32>
      %284 = arith.addf %275, %283 : vector<16x112xf32>
      %285 = vector.broadcast %1 : vector<16x1xf32> to vector<16x112xf32>
      %286 = arith.addf %284, %285 : vector<16x112xf32>
      %cst_112 = arith.constant 0.000000e+00 : f32
      %287 = vector.broadcast %cst_112 : f32 to vector<16x112xf32>
      %288 = arith.maximumf %286, %287 : vector<16x112xf32>
      %c2_i32_113 = arith.constant 2 : i32
      %289 = arith.muli %c2_i32_113, %201 : i32
      %c1_i32_114 = arith.constant 1 : i32
      %290 = arith.addi %289, %c1_i32_114 : i32
      %cst_115 = arith.constant 0.000000e+00 : f32
      %291 = vector.broadcast %cst_115 : f32 to vector<16x112xf32>
      %c0_i32_116 = arith.constant 0 : i32
      %292 = arith.addi %290, %c0_i32_116 : i32
      %c0_117 = arith.constant 0 : index
      %293 = arith.index_cast %292 : i32 to index
      %c0_118 = arith.constant 0 : index
      %294 = vector.load %arg1[%c0_117, %293, %c0_118] : memref<1x114x114xf32, #tpu.memory_space<vmem>>, vector<1x1x112xf32>
      %295 = vector.shape_cast %294 : vector<1x1x112xf32> to vector<1x112xf32>
      %296 = vector.extract_strided_slice %0 {offsets = [0, 0], sizes = [16, 1], strides = [1, 1]} : vector<16x9xf32> to vector<16x1xf32>
      %297 = vector.broadcast %296 : vector<16x1xf32> to vector<16x112xf32>
      %298 = vector.broadcast %295 : vector<1x112xf32> to vector<16x112xf32>
      %299 = arith.mulf %297, %298 : vector<16x112xf32>
      %300 = arith.addf %291, %299 : vector<16x112xf32>
      %c0_i32_119 = arith.constant 0 : i32
      %301 = arith.addi %290, %c0_i32_119 : i32
      %c0_120 = arith.constant 0 : index
      %302 = arith.index_cast %301 : i32 to index
      %c1_121 = arith.constant 1 : index
      %303 = vector.load %arg1[%c0_120, %302, %c1_121] : memref<1x114x114xf32, #tpu.memory_space<vmem>>, vector<1x1x112xf32>
      %304 = vector.shape_cast %303 : vector<1x1x112xf32> to vector<1x112xf32>
      %305 = vector.extract_strided_slice %0 {offsets = [0, 1], sizes = [16, 1], strides = [1, 1]} : vector<16x9xf32> to vector<16x1xf32>
      %306 = vector.broadcast %305 : vector<16x1xf32> to vector<16x112xf32>
      %307 = vector.broadcast %304 : vector<1x112xf32> to vector<16x112xf32>
      %308 = arith.mulf %306, %307 : vector<16x112xf32>
      %309 = arith.addf %300, %308 : vector<16x112xf32>
      %c0_i32_122 = arith.constant 0 : i32
      %310 = arith.addi %290, %c0_i32_122 : i32
      %c0_123 = arith.constant 0 : index
      %311 = arith.index_cast %310 : i32 to index
      %c2_124 = arith.constant 2 : index
      %312 = vector.load %arg1[%c0_123, %311, %c2_124] : memref<1x114x114xf32, #tpu.memory_space<vmem>>, vector<1x1x112xf32>
      %313 = vector.shape_cast %312 : vector<1x1x112xf32> to vector<1x112xf32>
      %314 = vector.extract_strided_slice %0 {offsets = [0, 2], sizes = [16, 1], strides = [1, 1]} : vector<16x9xf32> to vector<16x1xf32>
      %315 = vector.broadcast %314 : vector<16x1xf32> to vector<16x112xf32>
      %316 = vector.broadcast %313 : vector<1x112xf32> to vector<16x112xf32>
      %317 = arith.mulf %315, %316 : vector<16x112xf32>
      %318 = arith.addf %309, %317 : vector<16x112xf32>
      %c1_i32_125 = arith.constant 1 : i32
      %319 = arith.addi %290, %c1_i32_125 : i32
      %c0_126 = arith.constant 0 : index
      %320 = arith.index_cast %319 : i32 to index
      %c0_127 = arith.constant 0 : index
      %321 = vector.load %arg1[%c0_126, %320, %c0_127] : memref<1x114x114xf32, #tpu.memory_space<vmem>>, vector<1x1x112xf32>
      %322 = vector.shape_cast %321 : vector<1x1x112xf32> to vector<1x112xf32>
      %323 = vector.extract_strided_slice %0 {offsets = [0, 3], sizes = [16, 1], strides = [1, 1]} : vector<16x9xf32> to vector<16x1xf32>
      %324 = vector.broadcast %323 : vector<16x1xf32> to vector<16x112xf32>
      %325 = vector.broadcast %322 : vector<1x112xf32> to vector<16x112xf32>
      %326 = arith.mulf %324, %325 : vector<16x112xf32>
      %327 = arith.addf %318, %326 : vector<16x112xf32>
      %c1_i32_128 = arith.constant 1 : i32
      %328 = arith.addi %290, %c1_i32_128 : i32
      %c0_129 = arith.constant 0 : index
      %329 = arith.index_cast %328 : i32 to index
      %c1_130 = arith.constant 1 : index
      %330 = vector.load %arg1[%c0_129, %329, %c1_130] : memref<1x114x114xf32, #tpu.memory_space<vmem>>, vector<1x1x112xf32>
      %331 = vector.shape_cast %330 : vector<1x1x112xf32> to vector<1x112xf32>
      %332 = vector.extract_strided_slice %0 {offsets = [0, 4], sizes = [16, 1], strides = [1, 1]} : vector<16x9xf32> to vector<16x1xf32>
      %333 = vector.broadcast %332 : vector<16x1xf32> to vector<16x112xf32>
      %334 = vector.broadcast %331 : vector<1x112xf32> to vector<16x112xf32>
      %335 = arith.mulf %333, %334 : vector<16x112xf32>
      %336 = arith.addf %327, %335 : vector<16x112xf32>
      %c1_i32_131 = arith.constant 1 : i32
      %337 = arith.addi %290, %c1_i32_131 : i32
      %c0_132 = arith.constant 0 : index
      %338 = arith.index_cast %337 : i32 to index
      %c2_133 = arith.constant 2 : index
      %339 = vector.load %arg1[%c0_132, %338, %c2_133] : memref<1x114x114xf32, #tpu.memory_space<vmem>>, vector<1x1x112xf32>
      %340 = vector.shape_cast %339 : vector<1x1x112xf32> to vector<1x112xf32>
      %341 = vector.extract_strided_slice %0 {offsets = [0, 5], sizes = [16, 1], strides = [1, 1]} : vector<16x9xf32> to vector<16x1xf32>
      %342 = vector.broadcast %341 : vector<16x1xf32> to vector<16x112xf32>
      %343 = vector.broadcast %340 : vector<1x112xf32> to vector<16x112xf32>
      %344 = arith.mulf %342, %343 : vector<16x112xf32>
      %345 = arith.addf %336, %344 : vector<16x112xf32>
      %c2_i32_134 = arith.constant 2 : i32
      %346 = arith.addi %290, %c2_i32_134 : i32
      %c0_135 = arith.constant 0 : index
      %347 = arith.index_cast %346 : i32 to index
      %c0_136 = arith.constant 0 : index
      %348 = vector.load %arg1[%c0_135, %347, %c0_136] : memref<1x114x114xf32, #tpu.memory_space<vmem>>, vector<1x1x112xf32>
      %349 = vector.shape_cast %348 : vector<1x1x112xf32> to vector<1x112xf32>
      %350 = vector.extract_strided_slice %0 {offsets = [0, 6], sizes = [16, 1], strides = [1, 1]} : vector<16x9xf32> to vector<16x1xf32>
      %351 = vector.broadcast %350 : vector<16x1xf32> to vector<16x112xf32>
      %352 = vector.broadcast %349 : vector<1x112xf32> to vector<16x112xf32>
      %353 = arith.mulf %351, %352 : vector<16x112xf32>
      %354 = arith.addf %345, %353 : vector<16x112xf32>
      %c2_i32_137 = arith.constant 2 : i32
      %355 = arith.addi %290, %c2_i32_137 : i32
      %c0_138 = arith.constant 0 : index
      %356 = arith.index_cast %355 : i32 to index
      %c1_139 = arith.constant 1 : index
      %357 = vector.load %arg1[%c0_138, %356, %c1_139] : memref<1x114x114xf32, #tpu.memory_space<vmem>>, vector<1x1x112xf32>
      %358 = vector.shape_cast %357 : vector<1x1x112xf32> to vector<1x112xf32>
      %359 = vector.extract_strided_slice %0 {offsets = [0, 7], sizes = [16, 1], strides = [1, 1]} : vector<16x9xf32> to vector<16x1xf32>
      %360 = vector.broadcast %359 : vector<16x1xf32> to vector<16x112xf32>
      %361 = vector.broadcast %358 : vector<1x112xf32> to vector<16x112xf32>
      %362 = arith.mulf %360, %361 : vector<16x112xf32>
      %363 = arith.addf %354, %362 : vector<16x112xf32>
      %c2_i32_140 = arith.constant 2 : i32
      %364 = arith.addi %290, %c2_i32_140 : i32
      %c0_141 = arith.constant 0 : index
      %365 = arith.index_cast %364 : i32 to index
      %c2_142 = arith.constant 2 : index
      %366 = vector.load %arg1[%c0_141, %365, %c2_142] : memref<1x114x114xf32, #tpu.memory_space<vmem>>, vector<1x1x112xf32>
      %367 = vector.shape_cast %366 : vector<1x1x112xf32> to vector<1x112xf32>
      %368 = vector.extract_strided_slice %0 {offsets = [0, 8], sizes = [16, 1], strides = [1, 1]} : vector<16x9xf32> to vector<16x1xf32>
      %369 = vector.broadcast %368 : vector<16x1xf32> to vector<16x112xf32>
      %370 = vector.broadcast %367 : vector<1x112xf32> to vector<16x112xf32>
      %371 = arith.mulf %369, %370 : vector<16x112xf32>
      %372 = arith.addf %363, %371 : vector<16x112xf32>
      %373 = vector.broadcast %1 : vector<16x1xf32> to vector<16x112xf32>
      %374 = arith.addf %372, %373 : vector<16x112xf32>
      %cst_143 = arith.constant 0.000000e+00 : f32
      %375 = vector.broadcast %cst_143 : f32 to vector<16x112xf32>
      %376 = arith.maximumf %374, %375 : vector<16x112xf32>
      %377 = arith.maximumf %288, %376 : vector<16x112xf32>
      %c0_144 = arith.constant 0 : index
      %c0_145 = arith.constant 0 : index
      %378 = vector.load %arg4[%c0_144, %c0_145] : memref<112x56xf32, #tpu.memory_space<vmem>>, vector<112x56xf32>
      %cst_146 = arith.constant dense<0.000000e+00> : vector<16x56xf32>
      %379 = tpu.matmul %377, %378, %cst_146 {dimension_numbers = #tpu.dot_dimension_numbers<[1], [0], [0], [1], [0, 0, 1, 1], [], []>} : vector<16x112xf32>, vector<112x56xf32>, vector<16x56xf32> -> vector<16x56xf32>
      %c0_147 = arith.constant 0 : index
      %c0_148 = arith.constant 0 : index
      %380 = vector.load %arg5[%c0_147, %c0_148] : memref<112x56xf32, #tpu.memory_space<vmem>>, vector<112x56xf32>
      %cst_149 = arith.constant dense<0.000000e+00> : vector<16x56xf32>
      %381 = tpu.matmul %377, %380, %cst_149 {dimension_numbers = #tpu.dot_dimension_numbers<[1], [0], [0], [1], [0, 0, 1, 1], [], []>} : vector<16x112xf32>, vector<112x56xf32>, vector<16x56xf32> -> vector<16x56xf32>
      %382 = arith.maximumf %379, %381 : vector<16x56xf32>
      %383 = tpu.concatenate %9, %382, %9 in 1 : vector<16x1xf32>, vector<16x56xf32>, vector<16x1xf32> -> vector<16x58xf32>
      %c1_i32_150 = arith.constant 1 : i32
      %384 = arith.addi %c1_i32_150, %201 : i32
      %c0_151 = arith.constant 0 : index
      %385 = arith.index_cast %384 : i32 to index
      %c0_152 = arith.constant 0 : index
      %c0_153 = arith.constant 0 : index
      %386 = vector.load %arg6[%c0_151, %385, %c0_152, %c0_153] : memref<1x58x16x58xf32, #tpu.memory_space<vmem>>, vector<1x1x16x58xf32>
      %387 = vector.shape_cast %386 : vector<1x1x16x58xf32> to vector<16x58xf32>
      %388 = vector.shape_cast %383 : vector<16x58xf32> to vector<1x1x16x58xf32>
      tpu.vector_store %arg6[%c0_151, %385, %c0_152, %c0_153], %388 {strides = array<i32>} : memref<1x58x16x58xf32, #tpu.memory_space<vmem>>, vector<1x1x16x58xf32>,
      %c4_i32_154 = arith.constant 4 : i32
      %389 = arith.muli %arg7, %c4_i32_154 : i32
      %c2_i32_155 = arith.constant 2 : i32
      %390 = arith.addi %389, %c2_i32_155 : i32
      %c2_i32_156 = arith.constant 2 : i32
      %391 = arith.muli %c2_i32_156, %390 : i32
      %cst_157 = arith.constant 0.000000e+00 : f32
      %392 = vector.broadcast %cst_157 : f32 to vector<16x112xf32>
      %c0_i32_158 = arith.constant 0 : i32
      %393 = arith.addi %391, %c0_i32_158 : i32
      %c0_159 = arith.constant 0 : index
      %394 = arith.index_cast %393 : i32 to index
      %c0_160 = arith.constant 0 : index
      %395 = vector.load %arg1[%c0_159, %394, %c0_160] : memref<1x114x114xf32, #tpu.memory_space<vmem>>, vector<1x1x112xf32>
      %396 = vector.shape_cast %395 : vector<1x1x112xf32> to vector<1x112xf32>
      %397 = vector.extract_strided_slice %0 {offsets = [0, 0], sizes = [16, 1], strides = [1, 1]} : vector<16x9xf32> to vector<16x1xf32>
      %398 = vector.broadcast %397 : vector<16x1xf32> to vector<16x112xf32>
      %399 = vector.broadcast %396 : vector<1x112xf32> to vector<16x112xf32>
      %400 = arith.mulf %398, %399 : vector<16x112xf32>
      %401 = arith.addf %392, %400 : vector<16x112xf32>
      %c0_i32_161 = arith.constant 0 : i32
      %402 = arith.addi %391, %c0_i32_161 : i32
      %c0_162 = arith.constant 0 : index
      %403 = arith.index_cast %402 : i32 to index
      %c1_163 = arith.constant 1 : index
      %404 = vector.load %arg1[%c0_162, %403, %c1_163] : memref<1x114x114xf32, #tpu.memory_space<vmem>>, vector<1x1x112xf32>
      %405 = vector.shape_cast %404 : vector<1x1x112xf32> to vector<1x112xf32>
      %406 = vector.extract_strided_slice %0 {offsets = [0, 1], sizes = [16, 1], strides = [1, 1]} : vector<16x9xf32> to vector<16x1xf32>
      %407 = vector.broadcast %406 : vector<16x1xf32> to vector<16x112xf32>
      %408 = vector.broadcast %405 : vector<1x112xf32> to vector<16x112xf32>
      %409 = arith.mulf %407, %408 : vector<16x112xf32>
      %410 = arith.addf %401, %409 : vector<16x112xf32>
      %c0_i32_164 = arith.constant 0 : i32
      %411 = arith.addi %391, %c0_i32_164 : i32
      %c0_165 = arith.constant 0 : index
      %412 = arith.index_cast %411 : i32 to index
      %c2_166 = arith.constant 2 : index
      %413 = vector.load %arg1[%c0_165, %412, %c2_166] : memref<1x114x114xf32, #tpu.memory_space<vmem>>, vector<1x1x112xf32>
      %414 = vector.shape_cast %413 : vector<1x1x112xf32> to vector<1x112xf32>
      %415 = vector.extract_strided_slice %0 {offsets = [0, 2], sizes = [16, 1], strides = [1, 1]} : vector<16x9xf32> to vector<16x1xf32>
      %416 = vector.broadcast %415 : vector<16x1xf32> to vector<16x112xf32>
      %417 = vector.broadcast %414 : vector<1x112xf32> to vector<16x112xf32>
      %418 = arith.mulf %416, %417 : vector<16x112xf32>
      %419 = arith.addf %410, %418 : vector<16x112xf32>
      %c1_i32_167 = arith.constant 1 : i32
      %420 = arith.addi %391, %c1_i32_167 : i32
      %c0_168 = arith.constant 0 : index
      %421 = arith.index_cast %420 : i32 to index
      %c0_169 = arith.constant 0 : index
      %422 = vector.load %arg1[%c0_168, %421, %c0_169] : memref<1x114x114xf32, #tpu.memory_space<vmem>>, vector<1x1x112xf32>
      %423 = vector.shape_cast %422 : vector<1x1x112xf32> to vector<1x112xf32>
      %424 = vector.extract_strided_slice %0 {offsets = [0, 3], sizes = [16, 1], strides = [1, 1]} : vector<16x9xf32> to vector<16x1xf32>
      %425 = vector.broadcast %424 : vector<16x1xf32> to vector<16x112xf32>
      %426 = vector.broadcast %423 : vector<1x112xf32> to vector<16x112xf32>
      %427 = arith.mulf %425, %426 : vector<16x112xf32>
      %428 = arith.addf %419, %427 : vector<16x112xf32>
      %c1_i32_170 = arith.constant 1 : i32
      %429 = arith.addi %391, %c1_i32_170 : i32
      %c0_171 = arith.constant 0 : index
      %430 = arith.index_cast %429 : i32 to index
      %c1_172 = arith.constant 1 : index
      %431 = vector.load %arg1[%c0_171, %430, %c1_172] : memref<1x114x114xf32, #tpu.memory_space<vmem>>, vector<1x1x112xf32>
      %432 = vector.shape_cast %431 : vector<1x1x112xf32> to vector<1x112xf32>
      %433 = vector.extract_strided_slice %0 {offsets = [0, 4], sizes = [16, 1], strides = [1, 1]} : vector<16x9xf32> to vector<16x1xf32>
      %434 = vector.broadcast %433 : vector<16x1xf32> to vector<16x112xf32>
      %435 = vector.broadcast %432 : vector<1x112xf32> to vector<16x112xf32>
      %436 = arith.mulf %434, %435 : vector<16x112xf32>
      %437 = arith.addf %428, %436 : vector<16x112xf32>
      %c1_i32_173 = arith.constant 1 : i32
      %438 = arith.addi %391, %c1_i32_173 : i32
      %c0_174 = arith.constant 0 : index
      %439 = arith.index_cast %438 : i32 to index
      %c2_175 = arith.constant 2 : index
      %440 = vector.load %arg1[%c0_174, %439, %c2_175] : memref<1x114x114xf32, #tpu.memory_space<vmem>>, vector<1x1x112xf32>
      %441 = vector.shape_cast %440 : vector<1x1x112xf32> to vector<1x112xf32>
      %442 = vector.extract_strided_slice %0 {offsets = [0, 5], sizes = [16, 1], strides = [1, 1]} : vector<16x9xf32> to vector<16x1xf32>
      %443 = vector.broadcast %442 : vector<16x1xf32> to vector<16x112xf32>
      %444 = vector.broadcast %441 : vector<1x112xf32> to vector<16x112xf32>
      %445 = arith.mulf %443, %444 : vector<16x112xf32>
      %446 = arith.addf %437, %445 : vector<16x112xf32>
      %c2_i32_176 = arith.constant 2 : i32
      %447 = arith.addi %391, %c2_i32_176 : i32
      %c0_177 = arith.constant 0 : index
      %448 = arith.index_cast %447 : i32 to index
      %c0_178 = arith.constant 0 : index
      %449 = vector.load %arg1[%c0_177, %448, %c0_178] : memref<1x114x114xf32, #tpu.memory_space<vmem>>, vector<1x1x112xf32>
      %450 = vector.shape_cast %449 : vector<1x1x112xf32> to vector<1x112xf32>
      %451 = vector.extract_strided_slice %0 {offsets = [0, 6], sizes = [16, 1], strides = [1, 1]} : vector<16x9xf32> to vector<16x1xf32>
      %452 = vector.broadcast %451 : vector<16x1xf32> to vector<16x112xf32>
      %453 = vector.broadcast %450 : vector<1x112xf32> to vector<16x112xf32>
      %454 = arith.mulf %452, %453 : vector<16x112xf32>
      %455 = arith.addf %446, %454 : vector<16x112xf32>
      %c2_i32_179 = arith.constant 2 : i32
      %456 = arith.addi %391, %c2_i32_179 : i32
      %c0_180 = arith.constant 0 : index
      %457 = arith.index_cast %456 : i32 to index
      %c1_181 = arith.constant 1 : index
      %458 = vector.load %arg1[%c0_180, %457, %c1_181] : memref<1x114x114xf32, #tpu.memory_space<vmem>>, vector<1x1x112xf32>
      %459 = vector.shape_cast %458 : vector<1x1x112xf32> to vector<1x112xf32>
      %460 = vector.extract_strided_slice %0 {offsets = [0, 7], sizes = [16, 1], strides = [1, 1]} : vector<16x9xf32> to vector<16x1xf32>
      %461 = vector.broadcast %460 : vector<16x1xf32> to vector<16x112xf32>
      %462 = vector.broadcast %459 : vector<1x112xf32> to vector<16x112xf32>
      %463 = arith.mulf %461, %462 : vector<16x112xf32>
      %464 = arith.addf %455, %463 : vector<16x112xf32>
      %c2_i32_182 = arith.constant 2 : i32
      %465 = arith.addi %391, %c2_i32_182 : i32
      %c0_183 = arith.constant 0 : index
      %466 = arith.index_cast %465 : i32 to index
      %c2_184 = arith.constant 2 : index
      %467 = vector.load %arg1[%c0_183, %466, %c2_184] : memref<1x114x114xf32, #tpu.memory_space<vmem>>, vector<1x1x112xf32>
      %468 = vector.shape_cast %467 : vector<1x1x112xf32> to vector<1x112xf32>
      %469 = vector.extract_strided_slice %0 {offsets = [0, 8], sizes = [16, 1], strides = [1, 1]} : vector<16x9xf32> to vector<16x1xf32>
      %470 = vector.broadcast %469 : vector<16x1xf32> to vector<16x112xf32>
      %471 = vector.broadcast %468 : vector<1x112xf32> to vector<16x112xf32>
      %472 = arith.mulf %470, %471 : vector<16x112xf32>
      %473 = arith.addf %464, %472 : vector<16x112xf32>
      %474 = vector.broadcast %1 : vector<16x1xf32> to vector<16x112xf32>
      %475 = arith.addf %473, %474 : vector<16x112xf32>
      %cst_185 = arith.constant 0.000000e+00 : f32
      %476 = vector.broadcast %cst_185 : f32 to vector<16x112xf32>
      %477 = arith.maximumf %475, %476 : vector<16x112xf32>
      %c2_i32_186 = arith.constant 2 : i32
      %478 = arith.muli %c2_i32_186, %390 : i32
      %c1_i32_187 = arith.constant 1 : i32
      %479 = arith.addi %478, %c1_i32_187 : i32
      %cst_188 = arith.constant 0.000000e+00 : f32
      %480 = vector.broadcast %cst_188 : f32 to vector<16x112xf32>
      %c0_i32_189 = arith.constant 0 : i32
      %481 = arith.addi %479, %c0_i32_189 : i32
      %c0_190 = arith.constant 0 : index
      %482 = arith.index_cast %481 : i32 to index
      %c0_191 = arith.constant 0 : index
      %483 = vector.load %arg1[%c0_190, %482, %c0_191] : memref<1x114x114xf32, #tpu.memory_space<vmem>>, vector<1x1x112xf32>
      %484 = vector.shape_cast %483 : vector<1x1x112xf32> to vector<1x112xf32>
      %485 = vector.extract_strided_slice %0 {offsets = [0, 0], sizes = [16, 1], strides = [1, 1]} : vector<16x9xf32> to vector<16x1xf32>
      %486 = vector.broadcast %485 : vector<16x1xf32> to vector<16x112xf32>
      %487 = vector.broadcast %484 : vector<1x112xf32> to vector<16x112xf32>
      %488 = arith.mulf %486, %487 : vector<16x112xf32>
      %489 = arith.addf %480, %488 : vector<16x112xf32>
      %c0_i32_192 = arith.constant 0 : i32
      %490 = arith.addi %479, %c0_i32_192 : i32
      %c0_193 = arith.constant 0 : index
      %491 = arith.index_cast %490 : i32 to index
      %c1_194 = arith.constant 1 : index
      %492 = vector.load %arg1[%c0_193, %491, %c1_194] : memref<1x114x114xf32, #tpu.memory_space<vmem>>, vector<1x1x112xf32>
      %493 = vector.shape_cast %492 : vector<1x1x112xf32> to vector<1x112xf32>
      %494 = vector.extract_strided_slice %0 {offsets = [0, 1], sizes = [16, 1], strides = [1, 1]} : vector<16x9xf32> to vector<16x1xf32>
      %495 = vector.broadcast %494 : vector<16x1xf32> to vector<16x112xf32>
      %496 = vector.broadcast %493 : vector<1x112xf32> to vector<16x112xf32>
      %497 = arith.mulf %495, %496 : vector<16x112xf32>
      %498 = arith.addf %489, %497 : vector<16x112xf32>
      %c0_i32_195 = arith.constant 0 : i32
      %499 = arith.addi %479, %c0_i32_195 : i32
      %c0_196 = arith.constant 0 : index
      %500 = arith.index_cast %499 : i32 to index
      %c2_197 = arith.constant 2 : index
      %501 = vector.load %arg1[%c0_196, %500, %c2_197] : memref<1x114x114xf32, #tpu.memory_space<vmem>>, vector<1x1x112xf32>
      %502 = vector.shape_cast %501 : vector<1x1x112xf32> to vector<1x112xf32>
      %503 = vector.extract_strided_slice %0 {offsets = [0, 2], sizes = [16, 1], strides = [1, 1]} : vector<16x9xf32> to vector<16x1xf32>
      %504 = vector.broadcast %503 : vector<16x1xf32> to vector<16x112xf32>
      %505 = vector.broadcast %502 : vector<1x112xf32> to vector<16x112xf32>
      %506 = arith.mulf %504, %505 : vector<16x112xf32>
      %507 = arith.addf %498, %506 : vector<16x112xf32>
      %c1_i32_198 = arith.constant 1 : i32
      %508 = arith.addi %479, %c1_i32_198 : i32
      %c0_199 = arith.constant 0 : index
      %509 = arith.index_cast %508 : i32 to index
      %c0_200 = arith.constant 0 : index
      %510 = vector.load %arg1[%c0_199, %509, %c0_200] : memref<1x114x114xf32, #tpu.memory_space<vmem>>, vector<1x1x112xf32>
      %511 = vector.shape_cast %510 : vector<1x1x112xf32> to vector<1x112xf32>
      %512 = vector.extract_strided_slice %0 {offsets = [0, 3], sizes = [16, 1], strides = [1, 1]} : vector<16x9xf32> to vector<16x1xf32>
      %513 = vector.broadcast %512 : vector<16x1xf32> to vector<16x112xf32>
      %514 = vector.broadcast %511 : vector<1x112xf32> to vector<16x112xf32>
      %515 = arith.mulf %513, %514 : vector<16x112xf32>
      %516 = arith.addf %507, %515 : vector<16x112xf32>
      %c1_i32_201 = arith.constant 1 : i32
      %517 = arith.addi %479, %c1_i32_201 : i32
      %c0_202 = arith.constant 0 : index
      %518 = arith.index_cast %517 : i32 to index
      %c1_203 = arith.constant 1 : index
      %519 = vector.load %arg1[%c0_202, %518, %c1_203] : memref<1x114x114xf32, #tpu.memory_space<vmem>>, vector<1x1x112xf32>
      %520 = vector.shape_cast %519 : vector<1x1x112xf32> to vector<1x112xf32>
      %521 = vector.extract_strided_slice %0 {offsets = [0, 4], sizes = [16, 1], strides = [1, 1]} : vector<16x9xf32> to vector<16x1xf32>
      %522 = vector.broadcast %521 : vector<16x1xf32> to vector<16x112xf32>
      %523 = vector.broadcast %520 : vector<1x112xf32> to vector<16x112xf32>
      %524 = arith.mulf %522, %523 : vector<16x112xf32>
      %525 = arith.addf %516, %524 : vector<16x112xf32>
      %c1_i32_204 = arith.constant 1 : i32
      %526 = arith.addi %479, %c1_i32_204 : i32
      %c0_205 = arith.constant 0 : index
      %527 = arith.index_cast %526 : i32 to index
      %c2_206 = arith.constant 2 : index
      %528 = vector.load %arg1[%c0_205, %527, %c2_206] : memref<1x114x114xf32, #tpu.memory_space<vmem>>, vector<1x1x112xf32>
      %529 = vector.shape_cast %528 : vector<1x1x112xf32> to vector<1x112xf32>
      %530 = vector.extract_strided_slice %0 {offsets = [0, 5], sizes = [16, 1], strides = [1, 1]} : vector<16x9xf32> to vector<16x1xf32>
      %531 = vector.broadcast %530 : vector<16x1xf32> to vector<16x112xf32>
      %532 = vector.broadcast %529 : vector<1x112xf32> to vector<16x112xf32>
      %533 = arith.mulf %531, %532 : vector<16x112xf32>
      %534 = arith.addf %525, %533 : vector<16x112xf32>
      %c2_i32_207 = arith.constant 2 : i32
      %535 = arith.addi %479, %c2_i32_207 : i32
      %c0_208 = arith.constant 0 : index
      %536 = arith.index_cast %535 : i32 to index
      %c0_209 = arith.constant 0 : index
      %537 = vector.load %arg1[%c0_208, %536, %c0_209] : memref<1x114x114xf32, #tpu.memory_space<vmem>>, vector<1x1x112xf32>
      %538 = vector.shape_cast %537 : vector<1x1x112xf32> to vector<1x112xf32>
      %539 = vector.extract_strided_slice %0 {offsets = [0, 6], sizes = [16, 1], strides = [1, 1]} : vector<16x9xf32> to vector<16x1xf32>
      %540 = vector.broadcast %539 : vector<16x1xf32> to vector<16x112xf32>
      %541 = vector.broadcast %538 : vector<1x112xf32> to vector<16x112xf32>
      %542 = arith.mulf %540, %541 : vector<16x112xf32>
      %543 = arith.addf %534, %542 : vector<16x112xf32>
      %c2_i32_210 = arith.constant 2 : i32
      %544 = arith.addi %479, %c2_i32_210 : i32
      %c0_211 = arith.constant 0 : index
      %545 = arith.index_cast %544 : i32 to index
      %c1_212 = arith.constant 1 : index
      %546 = vector.load %arg1[%c0_211, %545, %c1_212] : memref<1x114x114xf32, #tpu.memory_space<vmem>>, vector<1x1x112xf32>
      %547 = vector.shape_cast %546 : vector<1x1x112xf32> to vector<1x112xf32>
      %548 = vector.extract_strided_slice %0 {offsets = [0, 7], sizes = [16, 1], strides = [1, 1]} : vector<16x9xf32> to vector<16x1xf32>
      %549 = vector.broadcast %548 : vector<16x1xf32> to vector<16x112xf32>
      %550 = vector.broadcast %547 : vector<1x112xf32> to vector<16x112xf32>
      %551 = arith.mulf %549, %550 : vector<16x112xf32>
      %552 = arith.addf %543, %551 : vector<16x112xf32>
      %c2_i32_213 = arith.constant 2 : i32
      %553 = arith.addi %479, %c2_i32_213 : i32
      %c0_214 = arith.constant 0 : index
      %554 = arith.index_cast %553 : i32 to index
      %c2_215 = arith.constant 2 : index
      %555 = vector.load %arg1[%c0_214, %554, %c2_215] : memref<1x114x114xf32, #tpu.memory_space<vmem>>, vector<1x1x112xf32>
      %556 = vector.shape_cast %555 : vector<1x1x112xf32> to vector<1x112xf32>
      %557 = vector.extract_strided_slice %0 {offsets = [0, 8], sizes = [16, 1], strides = [1, 1]} : vector<16x9xf32> to vector<16x1xf32>
      %558 = vector.broadcast %557 : vector<16x1xf32> to vector<16x112xf32>
      %559 = vector.broadcast %556 : vector<1x112xf32> to vector<16x112xf32>
      %560 = arith.mulf %558, %559 : vector<16x112xf32>
      %561 = arith.addf %552, %560 : vector<16x112xf32>
      %562 = vector.broadcast %1 : vector<16x1xf32> to vector<16x112xf32>
      %563 = arith.addf %561, %562 : vector<16x112xf32>
      %cst_216 = arith.constant 0.000000e+00 : f32
      %564 = vector.broadcast %cst_216 : f32 to vector<16x112xf32>
      %565 = arith.maximumf %563, %564 : vector<16x112xf32>
      %566 = arith.maximumf %477, %565 : vector<16x112xf32>
      %c0_217 = arith.constant 0 : index
      %c0_218 = arith.constant 0 : index
      %567 = vector.load %arg4[%c0_217, %c0_218] : memref<112x56xf32, #tpu.memory_space<vmem>>, vector<112x56xf32>
      %cst_219 = arith.constant dense<0.000000e+00> : vector<16x56xf32>
      %568 = tpu.matmul %566, %567, %cst_219 {dimension_numbers = #tpu.dot_dimension_numbers<[1], [0], [0], [1], [0, 0, 1, 1], [], []>} : vector<16x112xf32>, vector<112x56xf32>, vector<16x56xf32> -> vector<16x56xf32>
      %c0_220 = arith.constant 0 : index
      %c0_221 = arith.constant 0 : index
      %569 = vector.load %arg5[%c0_220, %c0_221] : memref<112x56xf32, #tpu.memory_space<vmem>>, vector<112x56xf32>
      %cst_222 = arith.constant dense<0.000000e+00> : vector<16x56xf32>
      %570 = tpu.matmul %566, %569, %cst_222 {dimension_numbers = #tpu.dot_dimension_numbers<[1], [0], [0], [1], [0, 0, 1, 1], [], []>} : vector<16x112xf32>, vector<112x56xf32>, vector<16x56xf32> -> vector<16x56xf32>
      %571 = arith.maximumf %568, %570 : vector<16x56xf32>
      %572 = tpu.concatenate %9, %571, %9 in 1 : vector<16x1xf32>, vector<16x56xf32>, vector<16x1xf32> -> vector<16x58xf32>
      %c1_i32_223 = arith.constant 1 : i32
      %573 = arith.addi %c1_i32_223, %390 : i32
      %c0_224 = arith.constant 0 : index
      %574 = arith.index_cast %573 : i32 to index
      %c0_225 = arith.constant 0 : index
      %c0_226 = arith.constant 0 : index
      %575 = vector.load %arg6[%c0_224, %574, %c0_225, %c0_226] : memref<1x58x16x58xf32, #tpu.memory_space<vmem>>, vector<1x1x16x58xf32>
      %576 = vector.shape_cast %575 : vector<1x1x16x58xf32> to vector<16x58xf32>
      %577 = vector.shape_cast %572 : vector<16x58xf32> to vector<1x1x16x58xf32>
      tpu.vector_store %arg6[%c0_224, %574, %c0_225, %c0_226], %577 {strides = array<i32>} : memref<1x58x16x58xf32, #tpu.memory_space<vmem>>, vector<1x1x16x58xf32>,
      %c4_i32_227 = arith.constant 4 : i32
      %578 = arith.muli %arg7, %c4_i32_227 : i32
      %c3_i32 = arith.constant 3 : i32
      %579 = arith.addi %578, %c3_i32 : i32
      %c2_i32_228 = arith.constant 2 : i32
      %580 = arith.muli %c2_i32_228, %579 : i32
      %cst_229 = arith.constant 0.000000e+00 : f32
      %581 = vector.broadcast %cst_229 : f32 to vector<16x112xf32>
      %c0_i32_230 = arith.constant 0 : i32
      %582 = arith.addi %580, %c0_i32_230 : i32
      %c0_231 = arith.constant 0 : index
      %583 = arith.index_cast %582 : i32 to index
      %c0_232 = arith.constant 0 : index
      %584 = vector.load %arg1[%c0_231, %583, %c0_232] : memref<1x114x114xf32, #tpu.memory_space<vmem>>, vector<1x1x112xf32>
      %585 = vector.shape_cast %584 : vector<1x1x112xf32> to vector<1x112xf32>
      %586 = vector.extract_strided_slice %0 {offsets = [0, 0], sizes = [16, 1], strides = [1, 1]} : vector<16x9xf32> to vector<16x1xf32>
      %587 = vector.broadcast %586 : vector<16x1xf32> to vector<16x112xf32>
      %588 = vector.broadcast %585 : vector<1x112xf32> to vector<16x112xf32>
      %589 = arith.mulf %587, %588 : vector<16x112xf32>
      %590 = arith.addf %581, %589 : vector<16x112xf32>
      %c0_i32_233 = arith.constant 0 : i32
      %591 = arith.addi %580, %c0_i32_233 : i32
      %c0_234 = arith.constant 0 : index
      %592 = arith.index_cast %591 : i32 to index
      %c1_235 = arith.constant 1 : index
      %593 = vector.load %arg1[%c0_234, %592, %c1_235] : memref<1x114x114xf32, #tpu.memory_space<vmem>>, vector<1x1x112xf32>
      %594 = vector.shape_cast %593 : vector<1x1x112xf32> to vector<1x112xf32>
      %595 = vector.extract_strided_slice %0 {offsets = [0, 1], sizes = [16, 1], strides = [1, 1]} : vector<16x9xf32> to vector<16x1xf32>
      %596 = vector.broadcast %595 : vector<16x1xf32> to vector<16x112xf32>
      %597 = vector.broadcast %594 : vector<1x112xf32> to vector<16x112xf32>
      %598 = arith.mulf %596, %597 : vector<16x112xf32>
      %599 = arith.addf %590, %598 : vector<16x112xf32>
      %c0_i32_236 = arith.constant 0 : i32
      %600 = arith.addi %580, %c0_i32_236 : i32
      %c0_237 = arith.constant 0 : index
      %601 = arith.index_cast %600 : i32 to index
      %c2_238 = arith.constant 2 : index
      %602 = vector.load %arg1[%c0_237, %601, %c2_238] : memref<1x114x114xf32, #tpu.memory_space<vmem>>, vector<1x1x112xf32>
      %603 = vector.shape_cast %602 : vector<1x1x112xf32> to vector<1x112xf32>
      %604 = vector.extract_strided_slice %0 {offsets = [0, 2], sizes = [16, 1], strides = [1, 1]} : vector<16x9xf32> to vector<16x1xf32>
      %605 = vector.broadcast %604 : vector<16x1xf32> to vector<16x112xf32>
      %606 = vector.broadcast %603 : vector<1x112xf32> to vector<16x112xf32>
      %607 = arith.mulf %605, %606 : vector<16x112xf32>
      %608 = arith.addf %599, %607 : vector<16x112xf32>
      %c1_i32_239 = arith.constant 1 : i32
      %609 = arith.addi %580, %c1_i32_239 : i32
      %c0_240 = arith.constant 0 : index
      %610 = arith.index_cast %609 : i32 to index
      %c0_241 = arith.constant 0 : index
      %611 = vector.load %arg1[%c0_240, %610, %c0_241] : memref<1x114x114xf32, #tpu.memory_space<vmem>>, vector<1x1x112xf32>
      %612 = vector.shape_cast %611 : vector<1x1x112xf32> to vector<1x112xf32>
      %613 = vector.extract_strided_slice %0 {offsets = [0, 3], sizes = [16, 1], strides = [1, 1]} : vector<16x9xf32> to vector<16x1xf32>
      %614 = vector.broadcast %613 : vector<16x1xf32> to vector<16x112xf32>
      %615 = vector.broadcast %612 : vector<1x112xf32> to vector<16x112xf32>
      %616 = arith.mulf %614, %615 : vector<16x112xf32>
      %617 = arith.addf %608, %616 : vector<16x112xf32>
      %c1_i32_242 = arith.constant 1 : i32
      %618 = arith.addi %580, %c1_i32_242 : i32
      %c0_243 = arith.constant 0 : index
      %619 = arith.index_cast %618 : i32 to index
      %c1_244 = arith.constant 1 : index
      %620 = vector.load %arg1[%c0_243, %619, %c1_244] : memref<1x114x114xf32, #tpu.memory_space<vmem>>, vector<1x1x112xf32>
      %621 = vector.shape_cast %620 : vector<1x1x112xf32> to vector<1x112xf32>
      %622 = vector.extract_strided_slice %0 {offsets = [0, 4], sizes = [16, 1], strides = [1, 1]} : vector<16x9xf32> to vector<16x1xf32>
      %623 = vector.broadcast %622 : vector<16x1xf32> to vector<16x112xf32>
      %624 = vector.broadcast %621 : vector<1x112xf32> to vector<16x112xf32>
      %625 = arith.mulf %623, %624 : vector<16x112xf32>
      %626 = arith.addf %617, %625 : vector<16x112xf32>
      %c1_i32_245 = arith.constant 1 : i32
      %627 = arith.addi %580, %c1_i32_245 : i32
      %c0_246 = arith.constant 0 : index
      %628 = arith.index_cast %627 : i32 to index
      %c2_247 = arith.constant 2 : index
      %629 = vector.load %arg1[%c0_246, %628, %c2_247] : memref<1x114x114xf32, #tpu.memory_space<vmem>>, vector<1x1x112xf32>
      %630 = vector.shape_cast %629 : vector<1x1x112xf32> to vector<1x112xf32>
      %631 = vector.extract_strided_slice %0 {offsets = [0, 5], sizes = [16, 1], strides = [1, 1]} : vector<16x9xf32> to vector<16x1xf32>
      %632 = vector.broadcast %631 : vector<16x1xf32> to vector<16x112xf32>
      %633 = vector.broadcast %630 : vector<1x112xf32> to vector<16x112xf32>
      %634 = arith.mulf %632, %633 : vector<16x112xf32>
      %635 = arith.addf %626, %634 : vector<16x112xf32>
      %c2_i32_248 = arith.constant 2 : i32
      %636 = arith.addi %580, %c2_i32_248 : i32
      %c0_249 = arith.constant 0 : index
      %637 = arith.index_cast %636 : i32 to index
      %c0_250 = arith.constant 0 : index
      %638 = vector.load %arg1[%c0_249, %637, %c0_250] : memref<1x114x114xf32, #tpu.memory_space<vmem>>, vector<1x1x112xf32>
      %639 = vector.shape_cast %638 : vector<1x1x112xf32> to vector<1x112xf32>
      %640 = vector.extract_strided_slice %0 {offsets = [0, 6], sizes = [16, 1], strides = [1, 1]} : vector<16x9xf32> to vector<16x1xf32>
      %641 = vector.broadcast %640 : vector<16x1xf32> to vector<16x112xf32>
      %642 = vector.broadcast %639 : vector<1x112xf32> to vector<16x112xf32>
      %643 = arith.mulf %641, %642 : vector<16x112xf32>
      %644 = arith.addf %635, %643 : vector<16x112xf32>
      %c2_i32_251 = arith.constant 2 : i32
      %645 = arith.addi %580, %c2_i32_251 : i32
      %c0_252 = arith.constant 0 : index
      %646 = arith.index_cast %645 : i32 to index
      %c1_253 = arith.constant 1 : index
      %647 = vector.load %arg1[%c0_252, %646, %c1_253] : memref<1x114x114xf32, #tpu.memory_space<vmem>>, vector<1x1x112xf32>
      %648 = vector.shape_cast %647 : vector<1x1x112xf32> to vector<1x112xf32>
      %649 = vector.extract_strided_slice %0 {offsets = [0, 7], sizes = [16, 1], strides = [1, 1]} : vector<16x9xf32> to vector<16x1xf32>
      %650 = vector.broadcast %649 : vector<16x1xf32> to vector<16x112xf32>
      %651 = vector.broadcast %648 : vector<1x112xf32> to vector<16x112xf32>
      %652 = arith.mulf %650, %651 : vector<16x112xf32>
      %653 = arith.addf %644, %652 : vector<16x112xf32>
      %c2_i32_254 = arith.constant 2 : i32
      %654 = arith.addi %580, %c2_i32_254 : i32
      %c0_255 = arith.constant 0 : index
      %655 = arith.index_cast %654 : i32 to index
      %c2_256 = arith.constant 2 : index
      %656 = vector.load %arg1[%c0_255, %655, %c2_256] : memref<1x114x114xf32, #tpu.memory_space<vmem>>, vector<1x1x112xf32>
      %657 = vector.shape_cast %656 : vector<1x1x112xf32> to vector<1x112xf32>
      %658 = vector.extract_strided_slice %0 {offsets = [0, 8], sizes = [16, 1], strides = [1, 1]} : vector<16x9xf32> to vector<16x1xf32>
      %659 = vector.broadcast %658 : vector<16x1xf32> to vector<16x112xf32>
      %660 = vector.broadcast %657 : vector<1x112xf32> to vector<16x112xf32>
      %661 = arith.mulf %659, %660 : vector<16x112xf32>
      %662 = arith.addf %653, %661 : vector<16x112xf32>
      %663 = vector.broadcast %1 : vector<16x1xf32> to vector<16x112xf32>
      %664 = arith.addf %662, %663 : vector<16x112xf32>
      %cst_257 = arith.constant 0.000000e+00 : f32
      %665 = vector.broadcast %cst_257 : f32 to vector<16x112xf32>
      %666 = arith.maximumf %664, %665 : vector<16x112xf32>
      %c2_i32_258 = arith.constant 2 : i32
      %667 = arith.muli %c2_i32_258, %579 : i32
      %c1_i32_259 = arith.constant 1 : i32
      %668 = arith.addi %667, %c1_i32_259 : i32
      %cst_260 = arith.constant 0.000000e+00 : f32
      %669 = vector.broadcast %cst_260 : f32 to vector<16x112xf32>
      %c0_i32_261 = arith.constant 0 : i32
      %670 = arith.addi %668, %c0_i32_261 : i32
      %c0_262 = arith.constant 0 : index
      %671 = arith.index_cast %670 : i32 to index
      %c0_263 = arith.constant 0 : index
      %672 = vector.load %arg1[%c0_262, %671, %c0_263] : memref<1x114x114xf32, #tpu.memory_space<vmem>>, vector<1x1x112xf32>
      %673 = vector.shape_cast %672 : vector<1x1x112xf32> to vector<1x112xf32>
      %674 = vector.extract_strided_slice %0 {offsets = [0, 0], sizes = [16, 1], strides = [1, 1]} : vector<16x9xf32> to vector<16x1xf32>
      %675 = vector.broadcast %674 : vector<16x1xf32> to vector<16x112xf32>
      %676 = vector.broadcast %673 : vector<1x112xf32> to vector<16x112xf32>
      %677 = arith.mulf %675, %676 : vector<16x112xf32>
      %678 = arith.addf %669, %677 : vector<16x112xf32>
      %c0_i32_264 = arith.constant 0 : i32
      %679 = arith.addi %668, %c0_i32_264 : i32
      %c0_265 = arith.constant 0 : index
      %680 = arith.index_cast %679 : i32 to index
      %c1_266 = arith.constant 1 : index
      %681 = vector.load %arg1[%c0_265, %680, %c1_266] : memref<1x114x114xf32, #tpu.memory_space<vmem>>, vector<1x1x112xf32>
      %682 = vector.shape_cast %681 : vector<1x1x112xf32> to vector<1x112xf32>
      %683 = vector.extract_strided_slice %0 {offsets = [0, 1], sizes = [16, 1], strides = [1, 1]} : vector<16x9xf32> to vector<16x1xf32>
      %684 = vector.broadcast %683 : vector<16x1xf32> to vector<16x112xf32>
      %685 = vector.broadcast %682 : vector<1x112xf32> to vector<16x112xf32>
      %686 = arith.mulf %684, %685 : vector<16x112xf32>
      %687 = arith.addf %678, %686 : vector<16x112xf32>
      %c0_i32_267 = arith.constant 0 : i32
      %688 = arith.addi %668, %c0_i32_267 : i32
      %c0_268 = arith.constant 0 : index
      %689 = arith.index_cast %688 : i32 to index
      %c2_269 = arith.constant 2 : index
      %690 = vector.load %arg1[%c0_268, %689, %c2_269] : memref<1x114x114xf32, #tpu.memory_space<vmem>>, vector<1x1x112xf32>
      %691 = vector.shape_cast %690 : vector<1x1x112xf32> to vector<1x112xf32>
      %692 = vector.extract_strided_slice %0 {offsets = [0, 2], sizes = [16, 1], strides = [1, 1]} : vector<16x9xf32> to vector<16x1xf32>
      %693 = vector.broadcast %692 : vector<16x1xf32> to vector<16x112xf32>
      %694 = vector.broadcast %691 : vector<1x112xf32> to vector<16x112xf32>
      %695 = arith.mulf %693, %694 : vector<16x112xf32>
      %696 = arith.addf %687, %695 : vector<16x112xf32>
      %c1_i32_270 = arith.constant 1 : i32
      %697 = arith.addi %668, %c1_i32_270 : i32
      %c0_271 = arith.constant 0 : index
      %698 = arith.index_cast %697 : i32 to index
      %c0_272 = arith.constant 0 : index
      %699 = vector.load %arg1[%c0_271, %698, %c0_272] : memref<1x114x114xf32, #tpu.memory_space<vmem>>, vector<1x1x112xf32>
      %700 = vector.shape_cast %699 : vector<1x1x112xf32> to vector<1x112xf32>
      %701 = vector.extract_strided_slice %0 {offsets = [0, 3], sizes = [16, 1], strides = [1, 1]} : vector<16x9xf32> to vector<16x1xf32>
      %702 = vector.broadcast %701 : vector<16x1xf32> to vector<16x112xf32>
      %703 = vector.broadcast %700 : vector<1x112xf32> to vector<16x112xf32>
      %704 = arith.mulf %702, %703 : vector<16x112xf32>
      %705 = arith.addf %696, %704 : vector<16x112xf32>
      %c1_i32_273 = arith.constant 1 : i32
      %706 = arith.addi %668, %c1_i32_273 : i32
      %c0_274 = arith.constant 0 : index
      %707 = arith.index_cast %706 : i32 to index
      %c1_275 = arith.constant 1 : index
      %708 = vector.load %arg1[%c0_274, %707, %c1_275] : memref<1x114x114xf32, #tpu.memory_space<vmem>>, vector<1x1x112xf32>
      %709 = vector.shape_cast %708 : vector<1x1x112xf32> to vector<1x112xf32>
      %710 = vector.extract_strided_slice %0 {offsets = [0, 4], sizes = [16, 1], strides = [1, 1]} : vector<16x9xf32> to vector<16x1xf32>
      %711 = vector.broadcast %710 : vector<16x1xf32> to vector<16x112xf32>
      %712 = vector.broadcast %709 : vector<1x112xf32> to vector<16x112xf32>
      %713 = arith.mulf %711, %712 : vector<16x112xf32>
      %714 = arith.addf %705, %713 : vector<16x112xf32>
      %c1_i32_276 = arith.constant 1 : i32
      %715 = arith.addi %668, %c1_i32_276 : i32
      %c0_277 = arith.constant 0 : index
      %716 = arith.index_cast %715 : i32 to index
      %c2_278 = arith.constant 2 : index
      %717 = vector.load %arg1[%c0_277, %716, %c2_278] : memref<1x114x114xf32, #tpu.memory_space<vmem>>, vector<1x1x112xf32>
      %718 = vector.shape_cast %717 : vector<1x1x112xf32> to vector<1x112xf32>
      %719 = vector.extract_strided_slice %0 {offsets = [0, 5], sizes = [16, 1], strides = [1, 1]} : vector<16x9xf32> to vector<16x1xf32>
      %720 = vector.broadcast %719 : vector<16x1xf32> to vector<16x112xf32>
      %721 = vector.broadcast %718 : vector<1x112xf32> to vector<16x112xf32>
      %722 = arith.mulf %720, %721 : vector<16x112xf32>
      %723 = arith.addf %714, %722 : vector<16x112xf32>
      %c2_i32_279 = arith.constant 2 : i32
      %724 = arith.addi %668, %c2_i32_279 : i32
      %c0_280 = arith.constant 0 : index
      %725 = arith.index_cast %724 : i32 to index
      %c0_281 = arith.constant 0 : index
      %726 = vector.load %arg1[%c0_280, %725, %c0_281] : memref<1x114x114xf32, #tpu.memory_space<vmem>>, vector<1x1x112xf32>
      %727 = vector.shape_cast %726 : vector<1x1x112xf32> to vector<1x112xf32>
      %728 = vector.extract_strided_slice %0 {offsets = [0, 6], sizes = [16, 1], strides = [1, 1]} : vector<16x9xf32> to vector<16x1xf32>
      %729 = vector.broadcast %728 : vector<16x1xf32> to vector<16x112xf32>
      %730 = vector.broadcast %727 : vector<1x112xf32> to vector<16x112xf32>
      %731 = arith.mulf %729, %730 : vector<16x112xf32>
      %732 = arith.addf %723, %731 : vector<16x112xf32>
      %c2_i32_282 = arith.constant 2 : i32
      %733 = arith.addi %668, %c2_i32_282 : i32
      %c0_283 = arith.constant 0 : index
      %734 = arith.index_cast %733 : i32 to index
      %c1_284 = arith.constant 1 : index
      %735 = vector.load %arg1[%c0_283, %734, %c1_284] : memref<1x114x114xf32, #tpu.memory_space<vmem>>, vector<1x1x112xf32>
      %736 = vector.shape_cast %735 : vector<1x1x112xf32> to vector<1x112xf32>
      %737 = vector.extract_strided_slice %0 {offsets = [0, 7], sizes = [16, 1], strides = [1, 1]} : vector<16x9xf32> to vector<16x1xf32>
      %738 = vector.broadcast %737 : vector<16x1xf32> to vector<16x112xf32>
      %739 = vector.broadcast %736 : vector<1x112xf32> to vector<16x112xf32>
      %740 = arith.mulf %738, %739 : vector<16x112xf32>
      %741 = arith.addf %732, %740 : vector<16x112xf32>
      %c2_i32_285 = arith.constant 2 : i32
      %742 = arith.addi %668, %c2_i32_285 : i32
      %c0_286 = arith.constant 0 : index
      %743 = arith.index_cast %742 : i32 to index
      %c2_287 = arith.constant 2 : index
      %744 = vector.load %arg1[%c0_286, %743, %c2_287] : memref<1x114x114xf32, #tpu.memory_space<vmem>>, vector<1x1x112xf32>
      %745 = vector.shape_cast %744 : vector<1x1x112xf32> to vector<1x112xf32>
      %746 = vector.extract_strided_slice %0 {offsets = [0, 8], sizes = [16, 1], strides = [1, 1]} : vector<16x9xf32> to vector<16x1xf32>
      %747 = vector.broadcast %746 : vector<16x1xf32> to vector<16x112xf32>
      %748 = vector.broadcast %745 : vector<1x112xf32> to vector<16x112xf32>
      %749 = arith.mulf %747, %748 : vector<16x112xf32>
      %750 = arith.addf %741, %749 : vector<16x112xf32>
      %751 = vector.broadcast %1 : vector<16x1xf32> to vector<16x112xf32>
      %752 = arith.addf %750, %751 : vector<16x112xf32>
      %cst_288 = arith.constant 0.000000e+00 : f32
      %753 = vector.broadcast %cst_288 : f32 to vector<16x112xf32>
      %754 = arith.maximumf %752, %753 : vector<16x112xf32>
      %755 = arith.maximumf %666, %754 : vector<16x112xf32>
      %c0_289 = arith.constant 0 : index
      %c0_290 = arith.constant 0 : index
      %756 = vector.load %arg4[%c0_289, %c0_290] : memref<112x56xf32, #tpu.memory_space<vmem>>, vector<112x56xf32>
      %cst_291 = arith.constant dense<0.000000e+00> : vector<16x56xf32>
      %757 = tpu.matmul %755, %756, %cst_291 {dimension_numbers = #tpu.dot_dimension_numbers<[1], [0], [0], [1], [0, 0, 1, 1], [], []>} : vector<16x112xf32>, vector<112x56xf32>, vector<16x56xf32> -> vector<16x56xf32>
      %c0_292 = arith.constant 0 : index
      %c0_293 = arith.constant 0 : index
      %758 = vector.load %arg5[%c0_292, %c0_293] : memref<112x56xf32, #tpu.memory_space<vmem>>, vector<112x56xf32>
      %cst_294 = arith.constant dense<0.000000e+00> : vector<16x56xf32>
      %759 = tpu.matmul %755, %758, %cst_294 {dimension_numbers = #tpu.dot_dimension_numbers<[1], [0], [0], [1], [0, 0, 1, 1], [], []>} : vector<16x112xf32>, vector<112x56xf32>, vector<16x56xf32> -> vector<16x56xf32>
      %760 = arith.maximumf %757, %759 : vector<16x56xf32>
      %761 = tpu.concatenate %9, %760, %9 in 1 : vector<16x1xf32>, vector<16x56xf32>, vector<16x1xf32> -> vector<16x58xf32>
      %c1_i32_295 = arith.constant 1 : i32
      %762 = arith.addi %c1_i32_295, %579 : i32
      %c0_296 = arith.constant 0 : index
      %763 = arith.index_cast %762 : i32 to index
      %c0_297 = arith.constant 0 : index
      %c0_298 = arith.constant 0 : index
      %764 = vector.load %arg6[%c0_296, %763, %c0_297, %c0_298] : memref<1x58x16x58xf32, #tpu.memory_space<vmem>>, vector<1x1x16x58xf32>
      %765 = vector.shape_cast %764 : vector<1x1x16x58xf32> to vector<16x58xf32>
      %766 = vector.shape_cast %761 : vector<16x58xf32> to vector<1x1x16x58xf32>
      tpu.vector_store %arg6[%c0_296, %763, %c0_297, %c0_298], %766 {strides = array<i32>} : memref<1x58x16x58xf32, #tpu.memory_space<vmem>>, vector<1x1x16x58xf32>,
    }
    %c14_i32_11 = arith.constant 14 : i32
    return
  }
  func.func @transform_0(%arg0: i32) -> (i32, i32, i32) {
    %c0_i32 = arith.constant 0 : i32
    %c0_i32_0 = arith.constant 0 : i32
    %c0_i32_1 = arith.constant 0 : i32
    return %arg0, %c0_i32, %c0_i32_0 : i32, i32, i32
  }
  func.func @transform_1(%arg0: i32) -> (i32, i32) {
    %c0_i32 = arith.constant 0 : i32
    %c0_i32_0 = arith.constant 0 : i32
    %c0_i32_1 = arith.constant 0 : i32
    return %c0_i32, %c0_i32_0 : i32, i32
  }
  func.func @transform_2(%arg0: i32) -> (i32, i32) {
    %c0_i32 = arith.constant 0 : i32
    %c0_i32_0 = arith.constant 0 : i32
    %c0_i32_1 = arith.constant 0 : i32
    return %c0_i32, %c0_i32_0 : i32, i32
  }
  func.func @transform_3(%arg0: i32) -> (i32, i32) {
    %c0_i32 = arith.constant 0 : i32
    %c0_i32_0 = arith.constant 0 : i32
    %c0_i32_1 = arith.constant 0 : i32
    return %c0_i32, %c0_i32_0 : i32, i32
  }
  func.func @transform_4(%arg0: i32) -> (i32, i32) {
    %c0_i32 = arith.constant 0 : i32
    %c0_i32_0 = arith.constant 0 : i32
    %c0_i32_1 = arith.constant 0 : i32
    return %c0_i32, %c0_i32_0 : i32, i32
  }
  func.func @transform_5(%arg0: i32) -> (i32, i32, i32, i32) {
    %c0_i32 = arith.constant 0 : i32
    %c0_i32_0 = arith.constant 0 : i32
    %c0_i32_1 = arith.constant 0 : i32
    %c0_i32_2 = arith.constant 0 : i32
    return %arg0, %c0_i32, %c0_i32_0, %c0_i32_1 : i32, i32, i32, i32
  }
}

module attributes {stable_mosaic.version = 11 : i64} {
  func.func @_conv2_kernel(%arg0: i32, %arg1: memref<1x58x16x58xf32, #tpu.memory_space<vmem>>, %arg2: memref<32x144xf32, #tpu.memory_space<vmem>>, %arg3: memref<32x1xf32, #tpu.memory_space<vmem>>, %arg4: memref<56x28xf32, #tpu.memory_space<vmem>>, %arg5: memref<56x28xf32, #tpu.memory_space<vmem>>, %arg6: memref<1x28x32x28xf32, #tpu.memory_space<vmem>>) attributes {dimension_semantics = [#tpu.dimension_semantics<parallel>], iteration_bounds = array<i64: 2>, scalar_prefetch = 0 : i64, scratch_operands = 0 : i64, tpu.core_type = #tpu.core_type<tc>, window_params = [{transform_indices = @transform_0, window_bounds = array<i64: 1, 58, 16, 58>}, {pipeline_mode = #tpu.pipeline_mode<synchronous>, transform_indices = @transform_1, window_bounds = array<i64: 32, 144>}, {pipeline_mode = #tpu.pipeline_mode<synchronous>, transform_indices = @transform_2, window_bounds = array<i64: 32, 1>}, {pipeline_mode = #tpu.pipeline_mode<synchronous>, transform_indices = @transform_3, window_bounds = array<i64: 56, 28>}, {pipeline_mode = #tpu.pipeline_mode<synchronous>, transform_indices = @transform_4, window_bounds = array<i64: 56, 28>}, {transform_indices = @transform_5, window_bounds = array<i64: 1, 28, 32, 28>}]} {
    %c0 = arith.constant 0 : index
    %c0_0 = arith.constant 0 : index
    %0 = vector.load %arg2[%c0, %c0_0] : memref<32x144xf32, #tpu.memory_space<vmem>>, vector<32x144xf32>
    %c0_1 = arith.constant 0 : index
    %c0_2 = arith.constant 0 : index
    %1 = vector.load %arg3[%c0_1, %c0_2] : memref<32x1xf32, #tpu.memory_space<vmem>>, vector<32x1xf32>
    %c0_i32 = arith.constant 0 : i32
    %c7_i32 = arith.constant 7 : i32
    %2 = arith.addi %c0_i32, %c7_i32 : i32
    %c1_i32 = arith.constant 1 : i32
    scf.for %arg7 = %c0_i32 to %2 step %c1_i32  : i32 {
      %c4_i32 = arith.constant 4 : i32
      %3 = arith.muli %arg7, %c4_i32 : i32
      %c0_i32_4 = arith.constant 0 : i32
      %4 = arith.addi %3, %c0_i32_4 : i32
      %c2_i32 = arith.constant 2 : i32
      %5 = arith.muli %c2_i32, %4 : i32
      %c0_i32_5 = arith.constant 0 : i32
      %6 = arith.addi %5, %c0_i32_5 : i32
      %c0_6 = arith.constant 0 : index
      %7 = arith.index_cast %6 : i32 to index
      %c0_7 = arith.constant 0 : index
      %c0_8 = arith.constant 0 : index
      %8 = vector.load %arg1[%c0_6, %7, %c0_7, %c0_8] : memref<1x58x16x58xf32, #tpu.memory_space<vmem>>, vector<1x1x16x56xf32>
      %9 = vector.shape_cast %8 : vector<1x1x16x56xf32> to vector<16x56xf32>
      %c0_i32_9 = arith.constant 0 : i32
      %10 = arith.addi %5, %c0_i32_9 : i32
      %c0_10 = arith.constant 0 : index
      %11 = arith.index_cast %10 : i32 to index
      %c0_11 = arith.constant 0 : index
      %c1 = arith.constant 1 : index
      %12 = vector.load %arg1[%c0_10, %11, %c0_11, %c1] : memref<1x58x16x58xf32, #tpu.memory_space<vmem>>, vector<1x1x16x56xf32>
      %13 = vector.shape_cast %12 : vector<1x1x16x56xf32> to vector<16x56xf32>
      %c0_i32_12 = arith.constant 0 : i32
      %14 = arith.addi %5, %c0_i32_12 : i32
      %c0_13 = arith.constant 0 : index
      %15 = arith.index_cast %14 : i32 to index
      %c0_14 = arith.constant 0 : index
      %c2 = arith.constant 2 : index
      %16 = vector.load %arg1[%c0_13, %15, %c0_14, %c2] : memref<1x58x16x58xf32, #tpu.memory_space<vmem>>, vector<1x1x16x56xf32>
      %17 = vector.shape_cast %16 : vector<1x1x16x56xf32> to vector<16x56xf32>
      %c1_i32_15 = arith.constant 1 : i32
      %18 = arith.addi %5, %c1_i32_15 : i32
      %c0_16 = arith.constant 0 : index
      %19 = arith.index_cast %18 : i32 to index
      %c0_17 = arith.constant 0 : index
      %c0_18 = arith.constant 0 : index
      %20 = vector.load %arg1[%c0_16, %19, %c0_17, %c0_18] : memref<1x58x16x58xf32, #tpu.memory_space<vmem>>, vector<1x1x16x56xf32>
      %21 = vector.shape_cast %20 : vector<1x1x16x56xf32> to vector<16x56xf32>
      %c1_i32_19 = arith.constant 1 : i32
      %22 = arith.addi %5, %c1_i32_19 : i32
      %c0_20 = arith.constant 0 : index
      %23 = arith.index_cast %22 : i32 to index
      %c0_21 = arith.constant 0 : index
      %c1_22 = arith.constant 1 : index
      %24 = vector.load %arg1[%c0_20, %23, %c0_21, %c1_22] : memref<1x58x16x58xf32, #tpu.memory_space<vmem>>, vector<1x1x16x56xf32>
      %25 = vector.shape_cast %24 : vector<1x1x16x56xf32> to vector<16x56xf32>
      %c1_i32_23 = arith.constant 1 : i32
      %26 = arith.addi %5, %c1_i32_23 : i32
      %c0_24 = arith.constant 0 : index
      %27 = arith.index_cast %26 : i32 to index
      %c0_25 = arith.constant 0 : index
      %c2_26 = arith.constant 2 : index
      %28 = vector.load %arg1[%c0_24, %27, %c0_25, %c2_26] : memref<1x58x16x58xf32, #tpu.memory_space<vmem>>, vector<1x1x16x56xf32>
      %29 = vector.shape_cast %28 : vector<1x1x16x56xf32> to vector<16x56xf32>
      %c2_i32_27 = arith.constant 2 : i32
      %30 = arith.addi %5, %c2_i32_27 : i32
      %c0_28 = arith.constant 0 : index
      %31 = arith.index_cast %30 : i32 to index
      %c0_29 = arith.constant 0 : index
      %c0_30 = arith.constant 0 : index
      %32 = vector.load %arg1[%c0_28, %31, %c0_29, %c0_30] : memref<1x58x16x58xf32, #tpu.memory_space<vmem>>, vector<1x1x16x56xf32>
      %33 = vector.shape_cast %32 : vector<1x1x16x56xf32> to vector<16x56xf32>
      %c2_i32_31 = arith.constant 2 : i32
      %34 = arith.addi %5, %c2_i32_31 : i32
      %c0_32 = arith.constant 0 : index
      %35 = arith.index_cast %34 : i32 to index
      %c0_33 = arith.constant 0 : index
      %c1_34 = arith.constant 1 : index
      %36 = vector.load %arg1[%c0_32, %35, %c0_33, %c1_34] : memref<1x58x16x58xf32, #tpu.memory_space<vmem>>, vector<1x1x16x56xf32>
      %37 = vector.shape_cast %36 : vector<1x1x16x56xf32> to vector<16x56xf32>
      %c2_i32_35 = arith.constant 2 : i32
      %38 = arith.addi %5, %c2_i32_35 : i32
      %c0_36 = arith.constant 0 : index
      %39 = arith.index_cast %38 : i32 to index
      %c0_37 = arith.constant 0 : index
      %c2_38 = arith.constant 2 : index
      %40 = vector.load %arg1[%c0_36, %39, %c0_37, %c2_38] : memref<1x58x16x58xf32, #tpu.memory_space<vmem>>, vector<1x1x16x56xf32>
      %41 = vector.shape_cast %40 : vector<1x1x16x56xf32> to vector<16x56xf32>
      %42 = tpu.concatenate %9, %13, %17, %21, %25, %29, %33, %37, %41 in 0 : vector<16x56xf32>, vector<16x56xf32>, vector<16x56xf32>, vector<16x56xf32>, vector<16x56xf32>, vector<16x56xf32>, vector<16x56xf32>, vector<16x56xf32>, vector<16x56xf32> -> vector<144x56xf32>
      %cst = arith.constant dense<0.000000e+00> : vector<32x56xf32>
      %43 = tpu.matmul %0, %42, %cst {dimension_numbers = #tpu.dot_dimension_numbers<[1], [0], [0], [1], [0, 0, 1, 1], [], []>} : vector<32x144xf32>, vector<144x56xf32>, vector<32x56xf32> -> vector<32x56xf32>
      %44 = vector.broadcast %1 : vector<32x1xf32> to vector<32x56xf32>
      %45 = arith.addf %43, %44 : vector<32x56xf32>
      %cst_39 = arith.constant 0.000000e+00 : f32
      %46 = vector.broadcast %cst_39 : f32 to vector<32x56xf32>
      %47 = arith.maximumf %45, %46 : vector<32x56xf32>
      %c2_i32_40 = arith.constant 2 : i32
      %48 = arith.muli %c2_i32_40, %4 : i32
      %c1_i32_41 = arith.constant 1 : i32
      %49 = arith.addi %48, %c1_i32_41 : i32
      %c0_i32_42 = arith.constant 0 : i32
      %50 = arith.addi %49, %c0_i32_42 : i32
      %c0_43 = arith.constant 0 : index
      %51 = arith.index_cast %50 : i32 to index
      %c0_44 = arith.constant 0 : index
      %c0_45 = arith.constant 0 : index
      %52 = vector.load %arg1[%c0_43, %51, %c0_44, %c0_45] : memref<1x58x16x58xf32, #tpu.memory_space<vmem>>, vector<1x1x16x56xf32>
      %53 = vector.shape_cast %52 : vector<1x1x16x56xf32> to vector<16x56xf32>
      %c0_i32_46 = arith.constant 0 : i32
      %54 = arith.addi %49, %c0_i32_46 : i32
      %c0_47 = arith.constant 0 : index
      %55 = arith.index_cast %54 : i32 to index
      %c0_48 = arith.constant 0 : index
      %c1_49 = arith.constant 1 : index
      %56 = vector.load %arg1[%c0_47, %55, %c0_48, %c1_49] : memref<1x58x16x58xf32, #tpu.memory_space<vmem>>, vector<1x1x16x56xf32>
      %57 = vector.shape_cast %56 : vector<1x1x16x56xf32> to vector<16x56xf32>
      %c0_i32_50 = arith.constant 0 : i32
      %58 = arith.addi %49, %c0_i32_50 : i32
      %c0_51 = arith.constant 0 : index
      %59 = arith.index_cast %58 : i32 to index
      %c0_52 = arith.constant 0 : index
      %c2_53 = arith.constant 2 : index
      %60 = vector.load %arg1[%c0_51, %59, %c0_52, %c2_53] : memref<1x58x16x58xf32, #tpu.memory_space<vmem>>, vector<1x1x16x56xf32>
      %61 = vector.shape_cast %60 : vector<1x1x16x56xf32> to vector<16x56xf32>
      %c1_i32_54 = arith.constant 1 : i32
      %62 = arith.addi %49, %c1_i32_54 : i32
      %c0_55 = arith.constant 0 : index
      %63 = arith.index_cast %62 : i32 to index
      %c0_56 = arith.constant 0 : index
      %c0_57 = arith.constant 0 : index
      %64 = vector.load %arg1[%c0_55, %63, %c0_56, %c0_57] : memref<1x58x16x58xf32, #tpu.memory_space<vmem>>, vector<1x1x16x56xf32>
      %65 = vector.shape_cast %64 : vector<1x1x16x56xf32> to vector<16x56xf32>
      %c1_i32_58 = arith.constant 1 : i32
      %66 = arith.addi %49, %c1_i32_58 : i32
      %c0_59 = arith.constant 0 : index
      %67 = arith.index_cast %66 : i32 to index
      %c0_60 = arith.constant 0 : index
      %c1_61 = arith.constant 1 : index
      %68 = vector.load %arg1[%c0_59, %67, %c0_60, %c1_61] : memref<1x58x16x58xf32, #tpu.memory_space<vmem>>, vector<1x1x16x56xf32>
      %69 = vector.shape_cast %68 : vector<1x1x16x56xf32> to vector<16x56xf32>
      %c1_i32_62 = arith.constant 1 : i32
      %70 = arith.addi %49, %c1_i32_62 : i32
      %c0_63 = arith.constant 0 : index
      %71 = arith.index_cast %70 : i32 to index
      %c0_64 = arith.constant 0 : index
      %c2_65 = arith.constant 2 : index
      %72 = vector.load %arg1[%c0_63, %71, %c0_64, %c2_65] : memref<1x58x16x58xf32, #tpu.memory_space<vmem>>, vector<1x1x16x56xf32>
      %73 = vector.shape_cast %72 : vector<1x1x16x56xf32> to vector<16x56xf32>
      %c2_i32_66 = arith.constant 2 : i32
      %74 = arith.addi %49, %c2_i32_66 : i32
      %c0_67 = arith.constant 0 : index
      %75 = arith.index_cast %74 : i32 to index
      %c0_68 = arith.constant 0 : index
      %c0_69 = arith.constant 0 : index
      %76 = vector.load %arg1[%c0_67, %75, %c0_68, %c0_69] : memref<1x58x16x58xf32, #tpu.memory_space<vmem>>, vector<1x1x16x56xf32>
      %77 = vector.shape_cast %76 : vector<1x1x16x56xf32> to vector<16x56xf32>
      %c2_i32_70 = arith.constant 2 : i32
      %78 = arith.addi %49, %c2_i32_70 : i32
      %c0_71 = arith.constant 0 : index
      %79 = arith.index_cast %78 : i32 to index
      %c0_72 = arith.constant 0 : index
      %c1_73 = arith.constant 1 : index
      %80 = vector.load %arg1[%c0_71, %79, %c0_72, %c1_73] : memref<1x58x16x58xf32, #tpu.memory_space<vmem>>, vector<1x1x16x56xf32>
      %81 = vector.shape_cast %80 : vector<1x1x16x56xf32> to vector<16x56xf32>
      %c2_i32_74 = arith.constant 2 : i32
      %82 = arith.addi %49, %c2_i32_74 : i32
      %c0_75 = arith.constant 0 : index
      %83 = arith.index_cast %82 : i32 to index
      %c0_76 = arith.constant 0 : index
      %c2_77 = arith.constant 2 : index
      %84 = vector.load %arg1[%c0_75, %83, %c0_76, %c2_77] : memref<1x58x16x58xf32, #tpu.memory_space<vmem>>, vector<1x1x16x56xf32>
      %85 = vector.shape_cast %84 : vector<1x1x16x56xf32> to vector<16x56xf32>
      %86 = tpu.concatenate %53, %57, %61, %65, %69, %73, %77, %81, %85 in 0 : vector<16x56xf32>, vector<16x56xf32>, vector<16x56xf32>, vector<16x56xf32>, vector<16x56xf32>, vector<16x56xf32>, vector<16x56xf32>, vector<16x56xf32>, vector<16x56xf32> -> vector<144x56xf32>
      %cst_78 = arith.constant dense<0.000000e+00> : vector<32x56xf32>
      %87 = tpu.matmul %0, %86, %cst_78 {dimension_numbers = #tpu.dot_dimension_numbers<[1], [0], [0], [1], [0, 0, 1, 1], [], []>} : vector<32x144xf32>, vector<144x56xf32>, vector<32x56xf32> -> vector<32x56xf32>
      %88 = vector.broadcast %1 : vector<32x1xf32> to vector<32x56xf32>
      %89 = arith.addf %87, %88 : vector<32x56xf32>
      %cst_79 = arith.constant 0.000000e+00 : f32
      %90 = vector.broadcast %cst_79 : f32 to vector<32x56xf32>
      %91 = arith.maximumf %89, %90 : vector<32x56xf32>
      %92 = arith.maximumf %47, %91 : vector<32x56xf32>
      %c0_80 = arith.constant 0 : index
      %c0_81 = arith.constant 0 : index
      %93 = vector.load %arg4[%c0_80, %c0_81] : memref<56x28xf32, #tpu.memory_space<vmem>>, vector<56x28xf32>
      %cst_82 = arith.constant dense<0.000000e+00> : vector<32x28xf32>
      %94 = tpu.matmul %92, %93, %cst_82 {dimension_numbers = #tpu.dot_dimension_numbers<[1], [0], [0], [1], [0, 0, 1, 1], [], []>} : vector<32x56xf32>, vector<56x28xf32>, vector<32x28xf32> -> vector<32x28xf32>
      %c0_83 = arith.constant 0 : index
      %c0_84 = arith.constant 0 : index
      %95 = vector.load %arg5[%c0_83, %c0_84] : memref<56x28xf32, #tpu.memory_space<vmem>>, vector<56x28xf32>
      %cst_85 = arith.constant dense<0.000000e+00> : vector<32x28xf32>
      %96 = tpu.matmul %92, %95, %cst_85 {dimension_numbers = #tpu.dot_dimension_numbers<[1], [0], [0], [1], [0, 0, 1, 1], [], []>} : vector<32x56xf32>, vector<56x28xf32>, vector<32x28xf32> -> vector<32x28xf32>
      %97 = arith.maximumf %94, %96 : vector<32x28xf32>
      %c0_86 = arith.constant 0 : index
      %98 = arith.index_cast %4 : i32 to index
      %c0_87 = arith.constant 0 : index
      %c0_88 = arith.constant 0 : index
      %99 = vector.load %arg6[%c0_86, %98, %c0_87, %c0_88] : memref<1x28x32x28xf32, #tpu.memory_space<vmem>>, vector<1x1x32x28xf32>
      %100 = vector.shape_cast %99 : vector<1x1x32x28xf32> to vector<32x28xf32>
      %101 = vector.shape_cast %97 : vector<32x28xf32> to vector<1x1x32x28xf32>
      tpu.vector_store %arg6[%c0_86, %98, %c0_87, %c0_88], %101 {strides = array<i32>} : memref<1x28x32x28xf32, #tpu.memory_space<vmem>>, vector<1x1x32x28xf32>,
      %c4_i32_89 = arith.constant 4 : i32
      %102 = arith.muli %arg7, %c4_i32_89 : i32
      %c1_i32_90 = arith.constant 1 : i32
      %103 = arith.addi %102, %c1_i32_90 : i32
      %c2_i32_91 = arith.constant 2 : i32
      %104 = arith.muli %c2_i32_91, %103 : i32
      %c0_i32_92 = arith.constant 0 : i32
      %105 = arith.addi %104, %c0_i32_92 : i32
      %c0_93 = arith.constant 0 : index
      %106 = arith.index_cast %105 : i32 to index
      %c0_94 = arith.constant 0 : index
      %c0_95 = arith.constant 0 : index
      %107 = vector.load %arg1[%c0_93, %106, %c0_94, %c0_95] : memref<1x58x16x58xf32, #tpu.memory_space<vmem>>, vector<1x1x16x56xf32>
      %108 = vector.shape_cast %107 : vector<1x1x16x56xf32> to vector<16x56xf32>
      %c0_i32_96 = arith.constant 0 : i32
      %109 = arith.addi %104, %c0_i32_96 : i32
      %c0_97 = arith.constant 0 : index
      %110 = arith.index_cast %109 : i32 to index
      %c0_98 = arith.constant 0 : index
      %c1_99 = arith.constant 1 : index
      %111 = vector.load %arg1[%c0_97, %110, %c0_98, %c1_99] : memref<1x58x16x58xf32, #tpu.memory_space<vmem>>, vector<1x1x16x56xf32>
      %112 = vector.shape_cast %111 : vector<1x1x16x56xf32> to vector<16x56xf32>
      %c0_i32_100 = arith.constant 0 : i32
      %113 = arith.addi %104, %c0_i32_100 : i32
      %c0_101 = arith.constant 0 : index
      %114 = arith.index_cast %113 : i32 to index
      %c0_102 = arith.constant 0 : index
      %c2_103 = arith.constant 2 : index
      %115 = vector.load %arg1[%c0_101, %114, %c0_102, %c2_103] : memref<1x58x16x58xf32, #tpu.memory_space<vmem>>, vector<1x1x16x56xf32>
      %116 = vector.shape_cast %115 : vector<1x1x16x56xf32> to vector<16x56xf32>
      %c1_i32_104 = arith.constant 1 : i32
      %117 = arith.addi %104, %c1_i32_104 : i32
      %c0_105 = arith.constant 0 : index
      %118 = arith.index_cast %117 : i32 to index
      %c0_106 = arith.constant 0 : index
      %c0_107 = arith.constant 0 : index
      %119 = vector.load %arg1[%c0_105, %118, %c0_106, %c0_107] : memref<1x58x16x58xf32, #tpu.memory_space<vmem>>, vector<1x1x16x56xf32>
      %120 = vector.shape_cast %119 : vector<1x1x16x56xf32> to vector<16x56xf32>
      %c1_i32_108 = arith.constant 1 : i32
      %121 = arith.addi %104, %c1_i32_108 : i32
      %c0_109 = arith.constant 0 : index
      %122 = arith.index_cast %121 : i32 to index
      %c0_110 = arith.constant 0 : index
      %c1_111 = arith.constant 1 : index
      %123 = vector.load %arg1[%c0_109, %122, %c0_110, %c1_111] : memref<1x58x16x58xf32, #tpu.memory_space<vmem>>, vector<1x1x16x56xf32>
      %124 = vector.shape_cast %123 : vector<1x1x16x56xf32> to vector<16x56xf32>
      %c1_i32_112 = arith.constant 1 : i32
      %125 = arith.addi %104, %c1_i32_112 : i32
      %c0_113 = arith.constant 0 : index
      %126 = arith.index_cast %125 : i32 to index
      %c0_114 = arith.constant 0 : index
      %c2_115 = arith.constant 2 : index
      %127 = vector.load %arg1[%c0_113, %126, %c0_114, %c2_115] : memref<1x58x16x58xf32, #tpu.memory_space<vmem>>, vector<1x1x16x56xf32>
      %128 = vector.shape_cast %127 : vector<1x1x16x56xf32> to vector<16x56xf32>
      %c2_i32_116 = arith.constant 2 : i32
      %129 = arith.addi %104, %c2_i32_116 : i32
      %c0_117 = arith.constant 0 : index
      %130 = arith.index_cast %129 : i32 to index
      %c0_118 = arith.constant 0 : index
      %c0_119 = arith.constant 0 : index
      %131 = vector.load %arg1[%c0_117, %130, %c0_118, %c0_119] : memref<1x58x16x58xf32, #tpu.memory_space<vmem>>, vector<1x1x16x56xf32>
      %132 = vector.shape_cast %131 : vector<1x1x16x56xf32> to vector<16x56xf32>
      %c2_i32_120 = arith.constant 2 : i32
      %133 = arith.addi %104, %c2_i32_120 : i32
      %c0_121 = arith.constant 0 : index
      %134 = arith.index_cast %133 : i32 to index
      %c0_122 = arith.constant 0 : index
      %c1_123 = arith.constant 1 : index
      %135 = vector.load %arg1[%c0_121, %134, %c0_122, %c1_123] : memref<1x58x16x58xf32, #tpu.memory_space<vmem>>, vector<1x1x16x56xf32>
      %136 = vector.shape_cast %135 : vector<1x1x16x56xf32> to vector<16x56xf32>
      %c2_i32_124 = arith.constant 2 : i32
      %137 = arith.addi %104, %c2_i32_124 : i32
      %c0_125 = arith.constant 0 : index
      %138 = arith.index_cast %137 : i32 to index
      %c0_126 = arith.constant 0 : index
      %c2_127 = arith.constant 2 : index
      %139 = vector.load %arg1[%c0_125, %138, %c0_126, %c2_127] : memref<1x58x16x58xf32, #tpu.memory_space<vmem>>, vector<1x1x16x56xf32>
      %140 = vector.shape_cast %139 : vector<1x1x16x56xf32> to vector<16x56xf32>
      %141 = tpu.concatenate %108, %112, %116, %120, %124, %128, %132, %136, %140 in 0 : vector<16x56xf32>, vector<16x56xf32>, vector<16x56xf32>, vector<16x56xf32>, vector<16x56xf32>, vector<16x56xf32>, vector<16x56xf32>, vector<16x56xf32>, vector<16x56xf32> -> vector<144x56xf32>
      %cst_128 = arith.constant dense<0.000000e+00> : vector<32x56xf32>
      %142 = tpu.matmul %0, %141, %cst_128 {dimension_numbers = #tpu.dot_dimension_numbers<[1], [0], [0], [1], [0, 0, 1, 1], [], []>} : vector<32x144xf32>, vector<144x56xf32>, vector<32x56xf32> -> vector<32x56xf32>
      %143 = vector.broadcast %1 : vector<32x1xf32> to vector<32x56xf32>
      %144 = arith.addf %142, %143 : vector<32x56xf32>
      %cst_129 = arith.constant 0.000000e+00 : f32
      %145 = vector.broadcast %cst_129 : f32 to vector<32x56xf32>
      %146 = arith.maximumf %144, %145 : vector<32x56xf32>
      %c2_i32_130 = arith.constant 2 : i32
      %147 = arith.muli %c2_i32_130, %103 : i32
      %c1_i32_131 = arith.constant 1 : i32
      %148 = arith.addi %147, %c1_i32_131 : i32
      %c0_i32_132 = arith.constant 0 : i32
      %149 = arith.addi %148, %c0_i32_132 : i32
      %c0_133 = arith.constant 0 : index
      %150 = arith.index_cast %149 : i32 to index
      %c0_134 = arith.constant 0 : index
      %c0_135 = arith.constant 0 : index
      %151 = vector.load %arg1[%c0_133, %150, %c0_134, %c0_135] : memref<1x58x16x58xf32, #tpu.memory_space<vmem>>, vector<1x1x16x56xf32>
      %152 = vector.shape_cast %151 : vector<1x1x16x56xf32> to vector<16x56xf32>
      %c0_i32_136 = arith.constant 0 : i32
      %153 = arith.addi %148, %c0_i32_136 : i32
      %c0_137 = arith.constant 0 : index
      %154 = arith.index_cast %153 : i32 to index
      %c0_138 = arith.constant 0 : index
      %c1_139 = arith.constant 1 : index
      %155 = vector.load %arg1[%c0_137, %154, %c0_138, %c1_139] : memref<1x58x16x58xf32, #tpu.memory_space<vmem>>, vector<1x1x16x56xf32>
      %156 = vector.shape_cast %155 : vector<1x1x16x56xf32> to vector<16x56xf32>
      %c0_i32_140 = arith.constant 0 : i32
      %157 = arith.addi %148, %c0_i32_140 : i32
      %c0_141 = arith.constant 0 : index
      %158 = arith.index_cast %157 : i32 to index
      %c0_142 = arith.constant 0 : index
      %c2_143 = arith.constant 2 : index
      %159 = vector.load %arg1[%c0_141, %158, %c0_142, %c2_143] : memref<1x58x16x58xf32, #tpu.memory_space<vmem>>, vector<1x1x16x56xf32>
      %160 = vector.shape_cast %159 : vector<1x1x16x56xf32> to vector<16x56xf32>
      %c1_i32_144 = arith.constant 1 : i32
      %161 = arith.addi %148, %c1_i32_144 : i32
      %c0_145 = arith.constant 0 : index
      %162 = arith.index_cast %161 : i32 to index
      %c0_146 = arith.constant 0 : index
      %c0_147 = arith.constant 0 : index
      %163 = vector.load %arg1[%c0_145, %162, %c0_146, %c0_147] : memref<1x58x16x58xf32, #tpu.memory_space<vmem>>, vector<1x1x16x56xf32>
      %164 = vector.shape_cast %163 : vector<1x1x16x56xf32> to vector<16x56xf32>
      %c1_i32_148 = arith.constant 1 : i32
      %165 = arith.addi %148, %c1_i32_148 : i32
      %c0_149 = arith.constant 0 : index
      %166 = arith.index_cast %165 : i32 to index
      %c0_150 = arith.constant 0 : index
      %c1_151 = arith.constant 1 : index
      %167 = vector.load %arg1[%c0_149, %166, %c0_150, %c1_151] : memref<1x58x16x58xf32, #tpu.memory_space<vmem>>, vector<1x1x16x56xf32>
      %168 = vector.shape_cast %167 : vector<1x1x16x56xf32> to vector<16x56xf32>
      %c1_i32_152 = arith.constant 1 : i32
      %169 = arith.addi %148, %c1_i32_152 : i32
      %c0_153 = arith.constant 0 : index
      %170 = arith.index_cast %169 : i32 to index
      %c0_154 = arith.constant 0 : index
      %c2_155 = arith.constant 2 : index
      %171 = vector.load %arg1[%c0_153, %170, %c0_154, %c2_155] : memref<1x58x16x58xf32, #tpu.memory_space<vmem>>, vector<1x1x16x56xf32>
      %172 = vector.shape_cast %171 : vector<1x1x16x56xf32> to vector<16x56xf32>
      %c2_i32_156 = arith.constant 2 : i32
      %173 = arith.addi %148, %c2_i32_156 : i32
      %c0_157 = arith.constant 0 : index
      %174 = arith.index_cast %173 : i32 to index
      %c0_158 = arith.constant 0 : index
      %c0_159 = arith.constant 0 : index
      %175 = vector.load %arg1[%c0_157, %174, %c0_158, %c0_159] : memref<1x58x16x58xf32, #tpu.memory_space<vmem>>, vector<1x1x16x56xf32>
      %176 = vector.shape_cast %175 : vector<1x1x16x56xf32> to vector<16x56xf32>
      %c2_i32_160 = arith.constant 2 : i32
      %177 = arith.addi %148, %c2_i32_160 : i32
      %c0_161 = arith.constant 0 : index
      %178 = arith.index_cast %177 : i32 to index
      %c0_162 = arith.constant 0 : index
      %c1_163 = arith.constant 1 : index
      %179 = vector.load %arg1[%c0_161, %178, %c0_162, %c1_163] : memref<1x58x16x58xf32, #tpu.memory_space<vmem>>, vector<1x1x16x56xf32>
      %180 = vector.shape_cast %179 : vector<1x1x16x56xf32> to vector<16x56xf32>
      %c2_i32_164 = arith.constant 2 : i32
      %181 = arith.addi %148, %c2_i32_164 : i32
      %c0_165 = arith.constant 0 : index
      %182 = arith.index_cast %181 : i32 to index
      %c0_166 = arith.constant 0 : index
      %c2_167 = arith.constant 2 : index
      %183 = vector.load %arg1[%c0_165, %182, %c0_166, %c2_167] : memref<1x58x16x58xf32, #tpu.memory_space<vmem>>, vector<1x1x16x56xf32>
      %184 = vector.shape_cast %183 : vector<1x1x16x56xf32> to vector<16x56xf32>
      %185 = tpu.concatenate %152, %156, %160, %164, %168, %172, %176, %180, %184 in 0 : vector<16x56xf32>, vector<16x56xf32>, vector<16x56xf32>, vector<16x56xf32>, vector<16x56xf32>, vector<16x56xf32>, vector<16x56xf32>, vector<16x56xf32>, vector<16x56xf32> -> vector<144x56xf32>
      %cst_168 = arith.constant dense<0.000000e+00> : vector<32x56xf32>
      %186 = tpu.matmul %0, %185, %cst_168 {dimension_numbers = #tpu.dot_dimension_numbers<[1], [0], [0], [1], [0, 0, 1, 1], [], []>} : vector<32x144xf32>, vector<144x56xf32>, vector<32x56xf32> -> vector<32x56xf32>
      %187 = vector.broadcast %1 : vector<32x1xf32> to vector<32x56xf32>
      %188 = arith.addf %186, %187 : vector<32x56xf32>
      %cst_169 = arith.constant 0.000000e+00 : f32
      %189 = vector.broadcast %cst_169 : f32 to vector<32x56xf32>
      %190 = arith.maximumf %188, %189 : vector<32x56xf32>
      %191 = arith.maximumf %146, %190 : vector<32x56xf32>
      %c0_170 = arith.constant 0 : index
      %c0_171 = arith.constant 0 : index
      %192 = vector.load %arg4[%c0_170, %c0_171] : memref<56x28xf32, #tpu.memory_space<vmem>>, vector<56x28xf32>
      %cst_172 = arith.constant dense<0.000000e+00> : vector<32x28xf32>
      %193 = tpu.matmul %191, %192, %cst_172 {dimension_numbers = #tpu.dot_dimension_numbers<[1], [0], [0], [1], [0, 0, 1, 1], [], []>} : vector<32x56xf32>, vector<56x28xf32>, vector<32x28xf32> -> vector<32x28xf32>
      %c0_173 = arith.constant 0 : index
      %c0_174 = arith.constant 0 : index
      %194 = vector.load %arg5[%c0_173, %c0_174] : memref<56x28xf32, #tpu.memory_space<vmem>>, vector<56x28xf32>
      %cst_175 = arith.constant dense<0.000000e+00> : vector<32x28xf32>
      %195 = tpu.matmul %191, %194, %cst_175 {dimension_numbers = #tpu.dot_dimension_numbers<[1], [0], [0], [1], [0, 0, 1, 1], [], []>} : vector<32x56xf32>, vector<56x28xf32>, vector<32x28xf32> -> vector<32x28xf32>
      %196 = arith.maximumf %193, %195 : vector<32x28xf32>
      %c0_176 = arith.constant 0 : index
      %197 = arith.index_cast %103 : i32 to index
      %c0_177 = arith.constant 0 : index
      %c0_178 = arith.constant 0 : index
      %198 = vector.load %arg6[%c0_176, %197, %c0_177, %c0_178] : memref<1x28x32x28xf32, #tpu.memory_space<vmem>>, vector<1x1x32x28xf32>
      %199 = vector.shape_cast %198 : vector<1x1x32x28xf32> to vector<32x28xf32>
      %200 = vector.shape_cast %196 : vector<32x28xf32> to vector<1x1x32x28xf32>
      tpu.vector_store %arg6[%c0_176, %197, %c0_177, %c0_178], %200 {strides = array<i32>} : memref<1x28x32x28xf32, #tpu.memory_space<vmem>>, vector<1x1x32x28xf32>,
      %c4_i32_179 = arith.constant 4 : i32
      %201 = arith.muli %arg7, %c4_i32_179 : i32
      %c2_i32_180 = arith.constant 2 : i32
      %202 = arith.addi %201, %c2_i32_180 : i32
      %c2_i32_181 = arith.constant 2 : i32
      %203 = arith.muli %c2_i32_181, %202 : i32
      %c0_i32_182 = arith.constant 0 : i32
      %204 = arith.addi %203, %c0_i32_182 : i32
      %c0_183 = arith.constant 0 : index
      %205 = arith.index_cast %204 : i32 to index
      %c0_184 = arith.constant 0 : index
      %c0_185 = arith.constant 0 : index
      %206 = vector.load %arg1[%c0_183, %205, %c0_184, %c0_185] : memref<1x58x16x58xf32, #tpu.memory_space<vmem>>, vector<1x1x16x56xf32>
      %207 = vector.shape_cast %206 : vector<1x1x16x56xf32> to vector<16x56xf32>
      %c0_i32_186 = arith.constant 0 : i32
      %208 = arith.addi %203, %c0_i32_186 : i32
      %c0_187 = arith.constant 0 : index
      %209 = arith.index_cast %208 : i32 to index
      %c0_188 = arith.constant 0 : index
      %c1_189 = arith.constant 1 : index
      %210 = vector.load %arg1[%c0_187, %209, %c0_188, %c1_189] : memref<1x58x16x58xf32, #tpu.memory_space<vmem>>, vector<1x1x16x56xf32>
      %211 = vector.shape_cast %210 : vector<1x1x16x56xf32> to vector<16x56xf32>
      %c0_i32_190 = arith.constant 0 : i32
      %212 = arith.addi %203, %c0_i32_190 : i32
      %c0_191 = arith.constant 0 : index
      %213 = arith.index_cast %212 : i32 to index
      %c0_192 = arith.constant 0 : index
      %c2_193 = arith.constant 2 : index
      %214 = vector.load %arg1[%c0_191, %213, %c0_192, %c2_193] : memref<1x58x16x58xf32, #tpu.memory_space<vmem>>, vector<1x1x16x56xf32>
      %215 = vector.shape_cast %214 : vector<1x1x16x56xf32> to vector<16x56xf32>
      %c1_i32_194 = arith.constant 1 : i32
      %216 = arith.addi %203, %c1_i32_194 : i32
      %c0_195 = arith.constant 0 : index
      %217 = arith.index_cast %216 : i32 to index
      %c0_196 = arith.constant 0 : index
      %c0_197 = arith.constant 0 : index
      %218 = vector.load %arg1[%c0_195, %217, %c0_196, %c0_197] : memref<1x58x16x58xf32, #tpu.memory_space<vmem>>, vector<1x1x16x56xf32>
      %219 = vector.shape_cast %218 : vector<1x1x16x56xf32> to vector<16x56xf32>
      %c1_i32_198 = arith.constant 1 : i32
      %220 = arith.addi %203, %c1_i32_198 : i32
      %c0_199 = arith.constant 0 : index
      %221 = arith.index_cast %220 : i32 to index
      %c0_200 = arith.constant 0 : index
      %c1_201 = arith.constant 1 : index
      %222 = vector.load %arg1[%c0_199, %221, %c0_200, %c1_201] : memref<1x58x16x58xf32, #tpu.memory_space<vmem>>, vector<1x1x16x56xf32>
      %223 = vector.shape_cast %222 : vector<1x1x16x56xf32> to vector<16x56xf32>
      %c1_i32_202 = arith.constant 1 : i32
      %224 = arith.addi %203, %c1_i32_202 : i32
      %c0_203 = arith.constant 0 : index
      %225 = arith.index_cast %224 : i32 to index
      %c0_204 = arith.constant 0 : index
      %c2_205 = arith.constant 2 : index
      %226 = vector.load %arg1[%c0_203, %225, %c0_204, %c2_205] : memref<1x58x16x58xf32, #tpu.memory_space<vmem>>, vector<1x1x16x56xf32>
      %227 = vector.shape_cast %226 : vector<1x1x16x56xf32> to vector<16x56xf32>
      %c2_i32_206 = arith.constant 2 : i32
      %228 = arith.addi %203, %c2_i32_206 : i32
      %c0_207 = arith.constant 0 : index
      %229 = arith.index_cast %228 : i32 to index
      %c0_208 = arith.constant 0 : index
      %c0_209 = arith.constant 0 : index
      %230 = vector.load %arg1[%c0_207, %229, %c0_208, %c0_209] : memref<1x58x16x58xf32, #tpu.memory_space<vmem>>, vector<1x1x16x56xf32>
      %231 = vector.shape_cast %230 : vector<1x1x16x56xf32> to vector<16x56xf32>
      %c2_i32_210 = arith.constant 2 : i32
      %232 = arith.addi %203, %c2_i32_210 : i32
      %c0_211 = arith.constant 0 : index
      %233 = arith.index_cast %232 : i32 to index
      %c0_212 = arith.constant 0 : index
      %c1_213 = arith.constant 1 : index
      %234 = vector.load %arg1[%c0_211, %233, %c0_212, %c1_213] : memref<1x58x16x58xf32, #tpu.memory_space<vmem>>, vector<1x1x16x56xf32>
      %235 = vector.shape_cast %234 : vector<1x1x16x56xf32> to vector<16x56xf32>
      %c2_i32_214 = arith.constant 2 : i32
      %236 = arith.addi %203, %c2_i32_214 : i32
      %c0_215 = arith.constant 0 : index
      %237 = arith.index_cast %236 : i32 to index
      %c0_216 = arith.constant 0 : index
      %c2_217 = arith.constant 2 : index
      %238 = vector.load %arg1[%c0_215, %237, %c0_216, %c2_217] : memref<1x58x16x58xf32, #tpu.memory_space<vmem>>, vector<1x1x16x56xf32>
      %239 = vector.shape_cast %238 : vector<1x1x16x56xf32> to vector<16x56xf32>
      %240 = tpu.concatenate %207, %211, %215, %219, %223, %227, %231, %235, %239 in 0 : vector<16x56xf32>, vector<16x56xf32>, vector<16x56xf32>, vector<16x56xf32>, vector<16x56xf32>, vector<16x56xf32>, vector<16x56xf32>, vector<16x56xf32>, vector<16x56xf32> -> vector<144x56xf32>
      %cst_218 = arith.constant dense<0.000000e+00> : vector<32x56xf32>
      %241 = tpu.matmul %0, %240, %cst_218 {dimension_numbers = #tpu.dot_dimension_numbers<[1], [0], [0], [1], [0, 0, 1, 1], [], []>} : vector<32x144xf32>, vector<144x56xf32>, vector<32x56xf32> -> vector<32x56xf32>
      %242 = vector.broadcast %1 : vector<32x1xf32> to vector<32x56xf32>
      %243 = arith.addf %241, %242 : vector<32x56xf32>
      %cst_219 = arith.constant 0.000000e+00 : f32
      %244 = vector.broadcast %cst_219 : f32 to vector<32x56xf32>
      %245 = arith.maximumf %243, %244 : vector<32x56xf32>
      %c2_i32_220 = arith.constant 2 : i32
      %246 = arith.muli %c2_i32_220, %202 : i32
      %c1_i32_221 = arith.constant 1 : i32
      %247 = arith.addi %246, %c1_i32_221 : i32
      %c0_i32_222 = arith.constant 0 : i32
      %248 = arith.addi %247, %c0_i32_222 : i32
      %c0_223 = arith.constant 0 : index
      %249 = arith.index_cast %248 : i32 to index
      %c0_224 = arith.constant 0 : index
      %c0_225 = arith.constant 0 : index
      %250 = vector.load %arg1[%c0_223, %249, %c0_224, %c0_225] : memref<1x58x16x58xf32, #tpu.memory_space<vmem>>, vector<1x1x16x56xf32>
      %251 = vector.shape_cast %250 : vector<1x1x16x56xf32> to vector<16x56xf32>
      %c0_i32_226 = arith.constant 0 : i32
      %252 = arith.addi %247, %c0_i32_226 : i32
      %c0_227 = arith.constant 0 : index
      %253 = arith.index_cast %252 : i32 to index
      %c0_228 = arith.constant 0 : index
      %c1_229 = arith.constant 1 : index
      %254 = vector.load %arg1[%c0_227, %253, %c0_228, %c1_229] : memref<1x58x16x58xf32, #tpu.memory_space<vmem>>, vector<1x1x16x56xf32>
      %255 = vector.shape_cast %254 : vector<1x1x16x56xf32> to vector<16x56xf32>
      %c0_i32_230 = arith.constant 0 : i32
      %256 = arith.addi %247, %c0_i32_230 : i32
      %c0_231 = arith.constant 0 : index
      %257 = arith.index_cast %256 : i32 to index
      %c0_232 = arith.constant 0 : index
      %c2_233 = arith.constant 2 : index
      %258 = vector.load %arg1[%c0_231, %257, %c0_232, %c2_233] : memref<1x58x16x58xf32, #tpu.memory_space<vmem>>, vector<1x1x16x56xf32>
      %259 = vector.shape_cast %258 : vector<1x1x16x56xf32> to vector<16x56xf32>
      %c1_i32_234 = arith.constant 1 : i32
      %260 = arith.addi %247, %c1_i32_234 : i32
      %c0_235 = arith.constant 0 : index
      %261 = arith.index_cast %260 : i32 to index
      %c0_236 = arith.constant 0 : index
      %c0_237 = arith.constant 0 : index
      %262 = vector.load %arg1[%c0_235, %261, %c0_236, %c0_237] : memref<1x58x16x58xf32, #tpu.memory_space<vmem>>, vector<1x1x16x56xf32>
      %263 = vector.shape_cast %262 : vector<1x1x16x56xf32> to vector<16x56xf32>
      %c1_i32_238 = arith.constant 1 : i32
      %264 = arith.addi %247, %c1_i32_238 : i32
      %c0_239 = arith.constant 0 : index
      %265 = arith.index_cast %264 : i32 to index
      %c0_240 = arith.constant 0 : index
      %c1_241 = arith.constant 1 : index
      %266 = vector.load %arg1[%c0_239, %265, %c0_240, %c1_241] : memref<1x58x16x58xf32, #tpu.memory_space<vmem>>, vector<1x1x16x56xf32>
      %267 = vector.shape_cast %266 : vector<1x1x16x56xf32> to vector<16x56xf32>
      %c1_i32_242 = arith.constant 1 : i32
      %268 = arith.addi %247, %c1_i32_242 : i32
      %c0_243 = arith.constant 0 : index
      %269 = arith.index_cast %268 : i32 to index
      %c0_244 = arith.constant 0 : index
      %c2_245 = arith.constant 2 : index
      %270 = vector.load %arg1[%c0_243, %269, %c0_244, %c2_245] : memref<1x58x16x58xf32, #tpu.memory_space<vmem>>, vector<1x1x16x56xf32>
      %271 = vector.shape_cast %270 : vector<1x1x16x56xf32> to vector<16x56xf32>
      %c2_i32_246 = arith.constant 2 : i32
      %272 = arith.addi %247, %c2_i32_246 : i32
      %c0_247 = arith.constant 0 : index
      %273 = arith.index_cast %272 : i32 to index
      %c0_248 = arith.constant 0 : index
      %c0_249 = arith.constant 0 : index
      %274 = vector.load %arg1[%c0_247, %273, %c0_248, %c0_249] : memref<1x58x16x58xf32, #tpu.memory_space<vmem>>, vector<1x1x16x56xf32>
      %275 = vector.shape_cast %274 : vector<1x1x16x56xf32> to vector<16x56xf32>
      %c2_i32_250 = arith.constant 2 : i32
      %276 = arith.addi %247, %c2_i32_250 : i32
      %c0_251 = arith.constant 0 : index
      %277 = arith.index_cast %276 : i32 to index
      %c0_252 = arith.constant 0 : index
      %c1_253 = arith.constant 1 : index
      %278 = vector.load %arg1[%c0_251, %277, %c0_252, %c1_253] : memref<1x58x16x58xf32, #tpu.memory_space<vmem>>, vector<1x1x16x56xf32>
      %279 = vector.shape_cast %278 : vector<1x1x16x56xf32> to vector<16x56xf32>
      %c2_i32_254 = arith.constant 2 : i32
      %280 = arith.addi %247, %c2_i32_254 : i32
      %c0_255 = arith.constant 0 : index
      %281 = arith.index_cast %280 : i32 to index
      %c0_256 = arith.constant 0 : index
      %c2_257 = arith.constant 2 : index
      %282 = vector.load %arg1[%c0_255, %281, %c0_256, %c2_257] : memref<1x58x16x58xf32, #tpu.memory_space<vmem>>, vector<1x1x16x56xf32>
      %283 = vector.shape_cast %282 : vector<1x1x16x56xf32> to vector<16x56xf32>
      %284 = tpu.concatenate %251, %255, %259, %263, %267, %271, %275, %279, %283 in 0 : vector<16x56xf32>, vector<16x56xf32>, vector<16x56xf32>, vector<16x56xf32>, vector<16x56xf32>, vector<16x56xf32>, vector<16x56xf32>, vector<16x56xf32>, vector<16x56xf32> -> vector<144x56xf32>
      %cst_258 = arith.constant dense<0.000000e+00> : vector<32x56xf32>
      %285 = tpu.matmul %0, %284, %cst_258 {dimension_numbers = #tpu.dot_dimension_numbers<[1], [0], [0], [1], [0, 0, 1, 1], [], []>} : vector<32x144xf32>, vector<144x56xf32>, vector<32x56xf32> -> vector<32x56xf32>
      %286 = vector.broadcast %1 : vector<32x1xf32> to vector<32x56xf32>
      %287 = arith.addf %285, %286 : vector<32x56xf32>
      %cst_259 = arith.constant 0.000000e+00 : f32
      %288 = vector.broadcast %cst_259 : f32 to vector<32x56xf32>
      %289 = arith.maximumf %287, %288 : vector<32x56xf32>
      %290 = arith.maximumf %245, %289 : vector<32x56xf32>
      %c0_260 = arith.constant 0 : index
      %c0_261 = arith.constant 0 : index
      %291 = vector.load %arg4[%c0_260, %c0_261] : memref<56x28xf32, #tpu.memory_space<vmem>>, vector<56x28xf32>
      %cst_262 = arith.constant dense<0.000000e+00> : vector<32x28xf32>
      %292 = tpu.matmul %290, %291, %cst_262 {dimension_numbers = #tpu.dot_dimension_numbers<[1], [0], [0], [1], [0, 0, 1, 1], [], []>} : vector<32x56xf32>, vector<56x28xf32>, vector<32x28xf32> -> vector<32x28xf32>
      %c0_263 = arith.constant 0 : index
      %c0_264 = arith.constant 0 : index
      %293 = vector.load %arg5[%c0_263, %c0_264] : memref<56x28xf32, #tpu.memory_space<vmem>>, vector<56x28xf32>
      %cst_265 = arith.constant dense<0.000000e+00> : vector<32x28xf32>
      %294 = tpu.matmul %290, %293, %cst_265 {dimension_numbers = #tpu.dot_dimension_numbers<[1], [0], [0], [1], [0, 0, 1, 1], [], []>} : vector<32x56xf32>, vector<56x28xf32>, vector<32x28xf32> -> vector<32x28xf32>
      %295 = arith.maximumf %292, %294 : vector<32x28xf32>
      %c0_266 = arith.constant 0 : index
      %296 = arith.index_cast %202 : i32 to index
      %c0_267 = arith.constant 0 : index
      %c0_268 = arith.constant 0 : index
      %297 = vector.load %arg6[%c0_266, %296, %c0_267, %c0_268] : memref<1x28x32x28xf32, #tpu.memory_space<vmem>>, vector<1x1x32x28xf32>
      %298 = vector.shape_cast %297 : vector<1x1x32x28xf32> to vector<32x28xf32>
      %299 = vector.shape_cast %295 : vector<32x28xf32> to vector<1x1x32x28xf32>
      tpu.vector_store %arg6[%c0_266, %296, %c0_267, %c0_268], %299 {strides = array<i32>} : memref<1x28x32x28xf32, #tpu.memory_space<vmem>>, vector<1x1x32x28xf32>,
      %c4_i32_269 = arith.constant 4 : i32
      %300 = arith.muli %arg7, %c4_i32_269 : i32
      %c3_i32 = arith.constant 3 : i32
      %301 = arith.addi %300, %c3_i32 : i32
      %c2_i32_270 = arith.constant 2 : i32
      %302 = arith.muli %c2_i32_270, %301 : i32
      %c0_i32_271 = arith.constant 0 : i32
      %303 = arith.addi %302, %c0_i32_271 : i32
      %c0_272 = arith.constant 0 : index
      %304 = arith.index_cast %303 : i32 to index
      %c0_273 = arith.constant 0 : index
      %c0_274 = arith.constant 0 : index
      %305 = vector.load %arg1[%c0_272, %304, %c0_273, %c0_274] : memref<1x58x16x58xf32, #tpu.memory_space<vmem>>, vector<1x1x16x56xf32>
      %306 = vector.shape_cast %305 : vector<1x1x16x56xf32> to vector<16x56xf32>
      %c0_i32_275 = arith.constant 0 : i32
      %307 = arith.addi %302, %c0_i32_275 : i32
      %c0_276 = arith.constant 0 : index
      %308 = arith.index_cast %307 : i32 to index
      %c0_277 = arith.constant 0 : index
      %c1_278 = arith.constant 1 : index
      %309 = vector.load %arg1[%c0_276, %308, %c0_277, %c1_278] : memref<1x58x16x58xf32, #tpu.memory_space<vmem>>, vector<1x1x16x56xf32>
      %310 = vector.shape_cast %309 : vector<1x1x16x56xf32> to vector<16x56xf32>
      %c0_i32_279 = arith.constant 0 : i32
      %311 = arith.addi %302, %c0_i32_279 : i32
      %c0_280 = arith.constant 0 : index
      %312 = arith.index_cast %311 : i32 to index
      %c0_281 = arith.constant 0 : index
      %c2_282 = arith.constant 2 : index
      %313 = vector.load %arg1[%c0_280, %312, %c0_281, %c2_282] : memref<1x58x16x58xf32, #tpu.memory_space<vmem>>, vector<1x1x16x56xf32>
      %314 = vector.shape_cast %313 : vector<1x1x16x56xf32> to vector<16x56xf32>
      %c1_i32_283 = arith.constant 1 : i32
      %315 = arith.addi %302, %c1_i32_283 : i32
      %c0_284 = arith.constant 0 : index
      %316 = arith.index_cast %315 : i32 to index
      %c0_285 = arith.constant 0 : index
      %c0_286 = arith.constant 0 : index
      %317 = vector.load %arg1[%c0_284, %316, %c0_285, %c0_286] : memref<1x58x16x58xf32, #tpu.memory_space<vmem>>, vector<1x1x16x56xf32>
      %318 = vector.shape_cast %317 : vector<1x1x16x56xf32> to vector<16x56xf32>
      %c1_i32_287 = arith.constant 1 : i32
      %319 = arith.addi %302, %c1_i32_287 : i32
      %c0_288 = arith.constant 0 : index
      %320 = arith.index_cast %319 : i32 to index
      %c0_289 = arith.constant 0 : index
      %c1_290 = arith.constant 1 : index
      %321 = vector.load %arg1[%c0_288, %320, %c0_289, %c1_290] : memref<1x58x16x58xf32, #tpu.memory_space<vmem>>, vector<1x1x16x56xf32>
      %322 = vector.shape_cast %321 : vector<1x1x16x56xf32> to vector<16x56xf32>
      %c1_i32_291 = arith.constant 1 : i32
      %323 = arith.addi %302, %c1_i32_291 : i32
      %c0_292 = arith.constant 0 : index
      %324 = arith.index_cast %323 : i32 to index
      %c0_293 = arith.constant 0 : index
      %c2_294 = arith.constant 2 : index
      %325 = vector.load %arg1[%c0_292, %324, %c0_293, %c2_294] : memref<1x58x16x58xf32, #tpu.memory_space<vmem>>, vector<1x1x16x56xf32>
      %326 = vector.shape_cast %325 : vector<1x1x16x56xf32> to vector<16x56xf32>
      %c2_i32_295 = arith.constant 2 : i32
      %327 = arith.addi %302, %c2_i32_295 : i32
      %c0_296 = arith.constant 0 : index
      %328 = arith.index_cast %327 : i32 to index
      %c0_297 = arith.constant 0 : index
      %c0_298 = arith.constant 0 : index
      %329 = vector.load %arg1[%c0_296, %328, %c0_297, %c0_298] : memref<1x58x16x58xf32, #tpu.memory_space<vmem>>, vector<1x1x16x56xf32>
      %330 = vector.shape_cast %329 : vector<1x1x16x56xf32> to vector<16x56xf32>
      %c2_i32_299 = arith.constant 2 : i32
      %331 = arith.addi %302, %c2_i32_299 : i32
      %c0_300 = arith.constant 0 : index
      %332 = arith.index_cast %331 : i32 to index
      %c0_301 = arith.constant 0 : index
      %c1_302 = arith.constant 1 : index
      %333 = vector.load %arg1[%c0_300, %332, %c0_301, %c1_302] : memref<1x58x16x58xf32, #tpu.memory_space<vmem>>, vector<1x1x16x56xf32>
      %334 = vector.shape_cast %333 : vector<1x1x16x56xf32> to vector<16x56xf32>
      %c2_i32_303 = arith.constant 2 : i32
      %335 = arith.addi %302, %c2_i32_303 : i32
      %c0_304 = arith.constant 0 : index
      %336 = arith.index_cast %335 : i32 to index
      %c0_305 = arith.constant 0 : index
      %c2_306 = arith.constant 2 : index
      %337 = vector.load %arg1[%c0_304, %336, %c0_305, %c2_306] : memref<1x58x16x58xf32, #tpu.memory_space<vmem>>, vector<1x1x16x56xf32>
      %338 = vector.shape_cast %337 : vector<1x1x16x56xf32> to vector<16x56xf32>
      %339 = tpu.concatenate %306, %310, %314, %318, %322, %326, %330, %334, %338 in 0 : vector<16x56xf32>, vector<16x56xf32>, vector<16x56xf32>, vector<16x56xf32>, vector<16x56xf32>, vector<16x56xf32>, vector<16x56xf32>, vector<16x56xf32>, vector<16x56xf32> -> vector<144x56xf32>
      %cst_307 = arith.constant dense<0.000000e+00> : vector<32x56xf32>
      %340 = tpu.matmul %0, %339, %cst_307 {dimension_numbers = #tpu.dot_dimension_numbers<[1], [0], [0], [1], [0, 0, 1, 1], [], []>} : vector<32x144xf32>, vector<144x56xf32>, vector<32x56xf32> -> vector<32x56xf32>
      %341 = vector.broadcast %1 : vector<32x1xf32> to vector<32x56xf32>
      %342 = arith.addf %340, %341 : vector<32x56xf32>
      %cst_308 = arith.constant 0.000000e+00 : f32
      %343 = vector.broadcast %cst_308 : f32 to vector<32x56xf32>
      %344 = arith.maximumf %342, %343 : vector<32x56xf32>
      %c2_i32_309 = arith.constant 2 : i32
      %345 = arith.muli %c2_i32_309, %301 : i32
      %c1_i32_310 = arith.constant 1 : i32
      %346 = arith.addi %345, %c1_i32_310 : i32
      %c0_i32_311 = arith.constant 0 : i32
      %347 = arith.addi %346, %c0_i32_311 : i32
      %c0_312 = arith.constant 0 : index
      %348 = arith.index_cast %347 : i32 to index
      %c0_313 = arith.constant 0 : index
      %c0_314 = arith.constant 0 : index
      %349 = vector.load %arg1[%c0_312, %348, %c0_313, %c0_314] : memref<1x58x16x58xf32, #tpu.memory_space<vmem>>, vector<1x1x16x56xf32>
      %350 = vector.shape_cast %349 : vector<1x1x16x56xf32> to vector<16x56xf32>
      %c0_i32_315 = arith.constant 0 : i32
      %351 = arith.addi %346, %c0_i32_315 : i32
      %c0_316 = arith.constant 0 : index
      %352 = arith.index_cast %351 : i32 to index
      %c0_317 = arith.constant 0 : index
      %c1_318 = arith.constant 1 : index
      %353 = vector.load %arg1[%c0_316, %352, %c0_317, %c1_318] : memref<1x58x16x58xf32, #tpu.memory_space<vmem>>, vector<1x1x16x56xf32>
      %354 = vector.shape_cast %353 : vector<1x1x16x56xf32> to vector<16x56xf32>
      %c0_i32_319 = arith.constant 0 : i32
      %355 = arith.addi %346, %c0_i32_319 : i32
      %c0_320 = arith.constant 0 : index
      %356 = arith.index_cast %355 : i32 to index
      %c0_321 = arith.constant 0 : index
      %c2_322 = arith.constant 2 : index
      %357 = vector.load %arg1[%c0_320, %356, %c0_321, %c2_322] : memref<1x58x16x58xf32, #tpu.memory_space<vmem>>, vector<1x1x16x56xf32>
      %358 = vector.shape_cast %357 : vector<1x1x16x56xf32> to vector<16x56xf32>
      %c1_i32_323 = arith.constant 1 : i32
      %359 = arith.addi %346, %c1_i32_323 : i32
      %c0_324 = arith.constant 0 : index
      %360 = arith.index_cast %359 : i32 to index
      %c0_325 = arith.constant 0 : index
      %c0_326 = arith.constant 0 : index
      %361 = vector.load %arg1[%c0_324, %360, %c0_325, %c0_326] : memref<1x58x16x58xf32, #tpu.memory_space<vmem>>, vector<1x1x16x56xf32>
      %362 = vector.shape_cast %361 : vector<1x1x16x56xf32> to vector<16x56xf32>
      %c1_i32_327 = arith.constant 1 : i32
      %363 = arith.addi %346, %c1_i32_327 : i32
      %c0_328 = arith.constant 0 : index
      %364 = arith.index_cast %363 : i32 to index
      %c0_329 = arith.constant 0 : index
      %c1_330 = arith.constant 1 : index
      %365 = vector.load %arg1[%c0_328, %364, %c0_329, %c1_330] : memref<1x58x16x58xf32, #tpu.memory_space<vmem>>, vector<1x1x16x56xf32>
      %366 = vector.shape_cast %365 : vector<1x1x16x56xf32> to vector<16x56xf32>
      %c1_i32_331 = arith.constant 1 : i32
      %367 = arith.addi %346, %c1_i32_331 : i32
      %c0_332 = arith.constant 0 : index
      %368 = arith.index_cast %367 : i32 to index
      %c0_333 = arith.constant 0 : index
      %c2_334 = arith.constant 2 : index
      %369 = vector.load %arg1[%c0_332, %368, %c0_333, %c2_334] : memref<1x58x16x58xf32, #tpu.memory_space<vmem>>, vector<1x1x16x56xf32>
      %370 = vector.shape_cast %369 : vector<1x1x16x56xf32> to vector<16x56xf32>
      %c2_i32_335 = arith.constant 2 : i32
      %371 = arith.addi %346, %c2_i32_335 : i32
      %c0_336 = arith.constant 0 : index
      %372 = arith.index_cast %371 : i32 to index
      %c0_337 = arith.constant 0 : index
      %c0_338 = arith.constant 0 : index
      %373 = vector.load %arg1[%c0_336, %372, %c0_337, %c0_338] : memref<1x58x16x58xf32, #tpu.memory_space<vmem>>, vector<1x1x16x56xf32>
      %374 = vector.shape_cast %373 : vector<1x1x16x56xf32> to vector<16x56xf32>
      %c2_i32_339 = arith.constant 2 : i32
      %375 = arith.addi %346, %c2_i32_339 : i32
      %c0_340 = arith.constant 0 : index
      %376 = arith.index_cast %375 : i32 to index
      %c0_341 = arith.constant 0 : index
      %c1_342 = arith.constant 1 : index
      %377 = vector.load %arg1[%c0_340, %376, %c0_341, %c1_342] : memref<1x58x16x58xf32, #tpu.memory_space<vmem>>, vector<1x1x16x56xf32>
      %378 = vector.shape_cast %377 : vector<1x1x16x56xf32> to vector<16x56xf32>
      %c2_i32_343 = arith.constant 2 : i32
      %379 = arith.addi %346, %c2_i32_343 : i32
      %c0_344 = arith.constant 0 : index
      %380 = arith.index_cast %379 : i32 to index
      %c0_345 = arith.constant 0 : index
      %c2_346 = arith.constant 2 : index
      %381 = vector.load %arg1[%c0_344, %380, %c0_345, %c2_346] : memref<1x58x16x58xf32, #tpu.memory_space<vmem>>, vector<1x1x16x56xf32>
      %382 = vector.shape_cast %381 : vector<1x1x16x56xf32> to vector<16x56xf32>
      %383 = tpu.concatenate %350, %354, %358, %362, %366, %370, %374, %378, %382 in 0 : vector<16x56xf32>, vector<16x56xf32>, vector<16x56xf32>, vector<16x56xf32>, vector<16x56xf32>, vector<16x56xf32>, vector<16x56xf32>, vector<16x56xf32>, vector<16x56xf32> -> vector<144x56xf32>
      %cst_347 = arith.constant dense<0.000000e+00> : vector<32x56xf32>
      %384 = tpu.matmul %0, %383, %cst_347 {dimension_numbers = #tpu.dot_dimension_numbers<[1], [0], [0], [1], [0, 0, 1, 1], [], []>} : vector<32x144xf32>, vector<144x56xf32>, vector<32x56xf32> -> vector<32x56xf32>
      %385 = vector.broadcast %1 : vector<32x1xf32> to vector<32x56xf32>
      %386 = arith.addf %384, %385 : vector<32x56xf32>
      %cst_348 = arith.constant 0.000000e+00 : f32
      %387 = vector.broadcast %cst_348 : f32 to vector<32x56xf32>
      %388 = arith.maximumf %386, %387 : vector<32x56xf32>
      %389 = arith.maximumf %344, %388 : vector<32x56xf32>
      %c0_349 = arith.constant 0 : index
      %c0_350 = arith.constant 0 : index
      %390 = vector.load %arg4[%c0_349, %c0_350] : memref<56x28xf32, #tpu.memory_space<vmem>>, vector<56x28xf32>
      %cst_351 = arith.constant dense<0.000000e+00> : vector<32x28xf32>
      %391 = tpu.matmul %389, %390, %cst_351 {dimension_numbers = #tpu.dot_dimension_numbers<[1], [0], [0], [1], [0, 0, 1, 1], [], []>} : vector<32x56xf32>, vector<56x28xf32>, vector<32x28xf32> -> vector<32x28xf32>
      %c0_352 = arith.constant 0 : index
      %c0_353 = arith.constant 0 : index
      %392 = vector.load %arg5[%c0_352, %c0_353] : memref<56x28xf32, #tpu.memory_space<vmem>>, vector<56x28xf32>
      %cst_354 = arith.constant dense<0.000000e+00> : vector<32x28xf32>
      %393 = tpu.matmul %389, %392, %cst_354 {dimension_numbers = #tpu.dot_dimension_numbers<[1], [0], [0], [1], [0, 0, 1, 1], [], []>} : vector<32x56xf32>, vector<56x28xf32>, vector<32x28xf32> -> vector<32x28xf32>
      %394 = arith.maximumf %391, %393 : vector<32x28xf32>
      %c0_355 = arith.constant 0 : index
      %395 = arith.index_cast %301 : i32 to index
      %c0_356 = arith.constant 0 : index
      %c0_357 = arith.constant 0 : index
      %396 = vector.load %arg6[%c0_355, %395, %c0_356, %c0_357] : memref<1x28x32x28xf32, #tpu.memory_space<vmem>>, vector<1x1x32x28xf32>
      %397 = vector.shape_cast %396 : vector<1x1x32x28xf32> to vector<32x28xf32>
      %398 = vector.shape_cast %394 : vector<32x28xf32> to vector<1x1x32x28xf32>
      tpu.vector_store %arg6[%c0_355, %395, %c0_356, %c0_357], %398 {strides = array<i32>} : memref<1x28x32x28xf32, #tpu.memory_space<vmem>>, vector<1x1x32x28xf32>,
    }
    %c7_i32_3 = arith.constant 7 : i32
    return
  }
  func.func @transform_0(%arg0: i32) -> (i32, i32, i32, i32) {
    %c0_i32 = arith.constant 0 : i32
    %c0_i32_0 = arith.constant 0 : i32
    %c0_i32_1 = arith.constant 0 : i32
    %c0_i32_2 = arith.constant 0 : i32
    return %arg0, %c0_i32, %c0_i32_0, %c0_i32_1 : i32, i32, i32, i32
  }
  func.func @transform_1(%arg0: i32) -> (i32, i32) {
    %c0_i32 = arith.constant 0 : i32
    %c0_i32_0 = arith.constant 0 : i32
    %c0_i32_1 = arith.constant 0 : i32
    return %c0_i32, %c0_i32_0 : i32, i32
  }
  func.func @transform_2(%arg0: i32) -> (i32, i32) {
    %c0_i32 = arith.constant 0 : i32
    %c0_i32_0 = arith.constant 0 : i32
    %c0_i32_1 = arith.constant 0 : i32
    return %c0_i32, %c0_i32_0 : i32, i32
  }
  func.func @transform_3(%arg0: i32) -> (i32, i32) {
    %c0_i32 = arith.constant 0 : i32
    %c0_i32_0 = arith.constant 0 : i32
    %c0_i32_1 = arith.constant 0 : i32
    return %c0_i32, %c0_i32_0 : i32, i32
  }
  func.func @transform_4(%arg0: i32) -> (i32, i32) {
    %c0_i32 = arith.constant 0 : i32
    %c0_i32_0 = arith.constant 0 : i32
    %c0_i32_1 = arith.constant 0 : i32
    return %c0_i32, %c0_i32_0 : i32, i32
  }
  func.func @transform_5(%arg0: i32) -> (i32, i32, i32, i32) {
    %c0_i32 = arith.constant 0 : i32
    %c0_i32_0 = arith.constant 0 : i32
    %c0_i32_1 = arith.constant 0 : i32
    %c0_i32_2 = arith.constant 0 : i32
    return %arg0, %c0_i32, %c0_i32_0, %c0_i32_1 : i32, i32, i32, i32
  }
}

module attributes {stable_mosaic.version = 11 : i64} {
  func.func @_fc_kernel(%arg0: i32, %arg1: memref<2x3584xf32, #tpu.memory_space<vmem>>, %arg2: memref<3584x256xf32, #tpu.memory_space<vmem>>, %arg3: memref<1x256xf32, #tpu.memory_space<vmem>>, %arg4: memref<256x36xf32, #tpu.memory_space<vmem>>, %arg5: memref<1x36xf32, #tpu.memory_space<vmem>>, %arg6: memref<2x36xf32, #tpu.memory_space<vmem>>, %arg7: memref<2x256xf32, #tpu.memory_space<vmem>>) attributes {dimension_semantics = [#tpu.dimension_semantics<arbitrary>], iteration_bounds = array<i64: 7>, scalar_prefetch = 0 : i64, scratch_operands = 1 : i64, tpu.core_type = #tpu.core_type<tc>, window_params = [{transform_indices = @transform_0, window_bounds = array<i64: 2, 3584>}, {transform_indices = @transform_1, window_bounds = array<i64: 3584, 256>}, {pipeline_mode = #tpu.pipeline_mode<synchronous>, transform_indices = @transform_2, window_bounds = array<i64: 1, 256>}, {pipeline_mode = #tpu.pipeline_mode<synchronous>, transform_indices = @transform_3, window_bounds = array<i64: 256, 36>}, {pipeline_mode = #tpu.pipeline_mode<synchronous>, transform_indices = @transform_4, window_bounds = array<i64: 1, 36>}, {pipeline_mode = #tpu.pipeline_mode<synchronous>, transform_indices = @transform_5, window_bounds = array<i64: 2, 36>}]} {
    %c0_i32 = arith.constant 0 : i32
    %0 = arith.cmpi eq, %arg0, %c0_i32 : i32
    %1 = arith.extui %0 : i1 to i32
    %c0_i32_0 = arith.constant 0 : i32
    %2 = arith.cmpi ne, %1, %c0_i32_0 : i32
    scf.if %2 {
      %cst_9 = arith.constant 0.000000e+00 : f32
      %12 = vector.broadcast %cst_9 : f32 to vector<2x256xf32>
      %c0_10 = arith.constant 0 : index
      %c0_11 = arith.constant 0 : index
      %13 = vector.load %arg7[%c0_10, %c0_11] : memref<2x256xf32, #tpu.memory_space<vmem>>, vector<2x256xf32>
      tpu.vector_store %arg7[%c0_10, %c0_11], %12 {strides = array<i32>} : memref<2x256xf32, #tpu.memory_space<vmem>>, vector<2x256xf32>,
    } else {
    }
    %c0 = arith.constant 0 : index
    %c0_1 = arith.constant 0 : index
    %3 = vector.load %arg7[%c0, %c0_1] : memref<2x256xf32, #tpu.memory_space<vmem>>, vector<2x256xf32>
    %c0_2 = arith.constant 0 : index
    %c0_3 = arith.constant 0 : index
    %4 = vector.load %arg1[%c0_2, %c0_3] : memref<2x3584xf32, #tpu.memory_space<vmem>>, vector<2x3584xf32>
    %c0_4 = arith.constant 0 : index
    %c0_5 = arith.constant 0 : index
    %5 = vector.load %arg2[%c0_4, %c0_5] : memref<3584x256xf32, #tpu.memory_space<vmem>>, vector<3584x256xf32>
    %cst = arith.constant dense<0.000000e+00> : vector<2x256xf32>
    %6 = tpu.matmul %4, %5, %cst {dimension_numbers = #tpu.dot_dimension_numbers<[1], [0], [0], [1], [0, 0, 1, 1], [], []>} : vector<2x3584xf32>, vector<3584x256xf32>, vector<2x256xf32> -> vector<2x256xf32>
    %7 = arith.addf %3, %6 : vector<2x256xf32>
    %c0_6 = arith.constant 0 : index
    %c0_7 = arith.constant 0 : index
    %8 = vector.load %arg7[%c0_6, %c0_7] : memref<2x256xf32, #tpu.memory_space<vmem>>, vector<2x256xf32>
    tpu.vector_store %arg7[%c0_6, %c0_7], %7 {strides = array<i32>} : memref<2x256xf32, #tpu.memory_space<vmem>>, vector<2x256xf32>,
    %c6_i32 = arith.constant 6 : i32
    %9 = arith.cmpi eq, %arg0, %c6_i32 : i32
    %10 = arith.extui %9 : i1 to i32
    %c0_i32_8 = arith.constant 0 : i32
    %11 = arith.cmpi ne, %10, %c0_i32_8 : i32
    scf.if %11 {
      %c0_9 = arith.constant 0 : index
      %c0_10 = arith.constant 0 : index
      %12 = vector.load %arg7[%c0_9, %c0_10] : memref<2x256xf32, #tpu.memory_space<vmem>>, vector<2x256xf32>
      %c0_11 = arith.constant 0 : index
      %c0_12 = arith.constant 0 : index
      %13 = vector.load %arg3[%c0_11, %c0_12] : memref<1x256xf32, #tpu.memory_space<vmem>>, vector<1x256xf32>
      %14 = vector.broadcast %13 : vector<1x256xf32> to vector<2x256xf32>
      %15 = arith.addf %12, %14 : vector<2x256xf32>
      %cst_13 = arith.constant 0.000000e+00 : f32
      %16 = vector.broadcast %cst_13 : f32 to vector<2x256xf32>
      %17 = arith.maximumf %15, %16 : vector<2x256xf32>
      %c0_14 = arith.constant 0 : index
      %c0_15 = arith.constant 0 : index
      %18 = vector.load %arg4[%c0_14, %c0_15] : memref<256x36xf32, #tpu.memory_space<vmem>>, vector<256x36xf32>
      %cst_16 = arith.constant dense<0.000000e+00> : vector<2x36xf32>
      %19 = tpu.matmul %17, %18, %cst_16 {dimension_numbers = #tpu.dot_dimension_numbers<[1], [0], [0], [1], [0, 0, 1, 1], [], []>} : vector<2x256xf32>, vector<256x36xf32>, vector<2x36xf32> -> vector<2x36xf32>
      %c0_17 = arith.constant 0 : index
      %c0_18 = arith.constant 0 : index
      %20 = vector.load %arg5[%c0_17, %c0_18] : memref<1x36xf32, #tpu.memory_space<vmem>>, vector<1x36xf32>
      %21 = vector.broadcast %20 : vector<1x36xf32> to vector<2x36xf32>
      %22 = arith.addf %19, %21 : vector<2x36xf32>
      %c0_19 = arith.constant 0 : index
      %c0_20 = arith.constant 0 : index
      %23 = vector.load %arg6[%c0_19, %c0_20] : memref<2x36xf32, #tpu.memory_space<vmem>>, vector<2x36xf32>
      tpu.vector_store %arg6[%c0_19, %c0_20], %22 {strides = array<i32>} : memref<2x36xf32, #tpu.memory_space<vmem>>, vector<2x36xf32>,
    } else {
    }
    return
  }
  func.func @transform_0(%arg0: i32) -> (i32, i32) {
    %c0_i32 = arith.constant 0 : i32
    %c0_i32_0 = arith.constant 0 : i32
    return %c0_i32, %arg0 : i32, i32
  }
  func.func @transform_1(%arg0: i32) -> (i32, i32) {
    %c0_i32 = arith.constant 0 : i32
    %c0_i32_0 = arith.constant 0 : i32
    return %arg0, %c0_i32 : i32, i32
  }
  func.func @transform_2(%arg0: i32) -> (i32, i32) {
    %c0_i32 = arith.constant 0 : i32
    %c0_i32_0 = arith.constant 0 : i32
    %c0_i32_1 = arith.constant 0 : i32
    return %c0_i32, %c0_i32_0 : i32, i32
  }
  func.func @transform_3(%arg0: i32) -> (i32, i32) {
    %c0_i32 = arith.constant 0 : i32
    %c0_i32_0 = arith.constant 0 : i32
    %c0_i32_1 = arith.constant 0 : i32
    return %c0_i32, %c0_i32_0 : i32, i32
  }
  func.func @transform_4(%arg0: i32) -> (i32, i32) {
    %c0_i32 = arith.constant 0 : i32
    %c0_i32_0 = arith.constant 0 : i32
    %c0_i32_1 = arith.constant 0 : i32
    return %c0_i32, %c0_i32_0 : i32, i32
  }
  func.func @transform_5(%arg0: i32) -> (i32, i32) {
    %c0_i32 = arith.constant 0 : i32
    %c0_i32_0 = arith.constant 0 : i32
    %c0_i32_1 = arith.constant 0 : i32
    return %c0_i32, %c0_i32_0 : i32, i32
  }
}

</mosaic_0001>

<bundles_post_ra>
// kernel: simple_cnn_forward.3
= control target key start
LH: loop header
LB: loop body
LE: loop exit
PB: predicated region body
PF: predicated region fallthrough
CT: control target
= control target key end

     0   :  { %10 = vsyncpa [#allocation3], 0  ;;  %s3000_s18 = smov 0   ;;  %s3868_s0 = inlined_call_operand.vmem [shape: f32[2,114,114], index: 0, kind: input, shape index: {}]   ;;  %s3869_s1 = inlined_call_operand.hbm [shape: f32[16,9], index: 1, kind: input, shape index: {}]   ;;  %s3870_s2 = inlined_call_operand.vmem [shape: f32[16,1], index: 2, kind: input, shape index: {}]   ;;  %s3871_s3 = inlined_call_operand.vmem [shape: f32[112,56], index: 3, kind: input, shape index: {}]   ;;  %s3872_s4 = inlined_call_operand.vmem [shape: f32[112,56], index: 4, kind: input, shape index: {}]   ;;  %s3873_s5 = inlined_call_operand.vmem [shape: f32[2,58,16,58], index: 5, kind: output, shape index: {}]  }
   0x1 LB: > { %s3006_s19 = sadd.s32 4294967295, %s2948_s18   ;;  %p2129_p0 = scmp.ge.s32.totalorder %s2948_s18, 1  ;;  %s2948_s18 = sphi %s3000_s18, %s16_s18  }
   0x2   : > { %p157_p1 = scmp.lt.s32.totalorder %s2948_s18, 3  ;;  %s2954_s20 = smov [#allocation2]  }
   0x3   : > { %s169_s21 = sshll.u32 %s2954_s20, 4  ;;  %p3874_p3 = scmp.eq.s32.totalorder %s3006_s19, 0  ;;  %s170_s21 = int_to_ptr.vmem [resolvable:$true] %s169_s21 }
   0x4   : > { %p3010_p2 = pnand %p2129_p0, %p157_p1  ;;  %s2906_s26 = scalar_lea.hbm %s3869_s1, 256 }
   0x5   : > { %p2907_p6 = scmp.ne.s32.totalorder %s3869_s1, %s2906_s26  ;;  %p2913_p10 = scmp.lt.u32.totalorder %s2906_s26, %s3869_s1 }
   0x6   : > { %s3876_s22 = scalar_select %p3010_p2, 1, 0 }
   0x7   : > { %p2853_p4 = pneg %p3010_p2 }
   0x9   : > { %p3019_p5 = pnand %p3874_p3, %p2853_p4 }
   0xb   : > { %p2908_p7 = pneg %p3019_p5 }
   0xd   : > { %p2909_p8 = pnand %p2908_p7, %p2907_p6 }
   0xf   : > { %p2910_p9 = pneg %p2909_p8 }
  0x11   : > { %p2915_p11 = pnand %p2913_p10, %p2910_p9 }
  0x13   : > { %2918 = shalt.err (!%p2915_p11)
}
  0x14   : > { %s2919_s6 = scalar_lea.vmem %s170_s21, 256  ;;  %p2927_p1 = scmp.lt.s32.totalorder %s170_s21, %s170_s21 }
  0x15   : > { %p2920_p12 = scmp.ne.s32.totalorder %s170_s21, %s2919_s6  ;;  %p2928_p4 = scmp.lt.s32.totalorder %s2919_s6, %s2919_s6 }
  0x17   : > { %p2922_p13 = pnand %p2920_p12, %p2908_p7  ;;  %p2929_p3 = por %p2928_p4, %p2927_p1 }
  0x19   : > { %p2923_p0 = pneg %p2922_p13 }
  0x1b   : > { %p2930_p2 = pnand %p2929_p3, %p2923_p0 }
  0x1d   : > { %2933 = shalt.err (!%p2930_p2)
}
  0x1e   : > { %s2955_s7 = smov 128   ;;  %s2956_s8 = smov 8  }
  0x1f   : > { %2856 = dma.hbm_to_vmem [thread:$0]  (!%p3019_p5), %s3869_s1, 256, %s170_s21, [#allocation3], %s2955_s7, %s2955_s7, %s2956_s8  }
  0x20   : > { %p3878_p6 = scmp.ne.s32.totalorder %s3876_s22, 0 }
  0x21   : > { %p3879_p8 = scmp.eq.s32.totalorder (!%p3878_p6), %s3006_s19, 0 }
  0x22   : > { %202 = sbr.rel (%p3878_p6) target bundleno = 831 (0x33f), region = 40 }
  0x29   : > { %2943 = dma.done.wait (%p3879_p8), [#allocation3], 256   ;;  %p3880_p7 = pmov %p3879_p8 }
  0x2a   : > { %p230_p2 = scmp.lt.s32.totalorder %s3006_s19, 1  ;;  %vm244_vm0 = vcmask 474112   ;;  %v3052_v0 = vld [vmem:[#allocation2] sm:$0xff]  ;;  %v3054_v1 = vld [vmem:[#allocation2 + $0x8] sm:$0xff]  ;;  %v2957_v4 = vmov 0.0   ;;  %s3079_s24 = smov 0  }
  0x2b   : > { %2945 = vsyncadd (%p3880_p7), [#allocation3], 4294967040  ;;  %v3059_v2 = vld [vmem:[%s3870_s2] sm:$0xff]  ;;  %v3069_v3 = vld [vmem:[%s3870_s2 + $0x8] sm:$0xff] }
  0x2c   : > { %s3882_s19 = smov (!%p230_p2, %s3006_s19), 1 }
  0x2d   : > { %s2847_s11 = smul.u32 120, %s3882_s19 }
  0x2e   : > { %s2848_s12 = smul.u32 928, %s3882_s19 }
  0x2f   : > { %s3050_s15 = scalar_lea.vmem %s3868_s0, %s2847_s11 }
  0x30   : > { %s3064_s22 = scalar_lea.vmem %s3873_s5, %s2848_s12 }
  0x31   : > { %245 = vst.msk [vmem:[%s3064_s22] sm:$0xff] %vm244_vm0, %v2957_v4  ;;  %246 = vst.msk [vmem:[%s3064_s22 + $0x8] sm:$0xff] %vm244_vm0, %v2957_v4 }
  0x32   : > { %2136 = vst.msk [vmem:[%s3064_s22 + $0x390] sm:$0xff] %vm244_vm0, %v2957_v4  ;;  %2137 = vst.msk [vmem:[%s3064_s22 + $0x398] sm:$0xff] %vm244_vm0, %v2957_v4 }
  0x33 LB: >> { %v2958_v5 = vmov 2   ;;  %v2959_v6 = vmov 1   ;;  %v2960_v7 = vmov 4   ;;  %v2961_v8 = vmov 5   ;;  %s2138_s25 = sshll.u32 %s2952_s24, 3  ;;  %s2967_s27 = smov 127   ;;  %s2952_s24 = sphi %s3079_s24, %s255_s24  }
  0x34   : >> { %2892 = vset.pattern.permute.xlu1 %v2958_v5  ;;  %2891 = vset.pattern.permute.xlu0 %v2959_v6  ;;  %v2962_v9 = vmov 7   ;;  %v2963_v10 = vmov 8   ;;  %v2964_v11 = vmov 6   ;;  %v2965_v12 = vmov 0   ;;  %s3106_s26 = scalar_lea.vmem %s3050_s15, %s2138_s25  ;;  %s2968_s28 = smov 126   ;;  %v547_v34 = vld [vmem:[%s3871_s3] sm:$0xff] }
  0x35   : >> { %299 = vperm.xlu1 %2892, %v3052_v0   ;;  %279 = vperm.xlu0 %2891, %v3052_v0   ;;  %v2966_v13 = vmov 3   ;;  %v3109_v14 = vld [vmem:[%s3106_s26 + $0x1] ss:$0 sm:$0xff]  ;;  %v3112_v15 = vld [vmem:[%s3106_s26] ss:$0 sm:$0xff]  ;;  %v548_v35 = vld [vmem:[%s3871_s3 + $0x8] sm:$0xff] }
  0x36   : >> { %v3149_v30 = vld [vmem:[%s3106_s26 + $0x2] ss:$0 sm:$0xff]  ;;  %v3171_v38 = vpack.c.bf16 %v548_v35, %v547_v34  ;;  %v644_v40 = vld [vmem:[%s3872_s4 + $0x8] sm:$0xff]  ;;  %v549_v43 = vld [vmem:[%s3871_s3 + $0x10] sm:$0xff]  ;;  %vm561_vm1 = vcmask 916480   ;;  %vm742_vm2 = vcmask 7168  }
  0x37   : >> { %v643_v39 = vld [vmem:[%s3872_s4] sm:$0xff]  ;;  %v550_v44 = vld [vmem:[%s3871_s3 + $0x18] sm:$0xff]  ;;  %v645_v48 = vld [vmem:[%s3872_s4 + $0x10] sm:$0xff]  ;;  %vm745_vm3 = vcmask 465920  }
  0x38   : >> { %2624 = vmatprep.subr.bf16.mxu0 %v3171_v38  ;;  %v3195_v46 = vpack.c.bf16 %v644_v40, %v643_v39  ;;  %v3197_v47 = vpack.c.bf16 %v550_v44, %v549_v43  ;;  %v646_v49 = vld [vmem:[%s3872_s4 + $0x18] sm:$0xff]  ;;  %v551_v52 = vld [vmem:[%s3871_s3 + $0x20] sm:$0xff]  ;;  %v552_v53 = vld [vmem:[%s3871_s3 + $0x28] sm:$0xff] }
  0x39   : >> { %303 = vperm.xlu1 %2892, %v3054_v1   ;;  %283 = vperm.xlu0 %2891, %v3054_v1   ;;  %v3210_v51 = vpack.c.bf16 %v646_v49, %v645_v48  ;;  %v647_v54 = vld [vmem:[%s3872_s4 + $0x20] sm:$0xff]  ;;  %v3228_v57 = vpack.c.bf16 %v552_v53, %v551_v52  ;;  %v648_v58 = vld [vmem:[%s3872_s4 + $0x28] sm:$0xff]  ;;  %v553_v61 = vld [vmem:[%s3871_s3 + $0x30] sm:$0xff] }
  0x3a   : >> { %2626 = vmatpush3.bf16.msra.mxu0 %v3171_v38  ;;  %2652 = vmatprep.subr.bf16.mxu1 %v3195_v46  ;;  %v3236_v60 = vpack.c.bf16 %v648_v58, %v647_v54  ;;  %v554_v62 = vld [vmem:[%s3871_s3 + $0x38] sm:$0xff]  ;;  %v649_v63 = vld [vmem:[%s3872_s4 + $0x30] sm:$0xff]  ;;  %v559_v40 = vld [vmem:[%s3871_s3 + $0x60] sm:$0xff] }
  0x3b   : >> { %2628 = vmatprep.subr.bf16.mxu0 %v3197_v47  ;;  %2654 = vmatpush3.bf16.msra.mxu1 %v3195_v46  ;;  %v3253_v5 = vpack.c.bf16 %v554_v62, %v553_v61  ;;  %v650_v6 = vld [vmem:[%s3872_s4 + $0x38] sm:$0xff]  ;;  %v653_v34 = vld [vmem:[%s3872_s4 + $0x50] sm:$0xff]  ;;  %v655_v44 = vld [vmem:[%s3872_s4 + $0x60] sm:$0xff] }
  0x3c   : >> { %2656 = vmatprep.subr.bf16.mxu1 %v3210_v51  ;;  %v654_v35 = vld [vmem:[%s3872_s4 + $0x58] sm:$0xff] }
  0x3d   : >> { %2893 = vset.pattern.permute.xlu0 %v2960_v7  ;;  %2894 = vset.pattern.permute.xlu1 %v2960_v7 }
  0x3e   : >> { %338 = vperm.xlu0 %2893, %v3052_v0   ;;  %342 = vperm.xlu1 %2894, %v3054_v1  }
  0x3f   : >> { %2630 = vmatpush3.bf16.msra.mxu0 %v3197_v47  ;;  %2658 = vmatpush3.bf16.msra.mxu1 %v3210_v51 }
  0x40   : >> { %2632 = vmatprep.subr.bf16.mxu0 %v3228_v57  ;;  %2660 = vmatprep.subr.bf16.mxu1 %v3236_v60 }
  0x42   : >> { %2895 = vset.pattern.permute.xlu1 %v2961_v8  ;;  %2896 = vset.pattern.permute.xlu0 %v2961_v8  ;;  %v3262_v8 = vpack.c.bf16 %v650_v6, %v649_v63  ;;  %v3389_v6 = vld [vmem:[%s3106_s26 + $0x4] ss:$0 sm:$0xff] }
  0x43   : >> { %358 = vperm.xlu1 %2895, %v3052_v0   ;;  %362 = vperm.xlu0 %2896, %v3054_v1  }
  0x44   : >> { %2634 = vmatpush3.bf16.msra.mxu0 %v3228_v57  ;;  %2662 = vmatpush3.bf16.msra.mxu1 %v3236_v60 }
  0x45   : >> { %2636 = vmatprep.subr.bf16.mxu0 %v3253_v5  ;;  %2664 = vmatprep.subr.bf16.mxu1 %v3262_v8 }
  0x47   : >> { %2897 = vset.pattern.permute.xlu1 %v2962_v9  ;;  %2898 = vset.pattern.permute.xlu0 %v2963_v10 }
  0x48   : >> { %397 = vperm.xlu1 %2897, %v3052_v0   ;;  %417 = vperm.xlu0 %2898, %v3052_v0  }
  0x49   : >> { %2638 = vmatpush3.bf16.msra.mxu0 %v3253_v5  ;;  %2666 = vmatpush3.bf16.msra.mxu1 %v3262_v8 }
  0x4c   : >> { %401 = vperm.xlu1 %2897, %v3054_v1   ;;  %2903 = vset.pattern.permute.xlu0 %v2964_v11 }
  0x4d   : >> { %385 = vperm.xlu0 %2903, %v3054_v1  }
  0x50   : >> { %2899 = vset.pattern.permute.xlu1 %v2963_v10  ;;  %v3268_v10 = vld [vmem:[%s3106_s26 + $0x3] ss:$0 sm:$0xff] }
  0x51   : >> { %421 = vperm.xlu1 %2899, %v3054_v1   ;;  %2904 = vset.pattern.permute.xlu0 %v2965_v12 }
  0x52   : >> { %267 = vperm.xlu0 %2904, %v3054_v1  }
  0x55   : >> { %2900 = vset.pattern.permute.xlu1 %v2965_v12 }
  0x56   : >> { %262 = vperm.xlu1 %2900, %v3052_v0   ;;  %438 = vperm.xlu0 %2904, %v3059_v2  }
  0x5a   : >> { %2901 = vset.pattern.permute.xlu1 %v2966_v13  ;;  %v555_v13 = vld [vmem:[%s3871_s3 + $0x40] sm:$0xff] }
  0x5b   : >> { %322 = vperm.xlu1 %2901, %v3052_v0  }
  0x5f   : >> { %326 = vperm.xlu1 %2901, %v3054_v1  }
  0x63   : >> { %2902 = vset.pattern.permute.xlu1 %v2964_v11 }
  0x64   : >> { %381 = vperm.xlu1 %2902, %v3052_v0  }
  0x68   : >> { %2905 = vset.pattern.permute.xlu1 %v2965_v12 }
  0x69   : >> { %443 = vperm.xlu1 %2905, %v3069_v3  }
  0xb4   : >> { %v3114_v16 = vpop.permute.xlu1 %299  ;;  %v3116_v17 = vpop.permute.xlu0 %279 }
  0xb5   : >> { %v454_v18 = vmul.f32 %v3109_v14, %v3116_v17  ;;  %v286_v19 = vmul.f32 %v3112_v15, %v3116_v17  ;;  %v306_v20 = vmul.f32 %v3112_v15, %v3114_v16  ;;  %v466_v24 = vmul.f32 %v3109_v14, %v3114_v16 }
  0xb6   : >> { %v764_v48 = vmul.f32 %v3149_v30, %v3116_v17  ;;  %v866_v54 = vmul.f32 %v3268_v10, %v3116_v17  ;;  %v878_v61 = vmul.f32 %v3268_v10, %v3114_v16 }
  0xb7   : >> { %458 = vrot.lane.b32.xlu1 %v454_v18, %s2967_s27  ;;  %290 = vrot.lane.b32.xlu0 %v286_v19, %s2967_s27  ;;  %v556_v18 = vld [vmem:[%s3871_s3 + $0x48] sm:$0xff] }
  0xb8   : >> { %v3126_v21 = vpop.permute.xlu0 %283  ;;  %v3130_v23 = vpop.permute.xlu1 %303 }
  0xb9   : >> { %v287_v22 = vmul.f32 %v3112_v15, %v3126_v21  ;;  %v455_v25 = vmul.f32 %v3109_v14, %v3126_v21  ;;  %v307_v28 = vmul.f32 %v3112_v15, %v3130_v23  ;;  %v467_v29 = vmul.f32 %v3109_v14, %v3130_v23 }
  0xba   : >> { %v765_v53 = vmul.f32 %v3149_v30, %v3126_v21  ;;  %v777_v58 = vmul.f32 %v3149_v30, %v3130_v23  ;;  %v879_v63 = vmul.f32 %v3268_v10, %v3130_v23 }
  0xbb   : >> { %310 = vrot.lane.b32.xlu1 %v306_v20, %s2968_s28  ;;  %292 = vrot.lane.b32.xlu0 %v287_v22, %s2967_s27  ;;  %v3287_v20 = vpack.c.bf16 %v556_v18, %v555_v13  ;;  %v651_v22 = vld [vmem:[%s3872_s4 + $0x40] sm:$0xff] }
  0xbd   : >> { %v3138_v26 = vpop.permute.xlu1 %342  ;;  %v3142_v27 = vpop.permute.xlu0 %338  ;;  %2640 = vmatprep.subr.bf16.mxu0 %v3287_v20 }
  0xbe   : >> { %v345_v31 = vmul.f32 %v3109_v14, %v3142_v27  ;;  %v482_v32 = vmul.f32 %v3149_v30, %v3142_v27  ;;  %v346_v36 = vmul.f32 %v3109_v14, %v3138_v26  ;;  %v483_v37 = vmul.f32 %v3149_v30, %v3138_v26  ;;  %2642 = vmatpush3.bf16.msra.mxu0 %v3287_v20 }
  0xbf   : >> { %470 = vrot.lane.b32.xlu1 %v466_v24, %s2968_s28  ;;  %460 = vrot.lane.b32.xlu0 %v455_v25, %s2967_s27  ;;  %v652_v24 = vld [vmem:[%s3872_s4 + $0x48] sm:$0xff]  ;;  %v799_v62 = vmul.f32 %v3268_v10, %v3142_v27 }
  0xc0   : >> { %v3295_v25 = vpack.c.bf16 %v652_v24, %v651_v22 }
  0xc2   : >> { %v3157_v33 = vpop.permute.xlu1 %358  ;;  %v3205_v50 = vpop.permute.xlu0 %362  ;;  %2668 = vmatprep.subr.bf16.mxu1 %v3295_v25 }
  0xc3   : >> { %312 = vrot.lane.b32.xlu1 %v307_v28, %s2968_s28  ;;  %472 = vrot.lane.b32.xlu0 %v467_v29, %s2968_s28  ;;  %v365_v41 = vmul.f32 %v3109_v14, %v3157_v33  ;;  %v494_v45 = vmul.f32 %v3149_v30, %v3157_v33  ;;  %v366_v55 = vmul.f32 %v3109_v14, %v3205_v50  ;;  %v557_v29 = vld [vmem:[%s3871_s3 + $0x50] sm:$0xff] }
  0xc4   : >> { %v495_v9 = vmul.f32 %v3149_v30, %v3205_v50  ;;  %2670 = vmatpush3.bf16.msra.mxu1 %v3295_v25  ;;  %v812_v13 = vmul.f32 %v3268_v10, %v3205_v50  ;;  %v906_v18 = vmul.f32 %v3389_v6, %v3157_v33  ;;  %v907_v24 = vmul.f32 %v3389_v6, %v3205_v50 }
  0xc7   : >> { %349 = vrot.lane.b32.xlu1 %v345_v31, %s2967_s27  ;;  %486 = vrot.lane.b32.xlu0 %v482_v32, %s2967_s27  ;;  %v3182_v42 = vpop.permute.xlu1 %397  ;;  %v3258_v7 = vpop.permute.xlu0 %417  ;;  %v558_v31 = vld [vmem:[%s3871_s3 + $0x58] sm:$0xff] }
  0xc8   : >> { %v404_v56 = vmul.f32 %v3149_v30, %v3182_v42  ;;  %v517_v11 = vmul.f32 %v3268_v10, %v3182_v42  ;;  %v424_v12 = vmul.f32 %v3149_v30, %v3258_v7  ;;  %v3311_v32 = vpack.c.bf16 %v558_v31, %v557_v29  ;;  %v3416_v29 = vld [vmem:[%s3106_s26 + $0x5] ss:$0 sm:$0xff] }
  0xc9   : >> { %v529_v39 = vmul.f32 %v3268_v10, %v3258_v7  ;;  %v834_v22 = vmul.f32 %v3389_v6, %v3182_v42  ;;  %v929_v31 = vmul.f32 %v3416_v29, %v3182_v42 }
  0xca   : >> { %2644 = vmatprep.subr.bf16.mxu0 %v3311_v32 }
  0xcb   : >> { %351 = vrot.lane.b32.xlu1 %v346_v36, %s2967_s27  ;;  %488 = vrot.lane.b32.xlu0 %v483_v37, %s2967_s27  ;;  %v3233_v59 = vpop.permute.xlu1 %401  ;;  %v3321_v37 = vpack.c.bf16 %v654_v35, %v653_v34  ;;  %v846_v34 = vmul.f32 %v3389_v6, %v3258_v7 }
  0xcc   : >> { %v405_v4 = vmul.f32 %v3149_v30, %v3233_v59  ;;  %v518_v36 = vmul.f32 %v3268_v10, %v3233_v59  ;;  %2646 = vmatpush3.bf16.msra.mxu0 %v3311_v32 }
  0xcd   : >> { %2672 = vmatprep.subr.bf16.mxu1 %v3321_v37 }
  0xce   : >> { %2674 = vmatpush3.bf16.msra.mxu1 %v3321_v37 }
  0xcf   : >> { %369 = vrot.lane.b32.xlu1 %v365_v41, %s2968_s28  ;;  %498 = vrot.lane.b32.xlu0 %v494_v45, %s2968_s28  ;;  %v560_v41 = vld [vmem:[%s3871_s3 + $0x68] sm:$0xff] }
  0xd0   : >> { %v3283_v19 = vpop.permute.xlu1 %421  ;;  %v3337_v43 = vpack.c.bf16 %v560_v41, %v559_v40  ;;  %v656_v45 = vld [vmem:[%s3872_s4 + $0x68] sm:$0xff]  ;;  %v941_v40 = vmul.f32 %v3416_v29, %v3258_v7  ;;  %v1173_v41 = vmul.f32 %v3389_v6, %v3116_v17 }
  0xd1   : >> { %v425_v28 = vmul.f32 %v3149_v30, %v3283_v19  ;;  %v3347_v49 = vpack.c.bf16 %v656_v45, %v655_v44  ;;  %v530_v52 = vmul.f32 %v3268_v10, %v3283_v19  ;;  %v942_v45 = vmul.f32 %v3416_v29, %v3283_v19 }
  0xd2   : >> { %2648 = vmatprep.subr.bf16.mxu0 %v3337_v43 }
  0xd3   : >> { %371 = vrot.lane.b32.xlu1 %v366_v55, %s2968_s28  ;;  %408 = vrot.lane.b32.xlu0 %v404_v56, %s2967_s27  ;;  %v776_v55 = vmul.f32 %v3149_v30, %v3114_v16  ;;  %v867_v56 = vmul.f32 %v3268_v10, %v3126_v21 }
  0xd4   : >> { %2676 = vmatprep.subr.bf16.mxu1 %v3347_v49  ;;  %2650 = vmatpush3.bf16.msra.mxu0 %v3337_v43 }
  0xd5   : >> { %2680 = vmatprep.subr.bf16.mxu0 %v3171_v38  ;;  %2678 = vmatpush3.bf16.msra.mxu1 %v3347_v49  ;;  %v3424_v35 = vpop.permute.xlu1 %262 }
  0xd6   : >> { %2708 = vmatprep.subr.bf16.mxu1 %v3195_v46 }
  0xd7   : >> { %500 = vrot.lane.b32.xlu1 %v495_v9, %s2968_s28  ;;  %410 = vrot.lane.b32.xlu0 %v405_v4, %s2967_s27  ;;  %v800_v4 = vmul.f32 %v3268_v10, %v3138_v26  ;;  %v894_v9 = vmul.f32 %v3389_v6, %v3142_v27 }
  0xda   : >> { %v3436_v44 = vpop.permute.xlu1 %322 }
  0xdb   : >> { %521 = vrot.lane.b32.xlu1 %v517_v11, %s2967_s27  ;;  %428 = vrot.lane.b32.xlu0 %v424_v12, %s2968_s28  ;;  %v811_v11 = vmul.f32 %v3268_v10, %v3157_v33  ;;  %v895_v12 = vmul.f32 %v3389_v6, %v3138_v26 }
  0xdf   : >> { %523 = vrot.lane.b32.xlu1 %v518_v36, %s2967_s27  ;;  %430 = vrot.lane.b32.xlu0 %v425_v28, %s2968_s28  ;;  %v835_v28 = vmul.f32 %v3389_v6, %v3233_v59  ;;  %v930_v36 = vmul.f32 %v3416_v29, %v3233_v59 }
  0xe3   : >> { %533 = vrot.lane.b32.xlu1 %v529_v39, %s2968_s28  ;;  %768 = vrot.lane.b32.xlu0 %v764_v48, %s2967_s27  ;;  %v847_v39 = vmul.f32 %v3389_v6, %v3283_v19  ;;  %v1174_v48 = vmul.f32 %v3389_v6, %v3126_v21 }
  0xe7   : >> { %535 = vrot.lane.b32.xlu1 %v530_v52, %s2968_s28  ;;  %770 = vrot.lane.b32.xlu0 %v765_v53, %s2967_s27  ;;  %v3446_v52 = vpop.permute.xlu0 %385  ;;  %v3448_v53 = vpop.permute.xlu1 %326 }
  0xeb   : >> { %870 = vrot.lane.b32.xlu1 %v866_v54, %s2967_s27  ;;  %780 = vrot.lane.b32.xlu0 %v776_v55, %s2968_s28  ;;  %v1275_v54 = vmul.f32 %v3416_v29, %v3116_v17  ;;  %v1185_v55 = vmul.f32 %v3389_v6, %v3114_v16 }
  0xef   : >> { %872 = vrot.lane.b32.xlu1 %v867_v56, %s2967_s27  ;;  %782 = vrot.lane.b32.xlu0 %v777_v58, %s2968_s28  ;;  %v1276_v56 = vmul.f32 %v3416_v29, %v3126_v21  ;;  %v1186_v58 = vmul.f32 %v3389_v6, %v3130_v23 }
  0xf3   : >> { %882 = vrot.lane.b32.xlu1 %v878_v61, %s2968_s28  ;;  %803 = vrot.lane.b32.xlu0 %v799_v62, %s2967_s27  ;;  %v3460_v61 = vpop.permute.xlu1 %381  ;;  %v3462_v62 = vpop.permute.xlu0 %267 }
  0xf7   : >> { %884 = vrot.lane.b32.xlu1 %v879_v63, %s2968_s28  ;;  %805 = vrot.lane.b32.xlu0 %v800_v4, %s2967_s27  ;;  %v1287_v63 = vmul.f32 %v3416_v29, %v3114_v16  ;;  %v1208_v4 = vmul.f32 %v3416_v29, %v3142_v27 }
  0xfb   : >> { %898 = vrot.lane.b32.xlu1 %v894_v9, %s2967_s27  ;;  %815 = vrot.lane.b32.xlu0 %v811_v11, %s2968_s28  ;;  %v3472_v9 = vpop.permute.xlu0 %438  ;;  %v3474_v11 = vpop.permute.xlu1 %443 }
  0xff   : >> { %900 = vrot.lane.b32.xlu1 %v895_v12, %s2967_s27  ;;  %817 = vrot.lane.b32.xlu0 %v812_v13, %s2968_s28  ;;  %v1288_v12 = vmul.f32 %v3416_v29, %v3130_v23  ;;  %v1209_v13 = vmul.f32 %v3416_v29, %v3138_v26 }
 0x103   : >> { %910 = vrot.lane.b32.xlu1 %v906_v18, %s2968_s28  ;;  %838 = vrot.lane.b32.xlu0 %v834_v22, %s2967_s27  ;;  %v3483_v18 = vld [vmem:[%s3106_s26 + $0x6] ss:$0 sm:$0xff] }
 0x107   : >> { %912 = vrot.lane.b32.xlu1 %v907_v24, %s2968_s28  ;;  %840 = vrot.lane.b32.xlu0 %v835_v28, %s2967_s27  ;;  %v1303_v28 = vmul.f32 %v3483_v18, %v3142_v27 }
 0x10b   : >> { %933 = vrot.lane.b32.xlu1 %v929_v31, %s2967_s27  ;;  %850 = vrot.lane.b32.xlu0 %v846_v34, %s2968_s28  ;;  %v1220_v31 = vmul.f32 %v3416_v29, %v3157_v33  ;;  %v274_v34 = vmul.f32 %v3112_v15, %v3424_v35 }
 0x10f   : >> { %935 = vrot.lane.b32.xlu1 %v930_v36, %s2967_s27  ;;  %852 = vrot.lane.b32.xlu0 %v847_v39, %s2968_s28 }
 0x113   : >> { %945 = vrot.lane.b32.xlu1 %v941_v40, %s2968_s28  ;;  %1177 = vrot.lane.b32.xlu0 %v1173_v41, %s2967_s27  ;;  %v1304_v41 = vmul.f32 %v3483_v18, %v3138_v26 }
 0x117   : >> { %947 = vrot.lane.b32.xlu1 %v942_v45, %s2968_s28  ;;  %1179 = vrot.lane.b32.xlu0 %v1174_v48, %s2967_s27  ;;  %v1221_v45 = vmul.f32 %v3416_v29, %v3205_v50  ;;  %v450_v48 = vmul.f32 %v3109_v14, %v3424_v35 }
 0x11b   : >> { %1279 = vrot.lane.b32.xlu1 %v1275_v54, %s2967_s27  ;;  %1189 = vrot.lane.b32.xlu0 %v1185_v55, %s2968_s28  ;;  %v333_v55 = vmul.f32 %v3109_v14, %v3436_v44 }
 0x11f   : >> { %1281 = vrot.lane.b32.xlu1 %v1276_v56, %s2967_s27  ;;  %1191 = vrot.lane.b32.xlu0 %v1186_v58, %s2968_s28 }
 0x123   : >> { %1291 = vrot.lane.b32.xlu1 %v1287_v63, %s2968_s28  ;;  %1212 = vrot.lane.b32.xlu0 %v1208_v4, %s2967_s27 }
 0x127   : >> { %1293 = vrot.lane.b32.xlu1 %v1288_v12, %s2968_s28  ;;  %1214 = vrot.lane.b32.xlu0 %v1209_v13, %s2967_s27  ;;  %v1315_v12 = vmul.f32 %v3483_v18, %v3157_v33  ;;  %v1243_v13 = vmul.f32 %v3483_v18, %v3182_v42 }
 0x129   : >> { %v459_v22 = vpop.permute.xlu1 %458  ;;  %v291_v24 = vpop.permute.xlu0 %290 }
 0x12a   : >> { %v296_v36 = vadd.f32 %v291_v24, %v274_v34  ;;  %v464_v56 = vadd.f32 %v459_v22, %v450_v48  ;;  %v275_v24 = vmul.f32 %v3112_v15, %v3462_v62  ;;  %v478_v34 = vmul.f32 %v3149_v30, %v3436_v44 }
 0x12b   : >> { %1307 = vrot.lane.b32.xlu1 %v1303_v28, %s2967_s27  ;;  %1224 = vrot.lane.b32.xlu0 %v1220_v31, %s2968_s28  ;;  %v451_v31 = vmul.f32 %v3109_v14, %v3462_v62  ;;  %v1316_v15 = vmul.f32 %v3483_v18, %v3205_v50  ;;  %v1244_v48 = vmul.f32 %v3483_v18, %v3233_v59 }
 0x12d   : >> { %v311_v39 = vpop.permute.xlu1 %310  ;;  %v293_v40 = vpop.permute.xlu0 %292 }
 0x12e   : >> { %v316_v54 = vadd.f32 %v311_v39, %v296_v36  ;;  %v297_v22 = vadd.f32 %v293_v40, %v275_v24  ;;  %v3526_v40 = vld [vmem:[%s3106_s26 + $0x7] ss:$0 sm:$0xff] }
 0x12f   : >> { %1309 = vrot.lane.b32.xlu1 %v1304_v41, %s2967_s27  ;;  %1226 = vrot.lane.b32.xlu0 %v1221_v45, %s2968_s28 }
 0x130   : >> { %v335_v58 = vadd.f32 %v333_v55, %v316_v54 }
 0x131   : >> { %v471_v63 = vpop.permute.xlu1 %470  ;;  %v461_v4 = vpop.permute.xlu0 %460 }
 0x132   : >> { %v476_v28 = vadd.f32 %v471_v63, %v464_v56  ;;  %v465_v36 = vadd.f32 %v461_v4, %v451_v31  ;;  %v334_v56 = vmul.f32 %v3109_v14, %v3448_v53  ;;  %v479_v63 = vmul.f32 %v3149_v30, %v3448_v53 }
 0x133   : >> { %1319 = vrot.lane.b32.xlu1 %v1315_v12, %s2968_s28  ;;  %1247 = vrot.lane.b32.xlu0 %v1243_v13, %s2967_s27  ;;  %v1255_v31 = vmul.f32 %v3483_v18, %v3258_v7 }
 0x134   : >> { %v480_v39 = vadd.f32 %v478_v34, %v476_v28  ;;  %v1338_v28 = vmul.f32 %v3526_v40, %v3182_v42 }
 0x135   : >> { %v313_v41 = vpop.permute.xlu1 %312  ;;  %v473_v45 = vpop.permute.xlu0 %472 }
 0x136   : >> { %v317_v54 = vadd.f32 %v313_v41, %v297_v22  ;;  %v477_v55 = vadd.f32 %v473_v45, %v465_v36  ;;  %v1339_v22 = vmul.f32 %v3526_v40, %v3233_v59  ;;  %v1256_v36 = vmul.f32 %v3483_v18, %v3283_v19 }
 0x137   : >> { %1321 = vrot.lane.b32.xlu1 %v1316_v15, %s2968_s28  ;;  %1249 = vrot.lane.b32.xlu0 %v1244_v48, %s2967_s27 }
 0x138   : >> { %v336_v4 = vadd.f32 %v334_v56, %v317_v54  ;;  %v481_v12 = vadd.f32 %v479_v63, %v477_v55  ;;  %v1350_v54 = vmul.f32 %v3526_v40, %v3258_v7  ;;  %v1582_v55 = vmul.f32 %v3483_v18, %v3116_v17 }
 0x139   : >> { %v350_v13 = vpop.permute.xlu1 %349  ;;  %v487_v24 = vpop.permute.xlu0 %486 }
 0x13a   : >> { %v355_v41 = vadd.f32 %v350_v13, %v335_v58  ;;  %v492_v45 = vadd.f32 %v487_v24, %v480_v39 }
 0x13b   : >> { %1342 = vrot.lane.b32.xlu1 %v1338_v28, %s2967_s27  ;;  %1259 = vrot.lane.b32.xlu0 %v1255_v31, %s2968_s28  ;;  %v392_v28 = vmul.f32 %v3149_v30, %v3460_v61  ;;  %v513_v31 = vmul.f32 %v3268_v10, %v3460_v61 }
 0x13d   : >> { %v352_v14 = vpop.permute.xlu1 %351  ;;  %v489_v34 = vpop.permute.xlu0 %488 }
 0x13e   : >> { %v356_v58 = vadd.f32 %v352_v14, %v336_v4 }
 0x13f   : >> { %1344 = vrot.lane.b32.xlu1 %v1339_v22, %s2967_s27  ;;  %1261 = vrot.lane.b32.xlu0 %v1256_v36, %s2968_s28  ;;  %v1351_v36 = vmul.f32 %v3526_v40, %v3283_v19 }
 0x141   : >> { %v370_v15 = vpop.permute.xlu1 %369  ;;  %v499_v48 = vpop.permute.xlu0 %498 }
 0x142   : >> { %v375_v56 = vadd.f32 %v370_v15, %v355_v41  ;;  %v504_v63 = vadd.f32 %v499_v48, %v492_v45  ;;  %v1583_v41 = vmul.f32 %v3483_v18, %v3126_v21  ;;  %v393_v15 = vmul.f32 %v3149_v30, %v3446_v52 }
 0x143   : >> { %1354 = vrot.lane.b32.xlu1 %v1350_v54, %s2968_s28  ;;  %1586 = vrot.lane.b32.xlu0 %v1582_v55, %s2967_s27  ;;  %v493_v48 = vadd.f32 %v489_v34, %v481_v12  ;;  %v1684_v55 = vmul.f32 %v3526_v40, %v3116_v17  ;;  %v1685_v34 = vmul.f32 %v3526_v40, %v3126_v21 }
 0x144   : >> { %v394_v39 = vadd.f32 %v392_v28, %v375_v56  ;;  %v515_v13 = vadd.f32 %v513_v31, %v504_v63  ;;  %v1594_v56 = vmul.f32 %v3483_v18, %v3114_v16  ;;  %v514_v28 = vmul.f32 %v3268_v10, %v3446_v52 }
 0x145   : >> { %v372_v24 = vpop.permute.xlu1 %371  ;;  %v409_v22 = vpop.permute.xlu0 %408  ;;  %v1595_v17 = vmul.f32 %v3483_v18, %v3130_v23 }
 0x146   : >> { %v376_v45 = vadd.f32 %v372_v24, %v356_v58  ;;  %v414_v24 = vadd.f32 %v409_v22, %v394_v39  ;;  %v1697_v39 = vmul.f32 %v3526_v40, %v3130_v23  ;;  %v1618_v22 = vmul.f32 %v3526_v40, %v3138_v26 }
 0x147   : >> { %1356 = vrot.lane.b32.xlu1 %v1351_v36, %s2968_s28  ;;  %1588 = vrot.lane.b32.xlu0 %v1583_v41, %s2967_s27 }
 0x148   : >> { %v395_v4 = vadd.f32 %v393_v15, %v376_v45  ;;  %v1696_v45 = vmul.f32 %v3526_v40, %v3114_v16  ;;  %v1617_v15 = vmul.f32 %v3526_v40, %v3142_v27 }
 0x149   : >> { %v501_v14 = vpop.permute.xlu1 %500  ;;  %v411_v54 = vpop.permute.xlu0 %410 }
 0x14a   : >> { %v505_v63 = vadd.f32 %v501_v14, %v493_v48  ;;  %v415_v21 = vadd.f32 %v411_v54, %v395_v4  ;;  %v760_v54 = vmul.f32 %v3149_v30, %v3424_v35 }
 0x14b   : >> { %1688 = vrot.lane.b32.xlu1 %v1684_v55, %s2967_s27  ;;  %1598 = vrot.lane.b32.xlu0 %v1594_v56, %s2968_s28 }
 0x14c   : >> { %v516_v31 = vadd.f32 %v514_v28, %v505_v63 }
 0x14d   : >> { %v522_v58 = vpop.permute.xlu1 %521  ;;  %v429_v12 = vpop.permute.xlu0 %428 }
 0x14e   : >> { %v434_v48 = vadd.f32 %v429_v12, %v414_v24  ;;  %v527_v14 = vadd.f32 %v522_v58, %v515_v13 }
 0x14f   : >> { %1690 = vrot.lane.b32.xlu1 %v1685_v34, %s2967_s27  ;;  %1600 = vrot.lane.b32.xlu0 %v1595_v17, %s2968_s28  ;;  %v3584_v34 = vld [vmem:[%s3106_s26 + $0x8] ss:$0 sm:$0xff]  ;;  %v1629_v17 = vmul.f32 %v3526_v40, %v3157_v33 }
 0x150   : >> { %v446_v16 = vadd.f32 %v3472_v9, %v434_v48  ;;  %v1712_v12 = vmul.f32 %v3584_v34, %v3142_v27  ;;  %v761_v27 = vmul.f32 %v3149_v30, %v3462_v62 }
 0x151   : >> { %v524_v36 = vpop.permute.xlu1 %523  ;;  %v431_v41 = vpop.permute.xlu0 %430 }
 0x152   : >> { %v435_v63 = vadd.f32 %v431_v41, %v415_v21  ;;  %v528_v4 = vadd.f32 %v524_v36, %v516_v31  ;;  %v448_v24 = vmax.f32 %v446_v16, 0.0 }
 0x153   : >> { %1700 = vrot.lane.b32.xlu1 %v1696_v45, %s2968_s28  ;;  %1621 = vrot.lane.b32.xlu0 %v1617_v15, %s2967_s27 }
 0x154   : >> { %v447_v41 = vadd.f32 %v3474_v11, %v435_v63 }
 0x155   : >> { %v534_v55 = vpop.permute.xlu1 %533  ;;  %v769_v56 = vpop.permute.xlu0 %768 }
 0x156   : >> { %v539_v28 = vadd.f32 %v534_v55, %v527_v14  ;;  %v774_v31 = vadd.f32 %v769_v56, %v760_v54  ;;  %v1713_v55 = vmul.f32 %v3584_v34, %v3138_v26  ;;  %v795_v56 = vmul.f32 %v3268_v10, %v3436_v44 }
 0x157   : >> { %1702 = vrot.lane.b32.xlu1 %v1697_v39, %s2968_s28  ;;  %1623 = vrot.lane.b32.xlu0 %v1618_v22, %s2967_s27  ;;  %v1630_v39 = vmul.f32 %v3526_v40, %v3205_v50  ;;  %v449_v22 = vmax.f32 %v447_v41, 0.0  ;;  %v1724_v54 = vmul.f32 %v3584_v34, %v3157_v33 }
 0x158   : >> { %v541_v13 = vadd.f32 %v539_v28, %v3472_v9 }
 0x159   : >> { %v536_v23 = vpop.permute.xlu1 %535  ;;  %v771_v58 = vpop.permute.xlu0 %770 }
 0x15a   : >> { %v543_v45 = vmax.f32 %v541_v13, 0.0  ;;  %v540_v15 = vadd.f32 %v536_v23, %v528_v4  ;;  %v775_v28 = vadd.f32 %v771_v58, %v761_v27  ;;  %v1652_v23 = vmul.f32 %v3584_v34, %v3182_v42  ;;  %v3634_v27 = vld [vmem:[%s3106_s26 + $0x9] ss:$0 sm:$0xff]  ;;  %s2969_s26 = smov 1  }
 0x15b   : >> { %1716 = vrot.lane.b32.xlu1 %v1712_v12, %s2967_s27  ;;  %1633 = vrot.lane.b32.xlu0 %v1629_v17, %s2968_s28  ;;  %v862_v12 = vmul.f32 %v3268_v10, %v3424_v35  ;;  %v796_v58 = vmul.f32 %v3268_v10, %v3448_v53 }
 0x15c   : >> { %v542_v36 = vadd.f32 %v540_v15, %v3474_v11  ;;  %v545_v48 = vmax.f32 %v448_v24, %v543_v45  ;;  %v1725_v15 = vmul.f32 %v3584_v34, %v3205_v50 }
 0x15d   : >> { %v871_v21 = vpop.permute.xlu1 %870  ;;  %v781_v14 = vpop.permute.xlu0 %780 }
 0x15e   : >> { %v544_v16 = vmax.f32 %v542_v36, 0.0  ;;  %v786_v63 = vadd.f32 %v781_v14, %v774_v31  ;;  %2403 = vmatprep.mubr.msk.f32.mxu0 %vm561_vm1, %v545_v48  ;;  %2434 = vmatprep.mubr.msk.f32.mxu1 %vm561_vm1, %v545_v48  ;;  %v876_v33 = vadd.f32 %v871_v21, %v862_v12  ;;  %v1653_v31 = vmul.f32 %v3584_v34, %v3233_v59 }
 0x15f   : >> { %1718 = vrot.lane.b32.xlu1 %v1713_v55, %s2967_s27  ;;  %1635 = vrot.lane.b32.xlu0 %v1630_v39, %s2968_s28  ;;  %v863_v36 = vmul.f32 %v3268_v10, %v3462_v62  ;;  %v890_v21 = vmul.f32 %v3389_v6, %v3436_v44  ;;  %v1747_v10 = vmul.f32 %v3634_v27, %v3182_v42 }
 0x160   : >> { %v546_v30 = vmax.f32 %v449_v22, %v544_v16  ;;  %v797_v26 = vadd.f32 %v795_v56, %v786_v63  ;;  %v1664_v22 = vmul.f32 %v3584_v34, %v3258_v7  ;;  %v891_v63 = vmul.f32 %v3389_v6, %v3448_v53 }
 0x161   : >> { %v873_v4 = vpop.permute.xlu1 %872  ;;  %v783_v13 = vpop.permute.xlu0 %782 }
 0x162   : >> { %v787_v17 = vadd.f32 %v783_v13, %v775_v28  ;;  %2404 = vmatmul.mubr.msk.f32.vlgmr.msra.gmra.mrb[0].mxu0 %vm561_vm1, %v546_v30  ;;  %2435 = vmatmul.mubr.msk.f32.vlgmr.msra.gmra.mrb[0].mxu1 %vm561_vm1, %v546_v30  ;;  %v877_v50 = vadd.f32 %v873_v4, %v863_v36  ;;  %v1748_v4 = vmul.f32 %v3634_v27, %v3233_v59 }
 0x163   : >> { %1728 = vrot.lane.b32.xlu1 %v1724_v54, %s2968_s28  ;;  %1656 = vrot.lane.b32.xlu0 %v1652_v23, %s2967_s27  ;;  %v1665_v13 = vmul.f32 %v3584_v34, %v3283_v19 }
 0x164   : >> { %v798_v24 = vadd.f32 %v796_v58, %v787_v17  ;;  %2682 = vmatpush3.bf16.msra.mxu0 %v3171_v38  ;;  %2710 = vmatpush3.bf16.msra.mxu1 %v3195_v46  ;;  %v1759_v58 = vmul.f32 %v3634_v27, %v3258_v7  ;;  %v1760_v7 = vmul.f32 %v3634_v27, %v3283_v19 }
 0x165   : >> { %v883_v41 = vpop.permute.xlu1 %882  ;;  %v804_v45 = vpop.permute.xlu0 %803  ;;  %2684 = vmatprep.subr.bf16.mxu0 %v3197_v47  ;;  %2712 = vmatprep.subr.bf16.mxu1 %v3210_v51 }
 0x166   : >> { %v888_v48 = vadd.f32 %v883_v41, %v876_v33  ;;  %v809_v56 = vadd.f32 %v804_v45, %v797_v26  ;;  %v830_v26 = vmul.f32 %v3389_v6, %v3460_v61  ;;  %v831_v41 = vmul.f32 %v3389_v6, %v3446_v52 }
 0x167   : >> { %1730 = vrot.lane.b32.xlu1 %v1725_v15, %s2968_s28  ;;  %1658 = vrot.lane.b32.xlu0 %v1653_v31, %s2967_s27 }
 0x168   : >> { %v892_v14 = vadd.f32 %v890_v21, %v888_v48  ;;  %2686 = vmatpush3.bf16.msra.mxu0 %v3197_v47  ;;  %2714 = vmatpush3.bf16.msra.mxu1 %v3210_v51  ;;  %v925_v48 = vmul.f32 %v3416_v29, %v3460_v61 }
 0x169   : >> { %v885_v55 = vpop.permute.xlu1 %884  ;;  %v806_v39 = vpop.permute.xlu0 %805  ;;  %2688 = vmatprep.subr.bf16.mxu0 %v3228_v57  ;;  %2716 = vmatprep.subr.bf16.mxu1 %v3236_v60 }
 0x16a   : >> { %v889_v16 = vadd.f32 %v885_v55, %v877_v50  ;;  %v810_v23 = vadd.f32 %v806_v39, %v798_v24  ;;  %v926_v39 = vmul.f32 %v3416_v29, %v3446_v52 }
 0x16b   : >> { %1751 = vrot.lane.b32.xlu1 %v1747_v10, %s2967_s27  ;;  %1668 = vrot.lane.b32.xlu0 %v1664_v22, %s2968_s28 }
 0x16c   : >> { %v893_v30 = vadd.f32 %v891_v63, %v889_v16  ;;  %2690 = vmatpush3.bf16.msra.mxu0 %v3228_v57  ;;  %2718 = vmatpush3.bf16.msra.mxu1 %v3236_v60 }
 0x16d   : >> { %v899_v42 = vpop.permute.xlu1 %898  ;;  %v816_v28 = vpop.permute.xlu0 %815  ;;  %2692 = vmatprep.subr.bf16.mxu0 %v3253_v5  ;;  %2720 = vmatprep.subr.bf16.mxu1 %v3262_v8 }
 0x16e   : >> { %v821_v54 = vadd.f32 %v816_v28, %v809_v56  ;;  %v904_v24 = vadd.f32 %v899_v42, %v892_v14 }
 0x16f   : >> { %1753 = vrot.lane.b32.xlu1 %v1748_v4, %s2967_s27  ;;  %1670 = vrot.lane.b32.xlu0 %v1665_v13, %s2968_s28  ;;  %s2231_s27 = sshll.u32 %s2952_s24, 6  ;;  %s255_s24 = sadd.s32 1, %s2952_s24  }
 0x170   : >> { %v832_v12 = vadd.f32 %v830_v26, %v821_v54  ;;  %2694 = vmatpush3.bf16.msra.mxu0 %v3253_v5  ;;  %2722 = vmatpush3.bf16.msra.mxu1 %v3262_v8  ;;  %p252_p3 = scmp.ge.s32.totalorder %s255_s24, 14  }
 0x171   : >> { %v901_v59 = vpop.permute.xlu1 %900  ;;  %v818_v17 = vpop.permute.xlu0 %817  ;;  %2696 = vmatprep.subr.bf16.mxu0 %v3287_v20  ;;  %2724 = vmatprep.subr.bf16.mxu1 %v3295_v25 }
 0x172   : >> { %v822_v33 = vadd.f32 %v818_v17, %v810_v23  ;;  %v905_v21 = vadd.f32 %v901_v59, %v893_v30 }
 0x173   : >> { %1763 = vrot.lane.b32.xlu1 %v1759_v58, %s2968_s28 }
 0x174   : >> { %v833_v45 = vadd.f32 %v831_v41, %v822_v33  ;;  %2698 = vmatpush3.bf16.msra.mxu0 %v3287_v20  ;;  %2726 = vmatpush3.bf16.msra.mxu1 %v3295_v25  ;;  %v1169_v33 = vmul.f32 %v3389_v6, %v3424_v35 }
 0x175   : >> { %v911_v15 = vpop.permute.xlu1 %910  ;;  %v839_v31 = vpop.permute.xlu0 %838  ;;  %2700 = vmatprep.subr.bf16.mxu0 %v3311_v32  ;;  %2728 = vmatprep.subr.bf16.mxu1 %v3321_v37 }
 0x176   : >> { %v916_v36 = vadd.f32 %v911_v15, %v904_v24  ;;  %v844_v63 = vadd.f32 %v839_v31, %v832_v12 }
 0x177   : >> { %1765 = vrot.lane.b32.xlu1 %v1760_v7, %s2968_s28  ;;  %s3826_s28 = scalar_lea.vmem %s3064_s22, %s2231_s27 }
 0x178   : >> { %v927_v50 = vadd.f32 %v925_v48, %v916_v36  ;;  %2702 = vmatpush3.bf16.msra.mxu0 %v3311_v32  ;;  %2730 = vmatpush3.bf16.msra.mxu1 %v3321_v37 }
 0x179   : >> { %v913_v14 = vpop.permute.xlu1 %912  ;;  %v841_v55 = vpop.permute.xlu0 %840  ;;  %2704 = vmatprep.subr.bf16.mxu0 %v3337_v43  ;;  %2732 = vmatprep.subr.bf16.mxu1 %v3347_v49 }
 0x17a   : >> { %v917_v19 = vadd.f32 %v913_v14, %v905_v21  ;;  %v845_v28 = vadd.f32 %v841_v55, %v833_v45  ;;  %v1170_v21 = vmul.f32 %v3389_v6, %v3462_v62  ;;  %v1271_v6 = vmul.f32 %v3416_v29, %v3424_v35 }
 0x17c   : >> { %v928_v10 = vadd.f32 %v926_v39, %v917_v19  ;;  %2706 = vmatpush3.bf16.msra.mxu0 %v3337_v43  ;;  %2734 = vmatpush3.bf16.msra.mxu1 %v3347_v49 }
 0x17d   : >> { %v934_v22 = vpop.permute.xlu1 %933  ;;  %v851_v16 = vpop.permute.xlu0 %850  ;;  %2736 = vmatprep.subr.bf16.mxu0 %v3171_v38  ;;  %2764 = vmatprep.subr.bf16.mxu1 %v3195_v46 }
 0x17e   : >> { %v856_v42 = vadd.f32 %v851_v16, %v844_v63  ;;  %v939_v4 = vadd.f32 %v934_v22, %v927_v50 }
 0x180   : >> { %v858_v26 = vadd.f32 %v856_v42, %v3472_v9 }
 0x181   : >> { %v936_v56 = vpop.permute.xlu1 %935  ;;  %v853_v30 = vpop.permute.xlu0 %852 }
 0x182   : >> { %v857_v23 = vadd.f32 %v853_v30, %v845_v28  ;;  %v940_v17 = vadd.f32 %v936_v56, %v928_v10  ;;  %v860_v12 = vmax.f32 %v858_v26, 0.0  ;;  %v1204_v10 = vmul.f32 %v3416_v29, %v3436_v44 }
 0x183   : >> { %v1205_v28 = vmul.f32 %v3416_v29, %v3448_v53 }
 0x184   : >> { %v859_v15 = vadd.f32 %v857_v23, %v3474_v11  ;;  %v1272_v23 = vmul.f32 %v3416_v29, %v3462_v62  ;;  %v1300_v29 = vmul.f32 %v3483_v18, %v3448_v53 }
 0x185   : >> { %v946_v13 = vpop.permute.xlu1 %945  ;;  %v1178_v54 = vpop.permute.xlu0 %1177 }
 0x186   : >> { %v951_v59 = vadd.f32 %v946_v13, %v939_v4  ;;  %v1183_v36 = vadd.f32 %v1178_v54, %v1169_v33  ;;  %v861_v55 = vmax.f32 %v859_v15, 0.0 }
 0x188   : >> { %v953_v58 = vadd.f32 %v951_v59, %v3472_v9 }
 0x189   : >> { %v948_v41 = vpop.permute.xlu1 %947  ;;  %v1180_v24 = vpop.permute.xlu0 %1179 }
 0x18a   : >> { %v955_v31 = vmax.f32 %v953_v58, 0.0  ;;  %v952_v45 = vadd.f32 %v948_v41, %v940_v17  ;;  %v1184_v16 = vadd.f32 %v1180_v24, %v1170_v21  ;;  %v1299_v17 = vmul.f32 %v3483_v18, %v3436_v44 }
 0x18c   : >> { %v957_v7 = vmax.f32 %v860_v12, %v955_v31  ;;  %v954_v48 = vadd.f32 %v952_v45, %v3474_v11 }
 0x18d   : >> { %v1280_v50 = vpop.permute.xlu1 %1279  ;;  %v1190_v14 = vpop.permute.xlu0 %1189 }
 0x18e   : >> { %v956_v19 = vmax.f32 %v954_v48, 0.0  ;;  %v1195_v39 = vadd.f32 %v1190_v14, %v1183_v36  ;;  %2465 = vmatprep.mubr.msk.f32.mxu0 %vm561_vm1, %v957_v7  ;;  %2496 = vmatprep.mubr.msk.f32.mxu1 %vm561_vm1, %v957_v7  ;;  %v1285_v4 = vadd.f32 %v1280_v50, %v1271_v6  ;;  %v1239_v48 = vmul.f32 %v3483_v18, %v3460_v61 }
 0x190   : >> { %v958_v22 = vmax.f32 %v861_v55, %v956_v19  ;;  %v1206_v63 = vadd.f32 %v1204_v10, %v1195_v39  ;;  %v1240_v39 = vmul.f32 %v3483_v18, %v3446_v52 }
 0x191   : >> { %v1282_v56 = vpop.permute.xlu1 %1281  ;;  %v1192_v30 = vpop.permute.xlu0 %1191 }
 0x192   : >> { %v1196_v42 = vadd.f32 %v1192_v30, %v1184_v16  ;;  %2466 = vmatmul.mubr.msk.f32.vlgmr.msra.gmra.mrb[2].mxu0 %vm561_vm1, %v958_v22  ;;  %2497 = vmatmul.mubr.msk.f32.vlgmr.msra.gmra.mrb[2].mxu1 %vm561_vm1, %v958_v22  ;;  %v1286_v58 = vadd.f32 %v1282_v56, %v1272_v23  ;;  %v1334_v30 = vmul.f32 %v3526_v40, %v3460_v61 }
 0x193   : >> { %2738 = vmatpush3.bf16.msra.mxu0 %v3171_v38  ;;  %2766 = vmatpush3.bf16.msra.mxu1 %v3195_v46 }
 0x194   : >> { %v1207_v13 = vadd.f32 %v1205_v28, %v1196_v42  ;;  %2740 = vmatprep.subr.bf16.mxu0 %v3197_v47  ;;  %2768 = vmatprep.subr.bf16.mxu1 %v3210_v51 }
 0x195   : >> { %v1292_v54 = vpop.permute.xlu1 %1291  ;;  %v1213_v26 = vpop.permute.xlu0 %1212 }
 0x196   : >> { %v1297_v59 = vadd.f32 %v1292_v54, %v1285_v4  ;;  %v1218_v15 = vadd.f32 %v1213_v26, %v1206_v63  ;;  %v1335_v54 = vmul.f32 %v3526_v40, %v3446_v52 }
 0x197   : >> { %2742 = vmatpush3.bf16.msra.mxu0 %v3197_v47  ;;  %2770 = vmatpush3.bf16.msra.mxu1 %v3210_v51 }
 0x198   : >> { %v1301_v33 = vadd.f32 %v1299_v17, %v1297_v59  ;;  %2744 = vmatprep.subr.bf16.mxu0 %v3228_v57  ;;  %2772 = vmatprep.subr.bf16.mxu1 %v3236_v60 }
 0x199   : >> { %v1294_v41 = vpop.permute.xlu1 %1293  ;;  %v1215_v24 = vpop.permute.xlu0 %1214 }
 0x19a   : >> { %v1298_v12 = vadd.f32 %v1294_v41, %v1286_v58  ;;  %v1219_v21 = vadd.f32 %v1215_v24, %v1207_v13 }
 0x19b   : >> { %2746 = vmatpush3.bf16.msra.mxu0 %v3228_v57  ;;  %2774 = vmatpush3.bf16.msra.mxu1 %v3236_v60 }
 0x19c   : >> { %v1302_v31 = vadd.f32 %v1300_v29, %v1298_v12  ;;  %2748 = vmatprep.subr.bf16.mxu0 %v3253_v5  ;;  %2776 = vmatprep.subr.bf16.mxu1 %v3262_v8 }
 0x19d   : >> { %v1308_v45 = vpop.permute.xlu1 %1307  ;;  %v1225_v7 = vpop.permute.xlu0 %1224 }
 0x19e   : >> { %v1230_v36 = vadd.f32 %v1225_v7, %v1218_v15  ;;  %v1313_v10 = vadd.f32 %v1308_v45, %v1301_v33 }
 0x19f   : >> { %2750 = vmatpush3.bf16.msra.mxu0 %v3253_v5  ;;  %2778 = vmatpush3.bf16.msra.mxu1 %v3262_v8 }
 0x1a0   : >> { %v1241_v50 = vadd.f32 %v1239_v48, %v1230_v36  ;;  %2752 = vmatprep.subr.bf16.mxu0 %v3287_v20  ;;  %2780 = vmatprep.subr.bf16.mxu1 %v3295_v25 }
 0x1a1   : >> { %v1310_v14 = vpop.permute.xlu1 %1309  ;;  %v1227_v55 = vpop.permute.xlu0 %1226 }
 0x1a2   : >> { %v1231_v19 = vadd.f32 %v1227_v55, %v1219_v21  ;;  %v1314_v6 = vadd.f32 %v1310_v14, %v1302_v31  ;;  %v1578_v21 = vmul.f32 %v3483_v18, %v3424_v35 }
 0x1a3   : >> { %2754 = vmatpush3.bf16.msra.mxu0 %v3287_v20  ;;  %2782 = vmatpush3.bf16.msra.mxu1 %v3295_v25 }
 0x1a4   : >> { %v1242_v22 = vadd.f32 %v1240_v39, %v1231_v19  ;;  %2756 = vmatprep.subr.bf16.mxu0 %v3311_v32  ;;  %2784 = vmatprep.subr.bf16.mxu1 %v3321_v37 }
 0x1a5   : >> { %v1320_v16 = vpop.permute.xlu1 %1319  ;;  %v1248_v63 = vpop.permute.xlu0 %1247 }
 0x1a6   : >> { %v1325_v56 = vadd.f32 %v1320_v16, %v1313_v10  ;;  %v1253_v17 = vadd.f32 %v1248_v63, %v1241_v50 }
 0x1a7   : >> { %2758 = vmatpush3.bf16.msra.mxu0 %v3311_v32  ;;  %2786 = vmatpush3.bf16.msra.mxu1 %v3321_v37 }
 0x1a8   : >> { %v1336_v42 = vadd.f32 %v1334_v30, %v1325_v56  ;;  %2760 = vmatprep.subr.bf16.mxu0 %v3337_v43  ;;  %2788 = vmatprep.subr.bf16.mxu1 %v3347_v49  ;;  %v1579_v56 = vmul.f32 %v3483_v18, %v3462_v62  ;;  %v1680_v18 = vmul.f32 %v3526_v40, %v3424_v35 }
 0x1a9   : >> { %v1322_v28 = vpop.permute.xlu1 %1321  ;;  %v1250_v4 = vpop.permute.xlu0 %1249 }
 0x1aa   : >> { %v1326_v13 = vadd.f32 %v1322_v28, %v1314_v6  ;;  %v1254_v24 = vadd.f32 %v1250_v4, %v1242_v22 }
 0x1ab   : >> { %2762 = vmatpush3.bf16.msra.mxu0 %v3337_v43  ;;  %2790 = vmatpush3.bf16.msra.mxu1 %v3347_v49 }
 0x1ac   : >> { %v1337_v26 = vadd.f32 %v1335_v54, %v1326_v13  ;;  %2792 = vmatprep.subr.bf16.mxu0 %v3171_v38  ;;  %2820 = vmatprep.subr.bf16.mxu1 %v3195_v46  ;;  %v1613_v13 = vmul.f32 %v3526_v40, %v3436_v44 }
 0x1ad   : >> { %v1343_v23 = vpop.permute.xlu1 %1342  ;;  %v1260_v59 = vpop.permute.xlu0 %1259 }
 0x1ae   : >> { %v1265_v41 = vadd.f32 %v1260_v59, %v1253_v17  ;;  %v1348_v12 = vadd.f32 %v1343_v23, %v1336_v42 }
 0x1b0   : >> { %v1267_v31 = vadd.f32 %v1265_v41, %v3472_v9 }
 0x1b1   : >> { %v1345_v58 = vpop.permute.xlu1 %1344  ;;  %v1262_v33 = vpop.permute.xlu0 %1261 }
 0x1b2   : >> { %v1266_v45 = vadd.f32 %v1262_v33, %v1254_v24  ;;  %v1349_v36 = vadd.f32 %v1345_v58, %v1337_v26  ;;  %v1269_v50 = vmax.f32 %v1267_v31, 0.0  ;;  %v1614_v33 = vmul.f32 %v3526_v40, %v3448_v53 }
 0x1b3   : >> { %v1708_v31 = vmul.f32 %v3584_v34, %v3436_v44 }
 0x1b4   : >> { %v1268_v19 = vadd.f32 %v1266_v45, %v3474_v11 }
 0x1b5   : >> { %v1355_v29 = vpop.permute.xlu1 %1354  ;;  %v1587_v15 = vpop.permute.xlu0 %1586 }
 0x1b6   : >> { %v1360_v7 = vadd.f32 %v1355_v29, %v1348_v12  ;;  %v1592_v16 = vadd.f32 %v1587_v15, %v1578_v21  ;;  %v1270_v42 = vmax.f32 %v1268_v19, 0.0  ;;  %v1681_v29 = vmul.f32 %v3526_v40, %v3462_v62 }
 0x1b7   : >> { %v1709_v62 = vmul.f32 %v3584_v34, %v3448_v53  ;;  %v1648_v21 = vmul.f32 %v3584_v34, %v3460_v61 }
 0x1b8   : >> { %v1362_v48 = vadd.f32 %v1360_v7, %v3472_v9 }
 0x1b9   : >> { %v1357_v14 = vpop.permute.xlu1 %1356  ;;  %v1589_v55 = vpop.permute.xlu0 %1588 }
 0x1ba   : >> { %v1364_v39 = vmax.f32 %v1362_v48, 0.0  ;;  %v1361_v10 = vadd.f32 %v1357_v14, %v1349_v36  ;;  %v1593_v26 = vadd.f32 %v1589_v55, %v1579_v56  ;;  %v1744_v56 = vmul.f32 %v3634_v27, %v3446_v52 }
 0x1bc   : >> { %v1366_v22 = vmax.f32 %v1269_v50, %v1364_v39  ;;  %v1363_v63 = vadd.f32 %v1361_v10, %v3474_v11  ;;  %v1649_v50 = vmul.f32 %v3584_v34, %v3446_v52 }
 0x1bd   : >> { %v1689_v30 = vpop.permute.xlu1 %1688  ;;  %v1599_v6 = vpop.permute.xlu0 %1598 }
 0x1be   : >> { %v1365_v28 = vmax.f32 %v1363_v63, 0.0  ;;  %v1604_v4 = vadd.f32 %v1599_v6, %v1592_v16  ;;  %2527 = vmatprep.mubr.msk.f32.mxu0 %vm561_vm1, %v1366_v22  ;;  %2558 = vmatprep.mubr.msk.f32.mxu1 %vm561_vm1, %v1366_v22  ;;  %v1694_v41 = vadd.f32 %v1689_v30, %v1680_v18  ;;  %v1743_v22 = vmul.f32 %v3634_v27, %v3460_v61 }
 0x1c0   : >> { %v1367_v54 = vmax.f32 %v1270_v42, %v1365_v28  ;;  %v1615_v23 = vadd.f32 %v1613_v13, %v1604_v4 }
 0x1c1   : >> { %v1691_v59 = vpop.permute.xlu1 %1690  ;;  %v1601_v17 = vpop.permute.xlu0 %1600 }
 0x1c2   : >> { %v1605_v58 = vadd.f32 %v1601_v17, %v1593_v26  ;;  %2528 = vmatmul.mubr.msk.f32.vlgmr.msra.gmra.mrb[4].mxu0 %vm561_vm1, %v1367_v54  ;;  %2559 = vmatmul.mubr.msk.f32.vlgmr.msra.gmra.mrb[4].mxu1 %vm561_vm1, %v1367_v54 }
 0x1c3   : >> { %2794 = vmatpush3.bf16.msra.mxu0 %v3171_v38  ;;  %2822 = vmatpush3.bf16.msra.mxu1 %v3195_v46  ;;  %v1695_v38 = vadd.f32 %v1691_v59, %v1681_v29 }
 0x1c4   : >> { %v1616_v24 = vadd.f32 %v1614_v33, %v1605_v58  ;;  %2796 = vmatprep.subr.bf16.mxu0 %v3197_v47  ;;  %2824 = vmatprep.subr.bf16.mxu1 %v3210_v51 }
 0x1c5   : >> { %v1701_v12 = vpop.permute.xlu1 %1700  ;;  %v1622_v35 = vpop.permute.xlu0 %1621 }
 0x1c6   : >> { %v1706_v15 = vadd.f32 %v1701_v12, %v1694_v41  ;;  %v1627_v44 = vadd.f32 %v1622_v35, %v1615_v23 }
 0x1c7   : >> { %2798 = vmatpush3.bf16.msra.mxu0 %v3197_v47  ;;  %2826 = vmatpush3.bf16.msra.mxu1 %v3210_v51 }
 0x1c8   : >> { %v1710_v46 = vadd.f32 %v1708_v31, %v1706_v15  ;;  %2800 = vmatprep.subr.bf16.mxu0 %v3228_v57  ;;  %2828 = vmatprep.subr.bf16.mxu1 %v3236_v60 }
 0x1c9   : >> { %v1703_v45 = vpop.permute.xlu1 %1702  ;;  %v1624_v7 = vpop.permute.xlu0 %1623 }
 0x1ca   : >> { %v1707_v36 = vadd.f32 %v1703_v45, %v1695_v38  ;;  %v1628_v53 = vadd.f32 %v1624_v7, %v1616_v24 }
 0x1cb   : >> { %2802 = vmatpush3.bf16.msra.mxu0 %v3228_v57  ;;  %2830 = vmatpush3.bf16.msra.mxu1 %v3236_v60 }
 0x1cc   : >> { %v1711_v47 = vadd.f32 %v1709_v62, %v1707_v36  ;;  %2804 = vmatprep.subr.bf16.mxu0 %v3253_v5  ;;  %2832 = vmatprep.subr.bf16.mxu1 %v3262_v8 }
 0x1cd   : >> { %v1717_v51 = vpop.permute.xlu1 %1716  ;;  %v1634_v40 = vpop.permute.xlu0 %1633 }
 0x1ce   : >> { %v1639_v48 = vadd.f32 %v1634_v40, %v1627_v44  ;;  %v1722_v19 = vadd.f32 %v1717_v51, %v1710_v46 }
 0x1cf   : >> { %2806 = vmatpush3.bf16.msra.mxu0 %v3253_v5  ;;  %2834 = vmatpush3.bf16.msra.mxu1 %v3262_v8 }
 0x1d0   : >> { %v1650_v57 = vadd.f32 %v1648_v21, %v1639_v48  ;;  %2808 = vmatprep.subr.bf16.mxu0 %v3287_v20  ;;  %2836 = vmatprep.subr.bf16.mxu1 %v3295_v25 }
 0x1d1   : >> { %v1719_v60 = vpop.permute.xlu1 %1718  ;;  %v1636_v14 = vpop.permute.xlu0 %1635 }
 0x1d2   : >> { %v1640_v55 = vadd.f32 %v1636_v14, %v1628_v53  ;;  %v1723_v34 = vadd.f32 %v1719_v60, %v1711_v47 }
 0x1d3   : >> { %2810 = vmatpush3.bf16.msra.mxu0 %v3287_v20  ;;  %2838 = vmatpush3.bf16.msra.mxu1 %v3295_v25 }
 0x1d4   : >> { %v1651_v5 = vadd.f32 %v1649_v50, %v1640_v55  ;;  %2812 = vmatprep.subr.bf16.mxu0 %v3311_v32  ;;  %2840 = vmatprep.subr.bf16.mxu1 %v3321_v37 }
 0x1d5   : >> { %v1729_v8 = vpop.permute.xlu1 %1728  ;;  %v1657_v39 = vpop.permute.xlu0 %1656 }
 0x1d6   : >> { %v1734_v10 = vadd.f32 %v1729_v8, %v1722_v19 }
 0x1d7   : >> { %2814 = vmatpush3.bf16.msra.mxu0 %v3311_v32  ;;  %2842 = vmatpush3.bf16.msra.mxu1 %v3321_v37  ;;  %v1662_v37 = vadd.f32 %v1657_v39, %v1650_v57 }
 0x1d8   : >> { %v1745_v20 = vadd.f32 %v1743_v22, %v1734_v10  ;;  %2816 = vmatprep.subr.bf16.mxu0 %v3337_v43  ;;  %2844 = vmatprep.subr.bf16.mxu1 %v3347_v49 }
 0x1d9   : >> { %v1731_v25 = vpop.permute.xlu1 %1730  ;;  %v1659_v16 = vpop.permute.xlu0 %1658 }
 0x1da   : >> { %v1735_v63 = vadd.f32 %v1731_v25, %v1723_v34  ;;  %v1663_v4 = vadd.f32 %v1659_v16, %v1651_v5 }
 0x1db   : >> { %2818 = vmatpush3.bf16.msra.mxu0 %v3337_v43  ;;  %2846 = vmatpush3.bf16.msra.mxu1 %v3347_v49 }
 0x1dc   : >> { %v1746_v61 = vadd.f32 %v1744_v56, %v1735_v63 }
 0x1dd   : >> { %v1752_v32 = vpop.permute.xlu1 %1751  ;;  %v1669_v30 = vpop.permute.xlu0 %1668 }
 0x1de   : >> { %v1674_v42 = vadd.f32 %v1669_v30, %v1662_v37  ;;  %v1757_v13 = vadd.f32 %v1752_v32, %v1745_v20 }
 0x1e0   : >> { %v1676_v26 = vadd.f32 %v1674_v42, %v3472_v9 }
 0x1e1   : >> { %v1754_v6 = vpop.permute.xlu1 %1753  ;;  %v1671_v28 = vpop.permute.xlu0 %1670 }
 0x1e2   : >> { %v1675_v23 = vadd.f32 %v1671_v28, %v1663_v4  ;;  %v1758_v17 = vadd.f32 %v1754_v6, %v1746_v61  ;;  %v1678_v27 = vmax.f32 %v1676_v26, 0.0 }
 0x1e4   : >> { %v1677_v49 = vadd.f32 %v1675_v23, %v3474_v11 }
 0x1e5   : >> { %v1764_v54 = vpop.permute.xlu1 %1763 }
 0x1e6   : >> { %v1769_v59 = vadd.f32 %v1764_v54, %v1757_v13  ;;  %v1679_v24 = vmax.f32 %v1677_v49, 0.0 }
 0x1e8   : >> { %v1771_v52 = vadd.f32 %v1769_v59, %v3472_v9 }
 0x1e9   : >> { %v1766_v43 = vpop.permute.xlu1 %1765 }
 0x1ea   : >> { %v1773_v18 = vmax.f32 %v1771_v52, 0.0  ;;  %v1770_v58 = vadd.f32 %v1766_v43, %v1758_v17 }
 0x1ec   : >> { %v1775_v33 = vmax.f32 %v1678_v27, %v1773_v18  ;;  %v1772_v41 = vadd.f32 %v1770_v58, %v3474_v11 }
 0x1ee   : >> { %v1774_v12 = vmax.f32 %v1772_v41, 0.0  ;;  %2589 = vmatprep.mubr.msk.f32.mxu0 %vm561_vm1, %v1775_v33  ;;  %2620 = vmatprep.mubr.msk.f32.mxu1 %vm561_vm1, %v1775_v33 }
 0x1f0   : >> { %v1776_v35 = vmax.f32 %v1679_v24, %v1774_v12 }
 0x1f2   : >> { %2590 = vmatmul.mubr.msk.f32.vlgmr.msra.gmra.mrb[6].mxu0 %vm561_vm1, %v1776_v35  ;;  %2621 = vmatmul.mubr.msk.f32.vlgmr.msra.gmra.mrb[6].mxu1 %vm561_vm1, %v1776_v35 }
 0x235   : >> { %v2405_v9 = vpop.f32.mrb[0].mxu0  ;;  %v2436_v29 = vpop.f32.mrb[0].mxu1 }
 0x236   : >> { %v733_v15 = vmax.f32 %v2405_v9, %v2436_v29  ;;  %v634_v31 = vpop.f32.mrb[1].mxu0  ;;  %v723_v38 = vpop.f32.mrb[1].mxu1 }
 0x237   : >> { %v732_v46 = vmax.f32 %v634_v31, %v723_v38 }
 0x238   : >> { %738 = vrot.lane.b32.xlu1 %v733_v15, %s2969_s26 }
 0x239   : >> { %736 = vrot.lane.b32.xlu0 %v732_v46, %s2969_s26 }
 0x265   : >> { %v2467_v11 = vpop.f32.mrb[2].mxu0  ;;  %v2498_v45 = vpop.f32.mrb[2].mxu1 }
 0x266   : >> { %v1144_v7 = vmax.f32 %v2467_v11, %v2498_v45  ;;  %v1045_v36 = vpop.f32.mrb[3].mxu0  ;;  %v1134_v62 = vpop.f32.mrb[3].mxu1 }
 0x267   : >> { %v1143_v44 = vmax.f32 %v1045_v36, %v1134_v62 }
 0x268   : >> { %1149 = vrot.lane.b32.xlu1 %v1144_v7, %s2969_s26 }
 0x269   : >> { %1147 = vrot.lane.b32.xlu0 %v1143_v44, %s2969_s26 }
 0x295   : >> { %v2529_v47 = vpop.f32.mrb[4].mxu0  ;;  %v2560_v51 = vpop.f32.mrb[4].mxu1 }
 0x296   : >> { %v1553_v40 = vmax.f32 %v2529_v47, %v2560_v51  ;;  %v1454_v48 = vpop.f32.mrb[5].mxu0  ;;  %v1543_v21 = vpop.f32.mrb[5].mxu1 }
 0x297   : >> { %v1552_v53 = vmax.f32 %v1454_v48, %v1543_v21 }
 0x298   : >> { %1558 = vrot.lane.b32.xlu1 %v1553_v40, %s2969_s26 }
 0x299   : >> { %1556 = vrot.lane.b32.xlu0 %v1552_v53, %s2969_s26 }
 0x2aa   : >> { %v739_v57 = vpop.permute.xlu1 %738 }
 0x2ab   : >> { %v744_v60 = vsel %vm742_vm2, 0.0, %v739_v57  ;;  %v737_v14 = vpop.permute.xlu0 %736 }
 0x2ac   : >> { %v747_v55 = vsel %vm745_vm3, %v744_v60, 0.0  ;;  %v743_v50 = vsel %vm742_vm2, 0.0, %v737_v14 }
 0x2ad   : >> { %2156 = vst.msk [vmem:[%s3826_s28 + $0x18] sm:$0xff] %vm244_vm0, %v747_v55  ;;  %v746_v19 = vsel %vm745_vm3, %v743_v50, 0.0 }
 0x2ae   : >> { %2155 = vst.msk [vmem:[%s3826_s28 + $0x10] sm:$0xff] %vm244_vm0, %v746_v19 }
 0x2c5   : >> { %v2591_v5 = vpop.f32.mrb[6].mxu0  ;;  %v2622_v8 = vpop.f32.mrb[6].mxu1 }
 0x2c6   : >> { %v1962_v39 = vmax.f32 %v2591_v5, %v2622_v8  ;;  %v1863_v10 = vpop.f32.mrb[7].mxu0  ;;  %v1952_v22 = vpop.f32.mrb[7].mxu1 }
 0x2c7   : >> { %v1961_v34 = vmax.f32 %v1863_v10, %v1952_v22 }
 0x2c8   : >> { %1967 = vrot.lane.b32.xlu1 %v1962_v39, %s2969_s26 }
 0x2c9   : >> { %1965 = vrot.lane.b32.xlu0 %v1961_v34, %s2969_s26 }
 0x2da   : >> { %v1150_v20 = vpop.permute.xlu1 %1149 }
 0x2db   : >> { %v1154_v25 = vsel %vm742_vm2, 0.0, %v1150_v20  ;;  %v1148_v16 = vpop.permute.xlu0 %1147 }
 0x2dc   : >> { %v1156_v63 = vsel %vm745_vm3, %v1154_v25, 0.0  ;;  %v1153_v56 = vsel %vm742_vm2, 0.0, %v1148_v16 }
 0x2dd   : >> { %2180 = vst.msk [vmem:[%s3826_s28 + $0x28] sm:$0xff] %vm244_vm0, %v1156_v63  ;;  %v1155_v61 = vsel %vm745_vm3, %v1153_v56, 0.0 }
 0x2de   : >> { %2179 = vst.msk [vmem:[%s3826_s28 + $0x20] sm:$0xff] %vm244_vm0, %v1155_v61 }
 0x30a   : >> { %v1559_v32 = vpop.permute.xlu1 %1558 }
 0x30b   : >> { %v1563_v30 = vsel %vm742_vm2, 0.0, %v1559_v32  ;;  %v1557_v37 = vpop.permute.xlu0 %1556 }
 0x30c   : >> { %v1565_v6 = vsel %vm745_vm3, %v1563_v30, 0.0  ;;  %v1562_v42 = vsel %vm742_vm2, 0.0, %v1557_v37 }
 0x30d   : >> { %2204 = vst.msk [vmem:[%s3826_s28 + $0x38] sm:$0xff] %vm244_vm0, %v1565_v6  ;;  %v1564_v28 = vsel %vm745_vm3, %v1562_v42, 0.0 }
 0x30e   : >> { %2203 = vst.msk [vmem:[%s3826_s28 + $0x30] sm:$0xff] %vm244_vm0, %v1564_v28 }
 0x338   : > { %254 = sbr.rel (!%p252_p3) target bundleno = 51 (0x33), region = 103 }
 0x33a   : >> { %v1968_v4 = vpop.permute.xlu1 %1967 }
 0x33b   : >> { %v1972_v13 = vsel %vm742_vm2, 0.0, %v1968_v4  ;;  %v1966_v54 = vpop.permute.xlu0 %1965 }
 0x33c   : >> { %v1974_v26 = vsel %vm745_vm3, %v1972_v13, 0.0  ;;  %v1971_v23 = vsel %vm742_vm2, 0.0, %v1966_v54 }
 0x33d   : >> { %2228 = vst.msk [vmem:[%s3826_s28 + $0x48] sm:$0xff] %vm244_vm0, %v1974_v26  ;;  %v1973_v59 = vsel %vm745_vm3, %v1971_v23, 0.0 }
 0x33e   : >> { %2227 = vst.msk [vmem:[%s3826_s28 + $0x40] sm:$0xff] %vm244_vm0, %v1973_v59 }
 0x33f PF: > { %s16_s18 = sadd.s32 1, %s2948_s18  }
 0x340   : > { %p13_p5 = scmp.ge.s32.totalorder %s16_s18, 4  }
 0x342   :  { %15 = sbr.rel (!%p13_p5) target bundleno = 1 (0x1), region = 114 }
 0x349   :  { %2001 = vsyncpa [#allocation3], 1 }
 0x34a   :  { %2003 = vsyncpa [#allocation3 + $0x1], 1 }

// kernel: simple_cnn_forward.4
= control target key start
LH: loop header
LB: loop body
LE: loop exit
PB: predicated region body
PF: predicated region fallthrough
CT: control target
= control target key end

     0   :  { %10 = vsyncpa [#allocation3], 0  ;;  %s3347_s18 = smov 0   ;;  %s4032_s0 = inlined_call_operand.vmem [shape: f32[2,58,16,58], index: 0, kind: input, shape index: {}]   ;;  %s4033_s1 = inlined_call_operand.hbm [shape: f32[32,144], index: 1, kind: input, shape index: {}]   ;;  %s4034_s2 = inlined_call_operand.vmem [shape: f32[32,1], index: 2, kind: input, shape index: {}]   ;;  %s4035_s3 = inlined_call_operand.vmem [shape: f32[56,28], index: 3, kind: input, shape index: {}]   ;;  %s4036_s4 = inlined_call_operand.vmem [shape: f32[56,28], index: 4, kind: input, shape index: {}]   ;;  %s4037_s5 = inlined_call_operand.vmem [shape: f32[2,28,32,28], index: 5, kind: output, shape index: {}]  }
   0x1 LB: > { %s3353_s19 = sadd.s32 4294967295, %s3304_s18   ;;  %p2312_p0 = scmp.ge.s32.totalorder %s3304_s18, 1  ;;  %s3304_s18 = sphi %s3347_s18, %s16_s18  }
   0x2   : > { %p157_p1 = scmp.lt.s32.totalorder %s3304_s18, 3  ;;  %s3310_s20 = smov [#allocation2]  }
   0x3   : > { %s169_s21 = sshll.u32 %s3310_s20, 4  ;;  %p4038_p3 = scmp.eq.s32.totalorder %s3353_s19, 0  ;;  %s170_s21 = int_to_ptr.vmem [resolvable:$true] %s169_s21 }
   0x4   : > { %p3357_p2 = pnand %p2312_p0, %p157_p1  ;;  %s3262_s26 = scalar_lea.hbm %s4033_s1, 1024 }
   0x5   : > { %p3263_p6 = scmp.ne.s32.totalorder %s4033_s1, %s3262_s26  ;;  %p3269_p10 = scmp.lt.u32.totalorder %s3262_s26, %s4033_s1 }
   0x6   : > { %s4040_s22 = scalar_select %p3357_p2, 1, 0 }
   0x7   : > { %p3071_p4 = pneg %p3357_p2 }
   0x9   : > { %p3366_p5 = pnand %p4038_p3, %p3071_p4 }
   0xb   : > { %p3264_p7 = pneg %p3366_p5 }
   0xd   : > { %p3265_p8 = pnand %p3264_p7, %p3263_p6 }
   0xf   : > { %p3266_p9 = pneg %p3265_p8 }
  0x11   : > { %p3271_p11 = pnand %p3269_p10, %p3266_p9 }
  0x13   : > { %3274 = shalt.err (!%p3271_p11)
}
  0x14   : > { %s3275_s6 = scalar_lea.vmem %s170_s21, 1024  ;;  %p3283_p1 = scmp.lt.s32.totalorder %s170_s21, %s170_s21 }
  0x15   : > { %p3276_p12 = scmp.ne.s32.totalorder %s170_s21, %s3275_s6  ;;  %p3284_p4 = scmp.lt.s32.totalorder %s3275_s6, %s3275_s6 }
  0x17   : > { %p3278_p13 = pnand %p3276_p12, %p3264_p7  ;;  %p3285_p3 = por %p3284_p4, %p3283_p1 }
  0x19   : > { %p3279_p0 = pneg %p3278_p13 }
  0x1b   : > { %p3286_p2 = pnand %p3285_p3, %p3279_p0 }
  0x1d   : > { %3289 = shalt.err (!%p3286_p2)
}
  0x1e   : > { %s3311_s7 = smov 256   ;;  %s3312_s8 = smov 16  }
  0x1f   : > { %3074 = dma.hbm_to_vmem [thread:$0]  (!%p3366_p5), %s4033_s1, 1024, %s170_s21, [#allocation3], %s3311_s7, %s3311_s7, %s3312_s8  }
  0x20   : > { %p4042_p6 = scmp.ne.s32.totalorder %s4040_s22, 0 }
  0x21   : > { %p4043_p8 = scmp.eq.s32.totalorder (!%p4042_p6), %s3353_s19, 0 }
  0x22   : > { %202 = sbr.rel (%p4042_p6) target bundleno = 1428 (0x594), region = 40 }
  0x29   : > { %3299 = dma.done.wait (%p4043_p8), [#allocation3], 1024   ;;  %p4044_p7 = pmov %p4043_p8 }
  0x2a   : > { %p230_p2 = scmp.lt.s32.totalorder %s3353_s19, 1  ;;  %v3399_v0 = vld [vmem:[#allocation2] sm:$0xff]  ;;  %v3401_v1 = vld [vmem:[#allocation2 + $0x8] sm:$0xff]  ;;  %v3403_v2 = vld [vmem:[#allocation2 + $0x10] sm:$0xff]  ;;  %s3440_s28 = smov 0  }
  0x2b   : > { %3301 = vsyncadd (%p4044_p7), [#allocation3], 4294966272  ;;  %v3410_v3 = vld [vmem:[#allocation2 + $0x18] sm:$0xff]  ;;  %v3412_v4 = vld [vmem:[#allocation2 + $0x20] sm:$0xff] }
  0x2c   : > { %s4046_s19 = smov (!%p230_p2, %s3353_s19), 1  ;;  %v3414_v5 = vld [vmem:[#allocation2 + $0x28] sm:$0xff]  ;;  %v3416_v6 = vld [vmem:[#allocation2 + $0x30] sm:$0xff]  ;;  %v3418_v7 = vld [vmem:[#allocation2 + $0x38] sm:$0xff] }
  0x2d   : > { %s3065_s11 = smul.u32 928, %s4046_s19  ;;  %v3423_v8 = vld [vmem:[%s4034_s2] sm:$0xff]  ;;  %v3428_v9 = vld [vmem:[%s4034_s2 + $0x8] sm:$0xff]  ;;  %v3433_v10 = vld [vmem:[%s4034_s2 + $0x10] sm:$0xff] }
  0x2e   : > { %s3066_s12 = smul.u32 896, %s4046_s19  ;;  %v3438_v11 = vld [vmem:[%s4034_s2 + $0x18] sm:$0xff] }
  0x2f   : > { %s3397_s15 = scalar_lea.vmem %s4032_s0, %s3065_s11 }
  0x30   : > { %s3408_s20 = scalar_lea.vmem %s4037_s5, %s3066_s12 }
  0x31 LB: >> { %v3313_v12 = vmov 0.0|0.0   ;;  %s2476_s29 = sshll.u32 %s3308_s28, 7  ;;  %s3314_s6 = smov 127   ;;  %vm336_vm0 = vcmask 130048   ;;  %v3316_v29 = vmov 0   ;;  %vm557_vm1 = vcmask 457728   ;;  %s3308_s28 = sphi %s3440_s28, %s257_s28  }
  0x32   : >> { %2753 = vmatprep.subr.bf16.mxu0 %v3313_v12  ;;  %2780 = vmatprep.subr.bf16.mxu1 %v3313_v12  ;;  %s3451_s30 = scalar_lea.vmem %s3397_s15, %s2476_s29  ;;  %s3315_s7 = smov 126   ;;  %vm753_vm2 = vcmask 228352  }
  0x33   : >> { %v262_v13 = vld [vmem:[%s3451_s30] sm:$0xff]  ;;  %v263_v14 = vld [vmem:[%s3451_s30 + $0x8] sm:$0xff]  ;;  %v2324_v15 = vld [vmem:[%s3451_s30 + $0x10] sm:$0xff]  ;;  %2330 = vmatprep.mubr.msk.f32.mxu0 %vm336_vm0, %v3401_v1  ;;  %2338 = vmatprep.mubr.msk.f32.mxu1 %vm336_vm0, %v3401_v1  ;;  %s3783_s22 = scalar_lea.vmem %s3408_s20, %s2476_s29  ;;  %s257_s28 = sadd.s32 1, %s3308_s28  }
  0x34   : >> { %v3100_v16 = vpack.i.bf16 %v263_v14, %v262_v13  ;;  %v2325_v17 = vld [vmem:[%s3451_s30 + $0x18] sm:$0xff]  ;;  %v2754_v18 = vpack.c.bf16 %v263_v14, %v262_v13  ;;  %v2328_v21 = vld [vmem:[%s3451_s30 + $0x20] sm:$0xff]  ;;  %v2329_v22 = vld [vmem:[%s3451_s30 + $0x28] sm:$0xff]  ;;  %3141 = vset.pattern.permute.xlu1 %v3316_v29  ;;  %3140 = vset.pattern.permute.xlu0 %v3316_v29  ;;  %p254_p3 = scmp.ge.s32.totalorder %s257_s28, 7  }
  0x35   : >> { %v3457_v19 = vpack.c.bf16 %v2325_v17, %v2324_v15  ;;  %v3105_v20 = vpack.i.bf16 %v2325_v17, %v2324_v15  ;;  %v3464_v23 = vpack.c.bf16 %v2329_v22, %v2328_v21  ;;  %v3120_v24 = vpack.i.bf16 %v2329_v22, %v2328_v21  ;;  %v2336_v25 = vld [vmem:[%s3451_s30 + $0x30] sm:$0xff]  ;;  %v2337_v26 = vld [vmem:[%s3451_s30 + $0x38] sm:$0xff]  ;;  %v3487_v30 = vld [vmem:[%s3451_s30 + $0x40] sm:$0xff] }
  0x36   : >> { %3101 = vrot.lane.b32.xlu0 %v3100_v16, %s3314_s6  ;;  %3111 = vrot.lane.b32.xlu1 %v3100_v16, %s3315_s7  ;;  %v3130_v27 = vpack.i.bf16 %v2337_v26, %v2336_v25  ;;  %v3476_v28 = vpack.c.bf16 %v2337_v26, %v2336_v25  ;;  %v3490_v31 = vld [vmem:[%s3451_s30 + $0x48] sm:$0xff]  ;;  %v3499_v33 = vld [vmem:[%s3451_s30 + $0x50] sm:$0xff] }
  0x37   : >> { %2755 = vmatpush1.bf16.msra.mxu0 %v2754_v18  ;;  %2782 = vmatpush1.bf16.msra.mxu1 %v3457_v19  ;;  %v3162_v32 = vpack.i.bf16 %v3490_v31, %v3487_v30  ;;  %v3502_v34 = vld [vmem:[%s3451_s30 + $0x58] sm:$0xff]  ;;  %v550_v13 = vld [vmem:[%s4035_s3] sm:$0xff]  ;;  %v551_v14 = vld [vmem:[%s4035_s3 + $0x8] sm:$0xff] }
  0x38   : >> { %2756 = vmatprep.subr.bf16.mxu0 %v3313_v12  ;;  %2783 = vmatprep.subr.bf16.mxu1 %v3313_v12  ;;  %v3172_v35 = vpack.i.bf16 %v3502_v34, %v3499_v33  ;;  %v3537_v18 = vpack.c.bf16 %v551_v14, %v550_v13  ;;  %v552_v21 = vld [vmem:[%s4035_s3 + $0x10] sm:$0xff]  ;;  %v553_v22 = vld [vmem:[%s4035_s3 + $0x18] sm:$0xff] }
  0x39   : >> { %v3555_v26 = vpack.c.bf16 %v553_v22, %v552_v21  ;;  %v658_v29 = vld [vmem:[%s4036_s4 + $0x18] sm:$0xff] }
  0x3a   : >> { %3106 = vrot.lane.b32.xlu0 %v3105_v20, %s3314_s6  ;;  %3116 = vrot.lane.b32.xlu1 %v3105_v20, %s3315_s7  ;;  %v656_v20 = vld [vmem:[%s4036_s4 + $0x8] sm:$0xff] }
  0x3e   : >> { %3121 = vrot.lane.b32.xlu0 %v3120_v24, %s3314_s6  ;;  %3126 = vrot.lane.b32.xlu1 %v3120_v24, %s3315_s7 }
  0x42   : >> { %3131 = vrot.lane.b32.xlu0 %v3130_v27, %s3314_s6  ;;  %3136 = vrot.lane.b32.xlu1 %v3130_v27, %s3315_s7 }
  0x46   : >> { %323 = vperm.xlu1 %3141, %v3428_v9   ;;  %318 = vperm.xlu0 %3140, %v3423_v8  }
  0x4a   : >> { %3143 = vrot.lane.b32.xlu1 %v3120_v24, %s3314_s6  ;;  %3148 = vrot.lane.b32.xlu0 %v3130_v27, %s3314_s6 }
  0x4e   : >> { %3153 = vrot.lane.b32.xlu1 %v3120_v24, %s3315_s7  ;;  %3158 = vrot.lane.b32.xlu0 %v3130_v27, %s3315_s7  ;;  %v657_v27 = vld [vmem:[%s4036_s4 + $0x10] sm:$0xff] }
  0x52   : >> { %3163 = vrot.lane.b32.xlu1 %v3162_v32, %s3314_s6  ;;  %328 = vperm.xlu0 %3140, %v3433_v10  }
  0x56   : >> { %333 = vperm.xlu1 %3141, %v3438_v11   ;;  %3168 = vrot.lane.b32.xlu0 %v3162_v32, %s3315_s7 }
  0x5a   : >> { %3173 = vrot.lane.b32.xlu1 %v3172_v35, %s3314_s6  ;;  %3178 = vrot.lane.b32.xlu0 %v3172_v35, %s3315_s7 }
  0x5e   : >> { %3183 = vrot.lane.b32.xlu1 %v3162_v32, %s3314_s6  ;;  %3188 = vrot.lane.b32.xlu0 %v3172_v35, %s3314_s6 }
  0x62   : >> { %3193 = vrot.lane.b32.xlu1 %v3162_v32, %s3315_s7  ;;  %3198 = vrot.lane.b32.xlu0 %v3172_v35, %s3315_s7  ;;  %v3569_v32 = vpack.c.bf16 %v658_v29, %v657_v27  ;;  %v554_v35 = vld [vmem:[%s4035_s3 + $0x20] sm:$0xff] }
  0xa8   : >> { %v3102_v36 = vpop.permute.xlu0 %3101  ;;  %v3112_v37 = vpop.permute.xlu1 %3111 }
  0xa9   : >> { %v3104_v38 = vunpack.i.h.bf16 %v3102_v36  ;;  %v3103_v39 = vunpack.i.l.bf16 %v3102_v36  ;;  %v3114_v40 = vunpack.i.h.bf16 %v3112_v37  ;;  %v3113_v41 = vunpack.i.l.bf16 %v3112_v37  ;;  %v555_v36 = vld [vmem:[%s4035_s3 + $0x28] sm:$0xff]  ;;  %v659_v37 = vld [vmem:[%s4036_s4 + $0x20] sm:$0xff] }
  0xab   : >> { %v2757_v42 = vpack.c.bf16 %v3104_v38, %v3103_v39  ;;  %v2760_v43 = vpack.c.bf16 %v3114_v40, %v3113_v41  ;;  %v3601_v38 = vpack.c.bf16 %v555_v36, %v554_v35  ;;  %v660_v39 = vld [vmem:[%s4036_s4 + $0x28] sm:$0xff]  ;;  %v3615_v41 = vld [vmem:[%s4035_s3 + $0x30] sm:$0xff] }
  0xac   : >> { %v3107_v44 = vpop.permute.xlu0 %3106  ;;  %v3117_v45 = vpop.permute.xlu1 %3116  ;;  %v3606_v40 = vpack.c.bf16 %v660_v39, %v659_v37 }
  0xad   : >> { %v3109_v46 = vunpack.i.h.bf16 %v3107_v44  ;;  %v3108_v47 = vunpack.i.l.bf16 %v3107_v44  ;;  %2758 = vmatpush1.bf16.msra.mxu0 %v2757_v42  ;;  %v3119_v48 = vunpack.i.h.bf16 %v3117_v45  ;;  %v3118_v49 = vunpack.i.l.bf16 %v3117_v45  ;;  %v3620_v42 = vld [vmem:[%s4036_s4 + $0x30] sm:$0xff]  ;;  %v3632_v44 = vld [vmem:[%s3451_s30 + $0x68] sm:$0xff] }
  0xae   : >> { %2759 = vmatprep.subr.bf16.mxu0 %v3313_v12  ;;  %v3635_v45 = vld [vmem:[%s3451_s30 + $0x70] sm:$0xff] }
  0xaf   : >> { %v2766_v50 = vpack.c.bf16 %v3109_v46, %v3108_v47  ;;  %v2769_v51 = vpack.c.bf16 %v3119_v48, %v3118_v49  ;;  %v3640_v47 = vld [vmem:[%s3451_s30 + $0x78] sm:$0xff] }
  0xb0   : >> { %v3122_v52 = vpop.permute.xlu0 %3121  ;;  %v3127_v55 = vpop.permute.xlu1 %3126  ;;  %v3212_v48 = vpack.i.bf16 %v3640_v47, %v3635_v45 }
  0xb1   : >> { %2761 = vmatpush1.bf16.msra.mxu0 %v2760_v43  ;;  %2785 = vmatpush1.bf16.msra.mxu1 %v2766_v50  ;;  %v3124_v53 = vunpack.i.h.bf16 %v3122_v52  ;;  %v3123_v54 = vunpack.i.l.bf16 %v3122_v52  ;;  %v3129_v57 = vunpack.i.h.bf16 %v3127_v55  ;;  %v3128_v58 = vunpack.i.l.bf16 %v3127_v55  ;;  %v3629_v43 = vld [vmem:[%s3451_s30 + $0x60] sm:$0xff] }
  0xb2   : >> { %2762 = vmatprep.subr.bf16.mxu0 %v3313_v12  ;;  %2786 = vmatprep.subr.bf16.mxu1 %v3313_v12  ;;  %v3202_v46 = vpack.i.bf16 %v3632_v44, %v3629_v43 }
  0xb3   : >> { %v2775_v56 = vpack.c.bf16 %v3124_v53, %v3123_v54  ;;  %v2778_v59 = vpack.c.bf16 %v3129_v57, %v3128_v58 }
  0xb4   : >> { %v3132_v60 = vpop.permute.xlu0 %3131  ;;  %v3137_v63 = vpop.permute.xlu1 %3136  ;;  %3203 = vrot.lane.b32.xlu1 %v3202_v46, %s3314_s6  ;;  %3208 = vrot.lane.b32.xlu0 %v3202_v46, %s3315_s7 }
  0xb5   : >> { %2764 = vmatpush1.bf16.msra.mxu0 %v3457_v19  ;;  %2788 = vmatpush1.bf16.msra.mxu1 %v2769_v51  ;;  %v3134_v61 = vunpack.i.h.bf16 %v3132_v60  ;;  %v3133_v62 = vunpack.i.l.bf16 %v3132_v60  ;;  %v3139_v16 = vunpack.i.h.bf16 %v3137_v63  ;;  %v3138_v17 = vunpack.i.l.bf16 %v3137_v63  ;;  %v655_v19 = vld [vmem:[%s4036_s4] sm:$0xff] }
  0xb6   : >> { %2765 = vmatprep.subr.bf16.mxu0 %v3313_v12  ;;  %2789 = vmatprep.subr.bf16.mxu1 %v3313_v12  ;;  %v3553_v25 = vpack.c.bf16 %v656_v20, %v655_v19 }
  0xb7   : >> { %v2802_v15 = vpack.c.bf16 %v3134_v61, %v3133_v62  ;;  %v2805_v24 = vpack.c.bf16 %v3139_v16, %v3138_v17 }
  0xb8   : >> { %3213 = vrot.lane.b32.xlu1 %v3212_v48, %s3314_s6  ;;  %3218 = vrot.lane.b32.xlu0 %v3212_v48, %s3315_s7 }
  0xb9   : >> { %2767 = vmatpush1.bf16.msra.mxu0 %v2766_v50  ;;  %2791 = vmatpush1.bf16.msra.mxu1 %v3464_v23 }
  0xba   : >> { %2768 = vmatprep.subr.bf16.mxu0 %v3313_v12  ;;  %2792 = vmatprep.subr.bf16.mxu1 %v3313_v12 }
  0xbc   : >> { %3223 = vrot.lane.b32.xlu1 %v3202_v46, %s3314_s6  ;;  %3228 = vrot.lane.b32.xlu0 %v3212_v48, %s3314_s6 }
  0xbd   : >> { %2770 = vmatpush1.bf16.msra.mxu0 %v2769_v51  ;;  %2794 = vmatpush1.bf16.msra.mxu1 %v2775_v56 }
  0xbe   : >> { %2771 = vmatprep.subr.bf16.mxu0 %v3313_v12  ;;  %2795 = vmatprep.subr.bf16.mxu1 %v3313_v12 }
  0xc0   : >> { %3233 = vrot.lane.b32.xlu1 %v3202_v46, %s3315_s7  ;;  %3238 = vrot.lane.b32.xlu0 %v3212_v48, %s3315_s7 }
  0xc1   : >> { %2773 = vmatpush1.bf16.msra.mxu0 %v3464_v23  ;;  %2797 = vmatpush1.bf16.msra.mxu1 %v2778_v59 }
  0xc2   : >> { %2774 = vmatprep.subr.bf16.mxu0 %v3313_v12  ;;  %2798 = vmatprep.subr.bf16.mxu1 %v3313_v12 }
  0xc5   : >> { %2776 = vmatpush1.bf16.msra.mxu0 %v2775_v56  ;;  %2800 = vmatpush1.bf16.msra.mxu1 %v3476_v28  ;;  %v3652_v49 = vpop.permute.xlu1 %323  ;;  %v3654_v50 = vpop.permute.xlu0 %318 }
  0xc6   : >> { %2777 = vmatprep.subr.bf16.mxu0 %v3313_v12  ;;  %2801 = vmatprep.subr.bf16.mxu1 %v3313_v12 }
  0xc9   : >> { %2779 = vmatpush1.bf16.msra.mxu0 %v2778_v59  ;;  %2803 = vmatpush1.bf16.msra.mxu1 %v2802_v15  ;;  %v3144_v51 = vpop.permute.xlu1 %3143  ;;  %v3149_v52 = vpop.permute.xlu0 %3148 }
  0xca   : >> { %2804 = vmatprep.subr.bf16.mxu1 %v3313_v12  ;;  %2808 = vmatprep.subr.bf16.mxu0 %v3537_v18  ;;  %v3146_v36 = vunpack.i.h.bf16 %v3144_v51  ;;  %v3145_v37 = vunpack.i.l.bf16 %v3144_v51  ;;  %v3151_v48 = vunpack.i.h.bf16 %v3149_v52 }
  0xcc   : >> { %414 = vmatmul.mubr.f32.vlgmr.msra.gmra.mrb[0].mxu0 %v3399_v0  ;;  %v2835_v51 = vpack.c.bf16 %v3146_v36, %v3145_v37 }
  0xcd   : >> { %2806 = vmatpush1.bf16.msra.mxu1 %v2805_v24  ;;  %2331 = vmatprep.mubr.msk.f32.mxu0 %vm336_vm0, %v3410_v3  ;;  %v3656_v53 = vpop.permute.xlu1 %3153  ;;  %v3658_v55 = vpop.permute.xlu0 %3158 }
  0xce   : >> { %2820 = vmatprep.subr.bf16.mxu1 %v3553_v25  ;;  %2810 = vmatpush3.bf16.msra.mxu0 %v3537_v18 }
  0xcf   : >> { %2812 = vmatprep.subr.bf16.mxu0 %v3555_v26 }
  0xd0   : >> { %419 = vmatmul.mubr.f32.gmra.mrb[2].mxu0 %v3403_v2  ;;  %522 = vmatmul.mubr.f32.vlgmr.msra.gmra.mrb[0].mxu1 %v3399_v0 }
  0xd1   : >> { %2332 = vmatprep.mubr.msk.f32.mxu0 %vm336_vm0, %v3414_v5  ;;  %2339 = vmatprep.mubr.msk.f32.mxu1 %vm336_vm0, %v3410_v3  ;;  %v3663_v14 = vpop.permute.xlu1 %3163  ;;  %v3665_v16 = vpop.permute.xlu0 %328 }
  0xd2   : >> { %2822 = vmatpush3.bf16.msra.mxu1 %v3553_v25  ;;  %2814 = vmatpush3.bf16.msra.mxu0 %v3555_v26  ;;  %v3166_v37 = vunpack.i.h.bf16 %v3663_v14 }
  0xd3   : >> { %2824 = vmatprep.subr.bf16.mxu1 %v3569_v32  ;;  %2816 = vmatprep.subr.bf16.mxu0 %v3601_v38 }
  0xd4   : >> { %424 = vmatmul.mubr.f32.gmra.mrb[4].mxu0 %v3412_v4  ;;  %527 = vmatmul.mubr.f32.gmra.mrb[2].mxu1 %v3403_v2 }
  0xd5   : >> { %2333 = vmatprep.mubr.msk.f32.mxu0 %vm336_vm0, %v3418_v7  ;;  %2340 = vmatprep.mubr.msk.f32.mxu1 %vm336_vm0, %v3414_v5 }
  0xd6   : >> { %2826 = vmatpush3.bf16.msra.mxu1 %v3569_v32  ;;  %2818 = vmatpush3.bf16.msra.mxu0 %v3601_v38 }
  0xd7   : >> { %2828 = vmatprep.subr.bf16.mxu1 %v3606_v40  ;;  %2605 = vmatprep.subr.mxu0 %v3615_v41 }
  0xd8   : >> { %429 = vmatmul.mubr.f32.gmra.mrb[6].mxu0 %v3416_v6  ;;  %532 = vmatmul.mubr.f32.gmra.mrb[4].mxu1 %v3412_v4 }
  0xd9   : >> { %2341 = vmatprep.mubr.msk.f32.mxu1 %vm336_vm0, %v3418_v7 }
  0xda   : >> { %2830 = vmatpush3.bf16.msra.mxu1 %v3606_v40  ;;  %2606 = vmatpush3.msra.mxu0 %v3615_v41 }
  0xdb   : >> { %2625 = vmatprep.subr.mxu1 %v3620_v42  ;;  %2831 = vmatprep.subr.bf16.mxu0 %v3313_v12 }
  0xdc   : >> { %537 = vmatmul.mubr.f32.gmra.mrb[6].mxu1 %v3416_v6 }
  0xde   : >> { %2626 = vmatpush3.msra.mxu1 %v3620_v42 }
  0xdf   : >> { %2858 = vmatprep.subr.bf16.mxu1 %v3313_v12 }
 0x19f   : >> { %v415_v54 = vpop.f32.mrb[0].mxu0 }
 0x1a0   : >> { %v416_v56 = vadd.f32 %v415_v54, %v3654_v50  ;;  %v417_v57 = vpop.f32.mrb[1].mxu0  ;;  %v3150_v54 = vunpack.i.l.bf16 %v3149_v52 }
 0x1a2   : >> { %v434_v60 = vmax.f32 %v416_v56, 0.0 }
 0x1a3   : >> { %v523_v58 = vpop.f32.mrb[0].mxu1  ;;  %v420_v59 = vpop.f32.mrb[2].mxu0 }
 0x1a4   : >> { %v524_v61 = vadd.f32 %v523_v58, %v3654_v50  ;;  %v525_v62 = vpop.f32.mrb[1].mxu1  ;;  %v421_v63 = vadd.f32 %v420_v59, %v3652_v49  ;;  %v422_v13 = vpop.f32.mrb[3].mxu0 }
 0x1a5   : >> { %v2844_v13 = vpack.c.bf16 %v3151_v48, %v3150_v54 }
 0x1a6   : >> { %v542_v15 = vmax.f32 %v524_v61, 0.0  ;;  %v435_v21 = vmax.f32 %v421_v63, 0.0 }
 0x1a7   : >> { %v425_v17 = vpop.f32.mrb[4].mxu0  ;;  %v528_v19 = vpop.f32.mrb[2].mxu1 }
 0x1a8   : >> { %v546_v20 = vmax.f32 %v434_v60, %v542_v15  ;;  %v529_v22 = vadd.f32 %v528_v19, %v3652_v49  ;;  %v530_v24 = vpop.f32.mrb[3].mxu1  ;;  %v427_v27 = vpop.f32.mrb[5].mxu0  ;;  %v426_v29 = vadd.f32 %v425_v17, %v3665_v16 }
 0x1a9   : >> { %v3672_v60 = vpop.permute.xlu1 %333 }
 0x1aa   : >> { %v543_v35 = vmax.f32 %v529_v22, 0.0  ;;  %2607 = vmatprep.mubr.msk.f32.mxu0 %vm557_vm1, %v546_v20  ;;  %2627 = vmatprep.mubr.msk.f32.mxu1 %vm557_vm1, %v546_v20  ;;  %v436_v61 = vmax.f32 %v426_v29, 0.0  ;;  %v3156_v20 = vunpack.i.h.bf16 %v3656_v53  ;;  %v3161_v22 = vunpack.i.h.bf16 %v3658_v55 }
 0x1ab   : >> { %v430_v39 = vpop.f32.mrb[6].mxu0  ;;  %v533_v46 = vpop.f32.mrb[4].mxu1 }
 0x1ac   : >> { %v547_v56 = vmax.f32 %v435_v21, %v543_v35  ;;  %v534_v57 = vadd.f32 %v533_v46, %v3665_v16  ;;  %v535_v58 = vpop.f32.mrb[5].mxu1  ;;  %v432_v59 = vpop.f32.mrb[7].mxu0  ;;  %v431_v62 = vadd.f32 %v430_v39, %v3672_v60  ;;  %v3155_v21 = vunpack.i.l.bf16 %v3656_v53 }
 0x1ad   : >> { %v3694_v53 = vpack.c.bf16 %v3490_v31, %v3487_v30  ;;  %v3165_v39 = vunpack.i.l.bf16 %v3663_v14  ;;  %v3174_v14 = vpop.permute.xlu1 %3173 }
 0x1ae   : >> { %v544_v63 = vmax.f32 %v534_v57, 0.0  ;;  %2608 = vmatmul.mubr.msk.f32.vlgmr.msra.gmra.mrb[8].mxu0 %vm557_vm1, %v547_v56  ;;  %2628 = vmatmul.mubr.msk.f32.vlgmr.msra.gmra.mrb[8].mxu1 %vm557_vm1, %v547_v56  ;;  %v437_v24 = vmax.f32 %v431_v62, 0.0  ;;  %v2838_v35 = vpack.c.bf16 %v3156_v20, %v3155_v21  ;;  %v3175_v54 = vunpack.i.l.bf16 %v3174_v14 }
 0x1af   : >> { %2833 = vmatpush1.bf16.msra.mxu0 %v3464_v23  ;;  %2860 = vmatpush1.bf16.msra.mxu1 %v3476_v28  ;;  %v538_v52 = vpop.f32.mrb[6].mxu1  ;;  %v3160_v23 = vunpack.i.l.bf16 %v3658_v55  ;;  %v3169_v55 = vpop.permute.xlu0 %3168  ;;  %v2853_v46 = vpack.c.bf16 %v3166_v37, %v3165_v39  ;;  %v3712_v56 = vpack.c.bf16 %v3502_v34, %v3499_v33  ;;  %v3761_v33 = vld [vmem:[%s3451_s30 + $0x80] sm:$0xff]  ;;  %v3764_v34 = vld [vmem:[%s3451_s30 + $0x88] sm:$0xff] }
 0x1b0   : >> { %v548_v15 = vmax.f32 %v436_v61, %v544_v63  ;;  %v539_v17 = vadd.f32 %v538_v52, %v3672_v60  ;;  %2834 = vmatprep.subr.bf16.mxu0 %v3313_v12  ;;  %2861 = vmatprep.subr.bf16.mxu1 %v3313_v12  ;;  %v540_v19 = vpop.f32.mrb[7].mxu1  ;;  %v3171_v30 = vunpack.i.h.bf16 %v3169_v55  ;;  %v3170_v31 = vunpack.i.l.bf16 %v3169_v55  ;;  %v3767_v63 = vld [vmem:[%s3451_s30 + $0x90] sm:$0xff]  ;;  %v3772_v52 = vld [vmem:[%s3451_s30 + $0x98] sm:$0xff] }
 0x1b1   : >> { %v2847_v36 = vpack.c.bf16 %v3161_v22, %v3160_v23  ;;  %v3184_v55 = vpop.permute.xlu1 %3183 }
 0x1b2   : >> { %v545_v27 = vmax.f32 %v539_v17, 0.0  ;;  %2610 = vmatprep.mubr.msk.f32.mxu0 %vm557_vm1, %v548_v15  ;;  %2630 = vmatprep.mubr.msk.f32.mxu1 %vm557_vm1, %v548_v15  ;;  %v2856_v48 = vpack.c.bf16 %v3171_v30, %v3170_v31 }
 0x1b3   : >> { %2836 = vmatpush1.bf16.msra.mxu0 %v2835_v51  ;;  %2863 = vmatpush1.bf16.msra.mxu1 %v2844_v13  ;;  %v3179_v57 = vpop.permute.xlu0 %3178  ;;  %v3242_v51 = vpack.i.bf16 %v3764_v34, %v3761_v33 }
 0x1b4   : >> { %v549_v29 = vmax.f32 %v437_v24, %v545_v27  ;;  %2837 = vmatprep.subr.bf16.mxu0 %v3313_v12  ;;  %2864 = vmatprep.subr.bf16.mxu1 %v3313_v12  ;;  %v3181_v59 = vunpack.i.h.bf16 %v3179_v57  ;;  %v3180_v61 = vunpack.i.l.bf16 %v3179_v57 }
 0x1b5   : >> { %3243 = vrot.lane.b32.xlu1 %v3242_v51, %s3314_s6  ;;  %3248 = vrot.lane.b32.xlu0 %v3242_v51, %s3315_s7 }
 0x1b6   : >> { %2611 = vmatmul.mubr.msk.f32.gmra.mrb[10].mxu0 %vm557_vm1, %v549_v29  ;;  %2631 = vmatmul.mubr.msk.f32.gmra.mrb[10].mxu1 %vm557_vm1, %v549_v29  ;;  %v2883_v62 = vpack.c.bf16 %v3181_v59, %v3180_v61 }
 0x1b7   : >> { %2839 = vmatpush1.bf16.msra.mxu0 %v2838_v35  ;;  %2866 = vmatpush1.bf16.msra.mxu1 %v2847_v36  ;;  %v3189_v37 = vpop.permute.xlu0 %3188 }
 0x1b8   : >> { %2840 = vmatprep.subr.bf16.mxu0 %v3313_v12  ;;  %2867 = vmatprep.subr.bf16.mxu1 %v3313_v12 }
 0x1b9   : >> { %2365 = vmatprep.mubr.msk.f32.mxu0 %vm336_vm0, %v3401_v1  ;;  %2374 = vmatprep.mubr.msk.f32.mxu1 %vm336_vm0, %v3401_v1 }
 0x1bb   : >> { %2842 = vmatpush1.bf16.msra.mxu0 %v3476_v28  ;;  %2869 = vmatpush1.bf16.msra.mxu1 %v3694_v53  ;;  %v3176_v28 = vunpack.i.h.bf16 %v3174_v14 }
 0x1bc   : >> { %2843 = vmatprep.subr.bf16.mxu0 %v3313_v12  ;;  %2870 = vmatprep.subr.bf16.mxu1 %v3313_v12 }
 0x1bd   : >> { %v2880_v58 = vpack.c.bf16 %v3176_v28, %v3175_v54 }
 0x1bf   : >> { %2845 = vmatpush1.bf16.msra.mxu0 %v2844_v13  ;;  %2872 = vmatpush1.bf16.msra.mxu1 %v2853_v46  ;;  %v3252_v13 = vpack.i.bf16 %v3772_v52, %v3767_v63 }
 0x1c0   : >> { %2846 = vmatprep.subr.bf16.mxu0 %v3313_v12  ;;  %2873 = vmatprep.subr.bf16.mxu1 %v3313_v12 }
 0x1c1   : >> { %3253 = vrot.lane.b32.xlu1 %v3252_v13, %s3314_s6  ;;  %3258 = vrot.lane.b32.xlu0 %v3252_v13, %s3315_s7 }
 0x1c3   : >> { %2848 = vmatpush1.bf16.msra.mxu0 %v2847_v36  ;;  %2875 = vmatpush1.bf16.msra.mxu1 %v2856_v48 }
 0x1c4   : >> { %2849 = vmatprep.subr.bf16.mxu0 %v3313_v12  ;;  %2876 = vmatprep.subr.bf16.mxu1 %v3313_v12 }
 0x1c7   : >> { %2851 = vmatpush1.bf16.msra.mxu0 %v3694_v53  ;;  %2878 = vmatpush1.bf16.msra.mxu1 %v3712_v56 }
 0x1c8   : >> { %2852 = vmatprep.subr.bf16.mxu0 %v3313_v12  ;;  %2879 = vmatprep.subr.bf16.mxu1 %v3313_v12 }
 0x1cb   : >> { %2854 = vmatpush1.bf16.msra.mxu0 %v2853_v46  ;;  %2881 = vmatpush1.bf16.msra.mxu1 %v2880_v58 }
 0x1cc   : >> { %2855 = vmatprep.subr.bf16.mxu0 %v3313_v12  ;;  %2882 = vmatprep.subr.bf16.mxu1 %v3313_v12 }
 0x1cf   : >> { %2857 = vmatpush1.bf16.msra.mxu0 %v2856_v48  ;;  %2884 = vmatpush1.bf16.msra.mxu1 %v2883_v62 }
 0x1d0   : >> { %2886 = vmatprep.subr.bf16.mxu0 %v3537_v18  ;;  %2898 = vmatprep.subr.bf16.mxu1 %v3553_v25 }
 0x1d2   : >> { %881 = vmatmul.mubr.f32.vlgmr.msra.gmra.mrb[12].mxu0 %v3399_v0  ;;  %989 = vmatmul.mubr.f32.vlgmr.msra.gmra.mrb[12].mxu1 %v3399_v0 }
 0x1d3   : >> { %2366 = vmatprep.mubr.msk.f32.mxu0 %vm336_vm0, %v3410_v3  ;;  %2375 = vmatprep.mubr.msk.f32.mxu1 %vm336_vm0, %v3410_v3 }
 0x1d4   : >> { %2888 = vmatpush3.bf16.msra.mxu0 %v3537_v18  ;;  %2900 = vmatpush3.bf16.msra.mxu1 %v3553_v25 }
 0x1d5   : >> { %2890 = vmatprep.subr.bf16.mxu0 %v3555_v26  ;;  %2902 = vmatprep.subr.bf16.mxu1 %v3569_v32 }
 0x1d6   : >> { %886 = vmatmul.mubr.f32.gmra.mrb[14].mxu0 %v3403_v2  ;;  %994 = vmatmul.mubr.f32.gmra.mrb[14].mxu1 %v3403_v2 }
 0x1d7   : >> { %2367 = vmatprep.mubr.msk.f32.mxu0 %vm336_vm0, %v3414_v5  ;;  %2376 = vmatprep.mubr.msk.f32.mxu1 %vm336_vm0, %v3414_v5 }
 0x1d8   : >> { %2892 = vmatpush3.bf16.msra.mxu0 %v3555_v26  ;;  %2904 = vmatpush3.bf16.msra.mxu1 %v3569_v32 }
 0x1d9   : >> { %2894 = vmatprep.subr.bf16.mxu0 %v3601_v38  ;;  %2906 = vmatprep.subr.bf16.mxu1 %v3606_v40 }
 0x1da   : >> { %891 = vmatmul.mubr.f32.gmra.mrb[16].mxu0 %v3412_v4  ;;  %999 = vmatmul.mubr.f32.gmra.mrb[16].mxu1 %v3412_v4 }
 0x1db   : >> { %2368 = vmatprep.mubr.msk.f32.mxu0 %vm336_vm0, %v3418_v7  ;;  %2377 = vmatprep.mubr.msk.f32.mxu1 %vm336_vm0, %v3418_v7 }
 0x1dc   : >> { %2896 = vmatpush3.bf16.msra.mxu0 %v3601_v38  ;;  %2908 = vmatpush3.bf16.msra.mxu1 %v3606_v40 }
 0x1dd   : >> { %2645 = vmatprep.subr.mxu0 %v3615_v41  ;;  %2665 = vmatprep.subr.mxu1 %v3620_v42 }
 0x1de   : >> { %896 = vmatmul.mubr.f32.gmra.mrb[18].mxu0 %v3416_v6  ;;  %1004 = vmatmul.mubr.f32.gmra.mrb[18].mxu1 %v3416_v6 }
 0x1e0   : >> { %2646 = vmatpush3.msra.mxu0 %v3615_v41  ;;  %2666 = vmatpush3.msra.mxu1 %v3620_v42 }
 0x1e1   : >> { %2909 = vmatprep.subr.bf16.mxu0 %v3313_v12  ;;  %2936 = vmatprep.subr.bf16.mxu1 %v3313_v12 }
 0x281   : >> { %v2609_v15 = vpop.f32.mrb[8].mxu0  ;;  %v2629_v17 = vpop.f32.mrb[8].mxu1 }
 0x282   : >> { %v748_v19 = vmax.f32 %v2609_v15, %v2629_v17  ;;  %v636_v20 = vpop.f32.mrb[9].mxu0  ;;  %v728_v21 = vpop.f32.mrb[9].mxu1  ;;  %v3186_v15 = vunpack.i.h.bf16 %v3184_v55  ;;  %v3185_v17 = vunpack.i.l.bf16 %v3184_v55 }
 0x283   : >> { %v747_v22 = vmax.f32 %v636_v20, %v728_v21  ;;  %v3191_v21 = vunpack.i.h.bf16 %v3189_v37 }
 0x284   : >> { %755 = vst.msk [vmem:[%s3783_s22 + $0x8] sm:$0xff] %vm753_vm2, %v748_v19 }
 0x285   : >> { %754 = vst.msk [vmem:[%s3783_s22] sm:$0xff] %vm753_vm2, %v747_v22  ;;  %v3190_v22 = vunpack.i.l.bf16 %v3189_v37 }
 0x289   : >> { %v2612_v23 = vpop.f32.mrb[10].mxu0  ;;  %v2632_v24 = vpop.f32.mrb[10].mxu1 }
 0x28a   : >> { %v750_v27 = vmax.f32 %v2612_v23, %v2632_v24  ;;  %v646_v29 = vpop.f32.mrb[11].mxu0  ;;  %v738_v35 = vpop.f32.mrb[11].mxu1 }
 0x28b   : >> { %v749_v36 = vmax.f32 %v646_v29, %v738_v35  ;;  %v3194_v23 = vpop.permute.xlu1 %3193  ;;  %v3199_v24 = vpop.permute.xlu0 %3198 }
 0x28c   : >> { %757 = vst.msk [vmem:[%s3783_s22 + $0x18] sm:$0xff] %vm753_vm2, %v750_v27 }
 0x28d   : >> { %756 = vst.msk [vmem:[%s3783_s22 + $0x10] sm:$0xff] %vm753_vm2, %v749_v36 }
 0x2a5   : >> { %v882_v39 = vpop.f32.mrb[12].mxu0  ;;  %v990_v30 = vpop.f32.mrb[12].mxu1 }
 0x2a6   : >> { %v883_v31 = vadd.f32 %v882_v39, %v3654_v50  ;;  %v991_v46 = vadd.f32 %v990_v30, %v3654_v50  ;;  %v884_v48 = vpop.f32.mrb[13].mxu0  ;;  %v992_v14 = vpop.f32.mrb[13].mxu1 }
 0x2a7   : >> { %v2913_v48 = vpack.c.bf16 %v3186_v15, %v3185_v17  ;;  %v2922_v14 = vpack.c.bf16 %v3191_v21, %v3190_v22  ;;  %v3204_v22 = vpop.permute.xlu1 %3203 }
 0x2a8   : >> { %v901_v28 = vmax.f32 %v883_v31, 0.0  ;;  %v1009_v54 = vmax.f32 %v991_v46, 0.0 }
 0x2a9   : >> { %v887_v57 = vpop.f32.mrb[14].mxu0  ;;  %v995_v58 = vpop.f32.mrb[14].mxu1 }
 0x2aa   : >> { %v1013_v59 = vmax.f32 %v901_v28, %v1009_v54  ;;  %v888_v61 = vadd.f32 %v887_v57, %v3652_v49  ;;  %v996_v62 = vadd.f32 %v995_v58, %v3652_v49  ;;  %v889_v51 = vpop.f32.mrb[15].mxu0  ;;  %v997_v13 = vpop.f32.mrb[15].mxu1  ;;  %v3196_v54 = vunpack.i.h.bf16 %v3194_v23 }
 0x2ab   : >> { %v3195_v57 = vunpack.i.l.bf16 %v3194_v23  ;;  %v3201_v58 = vunpack.i.h.bf16 %v3199_v24  ;;  %v3206_v23 = vunpack.i.h.bf16 %v3204_v22 }
 0x2ac   : >> { %v902_v19 = vmax.f32 %v888_v61, 0.0  ;;  %v1010_v20 = vmax.f32 %v996_v62, 0.0  ;;  %2647 = vmatprep.mubr.msk.f32.mxu0 %vm557_vm1, %v1013_v59  ;;  %2667 = vmatprep.mubr.msk.f32.mxu1 %vm557_vm1, %v1013_v59  ;;  %v3200_v59 = vunpack.i.l.bf16 %v3199_v24  ;;  %v3205_v24 = vunpack.i.l.bf16 %v3204_v22 }
 0x2ad   : >> { %v892_v27 = vpop.f32.mrb[16].mxu0  ;;  %v1000_v29 = vpop.f32.mrb[16].mxu1 }
 0x2ae   : >> { %v1014_v35 = vmax.f32 %v902_v19, %v1010_v20  ;;  %v893_v36 = vadd.f32 %v892_v27, %v3665_v16  ;;  %v1001_v39 = vadd.f32 %v1000_v29, %v3665_v16  ;;  %v894_v30 = vpop.f32.mrb[17].mxu0  ;;  %v1002_v31 = vpop.f32.mrb[17].mxu1  ;;  %v2916_v19 = vpack.c.bf16 %v3196_v54, %v3195_v57 }
 0x2af   : >> { %v2925_v20 = vpack.c.bf16 %v3201_v58, %v3200_v59  ;;  %v3817_v27 = vpack.c.bf16 %v3632_v44, %v3629_v43  ;;  %v3209_v29 = vpop.permute.xlu0 %3208  ;;  %v3214_v44 = vpop.permute.xlu1 %3213  ;;  %v3833_v31 = vpack.c.bf16 %v3640_v47, %v3635_v45 }
 0x2b0   : >> { %v903_v55 = vmax.f32 %v893_v36, 0.0  ;;  %v1011_v46 = vmax.f32 %v1001_v39, 0.0  ;;  %2648 = vmatmul.mubr.msk.f32.vlgmr.msra.gmra.mrb[20].mxu0 %vm557_vm1, %v1014_v35  ;;  %2668 = vmatmul.mubr.msk.f32.vlgmr.msra.gmra.mrb[20].mxu1 %vm557_vm1, %v1014_v35  ;;  %v2931_v35 = vpack.c.bf16 %v3206_v23, %v3205_v24  ;;  %v3211_v36 = vunpack.i.h.bf16 %v3209_v29 }
 0x2b1   : >> { %2911 = vmatpush1.bf16.msra.mxu0 %v3694_v53  ;;  %2938 = vmatpush1.bf16.msra.mxu1 %v3712_v56  ;;  %v897_v37 = vpop.f32.mrb[18].mxu0  ;;  %v1005_v28 = vpop.f32.mrb[18].mxu1  ;;  %v3210_v39 = vunpack.i.l.bf16 %v3209_v29  ;;  %v3216_v30 = vunpack.i.h.bf16 %v3214_v44 }
 0x2b2   : >> { %v1015_v61 = vmax.f32 %v903_v55, %v1011_v46  ;;  %v898_v62 = vadd.f32 %v897_v37, %v3672_v60  ;;  %v1006_v51 = vadd.f32 %v1005_v28, %v3672_v60  ;;  %2912 = vmatprep.subr.bf16.mxu0 %v3313_v12  ;;  %2939 = vmatprep.subr.bf16.mxu1 %v3313_v12  ;;  %v899_v13 = vpop.f32.mrb[19].mxu0  ;;  %v1007_v15 = vpop.f32.mrb[19].mxu1 }
 0x2b3   : >> { %v2934_v43 = vpack.c.bf16 %v3211_v36, %v3210_v39  ;;  %v3219_v55 = vpop.permute.xlu0 %3218  ;;  %v3224_v57 = vpop.permute.xlu1 %3223 }
 0x2b4   : >> { %v904_v53 = vmax.f32 %v898_v62, 0.0  ;;  %v1012_v17 = vmax.f32 %v1006_v51, 0.0  ;;  %2650 = vmatprep.mubr.msk.f32.mxu0 %vm557_vm1, %v1015_v61  ;;  %2670 = vmatprep.mubr.msk.f32.mxu1 %vm557_vm1, %v1015_v61  ;;  %v3225_v36 = vunpack.i.l.bf16 %v3224_v57 }
 0x2b5   : >> { %2914 = vmatpush1.bf16.msra.mxu0 %v2913_v48  ;;  %2941 = vmatpush1.bf16.msra.mxu1 %v2922_v14  ;;  %v3221_v48 = vunpack.i.h.bf16 %v3219_v55 }
 0x2b6   : >> { %v1016_v21 = vmax.f32 %v904_v53, %v1012_v17  ;;  %2915 = vmatprep.subr.bf16.mxu0 %v3313_v12  ;;  %2942 = vmatprep.subr.bf16.mxu1 %v3313_v12 }
 0x2b7   : >> { %v3229_v58 = vpop.permute.xlu0 %3228 }
 0x2b8   : >> { %2651 = vmatmul.mubr.msk.f32.gmra.mrb[22].mxu0 %vm557_vm1, %v1016_v21  ;;  %2671 = vmatmul.mubr.msk.f32.gmra.mrb[22].mxu1 %vm557_vm1, %v1016_v21 }
 0x2b9   : >> { %2917 = vmatpush1.bf16.msra.mxu0 %v2916_v19  ;;  %2944 = vmatpush1.bf16.msra.mxu1 %v2925_v20 }
 0x2ba   : >> { %2918 = vmatprep.subr.bf16.mxu0 %v3313_v12  ;;  %2945 = vmatprep.subr.bf16.mxu1 %v3313_v12 }
 0x2bb   : >> { %2406 = vmatprep.mubr.msk.f32.mxu0 %vm336_vm0, %v3401_v1  ;;  %2415 = vmatprep.mubr.msk.f32.mxu1 %vm336_vm0, %v3401_v1 }
 0x2bd   : >> { %2920 = vmatpush1.bf16.msra.mxu0 %v3712_v56  ;;  %2947 = vmatpush1.bf16.msra.mxu1 %v3817_v27  ;;  %v3215_v56 = vunpack.i.l.bf16 %v3214_v44  ;;  %v3231_v44 = vunpack.i.h.bf16 %v3229_v58 }
 0x2be   : >> { %2921 = vmatprep.subr.bf16.mxu0 %v3313_v12  ;;  %2948 = vmatprep.subr.bf16.mxu1 %v3313_v12 }
 0x2bf   : >> { %v2958_v46 = vpack.c.bf16 %v3216_v30, %v3215_v56  ;;  %v3230_v30 = vunpack.i.l.bf16 %v3229_v58  ;;  %v3234_v56 = vpop.permute.xlu1 %3233 }
 0x2c1   : >> { %2923 = vmatpush1.bf16.msra.mxu0 %v2922_v14  ;;  %2950 = vmatpush1.bf16.msra.mxu1 %v2931_v35  ;;  %v3220_v14 = vunpack.i.l.bf16 %v3219_v55  ;;  %v3239_v55 = vpop.permute.xlu0 %3238 }
 0x2c2   : >> { %2924 = vmatprep.subr.bf16.mxu0 %v3313_v12  ;;  %2951 = vmatprep.subr.bf16.mxu1 %v3313_v12 }
 0x2c3   : >> { %v2961_v37 = vpack.c.bf16 %v3221_v48, %v3220_v14 }
 0x2c5   : >> { %2926 = vmatpush1.bf16.msra.mxu0 %v2925_v20  ;;  %2953 = vmatpush1.bf16.msra.mxu1 %v2934_v43 }
 0x2c6   : >> { %2927 = vmatprep.subr.bf16.mxu0 %v3313_v12  ;;  %2954 = vmatprep.subr.bf16.mxu1 %v3313_v12 }
 0x2c9   : >> { %2929 = vmatpush1.bf16.msra.mxu0 %v3817_v27  ;;  %2956 = vmatpush1.bf16.msra.mxu1 %v3833_v31 }
 0x2ca   : >> { %2930 = vmatprep.subr.bf16.mxu0 %v3313_v12  ;;  %2957 = vmatprep.subr.bf16.mxu1 %v3313_v12 }
 0x2cd   : >> { %2932 = vmatpush1.bf16.msra.mxu0 %v2931_v35  ;;  %2959 = vmatpush1.bf16.msra.mxu1 %v2958_v46  ;;  %v3226_v35 = vunpack.i.h.bf16 %v3224_v57  ;;  %v3240_v57 = vunpack.i.l.bf16 %v3239_v55 }
 0x2ce   : >> { %2933 = vmatprep.subr.bf16.mxu0 %v3313_v12  ;;  %2960 = vmatprep.subr.bf16.mxu1 %v3313_v12 }
 0x2d1   : >> { %2935 = vmatpush1.bf16.msra.mxu0 %v2934_v43  ;;  %2962 = vmatpush1.bf16.msra.mxu1 %v2961_v37 }
 0x2d2   : >> { %2964 = vmatprep.subr.bf16.mxu0 %v3537_v18  ;;  %2976 = vmatprep.subr.bf16.mxu1 %v3553_v25 }
 0x2d4   : >> { %1346 = vmatmul.mubr.f32.vlgmr.msra.gmra.mrb[24].mxu0 %v3399_v0  ;;  %1454 = vmatmul.mubr.f32.vlgmr.msra.gmra.mrb[24].mxu1 %v3399_v0 }
 0x2d5   : >> { %2407 = vmatprep.mubr.msk.f32.mxu0 %vm336_vm0, %v3410_v3  ;;  %2416 = vmatprep.mubr.msk.f32.mxu1 %vm336_vm0, %v3410_v3 }
 0x2d6   : >> { %2966 = vmatpush3.bf16.msra.mxu0 %v3537_v18  ;;  %2978 = vmatpush3.bf16.msra.mxu1 %v3553_v25 }
 0x2d7   : >> { %2968 = vmatprep.subr.bf16.mxu0 %v3555_v26  ;;  %2980 = vmatprep.subr.bf16.mxu1 %v3569_v32 }
 0x2d8   : >> { %1351 = vmatmul.mubr.f32.gmra.mrb[26].mxu0 %v3403_v2  ;;  %1459 = vmatmul.mubr.f32.gmra.mrb[26].mxu1 %v3403_v2 }
 0x2d9   : >> { %2408 = vmatprep.mubr.msk.f32.mxu0 %vm336_vm0, %v3414_v5  ;;  %2417 = vmatprep.mubr.msk.f32.mxu1 %vm336_vm0, %v3414_v5 }
 0x2da   : >> { %2970 = vmatpush3.bf16.msra.mxu0 %v3555_v26  ;;  %2982 = vmatpush3.bf16.msra.mxu1 %v3569_v32 }
 0x2db   : >> { %2972 = vmatprep.subr.bf16.mxu0 %v3601_v38  ;;  %2984 = vmatprep.subr.bf16.mxu1 %v3606_v40 }
 0x2dc   : >> { %1356 = vmatmul.mubr.f32.gmra.mrb[28].mxu0 %v3412_v4  ;;  %1464 = vmatmul.mubr.f32.gmra.mrb[28].mxu1 %v3412_v4 }
 0x2dd   : >> { %2409 = vmatprep.mubr.msk.f32.mxu0 %vm336_vm0, %v3418_v7  ;;  %2418 = vmatprep.mubr.msk.f32.mxu1 %vm336_vm0, %v3418_v7 }
 0x2de   : >> { %2974 = vmatpush3.bf16.msra.mxu0 %v3601_v38  ;;  %2986 = vmatpush3.bf16.msra.mxu1 %v3606_v40 }
 0x2df   : >> { %2685 = vmatprep.subr.mxu0 %v3615_v41  ;;  %2705 = vmatprep.subr.mxu1 %v3620_v42 }
 0x2e0   : >> { %1361 = vmatmul.mubr.f32.gmra.mrb[30].mxu0 %v3416_v6  ;;  %1469 = vmatmul.mubr.f32.gmra.mrb[30].mxu1 %v3416_v6 }
 0x2e2   : >> { %2686 = vmatpush3.msra.mxu0 %v3615_v41  ;;  %2706 = vmatpush3.msra.mxu1 %v3620_v42 }
 0x2e3   : >> { %2987 = vmatprep.subr.bf16.mxu0 %v3313_v12  ;;  %3014 = vmatprep.subr.bf16.mxu1 %v3313_v12 }
 0x383   : >> { %v2649_v18 = vpop.f32.mrb[20].mxu0  ;;  %v2669_v25 = vpop.f32.mrb[20].mxu1 }
 0x384   : >> { %v1214_v26 = vmax.f32 %v2649_v18, %v2669_v25  ;;  %v1102_v32 = vpop.f32.mrb[21].mxu0  ;;  %v1194_v38 = vpop.f32.mrb[21].mxu1 }
 0x385   : >> { %v1213_v40 = vmax.f32 %v1102_v32, %v1194_v38 }
 0x386   : >> { %2389 = vst.msk [vmem:[%s3783_s22 + $0x28] sm:$0xff] %vm753_vm2, %v1214_v26 }
 0x387   : >> { %2388 = vst.msk [vmem:[%s3783_s22 + $0x20] sm:$0xff] %vm753_vm2, %v1213_v40  ;;  %v2991_v40 = vpack.c.bf16 %v3226_v35, %v3225_v36 }
 0x38b   : >> { %v2652_v45 = vpop.f32.mrb[22].mxu0  ;;  %v2672_v41 = vpop.f32.mrb[22].mxu1 }
 0x38c   : >> { %v1216_v47 = vmax.f32 %v2652_v45, %v2672_v41  ;;  %v1112_v42 = vpop.f32.mrb[23].mxu0  ;;  %v1204_v28 = vpop.f32.mrb[23].mxu1  ;;  %v3000_v45 = vpack.c.bf16 %v3231_v44, %v3230_v30 }
 0x38d   : >> { %v1215_v54 = vmax.f32 %v1112_v42, %v1204_v28  ;;  %v3236_v42 = vunpack.i.h.bf16 %v3234_v56  ;;  %v3235_v28 = vunpack.i.l.bf16 %v3234_v56 }
 0x38e   : >> { %2391 = vst.msk [vmem:[%s3783_s22 + $0x38] sm:$0xff] %vm753_vm2, %v1216_v47 }
 0x38f   : >> { %2390 = vst.msk [vmem:[%s3783_s22 + $0x30] sm:$0xff] %vm753_vm2, %v1215_v54  ;;  %v3241_v54 = vunpack.i.h.bf16 %v3239_v55 }
 0x3a7   : >> { %v1347_v59 = vpop.f32.mrb[24].mxu0  ;;  %v1455_v61 = vpop.f32.mrb[24].mxu1 }
 0x3a8   : >> { %v1348_v62 = vadd.f32 %v1347_v59, %v3654_v50  ;;  %v1456_v51 = vadd.f32 %v1455_v61, %v3654_v50  ;;  %v1349_v13 = vpop.f32.mrb[25].mxu0  ;;  %v1457_v15 = vpop.f32.mrb[25].mxu1 }
 0x3a9   : >> { %v2994_v15 = vpack.c.bf16 %v3236_v42, %v3235_v28  ;;  %v2056_v42 = vld [vmem:[%s4036_s4 + $0x28] sm:$0xff] }
 0x3aa   : >> { %v1366_v53 = vmax.f32 %v1348_v62, 0.0  ;;  %v1474_v17 = vmax.f32 %v1456_v51, 0.0 }
 0x3ab   : >> { %v1352_v19 = vpop.f32.mrb[26].mxu0  ;;  %v1460_v20 = vpop.f32.mrb[26].mxu1 }
 0x3ac   : >> { %v1478_v21 = vmax.f32 %v1366_v53, %v1474_v17  ;;  %v1353_v22 = vadd.f32 %v1352_v19, %v3652_v49  ;;  %v1461_v23 = vadd.f32 %v1460_v20, %v3652_v49  ;;  %v1354_v24 = vpop.f32.mrb[27].mxu0  ;;  %v1462_v29 = vpop.f32.mrb[27].mxu1  ;;  %v3003_v53 = vpack.c.bf16 %v3241_v54, %v3240_v57  ;;  %v1953_v54 = vld [vmem:[%s4035_s3 + $0x30] sm:$0xff] }
 0x3ad   : >> { %v3244_v19 = vpop.permute.xlu1 %3243  ;;  %v2057_v57 = vld [vmem:[%s4036_s4 + $0x30] sm:$0xff] }
 0x3ae   : >> { %v1367_v39 = vmax.f32 %v1353_v22, 0.0  ;;  %v1475_v43 = vmax.f32 %v1461_v23, 0.0  ;;  %2687 = vmatprep.mubr.msk.f32.mxu0 %vm557_vm1, %v1478_v21  ;;  %2707 = vmatprep.mubr.msk.f32.mxu1 %vm557_vm1, %v1478_v21  ;;  %v3246_v20 = vunpack.i.h.bf16 %v3244_v19  ;;  %v3245_v21 = vunpack.i.l.bf16 %v3244_v19  ;;  %v3249_v23 = vpop.permute.xlu0 %3248 }
 0x3af   : >> { %v1357_v46 = vpop.f32.mrb[28].mxu0  ;;  %v1465_v48 = vpop.f32.mrb[28].mxu1  ;;  %v3006_v22 = vpack.c.bf16 %v3764_v34, %v3761_v33  ;;  %v3251_v29 = vunpack.i.h.bf16 %v3249_v23  ;;  %v3250_v35 = vunpack.i.l.bf16 %v3249_v23 }
 0x3b0   : >> { %v1479_v14 = vmax.f32 %v1367_v39, %v1475_v43  ;;  %v1358_v37 = vadd.f32 %v1357_v46, %v3665_v16  ;;  %v1466_v18 = vadd.f32 %v1465_v48, %v3665_v16  ;;  %v1359_v25 = vpop.f32.mrb[29].mxu0  ;;  %v1467_v26 = vpop.f32.mrb[29].mxu1  ;;  %v3009_v24 = vpack.c.bf16 %v3246_v20, %v3245_v21  ;;  %v2052_v48 = vld [vmem:[%s4036_s4 + $0x8] sm:$0xff] }
 0x3b1   : >> { %v3012_v33 = vpack.c.bf16 %v3251_v29, %v3250_v35  ;;  %v3254_v34 = vpop.permute.xlu1 %3253  ;;  %v2053_v25 = vld [vmem:[%s4036_s4 + $0x10] sm:$0xff] }
 0x3b2   : >> { %v1368_v32 = vmax.f32 %v1358_v37, 0.0  ;;  %v1476_v38 = vmax.f32 %v1466_v18, 0.0  ;;  %2688 = vmatmul.mubr.msk.f32.vlgmr.msra.gmra.mrb[32].mxu0 %vm557_vm1, %v1479_v14  ;;  %2708 = vmatmul.mubr.msk.f32.vlgmr.msra.gmra.mrb[32].mxu1 %vm557_vm1, %v1479_v14  ;;  %v3256_v36 = vunpack.i.h.bf16 %v3254_v34  ;;  %v3255_v39 = vunpack.i.l.bf16 %v3254_v34  ;;  %v3259_v43 = vpop.permute.xlu0 %3258  ;;  %v1949_v37 = vld [vmem:[%s4035_s3 + $0x10] sm:$0xff]  ;;  %v1950_v18 = vld [vmem:[%s4035_s3 + $0x18] sm:$0xff] }
 0x3b3   : >> { %2989 = vmatpush1.bf16.msra.mxu0 %v3817_v27  ;;  %3016 = vmatpush1.bf16.msra.mxu1 %v3833_v31  ;;  %v1362_v41 = vpop.f32.mrb[30].mxu0  ;;  %v1470_v47 = vpop.f32.mrb[30].mxu1  ;;  %v3261_v30 = vunpack.i.h.bf16 %v3259_v43  ;;  %v3260_v56 = vunpack.i.l.bf16 %v3259_v43  ;;  %v3045_v26 = vpack.c.bf16 %v1950_v18, %v1949_v37 }
 0x3b4   : >> { %v1480_v58 = vmax.f32 %v1368_v32, %v1476_v38  ;;  %v1363_v59 = vadd.f32 %v1362_v41, %v3672_v60  ;;  %v1471_v61 = vadd.f32 %v1470_v47, %v3672_v60  ;;  %2990 = vmatprep.subr.bf16.mxu0 %v3313_v12  ;;  %3017 = vmatprep.subr.bf16.mxu1 %v3313_v12  ;;  %v1364_v62 = vpop.f32.mrb[31].mxu0  ;;  %v1472_v51 = vpop.f32.mrb[31].mxu1  ;;  %v2054_v32 = vld [vmem:[%s4036_s4 + $0x18] sm:$0xff]  ;;  %v2055_v41 = vld [vmem:[%s4036_s4 + $0x20] sm:$0xff] }
 0x3b5   : >> { %v3036_v44 = vpack.c.bf16 %v3256_v36, %v3255_v39  ;;  %v3039_v55 = vpack.c.bf16 %v3261_v30, %v3260_v56  ;;  %v3057_v38 = vpack.c.bf16 %v2054_v32, %v2053_v25  ;;  %v3061_v28 = vpack.c.bf16 %v2056_v42, %v2055_v41 }
 0x3b6   : >> { %v1369_v27 = vmax.f32 %v1363_v59, 0.0  ;;  %v1477_v13 = vmax.f32 %v1471_v61, 0.0  ;;  %2690 = vmatprep.mubr.msk.f32.mxu0 %vm557_vm1, %v1480_v58  ;;  %2710 = vmatprep.mubr.msk.f32.mxu1 %vm557_vm1, %v1480_v58 }
 0x3b7   : >> { %2992 = vmatpush1.bf16.msra.mxu0 %v2991_v40  ;;  %3019 = vmatpush1.bf16.msra.mxu1 %v3000_v45  ;;  %v1951_v40 = vld [vmem:[%s4035_s3 + $0x20] sm:$0xff] }
 0x3b8   : >> { %v1481_v17 = vmax.f32 %v1369_v27, %v1477_v13  ;;  %2993 = vmatprep.subr.bf16.mxu0 %v3313_v12  ;;  %3020 = vmatprep.subr.bf16.mxu1 %v3313_v12 }
 0x3ba   : >> { %2691 = vmatmul.mubr.msk.f32.gmra.mrb[34].mxu0 %vm557_vm1, %v1481_v17  ;;  %2711 = vmatmul.mubr.msk.f32.gmra.mrb[34].mxu1 %vm557_vm1, %v1481_v17 }
 0x3bb   : >> { %2995 = vmatpush1.bf16.msra.mxu0 %v2994_v15  ;;  %3022 = vmatpush1.bf16.msra.mxu1 %v3003_v53 }
 0x3bc   : >> { %2996 = vmatprep.subr.bf16.mxu0 %v3313_v12  ;;  %3023 = vmatprep.subr.bf16.mxu1 %v3313_v12 }
 0x3bd   : >> { %2447 = vmatprep.mubr.msk.f32.mxu0 %vm336_vm0, %v3401_v1  ;;  %2456 = vmatprep.mubr.msk.f32.mxu1 %vm336_vm0, %v3401_v1 }
 0x3bf   : >> { %2998 = vmatpush1.bf16.msra.mxu0 %v3833_v31  ;;  %3025 = vmatpush1.bf16.msra.mxu1 %v3006_v22  ;;  %v3033_v31 = vpack.c.bf16 %v3772_v52, %v3767_v63  ;;  %v1948_v63 = vld [vmem:[%s4035_s3 + $0x8] sm:$0xff]  ;;  %v2051_v52 = vld [vmem:[%s4036_s4] sm:$0xff] }
 0x3c0   : >> { %2999 = vmatprep.subr.bf16.mxu0 %v3313_v12  ;;  %3026 = vmatprep.subr.bf16.mxu1 %v3313_v12  ;;  %v3053_v14 = vpack.c.bf16 %v2052_v48, %v2051_v52 }
 0x3c3   : >> { %3001 = vmatpush1.bf16.msra.mxu0 %v3000_v45  ;;  %3028 = vmatpush1.bf16.msra.mxu1 %v3009_v24  ;;  %v1952_v45 = vld [vmem:[%s4035_s3 + $0x28] sm:$0xff] }
 0x3c4   : >> { %3002 = vmatprep.subr.bf16.mxu0 %v3313_v12  ;;  %3029 = vmatprep.subr.bf16.mxu1 %v3313_v12  ;;  %v3049_v47 = vpack.c.bf16 %v1952_v45, %v1951_v40 }
 0x3c7   : >> { %3004 = vmatpush1.bf16.msra.mxu0 %v3003_v53  ;;  %3031 = vmatpush1.bf16.msra.mxu1 %v3012_v33 }
 0x3c8   : >> { %3005 = vmatprep.subr.bf16.mxu0 %v3313_v12  ;;  %3032 = vmatprep.subr.bf16.mxu1 %v3313_v12 }
 0x3cb   : >> { %3007 = vmatpush1.bf16.msra.mxu0 %v3006_v22  ;;  %3034 = vmatpush1.bf16.msra.mxu1 %v3033_v31 }
 0x3cc   : >> { %3008 = vmatprep.subr.bf16.mxu0 %v3313_v12  ;;  %3035 = vmatprep.subr.bf16.mxu1 %v3313_v12 }
 0x3cf   : >> { %3010 = vmatpush1.bf16.msra.mxu0 %v3009_v24  ;;  %3037 = vmatpush1.bf16.msra.mxu1 %v3036_v44 }
 0x3d0   : >> { %3011 = vmatprep.subr.bf16.mxu0 %v3313_v12  ;;  %3038 = vmatprep.subr.bf16.mxu1 %v3313_v12  ;;  %v1947_v12 = vld [vmem:[%s4035_s3] sm:$0xff] }
 0x3d1   : >> { %v3041_v46 = vpack.c.bf16 %v1948_v63, %v1947_v12 }
 0x3d3   : >> { %3013 = vmatpush1.bf16.msra.mxu0 %v3012_v33  ;;  %3040 = vmatpush1.bf16.msra.mxu1 %v3039_v55 }
 0x3d4   : >> { %3042 = vmatprep.subr.bf16.mxu0 %v3041_v46  ;;  %3054 = vmatprep.subr.bf16.mxu1 %v3053_v14 }
 0x3d6   : >> { %1811 = vmatmul.mubr.f32.vlgmr.msra.gmra.mrb[36].mxu0 %v3399_v0  ;;  %1919 = vmatmul.mubr.f32.vlgmr.msra.gmra.mrb[36].mxu1 %v3399_v0 }
 0x3d7   : >> { %2448 = vmatprep.mubr.msk.f32.mxu0 %vm336_vm0, %v3410_v3  ;;  %2457 = vmatprep.mubr.msk.f32.mxu1 %vm336_vm0, %v3410_v3 }
 0x3d8   : >> { %3044 = vmatpush3.bf16.msra.mxu0 %v3041_v46  ;;  %3056 = vmatpush3.bf16.msra.mxu1 %v3053_v14 }
 0x3d9   : >> { %3046 = vmatprep.subr.bf16.mxu0 %v3045_v26  ;;  %3058 = vmatprep.subr.bf16.mxu1 %v3057_v38 }
 0x3da   : >> { %1816 = vmatmul.mubr.f32.gmra.mrb[38].mxu0 %v3403_v2  ;;  %1924 = vmatmul.mubr.f32.gmra.mrb[38].mxu1 %v3403_v2 }
 0x3db   : >> { %2449 = vmatprep.mubr.msk.f32.mxu0 %vm336_vm0, %v3414_v5  ;;  %2458 = vmatprep.mubr.msk.f32.mxu1 %vm336_vm0, %v3414_v5 }
 0x3dc   : >> { %3048 = vmatpush3.bf16.msra.mxu0 %v3045_v26  ;;  %3060 = vmatpush3.bf16.msra.mxu1 %v3057_v38 }
 0x3dd   : >> { %3050 = vmatprep.subr.bf16.mxu0 %v3049_v47  ;;  %3062 = vmatprep.subr.bf16.mxu1 %v3061_v28 }
 0x3de   : >> { %1821 = vmatmul.mubr.f32.gmra.mrb[40].mxu0 %v3412_v4  ;;  %1929 = vmatmul.mubr.f32.gmra.mrb[40].mxu1 %v3412_v4 }
 0x3df   : >> { %2450 = vmatprep.mubr.msk.f32.mxu0 %vm336_vm0, %v3418_v7  ;;  %2459 = vmatprep.mubr.msk.f32.mxu1 %vm336_vm0, %v3418_v7 }
 0x3e0   : >> { %3052 = vmatpush3.bf16.msra.mxu0 %v3049_v47  ;;  %3064 = vmatpush3.bf16.msra.mxu1 %v3061_v28 }
 0x3e1   : >> { %2725 = vmatprep.subr.mxu0 %v1953_v54  ;;  %2745 = vmatprep.subr.mxu1 %v2057_v57 }
 0x3e2   : >> { %1826 = vmatmul.mubr.f32.gmra.mrb[42].mxu0 %v3416_v6  ;;  %1934 = vmatmul.mubr.f32.gmra.mrb[42].mxu1 %v3416_v6 }
 0x3e4   : >> { %2726 = vmatpush3.msra.mxu0 %v1953_v54  ;;  %2746 = vmatpush3.msra.mxu1 %v2057_v57 }
 0x485   : >> { %v2689_v58 = vpop.f32.mrb[32].mxu0  ;;  %v2709_v59 = vpop.f32.mrb[32].mxu1 }
 0x486   : >> { %v1679_v61 = vmax.f32 %v2689_v58, %v2709_v59  ;;  %v1567_v62 = vpop.f32.mrb[33].mxu0  ;;  %v1659_v51 = vpop.f32.mrb[33].mxu1 }
 0x487   : >> { %v1678_v27 = vmax.f32 %v1567_v62, %v1659_v51 }
 0x488   : >> { %2430 = vst.msk [vmem:[%s3783_s22 + $0x48] sm:$0xff] %vm753_vm2, %v1679_v61 }
 0x489   : >> { %2429 = vst.msk [vmem:[%s3783_s22 + $0x40] sm:$0xff] %vm753_vm2, %v1678_v27 }
 0x48d   : >> { %v2692_v13 = vpop.f32.mrb[34].mxu0  ;;  %v2712_v15 = vpop.f32.mrb[34].mxu1 }
 0x48e   : >> { %v1681_v53 = vmax.f32 %v2692_v13, %v2712_v15  ;;  %v1577_v17 = vpop.f32.mrb[35].mxu0  ;;  %v1669_v19 = vpop.f32.mrb[35].mxu1 }
 0x48f   : >> { %v1680_v20 = vmax.f32 %v1577_v17, %v1669_v19 }
 0x490   : >> { %2432 = vst.msk [vmem:[%s3783_s22 + $0x58] sm:$0xff] %vm753_vm2, %v1681_v53 }
 0x491   : >> { %2431 = vst.msk [vmem:[%s3783_s22 + $0x50] sm:$0xff] %vm753_vm2, %v1680_v20 }
 0x4a9   : >> { %v1812_v21 = vpop.f32.mrb[36].mxu0  ;;  %v1920_v22 = vpop.f32.mrb[36].mxu1 }
 0x4aa   : >> { %v1813_v23 = vadd.f32 %v1812_v21, %v3654_v50  ;;  %v1921_v24 = vadd.f32 %v1920_v22, %v3654_v50  ;;  %v1814_v29 = vpop.f32.mrb[37].mxu0  ;;  %v1922_v35 = vpop.f32.mrb[37].mxu1 }
 0x4ac   : >> { %v1831_v33 = vmax.f32 %v1813_v23, 0.0  ;;  %v1939_v34 = vmax.f32 %v1921_v24, 0.0 }
 0x4ad   : >> { %v1817_v36 = vpop.f32.mrb[38].mxu0  ;;  %v1925_v39 = vpop.f32.mrb[38].mxu1 }
 0x4ae   : >> { %v1943_v31 = vmax.f32 %v1831_v33, %v1939_v34  ;;  %v1818_v43 = vadd.f32 %v1817_v36, %v3652_v49  ;;  %v1926_v44 = vadd.f32 %v1925_v39, %v3652_v49  ;;  %v1819_v30 = vpop.f32.mrb[39].mxu0  ;;  %v1927_v56 = vpop.f32.mrb[39].mxu1 }
 0x4b0   : >> { %v1832_v55 = vmax.f32 %v1818_v43, 0.0  ;;  %v1940_v12 = vmax.f32 %v1926_v44, 0.0  ;;  %2727 = vmatprep.mubr.msk.f32.mxu0 %vm557_vm1, %v1943_v31  ;;  %2747 = vmatprep.mubr.msk.f32.mxu1 %vm557_vm1, %v1943_v31 }
 0x4b1   : >> { %v1822_v50 = vpop.f32.mrb[40].mxu0  ;;  %v1930_v63 = vpop.f32.mrb[40].mxu1 }
 0x4b2   : >> { %v1944_v52 = vmax.f32 %v1832_v55, %v1940_v12  ;;  %v1823_v46 = vadd.f32 %v1822_v50, %v3665_v16  ;;  %v1931_v48 = vadd.f32 %v1930_v63, %v3665_v16  ;;  %v1824_v14 = vpop.f32.mrb[41].mxu0  ;;  %v1932_v37 = vpop.f32.mrb[41].mxu1 }
 0x4b4   : >> { %v1833_v18 = vmax.f32 %v1823_v46, 0.0  ;;  %v1941_v25 = vmax.f32 %v1931_v48, 0.0  ;;  %2728 = vmatmul.mubr.msk.f32.vlgmr.msra.gmra.mrb[44].mxu0 %vm557_vm1, %v1944_v52  ;;  %2748 = vmatmul.mubr.msk.f32.vlgmr.msra.gmra.mrb[44].mxu1 %vm557_vm1, %v1944_v52 }
 0x4b5   : >> { %v1827_v49 = vpop.f32.mrb[42].mxu0  ;;  %v1935_v26 = vpop.f32.mrb[42].mxu1 }
 0x4b6   : >> { %v1945_v32 = vmax.f32 %v1833_v18, %v1941_v25  ;;  %v1828_v38 = vadd.f32 %v1827_v49, %v3672_v60  ;;  %v1936_v40 = vadd.f32 %v1935_v26, %v3672_v60  ;;  %v1829_v45 = vpop.f32.mrb[43].mxu0  ;;  %v1937_v41 = vpop.f32.mrb[43].mxu1 }
 0x4b8   : >> { %v1834_v16 = vmax.f32 %v1828_v38, 0.0  ;;  %v1942_v47 = vmax.f32 %v1936_v40, 0.0  ;;  %2730 = vmatprep.mubr.msk.f32.mxu0 %vm557_vm1, %v1945_v32  ;;  %2750 = vmatprep.mubr.msk.f32.mxu1 %vm557_vm1, %v1945_v32 }
 0x4ba   : >> { %v1946_v42 = vmax.f32 %v1834_v16, %v1942_v47 }
 0x4bc   : >> { %2731 = vmatmul.mubr.msk.f32.gmra.mrb[46].mxu0 %vm557_vm1, %v1946_v42  ;;  %2751 = vmatmul.mubr.msk.f32.gmra.mrb[46].mxu1 %vm557_vm1, %v1946_v42 }
 0x587   : >> { %v2729_v28 = vpop.f32.mrb[44].mxu0  ;;  %v2749_v54 = vpop.f32.mrb[44].mxu1 }
 0x588   : >> { %v2144_v60 = vmax.f32 %v2729_v28, %v2749_v54  ;;  %v2032_v57 = vpop.f32.mrb[45].mxu0  ;;  %v2124_v58 = vpop.f32.mrb[45].mxu1 }
 0x589   : >> { %v2143_v59 = vmax.f32 %v2032_v57, %v2124_v58 }
 0x58a   : >> { %2471 = vst.msk [vmem:[%s3783_s22 + $0x68] sm:$0xff] %vm753_vm2, %v2144_v60 }
 0x58b   : >> { %2470 = vst.msk [vmem:[%s3783_s22 + $0x60] sm:$0xff] %vm753_vm2, %v2143_v59 }
 0x58d   : > { %256 = sbr.rel (!%p254_p3) target bundleno = 49 (0x31), region = 102 }
 0x58f   : >> { %v2732_v61 = vpop.f32.mrb[46].mxu0  ;;  %v2752_v62 = vpop.f32.mrb[46].mxu1 }
 0x590   : >> { %v2146_v51 = vmax.f32 %v2732_v61, %v2752_v62  ;;  %v2042_v27 = vpop.f32.mrb[47].mxu0  ;;  %v2134_v13 = vpop.f32.mrb[47].mxu1 }
 0x591   : >> { %v2145_v15 = vmax.f32 %v2042_v27, %v2134_v13 }
 0x592   : >> { %2473 = vst.msk [vmem:[%s3783_s22 + $0x78] sm:$0xff] %vm753_vm2, %v2146_v51 }
 0x593   : >> { %2472 = vst.msk [vmem:[%s3783_s22 + $0x70] sm:$0xff] %vm753_vm2, %v2145_v15 }
 0x594 PF: > { %s16_s18 = sadd.s32 1, %s3304_s18  }
 0x595   : > { %p13_p5 = scmp.ge.s32.totalorder %s16_s18, 4  }
 0x597   :  { %15 = sbr.rel (!%p13_p5) target bundleno = 1 (0x1), region = 113 }
 0x59e   :  { %2174 = vsyncpa [#allocation3], 1 }
 0x59f   :  { %2176 = vsyncpa [#allocation3 + $0x1], 1 }

// kernel: simple_cnn_forward.5
= control target key start
LH: loop header
LB: loop body
LE: loop exit
PB: predicated region body
PF: predicated region fallthrough
CT: control target
= control target key end

     0   :  { %10 = vsyncpa [#allocation4], 0  ;;  %s5211_s0 = inlined_call_operand.vmem [shape: f32[2,25088], index: 0, kind: input, shape index: {}]   ;;  %s5212_s1 = inlined_call_operand.hbm [shape: f32[25088,256], index: 1, kind: input, shape index: {}]   ;;  %s5213_s2 = inlined_call_operand.hbm [shape: f32[1,256], index: 2, kind: input, shape index: {}]   ;;  %s5214_s3 = inlined_call_operand.vmem [shape: f32[256,36], index: 3, kind: input, shape index: {}]   ;;  %s5215_s4 = inlined_call_operand.hbm [shape: f32[1,36], index: 4, kind: input, shape index: {}]   ;;  %s5216_s5 = inlined_call_operand.hbm [shape: f32[2,36], index: 5, kind: output, shape index: {}]  }
   0x1   :  { %12 = vsyncpa [#allocation4 + $0x1], 0 }
   0x2   :  { %13 = vsyncpa [#allocation7], 0 }
   0x3   :  { %14 = vsyncpa [#allocation5], 0  ;;  %s3872_s18 = smov 0   ;;  %s3874_s19 = smov 0  }
   0x4   :  { %s3876_s20 = smov 0   ;;  %s3878_s21 = smov 0  }
   0x5 LB: > { %s3891_s22 = sadd.s32 4294967295, %s3832_s21   ;;  %s3894_s23 = sadd.s32 1, %s3832_s21   ;;  %s3832_s21 = sphi %s3878_s21, %s5235_s21   ;;  %s3828_s20 = sphi %s3876_s20, %s5234_s20   ;;  %s3824_s19 = sphi %s3874_s19, %s5233_s19   ;;  %s3820_s18 = sphi %s3872_s18, %s5232_s18  }
   0x6   : > { %s50_s24 = ssub.s32 %s3832_s21, %s3894_s23  ;;  %s53_s25 = sadd.s32 1, %s3828_s20 }
   0x7   : > { %p51_p0 = scmp.eq.s32.totalorder %s50_s24, 0  ;;  %p60_p1 = scmp.ne.s32.totalorder %s3828_s20, %s3824_s19 }
   0x8   : > { %p61_p2 = scmp.eq.s32.totalorder %s3832_s21, 0  ;;  %p66_p3 = scmp.ne.s32.totalorder %s3824_s19, %s3820_s18 }
   0x9   : > { %s3904_s26 = scalar_select %p51_p0, %s3828_s20, %s53_s25  }
   0xa   : > { %p3906_p4 = por %p61_p2, %p60_p1  ;;  %p5217_p5 = scmp.eq.s32.totalorder %s3891_s22, 0 }
   0xb   : > { %p2587_p6 = scmp.ge.s32.totalorder %s3832_s21, 1  ;;  %p161_p7 = scmp.lt.s32.totalorder %s3832_s21, 8 }
   0xc   : > { %p3915_p8 = por %p5217_p5, %p66_p3  ;;  %s3834_s30 = smov [#allocation6]  }
   0xd   : > { %p3920_p10 = pnand %p2587_p6, %p161_p7  ;;  %s174_s6 = sshll.u32 %s3834_s30, 4  ;;  %s175_s6 = int_to_ptr.vmem [resolvable:$true] %s174_s6 }
   0xe   : > { %s5222_s28 = scalar_select %p3915_p8, 1, 0 }
   0xf   : > { %s5223_s29 = scalar_select %p3920_p10, 1, 0 }
  0x10   : > { %p3612_p11 = pneg %p3920_p10  ;;  %p3625_p12 = scmp.lt.s32.totalorder %s3832_s21, 7 }
  0x11   : > { %s3835_s8 = smov [#allocation8]   ;;  %s208_s11 = sand.u32 1, %s3828_s20  }
  0x12   : > { %p3929_p13 = pnand %p3612_p11, %p5217_p5  ;;  %s188_s9 = sshll.u32 %s3835_s8, 4  ;;  %s3939_s9 = int_to_ptr.vmem [resolvable:$true] %s188_s9 }
  0x13   : > { %p3935_p0 = pnand %p3625_p12, %p3906_p4  ;;  %s3678_s14 = scalar_lea.hbm %s5213_s2, 32 }
  0x14   : > { %p3679_p1 = scmp.ne.s32.totalorder %s5213_s2, %s3678_s14  ;;  %p3680_p2 = pneg %p3929_p13 }
  0x15   : > { %s5225_s10 = scalar_select %p3935_p0, 1, 0 }
  0x16   : > { %p3681_p3 = pnand %p3680_p2, %p3679_p1  ;;  %p3685_p6 = scmp.lt.u32.totalorder %s3678_s14, %s5213_s2 }
  0x18   : > { %p3682_p4 = pneg %p3681_p3 }
  0x1a   : > { %p3687_p7 = pnand %p3685_p6, %p3682_p4 }
  0x1c   : > { %3690 = shalt.err (!%p3687_p7)
}
  0x1d   : > { %s3691_s24 = scalar_lea.vmem %s175_s6, 32  ;;  %p3699_p5 = scmp.lt.s32.totalorder %s175_s6, %s175_s6 }
  0x1e   : > { %p3692_p11 = scmp.ne.s32.totalorder %s175_s6, %s3691_s24  ;;  %p3700_p8 = scmp.lt.s32.totalorder %s3691_s24, %s3691_s24 }
  0x20   : > { %p3694_p12 = pnand %p3692_p11, %p3680_p2  ;;  %p3701_p10 = por %p3700_p8, %p3699_p5 }
  0x22   : > { %p3695_p9 = pneg %p3694_p12 }
  0x24   : > { %p3702_p0 = pnand %p3701_p10, %p3695_p9 }
  0x26   : > { %3705 = shalt.err (!%p3702_p0)
}
  0x27   : > { %3615 = dma.hbm_to_vmem [thread:$0]  (!%p3929_p13), %s5213_s2, 32, %s175_s6, [#allocation7]  }
  0x28   : > { %s3706_s12 = scalar_lea.hbm %s5215_s4, 16 }
  0x29   : > { %p3707_p1 = scmp.ne.s32.totalorder %s5215_s4, %s3706_s12  ;;  %p3713_p9 = scmp.lt.u32.totalorder %s3706_s12, %s5215_s4 }
  0x2b   : > { %p3709_p5 = pnand %p3707_p1, %p3680_p2 }
  0x2d   : > { %p3710_p8 = pneg %p3709_p5 }
  0x2f   : > { %p3715_p10 = pnand %p3713_p9, %p3710_p8 }
  0x31   : > { %3718 = shalt.err (!%p3715_p10)
}
  0x32   : > { %s3719_s6 = scalar_lea.vmem %s3939_s9, 16  ;;  %s3726_s17 = scalar_lea.vmem %s3939_s9, 32 }
  0x33   : > { %p3720_p0 = scmp.ne.s32.totalorder %s3939_s9, %s3719_s6  ;;  %p3727_p6 = scmp.lt.s32.totalorder %s3939_s9, %s3939_s9 }
  0x34   : > { %p3728_p7 = scmp.lt.s32.totalorder %s3726_s17, %s3719_s6 }
  0x35   : > { %p3722_p3 = pnand %p3720_p0, %p3680_p2 }
  0x36   : > { %p3729_p11 = por %p3728_p7, %p3727_p6 }
  0x37   : > { %p3723_p4 = pneg %p3722_p3 }
  0x39   : > { %p3730_p12 = pnand %p3729_p11, %p3723_p4 }
  0x3b   : > { %3733 = shalt.err (!%p3730_p12)
}
  0x3c   : > { %3618 = dma.hbm_to_vmem [thread:$0]  (!%p3929_p13), %s5215_s4, 16, %s3939_s9, [#allocation7]  }
  0x3d   : > { %s3596_s25 = smul.u32 7168, %s208_s11  ;;  %s4002_s14 = scalar_lea.sflag [#allocation4], %s208_s11 }
  0x3e   : > { %s2606_s27 = smul.u32 114688, %s3832_s21  ;;  %p5226_p2 = scmp.ne.s32.totalorder %s5225_s10, 0 }
  0x3f   : > { %s212_s7 = scalar_lea.vmem [#allocation3], %s3596_s25  ;;  %s3739_s16 = scalar_lea.hbm %s5212_s1, 802816 }
  0x40   : > { %s3996_s12 = scalar_lea.hbm %s5212_s1, %s2606_s27  ;;  %s220_s13 = sshll.u32 %s212_s7, 4  ;;  %s3998_s13 = int_to_ptr.vmem [resolvable:$true] %s220_s13 }
  0x41   : > { %s3734_s9 = scalar_lea.hbm %s3996_s12, 114688  ;;  %p3736_p1 = pneg %p5226_p2 }
  0x42   : > { %p3735_p13 = scmp.ne.s32.totalorder %s3996_s12, %s3734_s9  ;;  %p3740_p9 = scmp.lt.u32.totalorder %s3996_s12, %s5212_s1 }
  0x43   : > { %p3741_p10 = scmp.lt.u32.totalorder %s3739_s16, %s3734_s9  ;;  %p3743_p3 = scmp.lt.u32.totalorder %s3734_s9, %s3996_s12 }
  0x44   : > { %p3737_p5 = pnand %p3736_p1, %p3735_p13 }
  0x45   : > { %p3742_p0 = por %p3741_p10, %p3740_p9 }
  0x46   : > { %p3738_p8 = pneg %p3737_p5 }
  0x47   : > { %p3744_p4 = por %p3743_p3, %p3742_p0 }
  0x49   : > { %p3745_p6 = pnand %p3744_p4, %p3738_p8 }
  0x4b   : > { %3748 = shalt.err (!%p3745_p6)
}
  0x4c   : > { %s3749_s11 = scalar_lea.vmem %s3998_s13, 114688  ;;  %s3836_s18 = smov [#allocation3]  }
  0x4d   : > { %p3750_p7 = scmp.ne.s32.totalorder %s3998_s13, %s3749_s11  ;;  %s3754_s24 = sshll.u32 %s3836_s18, 4  ;;  %s3755_s24 = int_to_ptr.vmem [resolvable:$false] %s3754_s24 }
  0x4e   : > { %s3756_s25 = scalar_lea.vmem %s3755_s24, 229376  ;;  %p3757_p13 = scmp.lt.s32.totalorder %s3998_s13, %s3755_s24 }
  0x4f   : > { %p3752_p11 = pnand %p3750_p7, %p3736_p1  ;;  %p3758_p5 = scmp.lt.s32.totalorder %s3756_s25, %s3749_s11 }
  0x51   : > { %p3753_p12 = pneg %p3752_p11  ;;  %p3759_p9 = por %p3758_p5, %p3757_p13 }
  0x53   : > { %p3760_p10 = pnand %p3759_p9, %p3753_p12 }
  0x55   : > { %3763 = shalt.err (!%p3760_p10)
}
  0x56   : > { %s3837_s27 = smov 256   ;;  %s3838_s30 = smov 16  }
  0x57   : > { %3622 = dma.hbm_to_vmem [thread:$0]  (!%p5226_p2), %s3996_s12, 114688, %s3998_s13, %s4002_s14, %s3837_s27, %s3837_s27, %s3838_s30  }
  0x58   : > { %p5227_p1 = scmp.ne.s32.totalorder %s5223_s29, 0 }
  0x59   : > { %s234_s8 = sand.u32 (!%p5227_p1), 1, %s3824_s19   ;;  %p5228_p8 = scmp.ne.s32.totalorder (!%p5227_p1), %s5222_s28, 0 }
  0x5a   : > { %232 = sbr.rel (%p5227_p1) target bundleno = 1043 (0x413), region = 40  ;;  %s235_s9 = scalar_lea.sflag (!%p5227_p1), [#allocation4], %s234_s8 }
  0x5b   : > { %s3597_s7 = smul.u32 (!%p5227_p1), 7168, %s234_s8 }
  0x5d   : > { %s4033_s21 = scalar_lea.vmem (!%p5227_p1), [#allocation3], %s3597_s7 }
  0x61   : > { %3807 = dma.done.wait (%p5228_p8), %s235_s9, 114688  }
  0x62   : > { %3809 = vsyncadd (%p5228_p8), %s235_s9, 4294852608  ;;  %p5229_p0 = scmp.eq.s32.totalorder %s3891_s22, 0 }
  0x64   : > { %3811 = dma.done.wait (%p5229_p0), [#allocation7], 48   ;;  %p5230_p2 = pmov %p5229_p0 }
  0x65   : > { %s273_s29 = smul.u32 28, %s3891_s22  ;;  %p5231_p4 = scmp.ne.s32.totalorder %s3891_s22, 0 }
  0x66   : > { %3813 = vsyncadd (%p5230_p2), [#allocation7], 4294967248  ;;  %v3839_v0 = vmov (!%p5231_p4), 0.0  }
  0x67   : > { %p274_p3 = scmp.lt.s32.totalorder %s273_s29, 195  ;;  %283 = sbr.rel (%p5231_p4) target bundleno = 110 (0x6e), region = 56  ;;  %284 = vst [vmem:[#allocation2] sm:$0xf] (!%p5231_p4), %v3839_v0 }
  0x69   : > { %s5237_s29 = smov (!%p274_p3, %s273_s29), 195 }
  0x6a   : > { %s2596_s10 = sshll.u32 %s5237_s29, 1 }
  0x6b   : > { %s4047_s14 = scalar_lea.vmem %s5211_s0, %s2596_s10 }
  0x6e PF: > { %v294_v1 = vld [vmem:[%s4033_s21 + $0x8] sm:$0xff]  ;;  %v296_v2 = vld [vmem:[%s4033_s21 + $0x18] sm:$0xff]  ;;  %v293_v6 = vld [vmem:[%s4033_s21] sm:$0xff]  ;;  %p2598_p6 = scmp.ne.s32.totalorder %s3891_s22, 6 }
  0x6f   : > { %v742_v3 = vld [vmem:[%s4033_s21 + $0xe08] sm:$0xff]  ;;  %v2642_v4 = vpack.c.bf16 %v296_v2, %v294_v1  ;;  %v744_v5 = vld [vmem:[%s4033_s21 + $0xe18] sm:$0xff]  ;;  %v295_v7 = vld [vmem:[%s4033_s21 + $0x10] sm:$0xff]  ;;  %vm2496_vm0 = vcmask (!%p2598_p6), 287744  }
  0x70   : > { %v3090_v8 = vpack.c.bf16 %v744_v5, %v742_v3  ;;  %v2644_v9 = vpack.c.bf16 %v295_v7, %v293_v6  ;;  %v741_v10 = vld [vmem:[%s4033_s21 + $0xe00] sm:$0xff]  ;;  %v743_v11 = vld [vmem:[%s4033_s21 + $0xe10] sm:$0xff]  ;;  %v298_v12 = vld [vmem:[%s4033_s21 + $0x28] sm:$0xff] }
  0x71   : > { %2643 = vmatprep.subr.bf16.mxu1 %v2642_v4  ;;  %v3092_v13 = vpack.c.bf16 %v743_v11, %v741_v10  ;;  %v300_v14 = vld [vmem:[%s4033_s21 + $0x38] sm:$0xff]  ;;  %v746_v15 = vld [vmem:[%s4033_s21 + $0xe28] sm:$0xff]  ;;  %v297_v19 = vld [vmem:[%s4033_s21 + $0x20] sm:$0xff] }
  0x72   : > { %v748_v16 = vld [vmem:[%s4033_s21 + $0xe38] sm:$0xff]  ;;  %3091 = vmatprep.subr.bf16.mxu0 %v3090_v8  ;;  %2645 = vmatpush1.bf16.msra.mxu1 %v2644_v9  ;;  %v2646_v17 = vpack.c.bf16 %v300_v14, %v298_v12  ;;  %v299_v20 = vld [vmem:[%s4033_s21 + $0x30] sm:$0xff]  ;;  %v745_v21 = vld [vmem:[%s4033_s21 + $0xe20] sm:$0xff] }
  0x73   : > { %v3094_v18 = vpack.c.bf16 %v748_v16, %v746_v15  ;;  %3093 = vmatpush1.bf16.msra.mxu0 %v3092_v13  ;;  %v2648_v22 = vpack.c.bf16 %v299_v20, %v297_v19  ;;  %v747_v23 = vld [vmem:[%s4033_s21 + $0xe30] sm:$0xff]  ;;  %v302_v24 = vld [vmem:[%s4033_s21 + $0x48] sm:$0xff]  ;;  %v304_v25 = vld [vmem:[%s4033_s21 + $0x58] sm:$0xff] }
  0x74   : > { %2647 = vmatprep.subr.bf16.mxu1 %v2646_v17  ;;  %v3096_v26 = vpack.c.bf16 %v747_v23, %v745_v21  ;;  %v2650_v27 = vpack.c.bf16 %v304_v25, %v302_v24  ;;  %v750_v28 = vld [vmem:[%s4033_s21 + $0xe48] sm:$0xff]  ;;  %v752_v29 = vld [vmem:[%s4033_s21 + $0xe58] sm:$0xff]  ;;  %v301_v30 = vld [vmem:[%s4033_s21 + $0x40] sm:$0xff] }
  0x75   : > { %3095 = vmatprep.subr.bf16.mxu0 %v3094_v18  ;;  %v3098_v31 = vpack.c.bf16 %v752_v29, %v750_v28  ;;  %v303_v32 = vld [vmem:[%s4033_s21 + $0x50] sm:$0xff]  ;;  %v749_v33 = vld [vmem:[%s4033_s21 + $0xe40] sm:$0xff]  ;;  %v306_v36 = vld [vmem:[%s4033_s21 + $0x68] sm:$0xff] }
  0x76   : > { %v751_v34 = vld [vmem:[%s4033_s21 + $0xe50] sm:$0xff]  ;;  %2649 = vmatpush1.bf16.msra.mxu1 %v2648_v22  ;;  %v2652_v35 = vpack.c.bf16 %v303_v32, %v301_v30  ;;  %v308_v37 = vld [vmem:[%s4033_s21 + $0x78] sm:$0xff]  ;;  %v754_v38 = vld [vmem:[%s4033_s21 + $0xe68] sm:$0xff] }
  0x77   : > { %3097 = vmatpush1.bf16.msra.mxu0 %v3096_v26  ;;  %2651 = vmatprep.subr.bf16.mxu1 %v2650_v27  ;;  %v3100_v39 = vpack.c.bf16 %v751_v34, %v749_v33  ;;  %v2654_v40 = vpack.c.bf16 %v308_v37, %v306_v36  ;;  %v756_v41 = vld [vmem:[%s4033_s21 + $0xe78] sm:$0xff]  ;;  %v305_v42 = vld [vmem:[%s4033_s21 + $0x60] sm:$0xff]  ;;  %v307_v43 = vld [vmem:[%s4033_s21 + $0x70] sm:$0xff] }
  0x78   : > { %3099 = vmatprep.subr.bf16.mxu0 %v3098_v31  ;;  %v3102_v44 = vpack.c.bf16 %v756_v41, %v754_v38  ;;  %v753_v45 = vld [vmem:[%s4033_s21 + $0xe60] sm:$0xff]  ;;  %v755_v46 = vld [vmem:[%s4033_s21 + $0xe70] sm:$0xff]  ;;  %v310_v47 = vld [vmem:[%s4033_s21 + $0x88] sm:$0xff]  ;;  %v2656_v51 = vpack.c.bf16 %v307_v43, %v305_v42 }
  0x79   : > { %v312_v48 = vld [vmem:[%s4033_s21 + $0x98] sm:$0xff]  ;;  %v758_v49 = vld [vmem:[%s4033_s21 + $0xe88] sm:$0xff]  ;;  %v3104_v52 = vpack.c.bf16 %v755_v46, %v753_v45  ;;  %v309_v54 = vld [vmem:[%s4033_s21 + $0x80] sm:$0xff] }
  0x7a   : > { %v760_v50 = vld [vmem:[%s4033_s21 + $0xe98] sm:$0xff]  ;;  %2653 = vmatpush1.bf16.msra.mxu1 %v2652_v35  ;;  %v2658_v53 = vpack.c.bf16 %v312_v48, %v310_v47  ;;  %v311_v55 = vld [vmem:[%s4033_s21 + $0x90] sm:$0xff]  ;;  %v757_v56 = vld [vmem:[%s4033_s21 + $0xe80] sm:$0xff]  ;;  %v3840_v47 = vmov 1983009808  }
  0x7b   : > { %3101 = vmatpush1.bf16.msra.mxu0 %v3100_v39  ;;  %2655 = vmatprep.subr.bf16.mxu1 %v2654_v40  ;;  %v3106_v57 = vpack.c.bf16 %v760_v50, %v758_v49  ;;  %v759_v58 = vld [vmem:[%s4033_s21 + $0xe90] sm:$0xff]  ;;  %v314_v59 = vld [vmem:[%s4033_s21 + $0xa8] sm:$0xff]  ;;  %v316_v60 = vld [vmem:[%s4033_s21 + $0xb8] sm:$0xff]  ;;  %v2660_v63 = vpack.c.bf16 %v311_v55, %v309_v54  ;;  %v1198_v48 = vunpack.c.l.s4 %v3840_v47  ;;  %v1200_v49 = vlaneseq }
  0x7c   : > { %3103 = vmatprep.subr.bf16.mxu0 %v3102_v44  ;;  %v762_v61 = vld [vmem:[%s4033_s21 + $0xea8] sm:$0xff]  ;;  %v764_v62 = vld [vmem:[%s4033_s21 + $0xeb8] sm:$0xff]  ;;  %v3108_v0 = vpack.c.bf16 %v759_v58, %v757_v56  ;;  %v2662_v1 = vpack.c.bf16 %v316_v60, %v314_v59  ;;  %v313_v2 = vld [vmem:[%s4033_s21 + $0xa0] sm:$0xff] }
  0x7d   : > { %v315_v3 = vld [vmem:[%s4033_s21 + $0xb0] sm:$0xff]  ;;  %v761_v4 = vld [vmem:[%s4033_s21 + $0xea0] sm:$0xff]  ;;  %v3110_v5 = vpack.c.bf16 %v764_v62, %v762_v61  ;;  %v318_v7 = vld [vmem:[%s4033_s21 + $0xc8] sm:$0xff]  ;;  %v1199_v62 = vunpack.c.0.s8 %v1198_v48 }
  0x7e   : > { %2657 = vmatpush1.bf16.msra.mxu1 %v2656_v51  ;;  %v763_v6 = vld [vmem:[%s4033_s21 + $0xeb0] sm:$0xff]  ;;  %v320_v8 = vld [vmem:[%s4033_s21 + $0xd8] sm:$0xff]  ;;  %v766_v9 = vld [vmem:[%s4033_s21 + $0xec8] sm:$0xff]  ;;  %v2664_v11 = vpack.c.bf16 %v315_v3, %v313_v2 }
  0x7f   : > { %3105 = vmatpush1.bf16.msra.mxu0 %v3104_v52  ;;  %2659 = vmatprep.subr.bf16.mxu1 %v2658_v53  ;;  %v768_v10 = vld [vmem:[%s4033_s21 + $0xed8] sm:$0xff]  ;;  %v3112_v12 = vpack.c.bf16 %v763_v6, %v761_v4  ;;  %v2666_v13 = vpack.c.bf16 %v320_v8, %v318_v7  ;;  %v317_v14 = vld [vmem:[%s4033_s21 + $0xc0] sm:$0xff]  ;;  %v319_v15 = vld [vmem:[%s4033_s21 + $0xd0] sm:$0xff] }
  0x80   : > { %3107 = vmatprep.subr.bf16.mxu0 %v3106_v57  ;;  %v765_v16 = vld [vmem:[%s4033_s21 + $0xec0] sm:$0xff]  ;;  %v3114_v17 = vpack.c.bf16 %v768_v10, %v766_v9  ;;  %v767_v18 = vld [vmem:[%s4033_s21 + $0xed0] sm:$0xff]  ;;  %v322_v19 = vld [vmem:[%s4033_s21 + $0xe8] sm:$0xff]  ;;  %v2668_v23 = vpack.c.bf16 %v319_v15, %v317_v14 }
  0x81   : > { %v324_v20 = vld [vmem:[%s4033_s21 + $0xf8] sm:$0xff]  ;;  %v770_v21 = vld [vmem:[%s4033_s21 + $0xee8] sm:$0xff]  ;;  %v3116_v24 = vpack.c.bf16 %v767_v18, %v765_v16  ;;  %v321_v26 = vld [vmem:[%s4033_s21 + $0xe0] sm:$0xff] }
  0x82   : > { %2661 = vmatpush1.bf16.msra.mxu1 %v2660_v63  ;;  %v772_v22 = vld [vmem:[%s4033_s21 + $0xef8] sm:$0xff]  ;;  %v2670_v25 = vpack.c.bf16 %v324_v20, %v322_v19  ;;  %v323_v27 = vld [vmem:[%s4033_s21 + $0xf0] sm:$0xff]  ;;  %v769_v28 = vld [vmem:[%s4033_s21 + $0xee0] sm:$0xff]  ;;  %v4135_v63 = vshrl.u32 %v1200_v49, 7 }
  0x83   : > { %3109 = vmatpush1.bf16.msra.mxu0 %v3108_v0  ;;  %2663 = vmatprep.subr.bf16.mxu1 %v2662_v1  ;;  %v3118_v29 = vpack.c.bf16 %v772_v22, %v770_v21  ;;  %v771_v30 = vld [vmem:[%s4033_s21 + $0xef0] sm:$0xff]  ;;  %v326_v31 = vld [vmem:[%s4033_s21 + $0x108] sm:$0xff]  ;;  %v328_v32 = vld [vmem:[%s4033_s21 + $0x118] sm:$0xff]  ;;  %v2672_v35 = vpack.c.bf16 %v323_v27, %v321_v26 }
  0x84   : > { %3111 = vmatprep.subr.bf16.mxu0 %v3110_v5  ;;  %v774_v33 = vld [vmem:[%s4033_s21 + $0xf08] sm:$0xff]  ;;  %v776_v34 = vld [vmem:[%s4033_s21 + $0xf18] sm:$0xff]  ;;  %v3120_v36 = vpack.c.bf16 %v771_v30, %v769_v28  ;;  %v2674_v37 = vpack.c.bf16 %v328_v32, %v326_v31  ;;  %v325_v38 = vld [vmem:[%s4033_s21 + $0x100] sm:$0xff] }
  0x85   : > { %v327_v39 = vld [vmem:[%s4033_s21 + $0x110] sm:$0xff]  ;;  %v773_v40 = vld [vmem:[%s4033_s21 + $0xf00] sm:$0xff]  ;;  %v3122_v41 = vpack.c.bf16 %v776_v34, %v774_v33  ;;  %v330_v43 = vld [vmem:[%s4033_s21 + $0x128] sm:$0xff] }
  0x86   : > { %2665 = vmatpush1.bf16.msra.mxu1 %v2664_v11  ;;  %v775_v42 = vld [vmem:[%s4033_s21 + $0xf10] sm:$0xff]  ;;  %v332_v44 = vld [vmem:[%s4033_s21 + $0x138] sm:$0xff]  ;;  %v778_v45 = vld [vmem:[%s4033_s21 + $0xf28] sm:$0xff]  ;;  %v2676_v50 = vpack.c.bf16 %v327_v39, %v325_v38 }
  0x87   : > { %3113 = vmatpush1.bf16.msra.mxu0 %v3112_v12  ;;  %2667 = vmatprep.subr.bf16.mxu1 %v2666_v13  ;;  %v780_v46 = vld [vmem:[%s4033_s21 + $0xf38] sm:$0xff]  ;;  %v3124_v51 = vpack.c.bf16 %v775_v42, %v773_v40  ;;  %v2678_v52 = vpack.c.bf16 %v332_v44, %v330_v43  ;;  %v329_v53 = vld [vmem:[%s4033_s21 + $0x120] sm:$0xff]  ;;  %v331_v54 = vld [vmem:[%s4033_s21 + $0x130] sm:$0xff]  ;;  %v4146_v12 = vsub.s32 %v1199_v62, %v4135_v63 }
  0x88   : > { %3115 = vmatprep.subr.bf16.mxu0 %v3114_v17  ;;  %v777_v55 = vld [vmem:[%s4033_s21 + $0xf20] sm:$0xff]  ;;  %v3126_v56 = vpack.c.bf16 %v780_v46, %v778_v45  ;;  %v779_v57 = vld [vmem:[%s4033_s21 + $0xf30] sm:$0xff]  ;;  %v334_v58 = vld [vmem:[%s4033_s21 + $0x148] sm:$0xff]  ;;  %v2680_v0 = vpack.c.bf16 %v331_v54, %v329_v53 }
  0x89   : > { %v336_v59 = vld [vmem:[%s4033_s21 + $0x158] sm:$0xff]  ;;  %v782_v60 = vld [vmem:[%s4033_s21 + $0xf48] sm:$0xff]  ;;  %v3128_v1 = vpack.c.bf16 %v779_v57, %v777_v55  ;;  %v333_v3 = vld [vmem:[%s4033_s21 + $0x140] sm:$0xff] }
  0x8a   : > { %2669 = vmatpush1.bf16.msra.mxu1 %v2668_v23  ;;  %v784_v61 = vld [vmem:[%s4033_s21 + $0xf58] sm:$0xff]  ;;  %v2682_v2 = vpack.c.bf16 %v336_v59, %v334_v58  ;;  %v335_v4 = vld [vmem:[%s4033_s21 + $0x150] sm:$0xff]  ;;  %v781_v5 = vld [vmem:[%s4033_s21 + $0xf40] sm:$0xff] }
  0x8b   : > { %3117 = vmatpush1.bf16.msra.mxu0 %v3116_v24  ;;  %2671 = vmatprep.subr.bf16.mxu1 %v2670_v25  ;;  %v3130_v6 = vpack.c.bf16 %v784_v61, %v782_v60  ;;  %v783_v7 = vld [vmem:[%s4033_s21 + $0xf50] sm:$0xff]  ;;  %v338_v8 = vld [vmem:[%s4033_s21 + $0x168] sm:$0xff]  ;;  %v340_v9 = vld [vmem:[%s4033_s21 + $0x178] sm:$0xff]  ;;  %v2684_v13 = vpack.c.bf16 %v335_v4, %v333_v3 }
  0x8c   : > { %3119 = vmatprep.subr.bf16.mxu0 %v3118_v29  ;;  %v786_v10 = vld [vmem:[%s4033_s21 + $0xf68] sm:$0xff]  ;;  %v788_v11 = vld [vmem:[%s4033_s21 + $0xf78] sm:$0xff]  ;;  %v337_v14 = vld [vmem:[%s4033_s21 + $0x160] sm:$0xff]  ;;  %v3132_v15 = vpack.c.bf16 %v783_v7, %v781_v5  ;;  %v2686_v16 = vpack.c.bf16 %v340_v9, %v338_v8 }
  0x8d   : > { %v339_v17 = vld [vmem:[%s4033_s21 + $0x170] sm:$0xff]  ;;  %v785_v18 = vld [vmem:[%s4033_s21 + $0xf60] sm:$0xff]  ;;  %v3134_v20 = vpack.c.bf16 %v788_v11, %v786_v10  ;;  %v342_v21 = vld [vmem:[%s4033_s21 + $0x188] sm:$0xff] }
  0x8e   : > { %2673 = vmatpush1.bf16.msra.mxu1 %v2672_v35  ;;  %v787_v19 = vld [vmem:[%s4033_s21 + $0xf70] sm:$0xff]  ;;  %v344_v22 = vld [vmem:[%s4033_s21 + $0x198] sm:$0xff]  ;;  %v790_v24 = vld [vmem:[%s4033_s21 + $0xf88] sm:$0xff]  ;;  %v2688_v28 = vpack.c.bf16 %v339_v17, %v337_v14 }
  0x8f   : > { %3121 = vmatpush1.bf16.msra.mxu0 %v3120_v36  ;;  %2675 = vmatprep.subr.bf16.mxu1 %v2674_v37  ;;  %v4155_v23 = vld [vmem:[%s4047_s14] sm:$0xff]  ;;  %v289_v27 = vld [vmem:[%s4047_s14 + $0x18] sm:$0xff]  ;;  %v3136_v30 = vpack.c.bf16 %v787_v19, %v785_v18  ;;  %v2690_v31 = vpack.c.bf16 %v344_v22, %v342_v21  ;;  %v346_v38 = vld [vmem:[%s4033_s21 + $0x1a8] sm:$0xff] }
  0x90   : > { %3123 = vmatprep.subr.bf16.mxu0 %v3122_v41  ;;  %v792_v25 = vld [vmem:[%s4033_s21 + $0xf98] sm:$0xff]  ;;  %v4161_v26 = vrot.slane %v4155_v23, %v4146_v12  ;;  %v1247_v29 = vcombine.high %v289_v27, %v289_v27  ;;  %v341_v32 = vld [vmem:[%s4033_s21 + $0x180] sm:$0xff]  ;;  %v343_v33 = vld [vmem:[%s4033_s21 + $0x190] sm:$0xff]  ;;  %v1196_v14 = vcombine.high %v4155_v23, %v4155_v23 }
  0x91   : > { %v789_v34 = vld [vmem:[%s4033_s21 + $0xf80] sm:$0xff]  ;;  %v3138_v36 = vpack.c.bf16 %v792_v25, %v790_v24  ;;  %v791_v37 = vld [vmem:[%s4033_s21 + $0xf90] sm:$0xff]  ;;  %v348_v39 = vld [vmem:[%s4033_s21 + $0x1b8] sm:$0xff]  ;;  %v2692_v43 = vpack.c.bf16 %v343_v33, %v341_v32 }
  0x92   : > { %2677 = vmatpush1.bf16.msra.mxu1 %v2676_v50  ;;  %v1211_v35 = vcombine.high %v4161_v26, %v4161_v26  ;;  %v4173_v40 = vrot.slane %v1247_v29, %v4146_v12  ;;  %v794_v41 = vld [vmem:[%s4033_s21 + $0xfa8] sm:$0xff]  ;;  %v796_v42 = vld [vmem:[%s4033_s21 + $0xfb8] sm:$0xff]  ;;  %v3140_v45 = vpack.c.bf16 %v791_v37, %v789_v34  ;;  %v2694_v46 = vpack.c.bf16 %v348_v39, %v346_v38  ;;  %v345_v47 = vld [vmem:[%s4033_s21 + $0x1a0] sm:$0xff] }
  0x93   : > { %3125 = vmatpush1.bf16.msra.mxu0 %v3124_v51  ;;  %2679 = vmatprep.subr.bf16.mxu1 %v2678_v52  ;;  %v347_v48 = vld [vmem:[%s4033_s21 + $0x1b0] sm:$0xff]  ;;  %v793_v49 = vld [vmem:[%s4033_s21 + $0xfa0] sm:$0xff]  ;;  %v3142_v50 = vpack.c.bf16 %v796_v42, %v794_v41  ;;  %v350_v52 = vld [vmem:[%s4033_s21 + $0x1c8] sm:$0xff] }
  0x94   : > { %3127 = vmatprep.subr.bf16.mxu0 %v3126_v56  ;;  %1407 = vmatprep.mubr.f32.mxu1 %v1211_v35  ;;  %v1263_v44 = vcombine.high %v4173_v40, %v4173_v40  ;;  %v795_v51 = vld [vmem:[%s4033_s21 + $0xfb0] sm:$0xff]  ;;  %v352_v53 = vld [vmem:[%s4033_s21 + $0x1d8] sm:$0xff]  ;;  %v798_v54 = vld [vmem:[%s4033_s21 + $0xfc8] sm:$0xff]  ;;  %v2696_v56 = vpack.c.bf16 %v347_v48, %v345_v47 }
  0x95   : > { %v800_v55 = vld [vmem:[%s4033_s21 + $0xfd8] sm:$0xff]  ;;  %v3144_v57 = vpack.c.bf16 %v795_v51, %v793_v49  ;;  %v2698_v58 = vpack.c.bf16 %v352_v53, %v350_v52  ;;  %v349_v59 = vld [vmem:[%s4033_s21 + $0x1c0] sm:$0xff]  ;;  %v351_v60 = vld [vmem:[%s4033_s21 + $0x1d0] sm:$0xff] }
  0x96   : > { %2681 = vmatpush1.bf16.msra.mxu1 %v2680_v0  ;;  %1904 = vmatprep.mubr.f32.mxu0 %v1263_v44  ;;  %v797_v61 = vld [vmem:[%s4033_s21 + $0xfc0] sm:$0xff]  ;;  %v3146_v62 = vpack.c.bf16 %v800_v55, %v798_v54  ;;  %v799_v0 = vld [vmem:[%s4033_s21 + $0xfd0] sm:$0xff]  ;;  %v802_v3 = vld [vmem:[%s4033_s21 + $0xfe8] sm:$0xff]  ;;  %v2700_v5 = vpack.c.bf16 %v351_v60, %v349_v59 }
  0x97   : > { %3129 = vmatpush1.bf16.msra.mxu0 %v3128_v1  ;;  %2683 = vmatprep.subr.bf16.mxu1 %v2682_v2  ;;  %v354_v1 = vld [vmem:[%s4033_s21 + $0x1e8] sm:$0xff]  ;;  %v356_v2 = vld [vmem:[%s4033_s21 + $0x1f8] sm:$0xff]  ;;  %v353_v8 = vld [vmem:[%s4033_s21 + $0x1e0] sm:$0xff] }
  0x98   : > { %3131 = vmatprep.subr.bf16.mxu0 %v3130_v6  ;;  %v804_v4 = vld [vmem:[%s4033_s21 + $0xff8] sm:$0xff]  ;;  %v3148_v6 = vpack.c.bf16 %v799_v0, %v797_v61  ;;  %v2702_v7 = vpack.c.bf16 %v356_v2, %v354_v1  ;;  %v355_v9 = vld [vmem:[%s4033_s21 + $0x1f0] sm:$0xff]  ;;  %v801_v10 = vld [vmem:[%s4033_s21 + $0xfe0] sm:$0xff] }
  0x99   : > { %v3150_v11 = vpack.c.bf16 %v804_v4, %v802_v3  ;;  %v806_v17 = vld [vmem:[%s4033_s21 + $0x1008] sm:$0xff]  ;;  %v808_v18 = vld [vmem:[%s4033_s21 + $0x1018] sm:$0xff]  ;;  %v2704_v19 = vpack.c.bf16 %v355_v9, %v353_v8  ;;  %v357_v22 = vld [vmem:[%s4033_s21 + $0x200] sm:$0xff] }
  0x9a   : > { %2685 = vmatpush1.bf16.msra.mxu1 %v2684_v13  ;;  %v803_v13 = vld [vmem:[%s4033_s21 + $0xff0] sm:$0xff]  ;;  %v805_v25 = vld [vmem:[%s4033_s21 + $0x1000] sm:$0xff]  ;;  %v3154_v23 = vpack.c.bf16 %v808_v18, %v806_v17  ;;  %v364_v29 = vld [vmem:[%s4033_s21 + $0x238] sm:$0xff] }
  0x9b   : > { %3133 = vmatpush1.bf16.msra.mxu0 %v3132_v15  ;;  %2687 = vmatprep.subr.bf16.mxu1 %v2686_v16  ;;  %v358_v15 = vld [vmem:[%s4033_s21 + $0x208] sm:$0xff]  ;;  %v360_v16 = vld [vmem:[%s4033_s21 + $0x218] sm:$0xff]  ;;  %v359_v24 = vld [vmem:[%s4033_s21 + $0x210] sm:$0xff] }
  0x9c   : > { %3135 = vmatprep.subr.bf16.mxu0 %v3134_v20  ;;  %v3152_v20 = vpack.c.bf16 %v803_v13, %v801_v10  ;;  %v2706_v21 = vpack.c.bf16 %v360_v16, %v358_v15  ;;  %v807_v27 = vld [vmem:[%s4033_s21 + $0x1010] sm:$0xff]  ;;  %v812_v32 = vld [vmem:[%s4033_s21 + $0x1038] sm:$0xff]  ;;  %v2708_v33 = vpack.c.bf16 %v359_v24, %v357_v22  ;;  %v809_v38 = vld [vmem:[%s4033_s21 + $0x1020] sm:$0xff] }
  0x9d   : > { %v3156_v34 = vpack.c.bf16 %v807_v27, %v805_v25  ;;  %v363_v37 = vld [vmem:[%s4033_s21 + $0x230] sm:$0xff]  ;;  %v366_v42 = vld [vmem:[%s4033_s21 + $0x248] sm:$0xff]  ;;  %v813_v52 = vld [vmem:[%s4033_s21 + $0x1040] sm:$0xff] }
  0x9e   : > { %2689 = vmatpush1.bf16.msra.mxu1 %v2688_v28  ;;  %v362_v28 = vld [vmem:[%s4033_s21 + $0x228] sm:$0xff]  ;;  %v811_v41 = vld [vmem:[%s4033_s21 + $0x1030] sm:$0xff]  ;;  %v372_v55 = vld [vmem:[%s4033_s21 + $0x278] sm:$0xff] }
  0x9f   : > { %3137 = vmatpush1.bf16.msra.mxu0 %v3136_v30  ;;  %2691 = vmatprep.subr.bf16.mxu1 %v2690_v31  ;;  %v4212_v30 = vrot.slane %v1196_v14, %v4146_v12  ;;  %v810_v31 = vld [vmem:[%s4033_s21 + $0x1028] sm:$0xff]  ;;  %v2710_v35 = vpack.c.bf16 %v364_v29, %v362_v28  ;;  %v3160_v48 = vpack.c.bf16 %v811_v41, %v809_v38  ;;  %v367_v51 = vld [vmem:[%s4033_s21 + $0x250] sm:$0xff]  ;;  %v369_v60 = vld [vmem:[%s4033_s21 + $0x260] sm:$0xff] }
  0xa0   : > { %3139 = vmatprep.subr.bf16.mxu0 %v3138_v36  ;;  %v361_v36 = vld [vmem:[%s4033_s21 + $0x220] sm:$0xff]  ;;  %v3158_v39 = vpack.c.bf16 %v812_v32, %v810_v31  ;;  %v815_v53 = vld [vmem:[%s4033_s21 + $0x1050] sm:$0xff]  ;;  %v370_v54 = vld [vmem:[%s4033_s21 + $0x268] sm:$0xff] }
  0xa1   : > { %v1212_v44 = vcombine.high %v4212_v30, %v4212_v30  ;;  %v2712_v47 = vpack.c.bf16 %v363_v37, %v361_v36  ;;  %v2718_v59 = vpack.c.bf16 %v372_v55, %v370_v54  ;;  %v371_v61 = vld [vmem:[%s4033_s21 + $0x270] sm:$0xff]  ;;  %v374_v2 = vld [vmem:[%s4033_s21 + $0x288] sm:$0xff]  ;;  %v376_v3 = vld [vmem:[%s4033_s21 + $0x298] sm:$0xff] }
  0xa2   : > { %2693 = vmatpush1.bf16.msra.mxu1 %v2692_v43  ;;  %v368_v43 = vld [vmem:[%s4033_s21 + $0x258] sm:$0xff]  ;;  %v819_v1 = vld [vmem:[%s4033_s21 + $0x1070] sm:$0xff]  ;;  %v822_v4 = vld [vmem:[%s4033_s21 + $0x1088] sm:$0xff]  ;;  %v2722_v8 = vpack.c.bf16 %v376_v3, %v374_v2 }
  0xa3   : > { %3141 = vmatpush1.bf16.msra.mxu0 %v3140_v45  ;;  %2695 = vmatprep.subr.bf16.mxu1 %v2694_v46  ;;  %v814_v45 = vld [vmem:[%s4033_s21 + $0x1048] sm:$0xff]  ;;  %v816_v46 = vld [vmem:[%s4033_s21 + $0x1058] sm:$0xff]  ;;  %v2714_v49 = vpack.c.bf16 %v368_v43, %v366_v42  ;;  %v373_v9 = vld [vmem:[%s4033_s21 + $0x280] sm:$0xff] }
  0xa4   : > { %3143 = vmatprep.subr.bf16.mxu0 %v3142_v50  ;;  %v365_v50 = vld [vmem:[%s4033_s21 + $0x240] sm:$0xff]  ;;  %v375_v10 = vld [vmem:[%s4033_s21 + $0x290] sm:$0xff]  ;;  %v378_v15 = vld [vmem:[%s4033_s21 + $0x2a8] sm:$0xff] }
  0xa5   : > { %v823_v14 = vld [vmem:[%s4033_s21 + $0x1090] sm:$0xff]  ;;  %v380_v16 = vld [vmem:[%s4033_s21 + $0x2b8] sm:$0xff]  ;;  %v826_v17 = vld [vmem:[%s4033_s21 + $0x10a8] sm:$0xff] }
  0xa6   : > { %2697 = vmatpush1.bf16.msra.mxu1 %v2696_v56  ;;  %v820_v56 = vld [vmem:[%s4033_s21 + $0x1078] sm:$0xff]  ;;  %v377_v22 = vld [vmem:[%s4033_s21 + $0x2a0] sm:$0xff]  ;;  %v379_v24 = vld [vmem:[%s4033_s21 + $0x2b0] sm:$0xff] }
  0xa7   : > { %3145 = vmatpush1.bf16.msra.mxu0 %v3144_v57  ;;  %2699 = vmatprep.subr.bf16.mxu1 %v2698_v58  ;;  %v2716_v57 = vpack.c.bf16 %v367_v51, %v365_v50  ;;  %v3164_v58 = vpack.c.bf16 %v815_v53, %v813_v52  ;;  %v828_v18 = vld [vmem:[%s4033_s21 + $0x10b8] sm:$0xff]  ;;  %v825_v25 = vld [vmem:[%s4033_s21 + $0x10a0] sm:$0xff]  ;;  %v827_v27 = vld [vmem:[%s4033_s21 + $0x10b0] sm:$0xff] }
  0xa8   : > { %3147 = vmatprep.subr.bf16.mxu0 %v3146_v62  ;;  %v817_v62 = vld [vmem:[%s4033_s21 + $0x1060] sm:$0xff]  ;;  %v382_v28 = vld [vmem:[%s4033_s21 + $0x2c8] sm:$0xff]  ;;  %v384_v29 = vld [vmem:[%s4033_s21 + $0x2d8] sm:$0xff] }
  0xa9   : > { %v830_v31 = vld [vmem:[%s4033_s21 + $0x10c8] sm:$0xff]  ;;  %v832_v32 = vld [vmem:[%s4033_s21 + $0x10d8] sm:$0xff]  ;;  %v2730_v36 = vpack.c.bf16 %v384_v29, %v382_v28  ;;  %v383_v37 = vld [vmem:[%s4033_s21 + $0x2d0] sm:$0xff] }
  0xaa   : > { %2701 = vmatpush1.bf16.msra.mxu1 %v2700_v5  ;;  %v824_v5 = vld [vmem:[%s4033_s21 + $0x1098] sm:$0xff]  ;;  %v829_v38 = vld [vmem:[%s4033_s21 + $0x10c0] sm:$0xff]  ;;  %v3178_v41 = vpack.c.bf16 %v832_v32, %v830_v31  ;;  %v386_v42 = vld [vmem:[%s4033_s21 + $0x2e8] sm:$0xff] }
  0xab   : > { %3149 = vmatpush1.bf16.msra.mxu0 %v3148_v6  ;;  %2703 = vmatprep.subr.bf16.mxu1 %v2702_v7  ;;  %v2720_v6 = vpack.c.bf16 %v371_v61, %v369_v60  ;;  %v3168_v7 = vpack.c.bf16 %v819_v1, %v817_v62  ;;  %v3170_v13 = vpack.c.bf16 %v824_v5, %v822_v4  ;;  %v388_v43 = vld [vmem:[%s4033_s21 + $0x2f8] sm:$0xff]  ;;  %v385_v51 = vld [vmem:[%s4033_s21 + $0x2e0] sm:$0xff]  ;;  %v387_v52 = vld [vmem:[%s4033_s21 + $0x2f0] sm:$0xff] }
  0xac   : > { %3151 = vmatprep.subr.bf16.mxu0 %v3150_v11  ;;  %v821_v11 = vld [vmem:[%s4033_s21 + $0x1080] sm:$0xff]  ;;  %v2734_v50 = vpack.c.bf16 %v388_v43, %v386_v42  ;;  %v835_v55 = vld [vmem:[%s4033_s21 + $0x10f0] sm:$0xff]  ;;  %v394_v4 = vld [vmem:[%s4033_s21 + $0x328] sm:$0xff] }
  0xad   : > { %v389_v62 = vld [vmem:[%s4033_s21 + $0x300] sm:$0xff]  ;;  %v839_v3 = vld [vmem:[%s4033_s21 + $0x1110] sm:$0xff]  ;;  %v396_v5 = vld [vmem:[%s4033_s21 + $0x338] sm:$0xff] }
  0xae   : > { %2705 = vmatpush1.bf16.msra.mxu1 %v2704_v19  ;;  %v2724_v19 = vpack.c.bf16 %v375_v10, %v373_v9  ;;  %v837_v1 = vld [vmem:[%s4033_s21 + $0x1100] sm:$0xff]  ;;  %v2742_v10 = vpack.c.bf16 %v396_v5, %v394_v4  ;;  %v847_v29 = vld [vmem:[%s4033_s21 + $0x1150] sm:$0xff]  ;;  %v402_v31 = vld [vmem:[%s4033_s21 + $0x368] sm:$0xff] }
  0xaf   : > { %3153 = vmatpush1.bf16.msra.mxu0 %v3152_v20  ;;  %2707 = vmatprep.subr.bf16.mxu1 %v2706_v21  ;;  %v3172_v20 = vpack.c.bf16 %v823_v14, %v821_v11  ;;  %v2726_v21 = vpack.c.bf16 %v380_v16, %v378_v15  ;;  %v3188_v9 = vpack.c.bf16 %v839_v3, %v837_v1  ;;  %v393_v11 = vld [vmem:[%s4033_s21 + $0x320] sm:$0xff]  ;;  %v843_v16 = vld [vmem:[%s4033_s21 + $0x1130] sm:$0xff]  ;;  %v404_v32 = vld [vmem:[%s4033_s21 + $0x378] sm:$0xff] }
  0xb0   : > { %3155 = vmatprep.subr.bf16.mxu0 %v3154_v23  ;;  %v3174_v23 = vpack.c.bf16 %v828_v18, %v826_v17  ;;  %v841_v14 = vld [vmem:[%s4033_s21 + $0x1120] sm:$0xff]  ;;  %v398_v17 = vld [vmem:[%s4033_s21 + $0x348] sm:$0xff]  ;;  %v400_v18 = vld [vmem:[%s4033_s21 + $0x358] sm:$0xff] }
  0xb1   : > { %1408 = vmatmul.mubr.f32.vlgmr.msra.gmra.mrb[0].mxu1 %v4161_v26  ;;  %v3162_v26 = vpack.c.bf16 %v816_v46, %v814_v45  ;;  %v834_v45 = vld [vmem:[%s4033_s21 + $0x10e8] sm:$0xff]  ;;  %v836_v46 = vld [vmem:[%s4033_s21 + $0x10f8] sm:$0xff]  ;;  %v851_v43 = vld [vmem:[%s4033_s21 + $0x1170] sm:$0xff] }
  0xb2   : > { %2709 = vmatpush1.bf16.msra.mxu1 %v2708_v33  ;;  %1905 = vmatmul.mubr.f32.vlgmr.msra.gmra.mrb[0].mxu0 %v4173_v40  ;;  %v818_v40 = vld [vmem:[%s4033_s21 + $0x1068] sm:$0xff]  ;;  %v2728_v33 = vpack.c.bf16 %v379_v24, %v377_v22  ;;  %v3182_v54 = vpack.c.bf16 %v836_v46, %v834_v45  ;;  %v3192_v22 = vpack.c.bf16 %v843_v16, %v841_v14  ;;  %v408_v46 = vld [vmem:[%s4033_s21 + $0x398] sm:$0xff]  ;;  %v411_v1 = vld [vmem:[%s4033_s21 + $0x3b0] sm:$0xff] }
  0xb3   : > { %3157 = vmatpush1.bf16.msra.mxu0 %v3156_v34  ;;  %2711 = vmatprep.subr.bf16.mxu1 %v2710_v35  ;;  %v3166_v0 = vpack.c.bf16 %v820_v56, %v818_v40  ;;  %v381_v34 = vld [vmem:[%s4033_s21 + $0x2c0] sm:$0xff]  ;;  %v3176_v35 = vpack.c.bf16 %v827_v27, %v825_v25  ;;  %v390_v40 = vld [vmem:[%s4033_s21 + $0x308] sm:$0xff]  ;;  %v392_v56 = vld [vmem:[%s4033_s21 + $0x318] sm:$0xff]  ;;  %v2746_v24 = vpack.c.bf16 %v400_v18, %v398_v17 }
  0xb4   : > { %3159 = vmatprep.subr.bf16.mxu0 %v3158_v39  ;;  %1478 = vmatprep.mubr.f32.mxu1 %v1212_v44  ;;  %v831_v39 = vld [vmem:[%s4033_s21 + $0x10d0] sm:$0xff]  ;;  %v4267_v44 = vld [vmem:[%s4047_s14 + $0x20] sm:$0xff]  ;;  %v2738_v61 = vpack.c.bf16 %v392_v56, %v390_v40  ;;  %v406_v45 = vld [vmem:[%s4033_s21 + $0x388] sm:$0xff] }
  0xb5   : > { %v397_v25 = vld [vmem:[%s4033_s21 + $0x340] sm:$0xff]  ;;  %v855_v40 = vld [vmem:[%s4033_s21 + $0x1190] sm:$0xff]  ;;  %v410_v56 = vld [vmem:[%s4033_s21 + $0x3a8] sm:$0xff] }
  0xb6   : > { %2713 = vmatpush1.bf16.msra.mxu1 %v2712_v47  ;;  %v4273_v47 = vrot.slane %v4267_v44, %v4146_v12  ;;  %v845_v27 = vld [vmem:[%s4033_s21 + $0x1140] sm:$0xff]  ;;  %v859_v4 = vld [vmem:[%s4033_s21 + $0x11b0] sm:$0xff]  ;;  %v414_v5 = vld [vmem:[%s4033_s21 + $0x3c8] sm:$0xff] }
  0xb7   : > { %3161 = vmatpush1.bf16.msra.mxu0 %v3160_v48  ;;  %2715 = vmatprep.subr.bf16.mxu1 %v2714_v49  ;;  %v2732_v48 = vpack.c.bf16 %v383_v37, %v381_v34  ;;  %v3180_v49 = vpack.c.bf16 %v831_v39, %v829_v38  ;;  %v852_v34 = vld [vmem:[%s4033_s21 + $0x1178] sm:$0xff]  ;;  %v2750_v37 = vpack.c.bf16 %v404_v32, %v402_v31  ;;  %v401_v38 = vld [vmem:[%s4033_s21 + $0x360] sm:$0xff]  ;;  %v403_v39 = vld [vmem:[%s4033_s21 + $0x370] sm:$0xff] }
  0xb8   : > { %3163 = vmatprep.subr.bf16.mxu0 %v3162_v26  ;;  %v833_v26 = vld [vmem:[%s4033_s21 + $0x10e0] sm:$0xff]  ;;  %v1279_v53 = vcombine.high %v4273_v47, %v4273_v47  ;;  %v415_v14 = vld [vmem:[%s4033_s21 + $0x3d0] sm:$0xff]  ;;  %v418_v18 = vld [vmem:[%s4033_s21 + $0x3e8] sm:$0xff] }
  0xb9   : > { %v3184_v60 = vpack.c.bf16 %v835_v55, %v833_v26  ;;  %v405_v26 = vld [vmem:[%s4033_s21 + $0x380] sm:$0xff]  ;;  %v863_v17 = vld [vmem:[%s4033_s21 + $0x11d0] sm:$0xff]  ;;  %v422_v32 = vld [vmem:[%s4033_s21 + $0x408] sm:$0xff] }
  0xba   : > { %2717 = vmatpush1.bf16.msra.mxu1 %v2716_v57  ;;  %v838_v57 = vld [vmem:[%s4033_s21 + $0x1108] sm:$0xff]  ;;  %1975 = vmatprep.mubr.f32.mxu0 %v1279_v53  ;;  %v407_v53 = vld [vmem:[%s4033_s21 + $0x390] sm:$0xff] }
  0xbb   : > { %3165 = vmatpush1.bf16.msra.mxu0 %v3164_v58  ;;  %2719 = vmatprep.subr.bf16.mxu1 %v2718_v59  ;;  %v840_v58 = vld [vmem:[%s4033_s21 + $0x1118] sm:$0xff]  ;;  %v2736_v59 = vpack.c.bf16 %v387_v52, %v385_v51  ;;  %v2754_v52 = vpack.c.bf16 %v408_v46, %v406_v45  ;;  %v867_v31 = vld [vmem:[%s4033_s21 + $0x11f0] sm:$0xff] }
  0xbc   : > { %3167 = vmatprep.subr.bf16.mxu0 %v3166_v0  ;;  %v391_v0 = vld [vmem:[%s4033_s21 + $0x310] sm:$0xff]  ;;  %v3186_v2 = vpack.c.bf16 %v840_v58, %v838_v57  ;;  %v412_v57 = vld [vmem:[%s4033_s21 + $0x3b8] sm:$0xff]  ;;  %v858_v58 = vld [vmem:[%s4033_s21 + $0x11a8] sm:$0xff] }
  0xbd   : > { %v871_v46 = vld [vmem:[%s4033_s21 + $0x1210] sm:$0xff] }
  0xbe   : > { %2721 = vmatpush1.bf16.msra.mxu1 %v2720_v6  ;;  %v842_v6 = vld [vmem:[%s4033_s21 + $0x1128] sm:$0xff] }
  0xbf   : > { %3169 = vmatpush1.bf16.msra.mxu0 %v3168_v7  ;;  %2723 = vmatprep.subr.bf16.mxu1 %v2722_v8  ;;  %v844_v7 = vld [vmem:[%s4033_s21 + $0x1138] sm:$0xff]  ;;  %v2740_v8 = vpack.c.bf16 %v391_v0, %v389_v62  ;;  %v2758_v62 = vpack.c.bf16 %v412_v57, %v410_v56  ;;  %v409_v0 = vld [vmem:[%s4033_s21 + $0x3a0] sm:$0xff] }
  0xc0   : > { %3171 = vmatprep.subr.bf16.mxu0 %v3170_v13  ;;  %v395_v13 = vld [vmem:[%s4033_s21 + $0x330] sm:$0xff]  ;;  %v3190_v15 = vpack.c.bf16 %v844_v7, %v842_v6  ;;  %v416_v6 = vld [vmem:[%s4033_s21 + $0x3d8] sm:$0xff]  ;;  %v862_v7 = vld [vmem:[%s4033_s21 + $0x11c8] sm:$0xff] }
  0xc1   : > { %v4366_v56 = vld [vmem:[%s4047_s14 + $0x8] sm:$0xff] }
  0xc2   : > { %2725 = vmatpush1.bf16.msra.mxu1 %v2724_v19  ;;  %v846_v19 = vld [vmem:[%s4033_s21 + $0x1148] sm:$0xff] }
  0xc3   : > { %3173 = vmatpush1.bf16.msra.mxu0 %v3172_v20  ;;  %2727 = vmatprep.subr.bf16.mxu1 %v2726_v21  ;;  %v848_v20 = vld [vmem:[%s4033_s21 + $0x1158] sm:$0xff]  ;;  %v2744_v21 = vpack.c.bf16 %v395_v13, %v393_v11  ;;  %v2762_v11 = vpack.c.bf16 %v416_v6, %v414_v5  ;;  %v413_v13 = vld [vmem:[%s4033_s21 + $0x3c0] sm:$0xff]  ;;  %v431_v6 = vld [vmem:[%s4033_s21 + $0x450] sm:$0xff] }
  0xc4   : > { %3175 = vmatprep.subr.bf16.mxu0 %v3174_v23  ;;  %v399_v23 = vld [vmem:[%s4033_s21 + $0x350] sm:$0xff]  ;;  %v3194_v28 = vpack.c.bf16 %v848_v20, %v846_v19  ;;  %v420_v19 = vld [vmem:[%s4033_s21 + $0x3f8] sm:$0xff]  ;;  %v866_v20 = vld [vmem:[%s4033_s21 + $0x11e8] sm:$0xff] }
  0xc5   : > { %v429_v5 = vld [vmem:[%s4033_s21 + $0x440] sm:$0xff] }
  0xc6   : > { %2729 = vmatpush1.bf16.msra.mxu1 %v2728_v33  ;;  %v850_v33 = vld [vmem:[%s4033_s21 + $0x1168] sm:$0xff] }
  0xc7   : > { %3177 = vmatpush1.bf16.msra.mxu0 %v3176_v35  ;;  %2731 = vmatprep.subr.bf16.mxu1 %v2730_v36  ;;  %v2748_v35 = vpack.c.bf16 %v399_v23, %v397_v25  ;;  %v3196_v36 = vpack.c.bf16 %v847_v29, %v845_v27  ;;  %v3198_v42 = vpack.c.bf16 %v852_v34, %v850_v33  ;;  %v417_v23 = vld [vmem:[%s4033_s21 + $0x3e0] sm:$0xff]  ;;  %v419_v27 = vld [vmem:[%s4033_s21 + $0x3f0] sm:$0xff]  ;;  %v424_v33 = vld [vmem:[%s4033_s21 + $0x418] sm:$0xff] }
  0xc8   : > { %3179 = vmatprep.subr.bf16.mxu0 %v3178_v41  ;;  %v849_v41 = vld [vmem:[%s4033_s21 + $0x1160] sm:$0xff]  ;;  %v2766_v25 = vpack.c.bf16 %v420_v19, %v418_v18  ;;  %v870_v34 = vld [vmem:[%s4033_s21 + $0x1208] sm:$0xff]  ;;  %v435_v18 = vld [vmem:[%s4033_s21 + $0x470] sm:$0xff] }
  0xc9   : > { %v3200_v51 = vpack.c.bf16 %v851_v43, %v849_v41  ;;  %v421_v41 = vld [vmem:[%s4033_s21 + $0x400] sm:$0xff] }
  0xca   : > { %2733 = vmatpush1.bf16.msra.mxu1 %v2732_v48  ;;  %v854_v48 = vld [vmem:[%s4033_s21 + $0x1188] sm:$0xff]  ;;  %v869_v43 = vld [vmem:[%s4033_s21 + $0x1200] sm:$0xff] }
  0xcb   : > { %3181 = vmatpush1.bf16.msra.mxu0 %v3180_v49  ;;  %2735 = vmatprep.subr.bf16.mxu1 %v2734_v50  ;;  %v856_v49 = vld [vmem:[%s4033_s21 + $0x1198] sm:$0xff]  ;;  %v2752_v50 = vpack.c.bf16 %v403_v39, %v401_v38  ;;  %v2770_v39 = vpack.c.bf16 %v424_v33, %v422_v32  ;;  %v881_v19 = vld [vmem:[%s4033_s21 + $0x1260] sm:$0xff]  ;;  %v439_v32 = vld [vmem:[%s4033_s21 + $0x490] sm:$0xff] }
  0xcc   : > { %3183 = vmatprep.subr.bf16.mxu0 %v3182_v54  ;;  %v853_v54 = vld [vmem:[%s4033_s21 + $0x1180] sm:$0xff]  ;;  %v3202_v55 = vpack.c.bf16 %v856_v49, %v854_v48  ;;  %v426_v48 = vld [vmem:[%s4033_s21 + $0x428] sm:$0xff]  ;;  %v428_v49 = vld [vmem:[%s4033_s21 + $0x438] sm:$0xff] }
  0xcd   : > { %v885_v33 = vld [vmem:[%s4033_s21 + $0x1280] sm:$0xff] }
  0xce   : > { %2737 = vmatpush1.bf16.msra.mxu1 %v2736_v59  ;;  %v860_v59 = vld [vmem:[%s4033_s21 + $0x11b8] sm:$0xff] }
  0xcf   : > { %3185 = vmatpush1.bf16.msra.mxu0 %v3184_v60  ;;  %2739 = vmatprep.subr.bf16.mxu1 %v2738_v61  ;;  %v2756_v60 = vpack.c.bf16 %v407_v53, %v405_v26  ;;  %v3204_v61 = vpack.c.bf16 %v855_v40, %v853_v54  ;;  %v3206_v3 = vpack.c.bf16 %v860_v59, %v858_v58  ;;  %v425_v26 = vld [vmem:[%s4033_s21 + $0x420] sm:$0xff]  ;;  %v875_v58 = vld [vmem:[%s4033_s21 + $0x1230] sm:$0xff]  ;;  %v430_v59 = vld [vmem:[%s4033_s21 + $0x448] sm:$0xff] }
  0xd0   : > { %3187 = vmatprep.subr.bf16.mxu0 %v3186_v2  ;;  %v857_v2 = vld [vmem:[%s4033_s21 + $0x11a0] sm:$0xff]  ;;  %v3220_v53 = vpack.c.bf16 %v871_v46, %v869_v43  ;;  %v2774_v54 = vpack.c.bf16 %v428_v49, %v426_v48  ;;  %v443_v46 = vld [vmem:[%s4033_s21 + $0x4b0] sm:$0xff] }
  0xd1   : > { %v873_v40 = vld [vmem:[%s4033_s21 + $0x1220] sm:$0xff] }
  0xd2   : > { %2741 = vmatpush1.bf16.msra.mxu1 %v2740_v8  ;;  %v864_v8 = vld [vmem:[%s4033_s21 + $0x11d8] sm:$0xff]  ;;  %v889_v48 = vld [vmem:[%s4033_s21 + $0x12a0] sm:$0xff] }
  0xd3   : > { %3189 = vmatpush1.bf16.msra.mxu0 %v3188_v9  ;;  %2743 = vmatprep.subr.bf16.mxu1 %v2742_v10  ;;  %v2760_v9 = vpack.c.bf16 %v411_v1, %v409_v0  ;;  %v3208_v10 = vpack.c.bf16 %v859_v4, %v857_v2  ;;  %v3210_v16 = vpack.c.bf16 %v864_v8, %v862_v7  ;;  %v880_v0 = vld [vmem:[%s4033_s21 + $0x1258] sm:$0xff]  ;;  %v877_v7 = vld [vmem:[%s4033_s21 + $0x1240] sm:$0xff] }
  0xd4   : > { %3191 = vmatprep.subr.bf16.mxu0 %v3190_v15  ;;  %v861_v15 = vld [vmem:[%s4033_s21 + $0x11c0] sm:$0xff] }
  0xd6   : > { %2745 = vmatpush1.bf16.msra.mxu1 %v2744_v21  ;;  %v868_v21 = vld [vmem:[%s4033_s21 + $0x11f8] sm:$0xff] }
  0xd7   : > { %3193 = vmatpush1.bf16.msra.mxu0 %v3192_v22  ;;  %2747 = vmatprep.subr.bf16.mxu1 %v2746_v24  ;;  %v2764_v22 = vpack.c.bf16 %v415_v14, %v413_v13  ;;  %v3212_v24 = vpack.c.bf16 %v863_v17, %v861_v15  ;;  %v3214_v29 = vpack.c.bf16 %v868_v21, %v866_v20  ;;  %v884_v13 = vld [vmem:[%s4033_s21 + $0x1278] sm:$0xff]  ;;  %v433_v17 = vld [vmem:[%s4033_s21 + $0x460] sm:$0xff]  ;;  %v883_v21 = vld [vmem:[%s4033_s21 + $0x1270] sm:$0xff] }
  0xd8   : > { %3195 = vmatprep.subr.bf16.mxu0 %v3194_v28  ;;  %v865_v28 = vld [vmem:[%s4033_s21 + $0x11e0] sm:$0xff]  ;;  %v2780_v14 = vpack.c.bf16 %v431_v6, %v429_v5 }
  0xd9   : > { %v3216_v38 = vpack.c.bf16 %v867_v31, %v865_v28  ;;  %v3232_v28 = vpack.c.bf16 %v883_v21, %v881_v19  ;;  %v437_v31 = vld [vmem:[%s4033_s21 + $0x480] sm:$0xff]  ;;  %v455_v19 = vld [vmem:[%s4033_s21 + $0x510] sm:$0xff] }
  0xda   : > { %2749 = vmatpush1.bf16.msra.mxu1 %v2748_v35  ;;  %v872_v35 = vld [vmem:[%s4033_s21 + $0x1218] sm:$0xff]  ;;  %v449_v6 = vld [vmem:[%s4033_s21 + $0x4e0] sm:$0xff] }
  0xdb   : > { %3197 = vmatpush1.bf16.msra.mxu0 %v3196_v36  ;;  %2751 = vmatprep.subr.bf16.mxu1 %v2750_v37  ;;  %v1264_v36 = vcombine.high %v4267_v44, %v4267_v44  ;;  %v2768_v37 = vpack.c.bf16 %v419_v27, %v417_v23  ;;  %v3218_v45 = vpack.c.bf16 %v872_v35, %v870_v34  ;;  %v874_v44 = vld [vmem:[%s4033_s21 + $0x1228] sm:$0xff]  ;;  %v888_v23 = vld [vmem:[%s4033_s21 + $0x1298] sm:$0xff]  ;;  %v887_v35 = vld [vmem:[%s4033_s21 + $0x1290] sm:$0xff] }
  0xdc   : > { %3199 = vmatprep.subr.bf16.mxu0 %v3198_v42  ;;  %v423_v42 = vld [vmem:[%s4033_s21 + $0x410] sm:$0xff]  ;;  %v2784_v27 = vpack.c.bf16 %v435_v18, %v433_v17  ;;  %v453_v18 = vld [vmem:[%s4033_s21 + $0x500] sm:$0xff] }
  0xde   : > { %2753 = vmatpush1.bf16.msra.mxu1 %v2752_v50  ;;  %v876_v50 = vld [vmem:[%s4033_s21 + $0x1238] sm:$0xff] }
  0xdf   : > { %3201 = vmatpush1.bf16.msra.mxu0 %v3200_v51  ;;  %2755 = vmatprep.subr.bf16.mxu1 %v2754_v52  ;;  %v4360_v51 = vrot.slane %v1264_v36, %v4146_v12  ;;  %v2772_v52 = vpack.c.bf16 %v423_v42, %v421_v41  ;;  %v3222_v57 = vpack.c.bf16 %v876_v50, %v874_v44  ;;  %v442_v36 = vld [vmem:[%s4033_s21 + $0x4a8] sm:$0xff]  ;;  %v891_v44 = vld [vmem:[%s4033_s21 + $0x12b0] sm:$0xff] }
  0xe0   : > { %3203 = vmatprep.subr.bf16.mxu0 %v3202_v55  ;;  %v427_v55 = vld [vmem:[%s4033_s21 + $0x430] sm:$0xff]  ;;  %v2788_v41 = vpack.c.bf16 %v439_v32, %v437_v31  ;;  %v3236_v42 = vpack.c.bf16 %v887_v35, %v885_v33  ;;  %v446_v50 = vld [vmem:[%s4033_s21 + $0x4c8] sm:$0xff]  ;;  %v457_v32 = vld [vmem:[%s4033_s21 + $0x520] sm:$0xff] }
  0xe1   : > { %v1280_v1 = vcombine.high %v4360_v51, %v4360_v51  ;;  %v2776_v2 = vpack.c.bf16 %v427_v55, %v425_v26  ;;  %v894_v26 = vld [vmem:[%s4033_s21 + $0x12c8] sm:$0xff]  ;;  %v3240_v55 = vpack.c.bf16 %v891_v44, %v889_v48  ;;  %v459_v33 = vld [vmem:[%s4033_s21 + $0x530] sm:$0xff] }
  0xe2   : > { %2757 = vmatpush1.bf16.msra.mxu1 %v2756_v60  ;;  %v432_v60 = vld [vmem:[%s4033_s21 + $0x458] sm:$0xff]  ;;  %v463_v48 = vld [vmem:[%s4033_s21 + $0x550] sm:$0xff] }
  0xe3   : > { %3205 = vmatpush1.bf16.msra.mxu0 %v3204_v61  ;;  %2759 = vmatprep.subr.bf16.mxu1 %v2758_v62  ;;  %v4373_v61 = vrot.slane %v4366_v56, %v4146_v12  ;;  %v878_v62 = vld [vmem:[%s4033_s21 + $0x1248] sm:$0xff]  ;;  %v2778_v4 = vpack.c.bf16 %v432_v60, %v430_v59  ;;  %v893_v59 = vld [vmem:[%s4033_s21 + $0x12c0] sm:$0xff] }
  0xe4   : > { %3207 = vmatprep.subr.bf16.mxu0 %v3206_v3  ;;  %v3226_v8 = vpack.c.bf16 %v880_v0, %v878_v62  ;;  %v895_v62 = vld [vmem:[%s4033_s21 + $0x12d0] sm:$0xff]  ;;  %v450_v0 = vld [vmem:[%s4033_s21 + $0x4e8] sm:$0xff] }
  0xe5   : > { %v1228_v3 = vcombine.high %v4373_v61, %v4373_v61 }
  0xe6   : > { %2761 = vmatpush1.bf16.msra.mxu1 %v2760_v9  ;;  %v879_v9 = vld [vmem:[%s4033_s21 + $0x1250] sm:$0xff] }
  0xe7   : > { %3209 = vmatpush1.bf16.msra.mxu0 %v3208_v10  ;;  %2763 = vmatprep.subr.bf16.mxu1 %v2762_v11  ;;  %v436_v10 = vld [vmem:[%s4033_s21 + $0x478] sm:$0xff]  ;;  %v882_v11 = vld [vmem:[%s4033_s21 + $0x1268] sm:$0xff]  ;;  %v3228_v15 = vpack.c.bf16 %v879_v9, %v877_v7  ;;  %v451_v7 = vld [vmem:[%s4033_s21 + $0x4f0] sm:$0xff] }
  0xe8   : > { %3211 = vmatprep.subr.bf16.mxu0 %v3210_v16  ;;  %v3230_v20 = vpack.c.bf16 %v884_v13, %v882_v11  ;;  %v456_v11 = vld [vmem:[%s4033_s21 + $0x518] sm:$0xff]  ;;  %v902_v13 = vld [vmem:[%s4033_s21 + $0x1308] sm:$0xff] }
  0xea   : > { %2765 = vmatpush1.bf16.msra.mxu1 %v2764_v22  ;;  %v438_v22 = vld [vmem:[%s4033_s21 + $0x488] sm:$0xff] }
  0xeb   : > { %3213 = vmatpush1.bf16.msra.mxu0 %v3212_v24  ;;  %2767 = vmatprep.subr.bf16.mxu1 %v2766_v25  ;;  %v440_v24 = vld [vmem:[%s4033_s21 + $0x498] sm:$0xff]  ;;  %v886_v25 = vld [vmem:[%s4033_s21 + $0x1288] sm:$0xff] }
  0xec   : > { %3215 = vmatprep.subr.bf16.mxu0 %v3214_v29  ;;  %v2786_v29 = vpack.c.bf16 %v440_v24, %v438_v22  ;;  %v3234_v34 = vpack.c.bf16 %v888_v23, %v886_v25  ;;  %v903_v22 = vld [vmem:[%s4033_s21 + $0x1310] sm:$0xff]  ;;  %v458_v24 = vld [vmem:[%s4033_s21 + $0x528] sm:$0xff]  ;;  %v460_v25 = vld [vmem:[%s4033_s21 + $0x538] sm:$0xff] }
  0xed   : > { %v906_v23 = vld [vmem:[%s4033_s21 + $0x1328] sm:$0xff]  ;;  %v2806_v31 = vpack.c.bf16 %v460_v25, %v458_v24  ;;  %v923_v24 = vld [vmem:[%s4033_s21 + $0x13b0] sm:$0xff] }
  0xee   : > { %2769 = vmatpush1.bf16.msra.mxu1 %v2768_v37  ;;  %v444_v37 = vld [vmem:[%s4033_s21 + $0x4b8] sm:$0xff]  ;;  %v478_v25 = vld [vmem:[%s4033_s21 + $0x5c8] sm:$0xff] }
  0xef   : > { %3217 = vmatpush1.bf16.msra.mxu0 %v3216_v38  ;;  %2771 = vmatprep.subr.bf16.mxu1 %v2770_v39  ;;  %v890_v38 = vld [vmem:[%s4033_s21 + $0x12a8] sm:$0xff]  ;;  %v892_v39 = vld [vmem:[%s4033_s21 + $0x12b8] sm:$0xff]  ;;  %v2790_v43 = vpack.c.bf16 %v444_v37, %v442_v36  ;;  %v907_v36 = vld [vmem:[%s4033_s21 + $0x1330] sm:$0xff] }
  0xf0   : > { %3219 = vmatprep.subr.bf16.mxu0 %v3218_v45  ;;  %v441_v45 = vld [vmem:[%s4033_s21 + $0x4a0] sm:$0xff]  ;;  %v3238_v49 = vpack.c.bf16 %v892_v39, %v890_v38  ;;  %v462_v37 = vld [vmem:[%s4033_s21 + $0x548] sm:$0xff]  ;;  %v464_v38 = vld [vmem:[%s4033_s21 + $0x558] sm:$0xff] }
  0xf1   : > { %1479 = vmatmul.mubr.f32.vlgmr.msra.gmra.mrb[0].mxu1 %v4212_v30  ;;  %v3224_v30 = vpack.c.bf16 %v875_v58, %v873_v40  ;;  %v447_v58 = vld [vmem:[%s4033_s21 + $0x4d0] sm:$0xff]  ;;  %v910_v39 = vld [vmem:[%s4033_s21 + $0x1348] sm:$0xff] }
  0xf2   : > { %2773 = vmatpush1.bf16.msra.mxu1 %v2772_v52  ;;  %1976 = vmatmul.mubr.f32.vlgmr.msra.gmra.mrb[0].mxu0 %v4273_v47  ;;  %v434_v47 = vld [vmem:[%s4033_s21 + $0x468] sm:$0xff]  ;;  %v448_v52 = vld [vmem:[%s4033_s21 + $0x4d8] sm:$0xff] }
  0xf3   : > { %3221 = vmatpush1.bf16.msra.mxu0 %v3220_v53  ;;  %2775 = vmatprep.subr.bf16.mxu1 %v2774_v54  ;;  %v2782_v16 = vpack.c.bf16 %v436_v10, %v434_v47  ;;  %v896_v53 = vld [vmem:[%s4033_s21 + $0x12d8] sm:$0xff]  ;;  %v2792_v54 = vpack.c.bf16 %v443_v46, %v441_v45  ;;  %v2794_v40 = vpack.c.bf16 %v448_v52, %v446_v50  ;;  %v899_v47 = vld [vmem:[%s4033_s21 + $0x12f0] sm:$0xff]  ;;  %v454_v10 = vld [vmem:[%s4033_s21 + $0x508] sm:$0xff] }
  0xf4   : > { %3223 = vmatprep.subr.bf16.mxu0 %v3222_v57  ;;  %1549 = vmatprep.mubr.f32.mxu1 %v1228_v3  ;;  %v445_v57 = vld [vmem:[%s4033_s21 + $0x4c0] sm:$0xff]  ;;  %v3242_v60 = vpack.c.bf16 %v896_v53, %v894_v26  ;;  %v900_v3 = vld [vmem:[%s4033_s21 + $0x12f8] sm:$0xff]  ;;  %v2802_v17 = vpack.c.bf16 %v456_v11, %v454_v10  ;;  %v2810_v45 = vpack.c.bf16 %v464_v38, %v462_v37  ;;  %v911_v50 = vld [vmem:[%s4033_s21 + $0x1350] sm:$0xff] }
  0xf5   : > { %2046 = vmatprep.mubr.f32.mxu0 %v1280_v1  ;;  %v452_v1 = vld [vmem:[%s4033_s21 + $0x4f8] sm:$0xff]  ;;  %v461_v46 = vld [vmem:[%s4033_s21 + $0x540] sm:$0xff]  ;;  %v466_v52 = vld [vmem:[%s4033_s21 + $0x568] sm:$0xff] }
  0xf6   : > { %2777 = vmatpush1.bf16.msra.mxu1 %v2776_v2  ;;  %v898_v2 = vld [vmem:[%s4033_s21 + $0x12e8] sm:$0xff]  ;;  %v2798_v5 = vpack.c.bf16 %v452_v1, %v450_v0  ;;  %v468_v26 = vld [vmem:[%s4033_s21 + $0x578] sm:$0xff]  ;;  %v915_v0 = vld [vmem:[%s4033_s21 + $0x1370] sm:$0xff] }
  0xf7   : > { %3225 = vmatpush1.bf16.msra.mxu0 %v3224_v30  ;;  %2779 = vmatprep.subr.bf16.mxu1 %v2778_v4  ;;  %v2796_v30 = vpack.c.bf16 %v447_v58, %v445_v57  ;;  %v3244_v4 = vpack.c.bf16 %v895_v62, %v893_v59  ;;  %v3246_v9 = vpack.c.bf16 %v900_v3, %v898_v2  ;;  %v914_v53 = vld [vmem:[%s4033_s21 + $0x1368] sm:$0xff]  ;;  %v465_v58 = vld [vmem:[%s4033_s21 + $0x560] sm:$0xff]  ;;  %v467_v59 = vld [vmem:[%s4033_s21 + $0x570] sm:$0xff] }
  0xf8   : > { %3227 = vmatprep.subr.bf16.mxu0 %v3226_v8  ;;  %v897_v8 = vld [vmem:[%s4033_s21 + $0x12e0] sm:$0xff]  ;;  %v2814_v57 = vpack.c.bf16 %v468_v26, %v466_v52  ;;  %v470_v1 = vld [vmem:[%s4033_s21 + $0x588] sm:$0xff]  ;;  %v472_v2 = vld [vmem:[%s4033_s21 + $0x598] sm:$0xff] }
  0xf9   : > { %v918_v3 = vld [vmem:[%s4033_s21 + $0x1388] sm:$0xff]  ;;  %v919_v10 = vld [vmem:[%s4033_s21 + $0x1390] sm:$0xff] }
  0xfa   : > { %2781 = vmatpush1.bf16.msra.mxu1 %v2780_v14  ;;  %v904_v14 = vld [vmem:[%s4033_s21 + $0x1318] sm:$0xff]  ;;  %v474_v11 = vld [vmem:[%s4033_s21 + $0x5a8] sm:$0xff]  ;;  %v927_v37 = vld [vmem:[%s4033_s21 + $0x13d0] sm:$0xff] }
  0xfb   : > { %3229 = vmatpush1.bf16.msra.mxu0 %v3228_v15  ;;  %2783 = vmatprep.subr.bf16.mxu1 %v2782_v16  ;;  %v2800_v15 = vpack.c.bf16 %v451_v7, %v449_v6  ;;  %v3248_v16 = vpack.c.bf16 %v899_v47, %v897_v8  ;;  %v3250_v21 = vpack.c.bf16 %v904_v14, %v902_v13  ;;  %v469_v7 = vld [vmem:[%s4033_s21 + $0x580] sm:$0xff]  ;;  %v471_v8 = vld [vmem:[%s4033_s21 + $0x590] sm:$0xff]  ;;  %v476_v13 = vld [vmem:[%s4033_s21 + $0x5b8] sm:$0xff] }
  0xfc   : > { %3231 = vmatprep.subr.bf16.mxu0 %v3230_v20  ;;  %v901_v20 = vld [vmem:[%s4033_s21 + $0x1300] sm:$0xff]  ;;  %v2818_v6 = vpack.c.bf16 %v472_v2, %v470_v1  ;;  %v922_v14 = vld [vmem:[%s4033_s21 + $0x13a8] sm:$0xff]  ;;  %v931_v52 = vld [vmem:[%s4033_s21 + $0x13f0] sm:$0xff] }
  0xfd   : > { %v482_v38 = vld [vmem:[%s4033_s21 + $0x5e8] sm:$0xff]  ;;  %v933_v1 = vld [vmem:[%s4033_s21 + $0x1400] sm:$0xff]  ;;  %v935_v2 = vld [vmem:[%s4033_s21 + $0x1410] sm:$0xff] }
  0xfe   : > { %2785 = vmatpush1.bf16.msra.mxu1 %v2784_v27  ;;  %v908_v27 = vld [vmem:[%s4033_s21 + $0x1338] sm:$0xff]  ;;  %v486_v26 = vld [vmem:[%s4033_s21 + $0x608] sm:$0xff] }
  0xff   : > { %3233 = vmatpush1.bf16.msra.mxu0 %v3232_v28  ;;  %2787 = vmatprep.subr.bf16.mxu1 %v2786_v29  ;;  %v2804_v28 = vpack.c.bf16 %v455_v19, %v453_v18  ;;  %v3252_v29 = vpack.c.bf16 %v903_v22, %v901_v20  ;;  %v3254_v35 = vpack.c.bf16 %v908_v27, %v906_v23  ;;  %v473_v19 = vld [vmem:[%s4033_s21 + $0x5a0] sm:$0xff]  ;;  %v475_v20 = vld [vmem:[%s4033_s21 + $0x5b0] sm:$0xff]  ;;  %v480_v23 = vld [vmem:[%s4033_s21 + $0x5d8] sm:$0xff] }
 0x100   : > { %3235 = vmatprep.subr.bf16.mxu0 %v3234_v34  ;;  %v905_v34 = vld [vmem:[%s4033_s21 + $0x1320] sm:$0xff]  ;;  %v2822_v18 = vpack.c.bf16 %v476_v13, %v474_v11  ;;  %v926_v27 = vld [vmem:[%s4033_s21 + $0x13c8] sm:$0xff]  ;;  %v491_v11 = vld [vmem:[%s4033_s21 + $0x630] sm:$0xff] }
 0x101   : > { %v937_v13 = vld [vmem:[%s4033_s21 + $0x1420] sm:$0xff] }
 0x102   : > { %2789 = vmatpush1.bf16.msra.mxu1 %v2788_v41  ;;  %v912_v41 = vld [vmem:[%s4033_s21 + $0x1358] sm:$0xff] }
 0x103   : > { %3237 = vmatpush1.bf16.msra.mxu0 %v3236_v42  ;;  %2791 = vmatprep.subr.bf16.mxu1 %v2790_v43  ;;  %v2808_v42 = vpack.c.bf16 %v459_v33, %v457_v32  ;;  %v3256_v43 = vpack.c.bf16 %v907_v36, %v905_v34  ;;  %v3258_v44 = vpack.c.bf16 %v912_v41, %v910_v39  ;;  %v477_v33 = vld [vmem:[%s4033_s21 + $0x5c0] sm:$0xff]  ;;  %v479_v34 = vld [vmem:[%s4033_s21 + $0x5d0] sm:$0xff]  ;;  %v484_v39 = vld [vmem:[%s4033_s21 + $0x5f8] sm:$0xff] }
 0x104   : > { %3239 = vmatprep.subr.bf16.mxu0 %v3238_v49  ;;  %v909_v49 = vld [vmem:[%s4033_s21 + $0x1340] sm:$0xff]  ;;  %v2826_v32 = vpack.c.bf16 %v480_v23, %v478_v25  ;;  %v930_v41 = vld [vmem:[%s4033_s21 + $0x13e8] sm:$0xff] }
 0x105   : > { %v493_v23 = vld [vmem:[%s4033_s21 + $0x640] sm:$0xff] }
 0x106   : > { %2793 = vmatpush1.bf16.msra.mxu1 %v2792_v54  ;;  %v916_v54 = vld [vmem:[%s4033_s21 + $0x1378] sm:$0xff] }
 0x107   : > { %3241 = vmatpush1.bf16.msra.mxu0 %v3240_v55  ;;  %2795 = vmatprep.subr.bf16.mxu1 %v2794_v40  ;;  %v2812_v55 = vpack.c.bf16 %v463_v48, %v461_v46  ;;  %v3260_v40 = vpack.c.bf16 %v911_v50, %v909_v49  ;;  %v3262_v62 = vpack.c.bf16 %v916_v54, %v914_v53  ;;  %v481_v48 = vld [vmem:[%s4033_s21 + $0x5e0] sm:$0xff]  ;;  %v483_v49 = vld [vmem:[%s4033_s21 + $0x5f0] sm:$0xff]  ;;  %v488_v53 = vld [vmem:[%s4033_s21 + $0x618] sm:$0xff] }
 0x108   : > { %3243 = vmatprep.subr.bf16.mxu0 %v3242_v60  ;;  %v913_v60 = vld [vmem:[%s4033_s21 + $0x1360] sm:$0xff]  ;;  %v2830_v46 = vpack.c.bf16 %v484_v39, %v482_v38  ;;  %v1213_v54 = vcombine.high %v4366_v56, %v4366_v56  ;;  %v499_v38 = vld [vmem:[%s4033_s21 + $0x670] sm:$0xff] }
 0x109   : > { %v945_v39 = vld [vmem:[%s4033_s21 + $0x1460] sm:$0xff] }
 0x10a   : > { %2797 = vmatpush1.bf16.msra.mxu1 %v2796_v30  ;;  %v920_v30 = vld [vmem:[%s4033_s21 + $0x1398] sm:$0xff] }
 0x10b   : > { %3245 = vmatpush1.bf16.msra.mxu0 %v3244_v4  ;;  %2799 = vmatprep.subr.bf16.mxu1 %v2798_v5  ;;  %v2816_v4 = vpack.c.bf16 %v467_v59, %v465_v58  ;;  %v3264_v5 = vpack.c.bf16 %v915_v0, %v913_v60  ;;  %v3266_v47 = vpack.c.bf16 %v920_v30, %v918_v3  ;;  %v4498_v58 = vld [vmem:[%s4047_s14 + $0x28] sm:$0xff]  ;;  %v487_v0 = vld [vmem:[%s4033_s21 + $0x610] sm:$0xff]  ;;  %v492_v30 = vld [vmem:[%s4033_s21 + $0x638] sm:$0xff] }
 0x10c   : > { %3247 = vmatprep.subr.bf16.mxu0 %v3246_v9  ;;  %v917_v9 = vld [vmem:[%s4033_s21 + $0x1380] sm:$0xff]  ;;  %v2834_v60 = vpack.c.bf16 %v488_v53, %v486_v26  ;;  %v490_v3 = vld [vmem:[%s4033_s21 + $0x628] sm:$0xff]  ;;  %v503_v26 = vld [vmem:[%s4033_s21 + $0x690] sm:$0xff] }
 0x10d   : > { %v949_v53 = vld [vmem:[%s4033_s21 + $0x1480] sm:$0xff] }
 0x10e   : > { %2801 = vmatpush1.bf16.msra.mxu1 %v2800_v15  ;;  %v924_v15 = vld [vmem:[%s4033_s21 + $0x13b8] sm:$0xff] }
 0x10f   : > { %3249 = vmatpush1.bf16.msra.mxu0 %v3248_v16  ;;  %2803 = vmatprep.subr.bf16.mxu1 %v2802_v17  ;;  %v2820_v16 = vpack.c.bf16 %v471_v8, %v469_v7  ;;  %v3268_v17 = vpack.c.bf16 %v919_v10, %v917_v9  ;;  %v3270_v22 = vpack.c.bf16 %v924_v15, %v922_v14  ;;  %v489_v10 = vld [vmem:[%s4033_s21 + $0x620] sm:$0xff]  ;;  %v939_v15 = vld [vmem:[%s4033_s21 + $0x1430] sm:$0xff] }
 0x110   : > { %3251 = vmatprep.subr.bf16.mxu0 %v3250_v21  ;;  %v921_v21 = vld [vmem:[%s4033_s21 + $0x13a0] sm:$0xff]  ;;  %v4513_v7 = vrot.slane %v4498_v58, %v4146_v12  ;;  %v3284_v9 = vpack.c.bf16 %v935_v2, %v933_v1  ;;  %v507_v2 = vld [vmem:[%s4033_s21 + $0x6b0] sm:$0xff] }
 0x112   : > { %2805 = vmatpush1.bf16.msra.mxu1 %v2804_v28  ;;  %v928_v28 = vld [vmem:[%s4033_s21 + $0x13d8] sm:$0xff] }
 0x113   : > { %3253 = vmatpush1.bf16.msra.mxu0 %v3252_v29  ;;  %2807 = vmatprep.subr.bf16.mxu1 %v2806_v31  ;;  %v2824_v29 = vpack.c.bf16 %v475_v20, %v473_v19  ;;  %v3272_v31 = vpack.c.bf16 %v923_v24, %v921_v21  ;;  %v3274_v36 = vpack.c.bf16 %v928_v28, %v926_v27  ;;  %v942_v19 = vld [vmem:[%s4033_s21 + $0x1448] sm:$0xff]  ;;  %v944_v20 = vld [vmem:[%s4033_s21 + $0x1458] sm:$0xff]  ;;  %v941_v27 = vld [vmem:[%s4033_s21 + $0x1440] sm:$0xff] }
 0x114   : > { %3255 = vmatprep.subr.bf16.mxu0 %v3254_v35  ;;  %v925_v35 = vld [vmem:[%s4033_s21 + $0x13c0] sm:$0xff]  ;;  %v1296_v21 = vcombine.high %v4513_v7, %v4513_v7  ;;  %v3288_v24 = vpack.c.bf16 %v939_v15, %v937_v13  ;;  %v3290_v28 = vpack.c.bf16 %v944_v20, %v942_v19  ;;  %v511_v15 = vld [vmem:[%s4033_s21 + $0x6d0] sm:$0xff]  ;;  %v514_v19 = vld [vmem:[%s4033_s21 + $0x6e8] sm:$0xff] }
 0x115   : > { %v516_v20 = vld [vmem:[%s4033_s21 + $0x6f8] sm:$0xff] }
 0x116   : > { %2809 = vmatpush1.bf16.msra.mxu1 %v2808_v42  ;;  %v932_v42 = vld [vmem:[%s4033_s21 + $0x13f8] sm:$0xff] }
 0x117   : > { %3257 = vmatpush1.bf16.msra.mxu0 %v3256_v43  ;;  %2811 = vmatprep.subr.bf16.mxu1 %v2810_v45  ;;  %v2828_v43 = vpack.c.bf16 %v479_v34, %v477_v33  ;;  %v3276_v45 = vpack.c.bf16 %v927_v37, %v925_v35  ;;  %v3278_v50 = vpack.c.bf16 %v932_v42, %v930_v41  ;;  %v948_v33 = vld [vmem:[%s4033_s21 + $0x1478] sm:$0xff]  ;;  %v497_v37 = vld [vmem:[%s4033_s21 + $0x660] sm:$0xff]  ;;  %v947_v42 = vld [vmem:[%s4033_s21 + $0x1470] sm:$0xff] }
 0x118   : > { %3259 = vmatprep.subr.bf16.mxu0 %v3258_v44  ;;  %v929_v44 = vld [vmem:[%s4033_s21 + $0x13e0] sm:$0xff] }
 0x119   : > { %v3280_v59 = vpack.c.bf16 %v931_v52, %v929_v44  ;;  %v3296_v44 = vpack.c.bf16 %v947_v42, %v945_v39  ;;  %v501_v52 = vld [vmem:[%s4033_s21 + $0x680] sm:$0xff]  ;;  %v519_v39 = vld [vmem:[%s4033_s21 + $0x710] sm:$0xff] }
 0x11a   : > { %2813 = vmatpush1.bf16.msra.mxu1 %v2812_v55  ;;  %v934_v55 = vld [vmem:[%s4033_s21 + $0x1408] sm:$0xff] }
 0x11b   : > { %3261 = vmatpush1.bf16.msra.mxu0 %v3260_v40  ;;  %2815 = vmatprep.subr.bf16.mxu1 %v2814_v57  ;;  %v936_v40 = vld [vmem:[%s4033_s21 + $0x1418] sm:$0xff]  ;;  %v2832_v57 = vpack.c.bf16 %v483_v49, %v481_v48  ;;  %v2848_v49 = vpack.c.bf16 %v499_v38, %v497_v37  ;;  %v517_v38 = vld [vmem:[%s4033_s21 + $0x700] sm:$0xff] }
 0x11c   : > { %3263 = vmatprep.subr.bf16.mxu0 %v3262_v62  ;;  %v485_v62 = vld [vmem:[%s4033_s21 + $0x600] sm:$0xff]  ;;  %v3282_v56 = vpack.c.bf16 %v936_v40, %v934_v55  ;;  %v952_v48 = vld [vmem:[%s4033_s21 + $0x1498] sm:$0xff]  ;;  %v951_v55 = vld [vmem:[%s4033_s21 + $0x1490] sm:$0xff] }
 0x11d   : > { %v2836_v8 = vpack.c.bf16 %v487_v0, %v485_v62  ;;  %v506_v40 = vld [vmem:[%s4033_s21 + $0x6a8] sm:$0xff]  ;;  %v2852_v62 = vpack.c.bf16 %v503_v26, %v501_v52  ;;  %v3300_v0 = vpack.c.bf16 %v951_v55, %v949_v53  ;;  %v521_v26 = vld [vmem:[%s4033_s21 + $0x720] sm:$0xff]  ;;  %v523_v53 = vld [vmem:[%s4033_s21 + $0x730] sm:$0xff] }
 0x11e   : > { %2817 = vmatpush1.bf16.msra.mxu1 %v2816_v4  ;;  %v4507_v4 = vrot.slane %v1213_v54, %v4146_v12 }
 0x11f   : > { %3265 = vmatpush1.bf16.msra.mxu0 %v3264_v5  ;;  %2819 = vmatprep.subr.bf16.mxu1 %v2818_v6  ;;  %v938_v5 = vld [vmem:[%s4033_s21 + $0x1428] sm:$0xff]  ;;  %v940_v6 = vld [vmem:[%s4033_s21 + $0x1438] sm:$0xff] }
 0x120   : > { %3267 = vmatprep.subr.bf16.mxu0 %v3266_v47  ;;  %v2838_v47 = vpack.c.bf16 %v492_v30, %v490_v3  ;;  %v3286_v14 = vpack.c.bf16 %v940_v6, %v938_v5  ;;  %v953_v3 = vld [vmem:[%s4033_s21 + $0x14a0] sm:$0xff]  ;;  %v955_v5 = vld [vmem:[%s4033_s21 + $0x14b0] sm:$0xff]  ;;  %v510_v6 = vld [vmem:[%s4033_s21 + $0x6c8] sm:$0xff] }
 0x122   : > { %2821 = vmatpush1.bf16.msra.mxu1 %v2820_v16  ;;  %v494_v16 = vld [vmem:[%s4033_s21 + $0x648] sm:$0xff] }
 0x123   : > { %3269 = vmatpush1.bf16.msra.mxu0 %v3268_v17  ;;  %2823 = vmatprep.subr.bf16.mxu1 %v2822_v18  ;;  %v496_v17 = vld [vmem:[%s4033_s21 + $0x658] sm:$0xff]  ;;  %v1229_v18 = vcombine.high %v4507_v4, %v4507_v4 }
 0x124   : > { %3271 = vmatprep.subr.bf16.mxu0 %v3270_v22  ;;  %v2840_v22 = vpack.c.bf16 %v491_v11, %v489_v10  ;;  %v2842_v25 = vpack.c.bf16 %v496_v17, %v494_v16  ;;  %v3304_v11 = vpack.c.bf16 %v955_v5, %v953_v3  ;;  %v957_v16 = vld [vmem:[%s4033_s21 + $0x14c0] sm:$0xff]  ;;  %v527_v3 = vld [vmem:[%s4033_s21 + $0x750] sm:$0xff] }
 0x126   : > { %2825 = vmatpush1.bf16.msra.mxu1 %v2824_v29  ;;  %v943_v29 = vld [vmem:[%s4033_s21 + $0x1450] sm:$0xff] }
 0x127   : > { %3273 = vmatpush1.bf16.msra.mxu0 %v3272_v31  ;;  %2827 = vmatprep.subr.bf16.mxu1 %v2826_v32  ;;  %v498_v31 = vld [vmem:[%s4033_s21 + $0x668] sm:$0xff]  ;;  %v500_v32 = vld [vmem:[%s4033_s21 + $0x678] sm:$0xff]  ;;  %v3292_v35 = vpack.c.bf16 %v943_v29, %v941_v27  ;;  %v515_v27 = vld [vmem:[%s4033_s21 + $0x6f0] sm:$0xff] }
 0x128   : > { %3275 = vmatprep.subr.bf16.mxu0 %v3274_v36  ;;  %v2846_v36 = vpack.c.bf16 %v500_v32, %v498_v31  ;;  %v963_v31 = vld [vmem:[%s4033_s21 + $0x14f0] sm:$0xff]  ;;  %v518_v32 = vld [vmem:[%s4033_s21 + $0x708] sm:$0xff] }
 0x12a   : > { %2829 = vmatpush1.bf16.msra.mxu1 %v2828_v43  ;;  %v502_v43 = vld [vmem:[%s4033_s21 + $0x688] sm:$0xff] }
 0x12b   : > { %3277 = vmatpush1.bf16.msra.mxu0 %v3276_v45  ;;  %2831 = vmatprep.subr.bf16.mxu1 %v2830_v46  ;;  %v504_v45 = vld [vmem:[%s4033_s21 + $0x698] sm:$0xff]  ;;  %v950_v46 = vld [vmem:[%s4033_s21 + $0x1488] sm:$0xff] }
 0x12c   : > { %3279 = vmatprep.subr.bf16.mxu0 %v3278_v50  ;;  %v2850_v50 = vpack.c.bf16 %v504_v45, %v502_v43  ;;  %v3298_v54 = vpack.c.bf16 %v952_v48, %v950_v46  ;;  %v967_v43 = vld [vmem:[%s4033_s21 + $0x1510] sm:$0xff]  ;;  %v522_v45 = vld [vmem:[%s4033_s21 + $0x728] sm:$0xff]  ;;  %v524_v46 = vld [vmem:[%s4033_s21 + $0x738] sm:$0xff] }
 0x12d   : > { %v970_v48 = vld [vmem:[%s4033_s21 + $0x1528] sm:$0xff]  ;;  %v2870_v52 = vpack.c.bf16 %v524_v46, %v522_v45  ;;  %v987_v45 = vld [vmem:[%s4033_s21 + $0x15b0] sm:$0xff] }
 0x12e   : > { %2833 = vmatpush1.bf16.msra.mxu1 %v2832_v57  ;;  %v508_v57 = vld [vmem:[%s4033_s21 + $0x6b8] sm:$0xff]  ;;  %v542_v46 = vld [vmem:[%s4033_s21 + $0x7c8] sm:$0xff] }
 0x12f   : > { %3281 = vmatpush1.bf16.msra.mxu0 %v3280_v59  ;;  %2835 = vmatprep.subr.bf16.mxu1 %v2834_v60  ;;  %v954_v59 = vld [vmem:[%s4033_s21 + $0x14a8] sm:$0xff]  ;;  %v956_v60 = vld [vmem:[%s4033_s21 + $0x14b8] sm:$0xff]  ;;  %v2854_v1 = vpack.c.bf16 %v508_v57, %v506_v40  ;;  %v971_v40 = vld [vmem:[%s4033_s21 + $0x1530] sm:$0xff] }
 0x130   : > { %3283 = vmatprep.subr.bf16.mxu0 %v3282_v56  ;;  %v505_v56 = vld [vmem:[%s4033_s21 + $0x6a0] sm:$0xff]  ;;  %v3302_v30 = vpack.c.bf16 %v956_v60, %v954_v59  ;;  %v526_v57 = vld [vmem:[%s4033_s21 + $0x748] sm:$0xff]  ;;  %v528_v59 = vld [vmem:[%s4033_s21 + $0x758] sm:$0xff] }
 0x131   : > { %1550 = vmatmul.mubr.f32.vlgmr.msra.gmra.mrb[0].mxu1 %v4373_v61  ;;  %v495_v61 = vld [vmem:[%s4033_s21 + $0x650] sm:$0xff]  ;;  %v2856_v10 = vpack.c.bf16 %v507_v2, %v505_v56  ;;  %v974_v60 = vld [vmem:[%s4033_s21 + $0x1548] sm:$0xff]  ;;  %v2874_v56 = vpack.c.bf16 %v528_v59, %v526_v57  ;;  %v525_v2 = vld [vmem:[%s4033_s21 + $0x740] sm:$0xff] }
 0x132   : > { %2837 = vmatpush1.bf16.msra.mxu1 %v2836_v8  ;;  %2047 = vmatmul.mubr.f32.vlgmr.msra.gmra.mrb[0].mxu0 %v4360_v51  ;;  %v946_v51 = vld [vmem:[%s4033_s21 + $0x1468] sm:$0xff]  ;;  %v2844_v34 = vpack.c.bf16 %v495_v61, %v493_v23  ;;  %v512_v8 = vld [vmem:[%s4033_s21 + $0x6d8] sm:$0xff]  ;;  %v2862_v23 = vpack.c.bf16 %v516_v20, %v514_v19  ;;  %v513_v61 = vld [vmem:[%s4033_s21 + $0x6e0] sm:$0xff] }
 0x133   : > { %3285 = vmatpush1.bf16.msra.mxu0 %v3284_v9  ;;  %2839 = vmatprep.subr.bf16.mxu1 %v2838_v47  ;;  %v3294_v41 = vpack.c.bf16 %v948_v33, %v946_v51  ;;  %v958_v9 = vld [vmem:[%s4033_s21 + $0x14c8] sm:$0xff]  ;;  %v960_v47 = vld [vmem:[%s4033_s21 + $0x14d8] sm:$0xff]  ;;  %v2858_v13 = vpack.c.bf16 %v512_v8, %v510_v6  ;;  %v975_v6 = vld [vmem:[%s4033_s21 + $0x1550] sm:$0xff] }
 0x134   : > { %3287 = vmatprep.subr.bf16.mxu0 %v3286_v14  ;;  %1620 = vmatprep.mubr.f32.mxu1 %v1229_v18  ;;  %v509_v14 = vld [vmem:[%s4033_s21 + $0x6c0] sm:$0xff]  ;;  %v3306_v17 = vpack.c.bf16 %v960_v47, %v958_v9  ;;  %v959_v18 = vld [vmem:[%s4033_s21 + $0x14d0] sm:$0xff]  ;;  %v520_v51 = vld [vmem:[%s4033_s21 + $0x718] sm:$0xff] }
 0x135   : > { %2117 = vmatprep.mubr.f32.mxu0 %v1296_v21  ;;  %v962_v21 = vld [vmem:[%s4033_s21 + $0x14e8] sm:$0xff]  ;;  %v2866_v37 = vpack.c.bf16 %v520_v51, %v518_v32  ;;  %v532_v9 = vld [vmem:[%s4033_s21 + $0x778] sm:$0xff]  ;;  %v979_v19 = vld [vmem:[%s4033_s21 + $0x1570] sm:$0xff] }
 0x136   : > { %2841 = vmatpush1.bf16.msra.mxu1 %v2840_v22  ;;  %v964_v22 = vld [vmem:[%s4033_s21 + $0x14f8] sm:$0xff]  ;;  %v966_v33 = vld [vmem:[%s4033_s21 + $0x1508] sm:$0xff]  ;;  %v983_v32 = vld [vmem:[%s4033_s21 + $0x1590] sm:$0xff] }
 0x137   : > { %3289 = vmatpush1.bf16.msra.mxu0 %v3288_v24  ;;  %2843 = vmatprep.subr.bf16.mxu1 %v2842_v25  ;;  %v2860_v24 = vpack.c.bf16 %v511_v15, %v509_v14  ;;  %v3308_v25 = vpack.c.bf16 %v959_v18, %v957_v16  ;;  %v3310_v29 = vpack.c.bf16 %v964_v22, %v962_v21  ;;  %v530_v8 = vld [vmem:[%s4033_s21 + $0x768] sm:$0xff]  ;;  %v529_v15 = vld [vmem:[%s4033_s21 + $0x760] sm:$0xff]  ;;  %v531_v16 = vld [vmem:[%s4033_s21 + $0x770] sm:$0xff] }
 0x138   : > { %3291 = vmatprep.subr.bf16.mxu0 %v3290_v28  ;;  %v961_v28 = vld [vmem:[%s4033_s21 + $0x14e0] sm:$0xff]  ;;  %v978_v47 = vld [vmem:[%s4033_s21 + $0x1568] sm:$0xff]  ;;  %v2878_v14 = vpack.c.bf16 %v532_v9, %v530_v8  ;;  %v536_v21 = vld [vmem:[%s4033_s21 + $0x798] sm:$0xff] }
 0x139   : > { %v534_v20 = vld [vmem:[%s4033_s21 + $0x788] sm:$0xff]  ;;  %v991_v57 = vld [vmem:[%s4033_s21 + $0x15d0] sm:$0xff] }
 0x13a   : > { %2845 = vmatpush1.bf16.msra.mxu1 %v2844_v34  ;;  %v968_v34 = vld [vmem:[%s4033_s21 + $0x1518] sm:$0xff]  ;;  %v982_v22 = vld [vmem:[%s4033_s21 + $0x1588] sm:$0xff]  ;;  %v995_v8 = vld [vmem:[%s4033_s21 + $0x15f0] sm:$0xff] }
 0x13b   : > { %3293 = vmatpush1.bf16.msra.mxu0 %v3292_v35  ;;  %2847 = vmatprep.subr.bf16.mxu1 %v2846_v36  ;;  %v2864_v35 = vpack.c.bf16 %v515_v27, %v513_v61  ;;  %v3312_v36 = vpack.c.bf16 %v963_v31, %v961_v28  ;;  %v3314_v42 = vpack.c.bf16 %v968_v34, %v966_v33  ;;  %v533_v27 = vld [vmem:[%s4033_s21 + $0x780] sm:$0xff]  ;;  %v535_v28 = vld [vmem:[%s4033_s21 + $0x790] sm:$0xff]  ;;  %v538_v51 = vld [vmem:[%s4033_s21 + $0x7a8] sm:$0xff] }
 0x13c   : > { %3295 = vmatprep.subr.bf16.mxu0 %v3294_v41  ;;  %v965_v41 = vld [vmem:[%s4033_s21 + $0x1500] sm:$0xff]  ;;  %v2882_v61 = vpack.c.bf16 %v536_v21, %v534_v20  ;;  %v540_v33 = vld [vmem:[%s4033_s21 + $0x7b8] sm:$0xff]  ;;  %v986_v34 = vld [vmem:[%s4033_s21 + $0x15a8] sm:$0xff] }
 0x13d   : > { %v546_v59 = vld [vmem:[%s4033_s21 + $0x7e8] sm:$0xff]  ;;  %v997_v20 = vld [vmem:[%s4033_s21 + $0x1600] sm:$0xff] }
 0x13e   : > { %2849 = vmatpush1.bf16.msra.mxu1 %v2848_v49  ;;  %v972_v49 = vld [vmem:[%s4033_s21 + $0x1538] sm:$0xff]  ;;  %v550_v9 = vld [vmem:[%s4033_s21 + $0x808] sm:$0xff] }
 0x13f   : > { %3297 = vmatpush1.bf16.msra.mxu0 %v3296_v44  ;;  %2851 = vmatprep.subr.bf16.mxu1 %v2850_v50  ;;  %v2868_v44 = vpack.c.bf16 %v519_v39, %v517_v38  ;;  %v3316_v50 = vpack.c.bf16 %v967_v43, %v965_v41  ;;  %v3318_v55 = vpack.c.bf16 %v972_v49, %v970_v48  ;;  %v537_v39 = vld [vmem:[%s4033_s21 + $0x7a0] sm:$0xff]  ;;  %v539_v41 = vld [vmem:[%s4033_s21 + $0x7b0] sm:$0xff]  ;;  %v544_v48 = vld [vmem:[%s4033_s21 + $0x7d8] sm:$0xff] }
 0x140   : > { %3299 = vmatprep.subr.bf16.mxu0 %v3298_v54  ;;  %v969_v54 = vld [vmem:[%s4033_s21 + $0x1520] sm:$0xff]  ;;  %v2886_v38 = vpack.c.bf16 %v540_v33, %v538_v51  ;;  %v990_v49 = vld [vmem:[%s4033_s21 + $0x15c8] sm:$0xff]  ;;  %v555_v51 = vld [vmem:[%s4033_s21 + $0x830] sm:$0xff] }
 0x141   : > { %v1001_v33 = vld [vmem:[%s4033_s21 + $0x1620] sm:$0xff] }
 0x142   : > { %2853 = vmatpush1.bf16.msra.mxu1 %v2852_v62  ;;  %v976_v62 = vld [vmem:[%s4033_s21 + $0x1558] sm:$0xff] }
 0x143   : > { %3301 = vmatpush1.bf16.msra.mxu0 %v3300_v0  ;;  %2855 = vmatprep.subr.bf16.mxu1 %v2854_v1  ;;  %v2872_v0 = vpack.c.bf16 %v523_v53, %v521_v26  ;;  %v3320_v1 = vpack.c.bf16 %v971_v40, %v969_v54  ;;  %v3322_v5 = vpack.c.bf16 %v976_v62, %v974_v60  ;;  %v541_v53 = vld [vmem:[%s4033_s21 + $0x7c0] sm:$0xff]  ;;  %v543_v54 = vld [vmem:[%s4033_s21 + $0x7d0] sm:$0xff]  ;;  %v548_v60 = vld [vmem:[%s4033_s21 + $0x7f8] sm:$0xff] }
 0x144   : > { %3303 = vmatprep.subr.bf16.mxu0 %v3302_v30  ;;  %v973_v30 = vld [vmem:[%s4033_s21 + $0x1540] sm:$0xff]  ;;  %v2890_v26 = vpack.c.bf16 %v544_v48, %v542_v46  ;;  %v994_v62 = vld [vmem:[%s4033_s21 + $0x15e8] sm:$0xff] }
 0x145   : > { %v557_v48 = vld [vmem:[%s4033_s21 + $0x840] sm:$0xff] }
 0x146   : > { %2857 = vmatpush1.bf16.msra.mxu1 %v2856_v10  ;;  %v980_v10 = vld [vmem:[%s4033_s21 + $0x1578] sm:$0xff] }
 0x147   : > { %3305 = vmatpush1.bf16.msra.mxu0 %v3304_v11  ;;  %2859 = vmatprep.subr.bf16.mxu1 %v2858_v13  ;;  %v2876_v11 = vpack.c.bf16 %v527_v3, %v525_v2  ;;  %v3324_v13 = vpack.c.bf16 %v975_v6, %v973_v30  ;;  %v3326_v18 = vpack.c.bf16 %v980_v10, %v978_v47  ;;  %v545_v3 = vld [vmem:[%s4033_s21 + $0x7e0] sm:$0xff]  ;;  %v547_v30 = vld [vmem:[%s4033_s21 + $0x7f0] sm:$0xff]  ;;  %v552_v47 = vld [vmem:[%s4033_s21 + $0x818] sm:$0xff] }
 0x148   : > { %3307 = vmatprep.subr.bf16.mxu0 %v3306_v17  ;;  %v977_v17 = vld [vmem:[%s4033_s21 + $0x1560] sm:$0xff]  ;;  %v2894_v2 = vpack.c.bf16 %v548_v60, %v546_v59  ;;  %v998_v10 = vld [vmem:[%s4033_s21 + $0x1608] sm:$0xff]  ;;  %v563_v59 = vld [vmem:[%s4033_s21 + $0x870] sm:$0xff] }
 0x149   : > { %v1009_v60 = vld [vmem:[%s4033_s21 + $0x1660] sm:$0xff] }
 0x14a   : > { %2861 = vmatpush1.bf16.msra.mxu1 %v2860_v24  ;;  %v984_v24 = vld [vmem:[%s4033_s21 + $0x1598] sm:$0xff] }
 0x14b   : > { %3309 = vmatpush1.bf16.msra.mxu0 %v3308_v25  ;;  %2863 = vmatprep.subr.bf16.mxu1 %v2862_v23  ;;  %v2880_v25 = vpack.c.bf16 %v531_v16, %v529_v15  ;;  %v3328_v23 = vpack.c.bf16 %v979_v19, %v977_v17  ;;  %v3330_v31 = vpack.c.bf16 %v984_v24, %v982_v22  ;;  %v551_v19 = vld [vmem:[%s4033_s21 + $0x810] sm:$0xff]  ;;  %v554_v24 = vld [vmem:[%s4033_s21 + $0x828] sm:$0xff] }
 0x14c   : > { %3311 = vmatprep.subr.bf16.mxu0 %v3310_v29  ;;  %v981_v29 = vld [vmem:[%s4033_s21 + $0x1580] sm:$0xff]  ;;  %v2896_v15 = vpack.c.bf16 %v547_v30, %v545_v3  ;;  %v2898_v17 = vpack.c.bf16 %v552_v47, %v550_v9  ;;  %v999_v22 = vld [vmem:[%s4033_s21 + $0x1610] sm:$0xff]  ;;  %v1016_v3 = vld [vmem:[%s4033_s21 + $0x1698] sm:$0xff] }
 0x14d   : > { %v567_v9 = vld [vmem:[%s4033_s21 + $0x890] sm:$0xff]  ;;  %v1013_v47 = vld [vmem:[%s4033_s21 + $0x1680] sm:$0xff] }
 0x14e   : > { %2865 = vmatpush1.bf16.msra.mxu1 %v2864_v35  ;;  %v988_v35 = vld [vmem:[%s4033_s21 + $0x15b8] sm:$0xff] }
 0x14f   : > { %3313 = vmatpush1.bf16.msra.mxu0 %v3312_v36  ;;  %2867 = vmatprep.subr.bf16.mxu1 %v2866_v37  ;;  %v2884_v36 = vpack.c.bf16 %v535_v28, %v533_v27  ;;  %v3332_v37 = vpack.c.bf16 %v983_v32, %v981_v29  ;;  %v3334_v43 = vpack.c.bf16 %v988_v35, %v986_v34  ;;  %v553_v32 = vld [vmem:[%s4033_s21 + $0x820] sm:$0xff]  ;;  %v1003_v35 = vld [vmem:[%s4033_s21 + $0x1630] sm:$0xff] }
 0x150   : > { %3315 = vmatprep.subr.bf16.mxu0 %v3314_v42  ;;  %v985_v42 = vld [vmem:[%s4033_s21 + $0x15a0] sm:$0xff]  ;;  %v3348_v29 = vpack.c.bf16 %v999_v22, %v997_v20  ;;  %v571_v22 = vld [vmem:[%s4033_s21 + $0x8b0] sm:$0xff] }
 0x152   : > { %2869 = vmatpush1.bf16.msra.mxu1 %v2868_v44  ;;  %v992_v44 = vld [vmem:[%s4033_s21 + $0x15d8] sm:$0xff] }
 0x153   : > { %3317 = vmatpush1.bf16.msra.mxu0 %v3316_v50  ;;  %2871 = vmatprep.subr.bf16.mxu1 %v2870_v52  ;;  %v2888_v50 = vpack.c.bf16 %v539_v41, %v537_v39  ;;  %v3336_v52 = vpack.c.bf16 %v987_v45, %v985_v42  ;;  %v3338_v40 = vpack.c.bf16 %v992_v44, %v990_v49  ;;  %v1006_v39 = vld [vmem:[%s4033_s21 + $0x1648] sm:$0xff]  ;;  %v1008_v41 = vld [vmem:[%s4033_s21 + $0x1658] sm:$0xff]  ;;  %v1005_v49 = vld [vmem:[%s4033_s21 + $0x1640] sm:$0xff] }
 0x154   : > { %3319 = vmatprep.subr.bf16.mxu0 %v3318_v55  ;;  %v989_v55 = vld [vmem:[%s4033_s21 + $0x15c0] sm:$0xff]  ;;  %v3352_v45 = vpack.c.bf16 %v1003_v35, %v1001_v33  ;;  %v3354_v44 = vpack.c.bf16 %v1008_v41, %v1006_v39  ;;  %v575_v35 = vld [vmem:[%s4033_s21 + $0x8d0] sm:$0xff]  ;;  %v578_v39 = vld [vmem:[%s4033_s21 + $0x8e8] sm:$0xff] }
 0x155   : > { %v580_v41 = vld [vmem:[%s4033_s21 + $0x8f8] sm:$0xff] }
 0x156   : > { %2873 = vmatpush1.bf16.msra.mxu1 %v2872_v0  ;;  %v996_v0 = vld [vmem:[%s4033_s21 + $0x15f8] sm:$0xff] }
 0x157   : > { %3321 = vmatpush1.bf16.msra.mxu0 %v3320_v1  ;;  %2875 = vmatprep.subr.bf16.mxu1 %v2874_v56  ;;  %v2892_v1 = vpack.c.bf16 %v543_v54, %v541_v53  ;;  %v3340_v56 = vpack.c.bf16 %v991_v57, %v989_v55  ;;  %v3342_v6 = vpack.c.bf16 %v996_v0, %v994_v62  ;;  %v1012_v53 = vld [vmem:[%s4033_s21 + $0x1678] sm:$0xff]  ;;  %v561_v57 = vld [vmem:[%s4033_s21 + $0x860] sm:$0xff]  ;;  %v1011_v0 = vld [vmem:[%s4033_s21 + $0x1670] sm:$0xff] }
 0x158   : > { %3323 = vmatprep.subr.bf16.mxu0 %v3322_v5  ;;  %v993_v5 = vld [vmem:[%s4033_s21 + $0x15e0] sm:$0xff]  ;;  %v2912_v30 = vpack.c.bf16 %v563_v59, %v561_v57 }
 0x159   : > { %v3344_v16 = vpack.c.bf16 %v995_v8, %v993_v5  ;;  %v3360_v5 = vpack.c.bf16 %v1011_v0, %v1009_v60  ;;  %v565_v8 = vld [vmem:[%s4033_s21 + $0x880] sm:$0xff]  ;;  %v583_v60 = vld [vmem:[%s4033_s21 + $0x910] sm:$0xff] }
 0x15a   : > { %2877 = vmatpush1.bf16.msra.mxu1 %v2876_v11  ;;  %v1000_v11 = vld [vmem:[%s4033_s21 + $0x1618] sm:$0xff]  ;;  %v581_v59 = vld [vmem:[%s4033_s21 + $0x900] sm:$0xff] }
 0x15b   : > { %3325 = vmatpush1.bf16.msra.mxu0 %v3324_v13  ;;  %2879 = vmatprep.subr.bf16.mxu1 %v2878_v14  ;;  %v4642_v13 = vld [vmem:[%s4047_s14 + $0x10] sm:$0xff]  ;;  %v1281_v14 = vcombine.high %v4498_v58, %v4498_v58  ;;  %v3346_v21 = vpack.c.bf16 %v1000_v11, %v998_v10 }
 0x15c   : > { %3327 = vmatprep.subr.bf16.mxu0 %v3326_v18  ;;  %v549_v18 = vld [vmem:[%s4033_s21 + $0x800] sm:$0xff]  ;;  %v4654_v58 = vrot.slane %v4642_v13, %v4146_v12  ;;  %v1015_v11 = vld [vmem:[%s4033_s21 + $0x1690] sm:$0xff] }
 0x15d   : > { %v4659_v27 = vrot.slane %v1281_v14, %v4146_v12  ;;  %v2900_v28 = vpack.c.bf16 %v551_v19, %v549_v18  ;;  %v570_v14 = vld [vmem:[%s4033_s21 + $0x8a8] sm:$0xff]  ;;  %v2916_v18 = vpack.c.bf16 %v567_v9, %v565_v8  ;;  %v3364_v19 = vpack.c.bf16 %v1015_v11, %v1013_v47  ;;  %v585_v9 = vld [vmem:[%s4033_s21 + $0x920] sm:$0xff]  ;;  %v587_v47 = vld [vmem:[%s4033_s21 + $0x930] sm:$0xff] }
 0x15e   : > { %2881 = vmatpush1.bf16.msra.mxu1 %v2880_v25  ;;  %v556_v25 = vld [vmem:[%s4033_s21 + $0x838] sm:$0xff] }
 0x15f   : > { %3329 = vmatpush1.bf16.msra.mxu0 %v3328_v23  ;;  %2883 = vmatprep.subr.bf16.mxu1 %v2882_v61  ;;  %v1002_v23 = vld [vmem:[%s4033_s21 + $0x1628] sm:$0xff]  ;;  %v1004_v61 = vld [vmem:[%s4033_s21 + $0x1638] sm:$0xff]  ;;  %v1297_v42 = vcombine.high %v4659_v27, %v4659_v27 }
 0x160   : > { %3331 = vmatprep.subr.bf16.mxu0 %v3330_v31  ;;  %v2902_v31 = vpack.c.bf16 %v556_v25, %v554_v24  ;;  %v3350_v34 = vpack.c.bf16 %v1004_v61, %v1002_v23  ;;  %v1017_v24 = vld [vmem:[%s4033_s21 + $0x16a0] sm:$0xff]  ;;  %v1019_v23 = vld [vmem:[%s4033_s21 + $0x16b0] sm:$0xff]  ;;  %v574_v61 = vld [vmem:[%s4033_s21 + $0x8c8] sm:$0xff] }
 0x162   : > { %2885 = vmatpush1.bf16.msra.mxu1 %v2884_v36  ;;  %v558_v36 = vld [vmem:[%s4033_s21 + $0x848] sm:$0xff] }
 0x163   : > { %3333 = vmatpush1.bf16.msra.mxu0 %v3332_v37  ;;  %2887 = vmatprep.subr.bf16.mxu1 %v2886_v38  ;;  %v560_v37 = vld [vmem:[%s4033_s21 + $0x858] sm:$0xff]  ;;  %v1245_v38 = vcombine.high %v4654_v58, %v4654_v58 }
 0x164   : > { %3335 = vmatprep.subr.bf16.mxu0 %v3334_v43  ;;  %v2904_v43 = vpack.c.bf16 %v555_v51, %v553_v32  ;;  %v2906_v46 = vpack.c.bf16 %v560_v37, %v558_v36  ;;  %v3368_v51 = vpack.c.bf16 %v1019_v23, %v1017_v24  ;;  %v1021_v36 = vld [vmem:[%s4033_s21 + $0x16c0] sm:$0xff]  ;;  %v591_v24 = vld [vmem:[%s4033_s21 + $0x950] sm:$0xff] }
 0x166   : > { %2889 = vmatpush1.bf16.msra.mxu1 %v2888_v50  ;;  %v1007_v50 = vld [vmem:[%s4033_s21 + $0x1650] sm:$0xff] }
 0x167   : > { %3337 = vmatpush1.bf16.msra.mxu0 %v3336_v52  ;;  %2891 = vmatprep.subr.bf16.mxu1 %v2890_v26  ;;  %v562_v52 = vld [vmem:[%s4033_s21 + $0x868] sm:$0xff]  ;;  %v564_v26 = vld [vmem:[%s4033_s21 + $0x878] sm:$0xff]  ;;  %v3356_v55 = vpack.c.bf16 %v1007_v50, %v1005_v49  ;;  %v579_v49 = vld [vmem:[%s4033_s21 + $0x8f0] sm:$0xff] }
 0x168   : > { %3339 = vmatprep.subr.bf16.mxu0 %v3338_v40  ;;  %v2910_v40 = vpack.c.bf16 %v564_v26, %v562_v52  ;;  %v1027_v52 = vld [vmem:[%s4033_s21 + $0x16f0] sm:$0xff]  ;;  %v582_v26 = vld [vmem:[%s4033_s21 + $0x908] sm:$0xff] }
 0x16a   : > { %2893 = vmatpush1.bf16.msra.mxu1 %v2892_v1  ;;  %v566_v1 = vld [vmem:[%s4033_s21 + $0x888] sm:$0xff] }
 0x16b   : > { %3341 = vmatpush1.bf16.msra.mxu0 %v3340_v56  ;;  %2895 = vmatprep.subr.bf16.mxu1 %v2894_v2  ;;  %v568_v56 = vld [vmem:[%s4033_s21 + $0x898] sm:$0xff]  ;;  %v1014_v2 = vld [vmem:[%s4033_s21 + $0x1688] sm:$0xff] }
 0x16c   : > { %3343 = vmatprep.subr.bf16.mxu0 %v3342_v6  ;;  %v2914_v6 = vpack.c.bf16 %v568_v56, %v566_v1  ;;  %v3362_v10 = vpack.c.bf16 %v1016_v3, %v1014_v2  ;;  %v1031_v1 = vld [vmem:[%s4033_s21 + $0x1710] sm:$0xff]  ;;  %v586_v56 = vld [vmem:[%s4033_s21 + $0x928] sm:$0xff]  ;;  %v588_v2 = vld [vmem:[%s4033_s21 + $0x938] sm:$0xff] }
 0x16d   : > { %v1034_v3 = vld [vmem:[%s4033_s21 + $0x1728] sm:$0xff]  ;;  %v2934_v8 = vpack.c.bf16 %v588_v2, %v586_v56  ;;  %v1051_v56 = vld [vmem:[%s4033_s21 + $0x17b0] sm:$0xff] }
 0x16e   : > { %2897 = vmatpush1.bf16.msra.mxu1 %v2896_v15  ;;  %v572_v15 = vld [vmem:[%s4033_s21 + $0x8b8] sm:$0xff]  ;;  %v606_v2 = vld [vmem:[%s4033_s21 + $0x9c8] sm:$0xff] }
 0x16f   : > { %3345 = vmatpush1.bf16.msra.mxu0 %v3344_v16  ;;  %2899 = vmatprep.subr.bf16.mxu1 %v2898_v17  ;;  %v1018_v16 = vld [vmem:[%s4033_s21 + $0x16a8] sm:$0xff]  ;;  %v1020_v17 = vld [vmem:[%s4033_s21 + $0x16b8] sm:$0xff]  ;;  %v2918_v20 = vpack.c.bf16 %v572_v15, %v570_v14  ;;  %v1035_v14 = vld [vmem:[%s4033_s21 + $0x1730] sm:$0xff] }
 0x170   : > { %3347 = vmatprep.subr.bf16.mxu0 %v3346_v21  ;;  %v569_v21 = vld [vmem:[%s4033_s21 + $0x8a0] sm:$0xff]  ;;  %v3366_v25 = vpack.c.bf16 %v1020_v17, %v1018_v16  ;;  %v590_v15 = vld [vmem:[%s4033_s21 + $0x948] sm:$0xff]  ;;  %v592_v16 = vld [vmem:[%s4033_s21 + $0x958] sm:$0xff] }
 0x171   : > { %1621 = vmatmul.mubr.f32.vlgmr.msra.gmra.mrb[0].mxu1 %v4507_v4  ;;  %v559_v4 = vld [vmem:[%s4033_s21 + $0x850] sm:$0xff]  ;;  %v2920_v32 = vpack.c.bf16 %v571_v22, %v569_v21  ;;  %v1038_v17 = vld [vmem:[%s4033_s21 + $0x1748] sm:$0xff]  ;;  %v2938_v21 = vpack.c.bf16 %v592_v16, %v590_v15  ;;  %v589_v22 = vld [vmem:[%s4033_s21 + $0x940] sm:$0xff] }
 0x172   : > { %2901 = vmatpush1.bf16.msra.mxu1 %v2900_v28  ;;  %2118 = vmatmul.mubr.f32.vlgmr.msra.gmra.mrb[0].mxu0 %v4513_v7  ;;  %v1010_v7 = vld [vmem:[%s4033_s21 + $0x1668] sm:$0xff]  ;;  %v2908_v54 = vpack.c.bf16 %v559_v4, %v557_v48  ;;  %v576_v28 = vld [vmem:[%s4033_s21 + $0x8d8] sm:$0xff]  ;;  %v2926_v48 = vpack.c.bf16 %v580_v41, %v578_v39  ;;  %v577_v4 = vld [vmem:[%s4033_s21 + $0x8e0] sm:$0xff] }
 0x173   : > { %3349 = vmatpush1.bf16.msra.mxu0 %v3348_v29  ;;  %2903 = vmatprep.subr.bf16.mxu1 %v2902_v31  ;;  %v3358_v62 = vpack.c.bf16 %v1012_v53, %v1010_v7  ;;  %v1022_v29 = vld [vmem:[%s4033_s21 + $0x16c8] sm:$0xff]  ;;  %v1024_v31 = vld [vmem:[%s4033_s21 + $0x16d8] sm:$0xff]  ;;  %v2922_v33 = vpack.c.bf16 %v576_v28, %v574_v61  ;;  %v1039_v61 = vld [vmem:[%s4033_s21 + $0x1750] sm:$0xff] }
 0x174   : > { %3351 = vmatprep.subr.bf16.mxu0 %v3350_v34  ;;  %1691 = vmatprep.mubr.f32.mxu1 %v1245_v38  ;;  %v573_v34 = vld [vmem:[%s4033_s21 + $0x8c0] sm:$0xff]  ;;  %v3370_v37 = vpack.c.bf16 %v1024_v31, %v1022_v29  ;;  %v1023_v38 = vld [vmem:[%s4033_s21 + $0x16d0] sm:$0xff]  ;;  %v584_v7 = vld [vmem:[%s4033_s21 + $0x918] sm:$0xff] }
 0x175   : > { %2188 = vmatprep.mubr.f32.mxu0 %v1297_v42  ;;  %v1026_v42 = vld [vmem:[%s4033_s21 + $0x16e8] sm:$0xff]  ;;  %v2930_v57 = vpack.c.bf16 %v584_v7, %v582_v26  ;;  %v596_v29 = vld [vmem:[%s4033_s21 + $0x978] sm:$0xff]  ;;  %v1043_v39 = vld [vmem:[%s4033_s21 + $0x1770] sm:$0xff] }
 0x176   : > { %2905 = vmatpush1.bf16.msra.mxu1 %v2904_v43  ;;  %v1028_v43 = vld [vmem:[%s4033_s21 + $0x16f8] sm:$0xff]  ;;  %v1030_v53 = vld [vmem:[%s4033_s21 + $0x1708] sm:$0xff]  ;;  %v1047_v26 = vld [vmem:[%s4033_s21 + $0x1790] sm:$0xff] }
 0x177   : > { %3353 = vmatpush1.bf16.msra.mxu0 %v3352_v45  ;;  %2907 = vmatprep.subr.bf16.mxu1 %v2906_v46  ;;  %v2924_v45 = vpack.c.bf16 %v575_v35, %v573_v34  ;;  %v3372_v46 = vpack.c.bf16 %v1023_v38, %v1021_v36  ;;  %v3374_v50 = vpack.c.bf16 %v1028_v43, %v1026_v42  ;;  %v594_v28 = vld [vmem:[%s4033_s21 + $0x968] sm:$0xff]  ;;  %v593_v35 = vld [vmem:[%s4033_s21 + $0x960] sm:$0xff]  ;;  %v595_v36 = vld [vmem:[%s4033_s21 + $0x970] sm:$0xff] }
 0x178   : > { %3355 = vmatprep.subr.bf16.mxu0 %v3354_v44  ;;  %v1025_v44 = vld [vmem:[%s4033_s21 + $0x16e0] sm:$0xff]  ;;  %v1042_v31 = vld [vmem:[%s4033_s21 + $0x1768] sm:$0xff]  ;;  %v2942_v34 = vpack.c.bf16 %v596_v29, %v594_v28  ;;  %v600_v42 = vld [vmem:[%s4033_s21 + $0x998] sm:$0xff] }
 0x179   : > { %v598_v41 = vld [vmem:[%s4033_s21 + $0x988] sm:$0xff]  ;;  %v1055_v15 = vld [vmem:[%s4033_s21 + $0x17d0] sm:$0xff] }
 0x17a   : > { %2909 = vmatpush1.bf16.msra.mxu1 %v2908_v54  ;;  %v1032_v54 = vld [vmem:[%s4033_s21 + $0x1718] sm:$0xff]  ;;  %v1046_v43 = vld [vmem:[%s4033_s21 + $0x1788] sm:$0xff]  ;;  %v1059_v28 = vld [vmem:[%s4033_s21 + $0x17f0] sm:$0xff] }
 0x17b   : > { %3357 = vmatpush1.bf16.msra.mxu0 %v3356_v55  ;;  %2911 = vmatprep.subr.bf16.mxu1 %v2910_v40  ;;  %v2928_v55 = vpack.c.bf16 %v579_v49, %v577_v4  ;;  %v3376_v40 = vpack.c.bf16 %v1027_v52, %v1025_v44  ;;  %v3378_v0 = vpack.c.bf16 %v1032_v54, %v1030_v53  ;;  %v597_v49 = vld [vmem:[%s4033_s21 + $0x980] sm:$0xff]  ;;  %v599_v44 = vld [vmem:[%s4033_s21 + $0x990] sm:$0xff]  ;;  %v602_v7 = vld [vmem:[%s4033_s21 + $0x9a8] sm:$0xff] }
 0x17c   : > { %3359 = vmatprep.subr.bf16.mxu0 %v3358_v62  ;;  %v1029_v62 = vld [vmem:[%s4033_s21 + $0x1700] sm:$0xff]  ;;  %v2946_v4 = vpack.c.bf16 %v600_v42, %v598_v41  ;;  %v604_v53 = vld [vmem:[%s4033_s21 + $0x9b8] sm:$0xff]  ;;  %v1050_v54 = vld [vmem:[%s4033_s21 + $0x17a8] sm:$0xff] }
 0x17d   : > { %v610_v16 = vld [vmem:[%s4033_s21 + $0x9e8] sm:$0xff]  ;;  %v1061_v41 = vld [vmem:[%s4033_s21 + $0x1800] sm:$0xff]  ;;  %v1063_v42 = vld [vmem:[%s4033_s21 + $0x1810] sm:$0xff] }
 0x17e   : > { %2913 = vmatpush1.bf16.msra.mxu1 %v2912_v30  ;;  %v1036_v30 = vld [vmem:[%s4033_s21 + $0x1738] sm:$0xff]  ;;  %v614_v29 = vld [vmem:[%s4033_s21 + $0xa08] sm:$0xff] }
 0x17f   : > { %3361 = vmatpush1.bf16.msra.mxu0 %v3360_v5  ;;  %2915 = vmatprep.subr.bf16.mxu1 %v2914_v6  ;;  %v2932_v5 = vpack.c.bf16 %v583_v60, %v581_v59  ;;  %v3380_v6 = vpack.c.bf16 %v1031_v1, %v1029_v62  ;;  %v3382_v11 = vpack.c.bf16 %v1036_v30, %v1034_v3  ;;  %v601_v60 = vld [vmem:[%s4033_s21 + $0x9a0] sm:$0xff]  ;;  %v603_v62 = vld [vmem:[%s4033_s21 + $0x9b0] sm:$0xff]  ;;  %v608_v3 = vld [vmem:[%s4033_s21 + $0x9d8] sm:$0xff] }
 0x180   : > { %3363 = vmatprep.subr.bf16.mxu0 %v3362_v10  ;;  %v1033_v10 = vld [vmem:[%s4033_s21 + $0x1720] sm:$0xff]  ;;  %v2950_v59 = vpack.c.bf16 %v604_v53, %v602_v7  ;;  %v1054_v30 = vld [vmem:[%s4033_s21 + $0x17c8] sm:$0xff]  ;;  %v619_v7 = vld [vmem:[%s4033_s21 + $0xa30] sm:$0xff] }
 0x181   : > { %v1065_v53 = vld [vmem:[%s4033_s21 + $0x1820] sm:$0xff] }
 0x182   : > { %2917 = vmatpush1.bf16.msra.mxu1 %v2916_v18  ;;  %v1040_v18 = vld [vmem:[%s4033_s21 + $0x1758] sm:$0xff] }
 0x183   : > { %3365 = vmatpush1.bf16.msra.mxu0 %v3364_v19  ;;  %2919 = vmatprep.subr.bf16.mxu1 %v2918_v20  ;;  %v2936_v19 = vpack.c.bf16 %v587_v47, %v585_v9  ;;  %v3384_v20 = vpack.c.bf16 %v1035_v14, %v1033_v10  ;;  %v3386_v23 = vpack.c.bf16 %v1040_v18, %v1038_v17  ;;  %v605_v47 = vld [vmem:[%s4033_s21 + $0x9c0] sm:$0xff]  ;;  %v607_v10 = vld [vmem:[%s4033_s21 + $0x9d0] sm:$0xff]  ;;  %v612_v17 = vld [vmem:[%s4033_s21 + $0x9f8] sm:$0xff] }
 0x184   : > { %3367 = vmatprep.subr.bf16.mxu0 %v3366_v25  ;;  %v1037_v25 = vld [vmem:[%s4033_s21 + $0x1740] sm:$0xff]  ;;  %v2954_v9 = vpack.c.bf16 %v608_v3, %v606_v2  ;;  %v1058_v18 = vld [vmem:[%s4033_s21 + $0x17e8] sm:$0xff] }
 0x185   : > { %v621_v3 = vld [vmem:[%s4033_s21 + $0xa40] sm:$0xff] }
 0x186   : > { %2921 = vmatpush1.bf16.msra.mxu1 %v2920_v32  ;;  %v1044_v32 = vld [vmem:[%s4033_s21 + $0x1778] sm:$0xff] }
 0x187   : > { %3369 = vmatpush1.bf16.msra.mxu0 %v3368_v51  ;;  %2923 = vmatprep.subr.bf16.mxu1 %v2922_v33  ;;  %v2940_v51 = vpack.c.bf16 %v591_v24, %v589_v22  ;;  %v3388_v33 = vpack.c.bf16 %v1039_v61, %v1037_v25  ;;  %v3390_v38 = vpack.c.bf16 %v1044_v32, %v1042_v31  ;;  %v609_v24 = vld [vmem:[%s4033_s21 + $0x9e0] sm:$0xff]  ;;  %v611_v25 = vld [vmem:[%s4033_s21 + $0x9f0] sm:$0xff]  ;;  %v616_v31 = vld [vmem:[%s4033_s21 + $0xa18] sm:$0xff] }
 0x188   : > { %3371 = vmatprep.subr.bf16.mxu0 %v3370_v37  ;;  %v1041_v37 = vld [vmem:[%s4033_s21 + $0x1760] sm:$0xff]  ;;  %v2958_v22 = vpack.c.bf16 %v612_v17, %v610_v16  ;;  %v1230_v32 = vcombine.high %v4642_v13, %v4642_v13  ;;  %v627_v16 = vld [vmem:[%s4033_s21 + $0xa70] sm:$0xff] }
 0x189   : > { %v1073_v17 = vld [vmem:[%s4033_s21 + $0x1860] sm:$0xff] }
 0x18a   : > { %2925 = vmatpush1.bf16.msra.mxu1 %v2924_v45  ;;  %v1048_v45 = vld [vmem:[%s4033_s21 + $0x1798] sm:$0xff] }
 0x18b   : > { %3373 = vmatpush1.bf16.msra.mxu0 %v3372_v46  ;;  %2927 = vmatprep.subr.bf16.mxu1 %v2926_v48  ;;  %v2944_v46 = vpack.c.bf16 %v595_v36, %v593_v35  ;;  %v3392_v48 = vpack.c.bf16 %v1043_v39, %v1041_v37  ;;  %v3394_v52 = vpack.c.bf16 %v1048_v45, %v1046_v43  ;;  %v4790_v35 = vld [vmem:[%s4047_s14 + $0x30] sm:$0xff]  ;;  %v620_v45 = vld [vmem:[%s4033_s21 + $0xa38] sm:$0xff] }
 0x18c   : > { %3375 = vmatprep.subr.bf16.mxu0 %v3374_v50  ;;  %v1045_v50 = vld [vmem:[%s4033_s21 + $0x1780] sm:$0xff]  ;;  %v2962_v37 = vpack.c.bf16 %v616_v31, %v614_v29  ;;  %v615_v39 = vld [vmem:[%s4033_s21 + $0xa10] sm:$0xff]  ;;  %v618_v43 = vld [vmem:[%s4033_s21 + $0xa28] sm:$0xff] }
 0x18d   : > { %v631_v29 = vld [vmem:[%s4033_s21 + $0xa90] sm:$0xff]  ;;  %v1077_v31 = vld [vmem:[%s4033_s21 + $0x1880] sm:$0xff] }
 0x18e   : > { %2929 = vmatpush1.bf16.msra.mxu1 %v2928_v55  ;;  %v1052_v55 = vld [vmem:[%s4033_s21 + $0x17b8] sm:$0xff] }
 0x18f   : > { %3377 = vmatpush1.bf16.msra.mxu0 %v3376_v40  ;;  %2931 = vmatprep.subr.bf16.mxu1 %v2930_v57  ;;  %v2948_v40 = vpack.c.bf16 %v599_v44, %v597_v49  ;;  %v3396_v57 = vpack.c.bf16 %v1047_v26, %v1045_v50  ;;  %v3398_v1 = vpack.c.bf16 %v1052_v55, %v1050_v54  ;;  %v617_v26 = vld [vmem:[%s4033_s21 + $0xa20] sm:$0xff]  ;;  %v1067_v55 = vld [vmem:[%s4033_s21 + $0x1830] sm:$0xff] }
 0x190   : > { %3379 = vmatprep.subr.bf16.mxu0 %v3378_v0  ;;  %v1049_v0 = vld [vmem:[%s4033_s21 + $0x17a0] sm:$0xff]  ;;  %v4805_v49 = vrot.slane %v4790_v35, %v4146_v12  ;;  %v3412_v50 = vpack.c.bf16 %v1063_v42, %v1061_v41  ;;  %v635_v42 = vld [vmem:[%s4033_s21 + $0xab0] sm:$0xff] }
 0x192   : > { %2933 = vmatpush1.bf16.msra.mxu1 %v2932_v5  ;;  %v1056_v5 = vld [vmem:[%s4033_s21 + $0x17d8] sm:$0xff] }
 0x193   : > { %3381 = vmatpush1.bf16.msra.mxu0 %v3380_v6  ;;  %2935 = vmatprep.subr.bf16.mxu1 %v2934_v8  ;;  %v2952_v6 = vpack.c.bf16 %v603_v62, %v601_v60  ;;  %v3400_v8 = vpack.c.bf16 %v1051_v56, %v1049_v0  ;;  %v3402_v14 = vpack.c.bf16 %v1056_v5, %v1054_v30  ;;  %v1070_v60 = vld [vmem:[%s4033_s21 + $0x1848] sm:$0xff]  ;;  %v1072_v62 = vld [vmem:[%s4033_s21 + $0x1858] sm:$0xff]  ;;  %v1069_v30 = vld [vmem:[%s4033_s21 + $0x1840] sm:$0xff] }
 0x194   : > { %3383 = vmatprep.subr.bf16.mxu0 %v3382_v11  ;;  %v1053_v11 = vld [vmem:[%s4033_s21 + $0x17c0] sm:$0xff]  ;;  %v1313_v0 = vcombine.high %v4805_v49, %v4805_v49  ;;  %v3416_v56 = vpack.c.bf16 %v1067_v55, %v1065_v53  ;;  %v3418_v5 = vpack.c.bf16 %v1072_v62, %v1070_v60  ;;  %v639_v55 = vld [vmem:[%s4033_s21 + $0xad0] sm:$0xff]  ;;  %v642_v60 = vld [vmem:[%s4033_s21 + $0xae8] sm:$0xff] }
 0x195   : > { %v644_v62 = vld [vmem:[%s4033_s21 + $0xaf8] sm:$0xff] }
 0x196   : > { %2937 = vmatpush1.bf16.msra.mxu1 %v2936_v19  ;;  %v1060_v19 = vld [vmem:[%s4033_s21 + $0x17f8] sm:$0xff] }
 0x197   : > { %3385 = vmatpush1.bf16.msra.mxu0 %v3384_v20  ;;  %2939 = vmatprep.subr.bf16.mxu1 %v2938_v21  ;;  %v2956_v20 = vpack.c.bf16 %v607_v10, %v605_v47  ;;  %v3404_v21 = vpack.c.bf16 %v1055_v15, %v1053_v11  ;;  %v3406_v61 = vpack.c.bf16 %v1060_v19, %v1058_v18  ;;  %v1076_v47 = vld [vmem:[%s4033_s21 + $0x1878] sm:$0xff]  ;;  %v625_v15 = vld [vmem:[%s4033_s21 + $0xa60] sm:$0xff]  ;;  %v1075_v19 = vld [vmem:[%s4033_s21 + $0x1870] sm:$0xff] }
 0x198   : > { %3387 = vmatprep.subr.bf16.mxu0 %v3386_v23  ;;  %v1057_v23 = vld [vmem:[%s4033_s21 + $0x17e0] sm:$0xff] }
 0x199   : > { %v3408_v36 = vpack.c.bf16 %v1059_v28, %v1057_v23  ;;  %v3424_v23 = vpack.c.bf16 %v1075_v19, %v1073_v17  ;;  %v629_v28 = vld [vmem:[%s4033_s21 + $0xa80] sm:$0xff]  ;;  %v647_v17 = vld [vmem:[%s4033_s21 + $0xb10] sm:$0xff] }
 0x19a   : > { %2941 = vmatpush1.bf16.msra.mxu1 %v2940_v51  ;;  %v1062_v51 = vld [vmem:[%s4033_s21 + $0x1808] sm:$0xff] }
 0x19b   : > { %3389 = vmatpush1.bf16.msra.mxu0 %v3388_v33  ;;  %2943 = vmatprep.subr.bf16.mxu1 %v2942_v34  ;;  %v1064_v33 = vld [vmem:[%s4033_s21 + $0x1818] sm:$0xff]  ;;  %v2960_v34 = vpack.c.bf16 %v611_v25, %v609_v24  ;;  %v2976_v25 = vpack.c.bf16 %v627_v16, %v625_v15  ;;  %v645_v16 = vld [vmem:[%s4033_s21 + $0xb00] sm:$0xff] }
 0x19c   : > { %3391 = vmatprep.subr.bf16.mxu0 %v3390_v38  ;;  %v613_v38 = vld [vmem:[%s4033_s21 + $0xa00] sm:$0xff]  ;;  %v3410_v13 = vpack.c.bf16 %v1064_v33, %v1062_v51  ;;  %v1080_v24 = vld [vmem:[%s4033_s21 + $0x1898] sm:$0xff]  ;;  %v1079_v51 = vld [vmem:[%s4033_s21 + $0x1890] sm:$0xff] }
 0x19d   : > { %v2964_v44 = vpack.c.bf16 %v615_v39, %v613_v38  ;;  %v634_v33 = vld [vmem:[%s4033_s21 + $0xaa8] sm:$0xff]  ;;  %v2980_v38 = vpack.c.bf16 %v631_v29, %v629_v28  ;;  %v3428_v39 = vpack.c.bf16 %v1079_v51, %v1077_v31  ;;  %v649_v29 = vld [vmem:[%s4033_s21 + $0xb20] sm:$0xff]  ;;  %v651_v31 = vld [vmem:[%s4033_s21 + $0xb30] sm:$0xff] }
 0x19e   : > { %2945 = vmatpush1.bf16.msra.mxu1 %v2944_v46  ;;  %v4799_v46 = vrot.slane %v1230_v32, %v4146_v12 }
 0x19f   : > { %3393 = vmatpush1.bf16.msra.mxu0 %v3392_v48  ;;  %2947 = vmatprep.subr.bf16.mxu1 %v2946_v4  ;;  %v1066_v48 = vld [vmem:[%s4033_s21 + $0x1828] sm:$0xff]  ;;  %v1068_v4 = vld [vmem:[%s4033_s21 + $0x1838] sm:$0xff] }
 0x1a0   : > { %3395 = vmatprep.subr.bf16.mxu0 %v3394_v52  ;;  %v2966_v52 = vpack.c.bf16 %v620_v45, %v618_v43  ;;  %v3414_v54 = vpack.c.bf16 %v1068_v4, %v1066_v48  ;;  %v1081_v43 = vld [vmem:[%s4033_s21 + $0x18a0] sm:$0xff]  ;;  %v1083_v48 = vld [vmem:[%s4033_s21 + $0x18b0] sm:$0xff]  ;;  %v638_v4 = vld [vmem:[%s4033_s21 + $0xac8] sm:$0xff] }
 0x1a2   : > { %2949 = vmatpush1.bf16.msra.mxu1 %v2948_v40  ;;  %v622_v40 = vld [vmem:[%s4033_s21 + $0xa48] sm:$0xff] }
 0x1a3   : > { %3397 = vmatpush1.bf16.msra.mxu0 %v3396_v57  ;;  %2951 = vmatprep.subr.bf16.mxu1 %v2950_v59  ;;  %v624_v57 = vld [vmem:[%s4033_s21 + $0xa58] sm:$0xff]  ;;  %v1246_v59 = vcombine.high %v4799_v46, %v4799_v46 }
 0x1a4   : > { %3399 = vmatprep.subr.bf16.mxu0 %v3398_v1  ;;  %v2968_v1 = vpack.c.bf16 %v619_v7, %v617_v26  ;;  %v2970_v2 = vpack.c.bf16 %v624_v57, %v622_v40  ;;  %v3432_v7 = vpack.c.bf16 %v1083_v48, %v1081_v43  ;;  %v1085_v40 = vld [vmem:[%s4033_s21 + $0x18c0] sm:$0xff]  ;;  %v655_v43 = vld [vmem:[%s4033_s21 + $0xb50] sm:$0xff] }
 0x1a6   : > { %2953 = vmatpush1.bf16.msra.mxu1 %v2952_v6  ;;  %v1071_v6 = vld [vmem:[%s4033_s21 + $0x1850] sm:$0xff] }
 0x1a7   : > { %3401 = vmatpush1.bf16.msra.mxu0 %v3400_v8  ;;  %2955 = vmatprep.subr.bf16.mxu1 %v2954_v9  ;;  %v626_v8 = vld [vmem:[%s4033_s21 + $0xa68] sm:$0xff]  ;;  %v628_v9 = vld [vmem:[%s4033_s21 + $0xa78] sm:$0xff]  ;;  %v3420_v11 = vpack.c.bf16 %v1071_v6, %v1069_v30  ;;  %v643_v30 = vld [vmem:[%s4033_s21 + $0xaf0] sm:$0xff] }
 0x1a8   : > { %3403 = vmatprep.subr.bf16.mxu0 %v3402_v14  ;;  %v2974_v14 = vpack.c.bf16 %v628_v9, %v626_v8  ;;  %v1091_v8 = vld [vmem:[%s4033_s21 + $0x18f0] sm:$0xff]  ;;  %v646_v9 = vld [vmem:[%s4033_s21 + $0xb08] sm:$0xff] }
 0x1aa   : > { %2957 = vmatpush1.bf16.msra.mxu1 %v2956_v20  ;;  %v630_v20 = vld [vmem:[%s4033_s21 + $0xa88] sm:$0xff] }
 0x1ab   : > { %3405 = vmatpush1.bf16.msra.mxu0 %v3404_v21  ;;  %2959 = vmatprep.subr.bf16.mxu1 %v2958_v22  ;;  %v632_v21 = vld [vmem:[%s4033_s21 + $0xa98] sm:$0xff]  ;;  %v1078_v22 = vld [vmem:[%s4033_s21 + $0x1888] sm:$0xff] }
 0x1ac   : > { %3407 = vmatprep.subr.bf16.mxu0 %v3406_v61  ;;  %v2978_v61 = vpack.c.bf16 %v632_v21, %v630_v20  ;;  %v3426_v32 = vpack.c.bf16 %v1080_v24, %v1078_v22  ;;  %v1095_v20 = vld [vmem:[%s4033_s21 + $0x1910] sm:$0xff]  ;;  %v650_v21 = vld [vmem:[%s4033_s21 + $0xb28] sm:$0xff]  ;;  %v652_v22 = vld [vmem:[%s4033_s21 + $0xb38] sm:$0xff] }
 0x1ad   : > { %v1098_v24 = vld [vmem:[%s4033_s21 + $0x1928] sm:$0xff]  ;;  %v2998_v28 = vpack.c.bf16 %v652_v22, %v650_v21  ;;  %v1115_v21 = vld [vmem:[%s4033_s21 + $0x19b0] sm:$0xff] }
 0x1ae   : > { %2961 = vmatpush1.bf16.msra.mxu1 %v2960_v34  ;;  %v636_v34 = vld [vmem:[%s4033_s21 + $0xab8] sm:$0xff]  ;;  %v670_v22 = vld [vmem:[%s4033_s21 + $0xbc8] sm:$0xff] }
 0x1af   : > { %3409 = vmatpush1.bf16.msra.mxu0 %v3408_v36  ;;  %2963 = vmatprep.subr.bf16.mxu1 %v2962_v37  ;;  %v1082_v36 = vld [vmem:[%s4033_s21 + $0x18a8] sm:$0xff]  ;;  %v1084_v37 = vld [vmem:[%s4033_s21 + $0x18b8] sm:$0xff]  ;;  %v2982_v41 = vpack.c.bf16 %v636_v34, %v634_v33  ;;  %v1099_v33 = vld [vmem:[%s4033_s21 + $0x1930] sm:$0xff] }
 0x1b0   : > { %3411 = vmatprep.subr.bf16.mxu0 %v3410_v13  ;;  %v633_v13 = vld [vmem:[%s4033_s21 + $0xaa0] sm:$0xff]  ;;  %v3430_v45 = vpack.c.bf16 %v1084_v37, %v1082_v36  ;;  %v654_v34 = vld [vmem:[%s4033_s21 + $0xb48] sm:$0xff]  ;;  %v656_v36 = vld [vmem:[%s4033_s21 + $0xb58] sm:$0xff] }
 0x1b1   : > { %1692 = vmatmul.mubr.f32.vlgmr.msra.gmra.mrb[0].mxu1 %v4654_v58  ;;  %v623_v58 = vld [vmem:[%s4033_s21 + $0xa50] sm:$0xff]  ;;  %v2984_v26 = vpack.c.bf16 %v635_v42, %v633_v13  ;;  %v1102_v37 = vld [vmem:[%s4033_s21 + $0x1948] sm:$0xff]  ;;  %v3002_v13 = vpack.c.bf16 %v656_v36, %v654_v34  ;;  %v653_v42 = vld [vmem:[%s4033_s21 + $0xb40] sm:$0xff] }
 0x1b2   : > { %2965 = vmatpush1.bf16.msra.mxu1 %v2964_v44  ;;  %2189 = vmatmul.mubr.f32.vlgmr.msra.gmra.mrb[0].mxu0 %v4659_v27  ;;  %v1074_v27 = vld [vmem:[%s4033_s21 + $0x1868] sm:$0xff]  ;;  %v2972_v10 = vpack.c.bf16 %v623_v58, %v621_v3  ;;  %v640_v44 = vld [vmem:[%s4033_s21 + $0xad8] sm:$0xff]  ;;  %v2990_v3 = vpack.c.bf16 %v644_v62, %v642_v60  ;;  %v641_v58 = vld [vmem:[%s4033_s21 + $0xae0] sm:$0xff] }
 0x1b3   : > { %3413 = vmatpush1.bf16.msra.mxu0 %v3412_v50  ;;  %2967 = vmatprep.subr.bf16.mxu1 %v2966_v52  ;;  %v3422_v18 = vpack.c.bf16 %v1076_v47, %v1074_v27  ;;  %v1086_v50 = vld [vmem:[%s4033_s21 + $0x18c8] sm:$0xff]  ;;  %v1088_v52 = vld [vmem:[%s4033_s21 + $0x18d8] sm:$0xff]  ;;  %v2986_v53 = vpack.c.bf16 %v640_v44, %v638_v4  ;;  %v1103_v4 = vld [vmem:[%s4033_s21 + $0x1950] sm:$0xff] }
 0x1b4   : > { %3415 = vmatprep.subr.bf16.mxu0 %v3414_v54  ;;  %1762 = vmatprep.mubr.f32.mxu1 %v1246_v59  ;;  %v637_v54 = vld [vmem:[%s4033_s21 + $0xac0] sm:$0xff]  ;;  %v3434_v57 = vpack.c.bf16 %v1088_v52, %v1086_v50  ;;  %v1087_v59 = vld [vmem:[%s4033_s21 + $0x18d0] sm:$0xff]  ;;  %v648_v27 = vld [vmem:[%s4033_s21 + $0xb18] sm:$0xff] }
 0x1b5   : > { %2259 = vmatprep.mubr.f32.mxu0 %v1313_v0  ;;  %v1090_v0 = vld [vmem:[%s4033_s21 + $0x18e8] sm:$0xff]  ;;  %v2994_v15 = vpack.c.bf16 %v648_v27, %v646_v9  ;;  %v660_v50 = vld [vmem:[%s4033_s21 + $0xb78] sm:$0xff]  ;;  %v1107_v60 = vld [vmem:[%s4033_s21 + $0x1970] sm:$0xff] }
 0x1b6   : > { %2969 = vmatpush1.bf16.msra.mxu1 %v2968_v1  ;;  %v1092_v1 = vld [vmem:[%s4033_s21 + $0x18f8] sm:$0xff]  ;;  %v1094_v47 = vld [vmem:[%s4033_s21 + $0x1908] sm:$0xff]  ;;  %v1111_v9 = vld [vmem:[%s4033_s21 + $0x1990] sm:$0xff] }
 0x1b7   : > { %3417 = vmatpush1.bf16.msra.mxu0 %v3416_v56  ;;  %2971 = vmatprep.subr.bf16.mxu1 %v2970_v2  ;;  %v2988_v56 = vpack.c.bf16 %v639_v55, %v637_v54  ;;  %v3436_v2 = vpack.c.bf16 %v1087_v59, %v1085_v40  ;;  %v3438_v6 = vpack.c.bf16 %v1092_v1, %v1090_v0  ;;  %v658_v44 = vld [vmem:[%s4033_s21 + $0xb68] sm:$0xff]  ;;  %v657_v55 = vld [vmem:[%s4033_s21 + $0xb60] sm:$0xff]  ;;  %v659_v40 = vld [vmem:[%s4033_s21 + $0xb70] sm:$0xff] }
 0x1b8   : > { %3419 = vmatprep.subr.bf16.mxu0 %v3418_v5  ;;  %v1089_v5 = vld [vmem:[%s4033_s21 + $0x18e0] sm:$0xff]  ;;  %v1106_v52 = vld [vmem:[%s4033_s21 + $0x1968] sm:$0xff]  ;;  %v3006_v54 = vpack.c.bf16 %v660_v50, %v658_v44  ;;  %v664_v0 = vld [vmem:[%s4033_s21 + $0xb98] sm:$0xff] }
 0x1b9   : > { %v662_v62 = vld [vmem:[%s4033_s21 + $0xb88] sm:$0xff]  ;;  %v1119_v34 = vld [vmem:[%s4033_s21 + $0x19d0] sm:$0xff] }
 0x1ba   : > { %2973 = vmatpush1.bf16.msra.mxu1 %v2972_v10  ;;  %v1096_v10 = vld [vmem:[%s4033_s21 + $0x1918] sm:$0xff]  ;;  %v1110_v1 = vld [vmem:[%s4033_s21 + $0x1988] sm:$0xff]  ;;  %v1123_v44 = vld [vmem:[%s4033_s21 + $0x19f0] sm:$0xff] }
 0x1bb   : > { %3421 = vmatpush1.bf16.msra.mxu0 %v3420_v11  ;;  %2975 = vmatprep.subr.bf16.mxu1 %v2974_v14  ;;  %v2992_v11 = vpack.c.bf16 %v643_v30, %v641_v58  ;;  %v3440_v14 = vpack.c.bf16 %v1091_v8, %v1089_v5  ;;  %v3442_v19 = vpack.c.bf16 %v1096_v10, %v1094_v47  ;;  %v661_v30 = vld [vmem:[%s4033_s21 + $0xb80] sm:$0xff]  ;;  %v663_v5 = vld [vmem:[%s4033_s21 + $0xb90] sm:$0xff]  ;;  %v666_v27 = vld [vmem:[%s4033_s21 + $0xba8] sm:$0xff] }
 0x1bc   : > { %3423 = vmatprep.subr.bf16.mxu0 %v3422_v18  ;;  %v1093_v18 = vld [vmem:[%s4033_s21 + $0x1900] sm:$0xff]  ;;  %v3010_v58 = vpack.c.bf16 %v664_v0, %v662_v62  ;;  %v668_v47 = vld [vmem:[%s4033_s21 + $0xbb8] sm:$0xff]  ;;  %v1114_v10 = vld [vmem:[%s4033_s21 + $0x19a8] sm:$0xff] }
 0x1bd   : > { %v674_v36 = vld [vmem:[%s4033_s21 + $0xbe8] sm:$0xff]  ;;  %v1127_v0 = vld [vmem:[%s4033_s21 + $0x1a10] sm:$0xff] }
 0x1be   : > { %2977 = vmatpush1.bf16.msra.mxu1 %v2976_v25  ;;  %v1100_v25 = vld [vmem:[%s4033_s21 + $0x1938] sm:$0xff]  ;;  %v678_v50 = vld [vmem:[%s4033_s21 + $0xc08] sm:$0xff] }
 0x1bf   : > { %3425 = vmatpush1.bf16.msra.mxu0 %v3424_v23  ;;  %2979 = vmatprep.subr.bf16.mxu1 %v2978_v61  ;;  %v2996_v23 = vpack.c.bf16 %v647_v17, %v645_v16  ;;  %v3444_v61 = vpack.c.bf16 %v1095_v20, %v1093_v18  ;;  %v3446_v51 = vpack.c.bf16 %v1100_v25, %v1098_v24  ;;  %v665_v17 = vld [vmem:[%s4033_s21 + $0xba0] sm:$0xff]  ;;  %v667_v18 = vld [vmem:[%s4033_s21 + $0xbb0] sm:$0xff]  ;;  %v672_v24 = vld [vmem:[%s4033_s21 + $0xbd8] sm:$0xff] }
 0x1c0   : > { %3427 = vmatprep.subr.bf16.mxu0 %v3426_v32  ;;  %v1097_v32 = vld [vmem:[%s4033_s21 + $0x1920] sm:$0xff]  ;;  %v3014_v16 = vpack.c.bf16 %v668_v47, %v666_v27  ;;  %v1118_v25 = vld [vmem:[%s4033_s21 + $0x19c8] sm:$0xff] }
 0x1c1   : > { %v1129_v27 = vld [vmem:[%s4033_s21 + $0x1a20] sm:$0xff] }
 0x1c2   : > { %2981 = vmatpush1.bf16.msra.mxu1 %v2980_v38  ;;  %v1104_v38 = vld [vmem:[%s4033_s21 + $0x1958] sm:$0xff] }
 0x1c3   : > { %3429 = vmatpush1.bf16.msra.mxu0 %v3428_v39  ;;  %2983 = vmatprep.subr.bf16.mxu1 %v2982_v41  ;;  %v3000_v39 = vpack.c.bf16 %v651_v31, %v649_v29  ;;  %v3448_v41 = vpack.c.bf16 %v1099_v33, %v1097_v32  ;;  %v3450_v48 = vpack.c.bf16 %v1104_v38, %v1102_v37  ;;  %v669_v31 = vld [vmem:[%s4033_s21 + $0xbc0] sm:$0xff]  ;;  %v671_v32 = vld [vmem:[%s4033_s21 + $0xbd0] sm:$0xff]  ;;  %v676_v37 = vld [vmem:[%s4033_s21 + $0xbf8] sm:$0xff] }
 0x1c4   : > { %3431 = vmatprep.subr.bf16.mxu0 %v3430_v45  ;;  %v1101_v45 = vld [vmem:[%s4033_s21 + $0x1940] sm:$0xff]  ;;  %v3018_v29 = vpack.c.bf16 %v672_v24, %v670_v22  ;;  %v1122_v38 = vld [vmem:[%s4033_s21 + $0x19e8] sm:$0xff] }
 0x1c5   : > { %v685_v22 = vld [vmem:[%s4033_s21 + $0xc40] sm:$0xff] }
 0x1c6   : > { %2985 = vmatpush1.bf16.msra.mxu1 %v2984_v26  ;;  %v1108_v26 = vld [vmem:[%s4033_s21 + $0x1978] sm:$0xff]  ;;  %v1133_v24 = vld [vmem:[%s4033_s21 + $0x1a40] sm:$0xff] }
 0x1c7   : > { %3433 = vmatpush1.bf16.msra.mxu0 %v3432_v7  ;;  %2987 = vmatprep.subr.bf16.mxu1 %v2986_v53  ;;  %v3004_v7 = vpack.c.bf16 %v655_v43, %v653_v42  ;;  %v3452_v53 = vpack.c.bf16 %v1103_v4, %v1101_v45  ;;  %v3454_v59 = vpack.c.bf16 %v1108_v26, %v1106_v52  ;;  %v673_v43 = vld [vmem:[%s4033_s21 + $0xbe0] sm:$0xff]  ;;  %v675_v45 = vld [vmem:[%s4033_s21 + $0xbf0] sm:$0xff]  ;;  %v680_v52 = vld [vmem:[%s4033_s21 + $0xc18] sm:$0xff] }
 0x1c8   : > { %3435 = vmatprep.subr.bf16.mxu0 %v3434_v57  ;;  %v1105_v57 = vld [vmem:[%s4033_s21 + $0x1960] sm:$0xff]  ;;  %v3022_v42 = vpack.c.bf16 %v676_v37, %v674_v36  ;;  %v1126_v26 = vld [vmem:[%s4033_s21 + $0x1a08] sm:$0xff] }
 0x1c9   : > { %v1137_v36 = vld [vmem:[%s4033_s21 + $0x1a60] sm:$0xff] }
 0x1ca   : > { %2989 = vmatpush1.bf16.msra.mxu1 %v2988_v56  ;;  %v1112_v56 = vld [vmem:[%s4033_s21 + $0x1998] sm:$0xff] }
 0x1cb   : > { %3437 = vmatpush1.bf16.msra.mxu0 %v3436_v2  ;;  %2991 = vmatprep.subr.bf16.mxu1 %v2990_v3  ;;  %v3008_v2 = vpack.c.bf16 %v659_v40, %v657_v55  ;;  %v3456_v3 = vpack.c.bf16 %v1107_v60, %v1105_v57  ;;  %v3458_v8 = vpack.c.bf16 %v1112_v56, %v1110_v1  ;;  %v677_v57 = vld [vmem:[%s4033_s21 + $0xc00] sm:$0xff]  ;;  %v682_v1 = vld [vmem:[%s4033_s21 + $0xc28] sm:$0xff]  ;;  %v684_v56 = vld [vmem:[%s4033_s21 + $0xc38] sm:$0xff] }
 0x1cc   : > { %3439 = vmatprep.subr.bf16.mxu0 %v3438_v6  ;;  %v1109_v6 = vld [vmem:[%s4033_s21 + $0x1980] sm:$0xff]  ;;  %v3026_v40 = vpack.c.bf16 %v680_v52, %v678_v50 }
 0x1cd   : > { %v1125_v60 = vld [vmem:[%s4033_s21 + $0x1a00] sm:$0xff] }
 0x1ce   : > { %2993 = vmatpush1.bf16.msra.mxu1 %v2992_v11  ;;  %v1116_v11 = vld [vmem:[%s4033_s21 + $0x19b8] sm:$0xff]  ;;  %v1141_v50 = vld [vmem:[%s4033_s21 + $0x1a80] sm:$0xff] }
 0x1cf   : > { %3441 = vmatpush1.bf16.msra.mxu0 %v3440_v14  ;;  %2995 = vmatprep.subr.bf16.mxu1 %v2994_v15  ;;  %v3012_v14 = vpack.c.bf16 %v663_v5, %v661_v30  ;;  %v3460_v15 = vpack.c.bf16 %v1111_v9, %v1109_v6  ;;  %v3462_v20 = vpack.c.bf16 %v1116_v11, %v1114_v10  ;;  %v683_v9 = vld [vmem:[%s4033_s21 + $0xc30] sm:$0xff]  ;;  %v686_v11 = vld [vmem:[%s4033_s21 + $0xc48] sm:$0xff] }
 0x1d0   : > { %3443 = vmatprep.subr.bf16.mxu0 %v3442_v19  ;;  %v1113_v19 = vld [vmem:[%s4033_s21 + $0x19a0] sm:$0xff]  ;;  %v3476_v5 = vpack.c.bf16 %v1127_v0, %v1125_v60  ;;  %v3030_v6 = vpack.c.bf16 %v684_v56, %v682_v1  ;;  %v1131_v10 = vld [vmem:[%s4033_s21 + $0x1a30] sm:$0xff] }
 0x1d1   : > { %v697_v60 = vld [vmem:[%s4033_s21 + $0xca0] sm:$0xff]  ;;  %v1147_v56 = vld [vmem:[%s4033_s21 + $0x1ab0] sm:$0xff] }
 0x1d2   : > { %2997 = vmatpush1.bf16.msra.mxu1 %v2996_v23  ;;  %v1120_v23 = vld [vmem:[%s4033_s21 + $0x19d8] sm:$0xff]  ;;  %v1145_v0 = vld [vmem:[%s4033_s21 + $0x1aa0] sm:$0xff] }
 0x1d3   : > { %3445 = vmatpush1.bf16.msra.mxu0 %v3444_v61  ;;  %2999 = vmatprep.subr.bf16.mxu1 %v2998_v28  ;;  %v3016_v61 = vpack.c.bf16 %v667_v18, %v665_v17  ;;  %v3464_v28 = vpack.c.bf16 %v1115_v21, %v1113_v19  ;;  %v3466_v33 = vpack.c.bf16 %v1120_v23, %v1118_v25  ;;  %v1136_v17 = vld [vmem:[%s4033_s21 + $0x1a58] sm:$0xff]  ;;  %v1135_v23 = vld [vmem:[%s4033_s21 + $0x1a50] sm:$0xff] }
 0x1d4   : > { %3447 = vmatprep.subr.bf16.mxu0 %v3446_v51  ;;  %v1117_v51 = vld [vmem:[%s4033_s21 + $0x19c0] sm:$0xff] }
 0x1d6   : > { %3001 = vmatpush1.bf16.msra.mxu1 %v3000_v39  ;;  %v1124_v39 = vld [vmem:[%s4033_s21 + $0x19f8] sm:$0xff] }
 0x1d7   : > { %3449 = vmatpush1.bf16.msra.mxu0 %v3448_v41  ;;  %3003 = vmatprep.subr.bf16.mxu1 %v3002_v13  ;;  %v3020_v41 = vpack.c.bf16 %v671_v32, %v669_v31  ;;  %v3468_v13 = vpack.c.bf16 %v1119_v34, %v1117_v51  ;;  %v3470_v4 = vpack.c.bf16 %v1124_v39, %v1122_v38  ;;  %v691_v34 = vld [vmem:[%s4033_s21 + $0xc70] sm:$0xff]  ;;  %v694_v39 = vld [vmem:[%s4033_s21 + $0xc88] sm:$0xff] }
 0x1d8   : > { %3451 = vmatprep.subr.bf16.mxu0 %v3450_v48  ;;  %v1121_v48 = vld [vmem:[%s4033_s21 + $0x19e0] sm:$0xff]  ;;  %v3484_v32 = vpack.c.bf16 %v1135_v23, %v1133_v24  ;;  %v1139_v38 = vld [vmem:[%s4033_s21 + $0x1a70] sm:$0xff] }
 0x1d9   : > { %v3472_v55 = vpack.c.bf16 %v1123_v44, %v1121_v48  ;;  %v695_v44 = vld [vmem:[%s4033_s21 + $0xc90] sm:$0xff]  ;;  %v1153_v24 = vld [vmem:[%s4033_s21 + $0x1ae0] sm:$0xff] }
 0x1da   : > { %3005 = vmatpush1.bf16.msra.mxu1 %v3004_v7  ;;  %v1128_v7 = vld [vmem:[%s4033_s21 + $0x1a18] sm:$0xff]  ;;  %v1155_v23 = vld [vmem:[%s4033_s21 + $0x1af0] sm:$0xff] }
 0x1db   : > { %3453 = vmatpush1.bf16.msra.mxu0 %v3452_v53  ;;  %3007 = vmatprep.subr.bf16.mxu1 %v3006_v54  ;;  %v1298_v53 = vcombine.high %v4790_v35, %v4790_v35  ;;  %v3024_v54 = vpack.c.bf16 %v675_v45, %v673_v43  ;;  %v3474_v62 = vpack.c.bf16 %v1128_v7, %v1126_v26  ;;  %v4942_v35 = vld.sshfl [vmem:[%s4047_s14 + $0x18] sm:$0xff pattern:$0x76325410]  ;;  %v698_v7 = vld [vmem:[%s4033_s21 + $0xca8] sm:$0xff] }
 0x1dc   : > { %3455 = vmatprep.subr.bf16.mxu0 %v3454_v59  ;;  %v679_v59 = vld [vmem:[%s4033_s21 + $0xc10] sm:$0xff]  ;;  %v3488_v45 = vpack.c.bf16 %v1139_v38, %v1137_v36  ;;  %v1157_v36 = vld [vmem:[%s4033_s21 + $0x1b00] sm:$0xff] }
 0x1dd   : > { %v3028_v30 = vpack.c.bf16 %v679_v59, %v677_v57  ;;  %v1143_v26 = vld [vmem:[%s4033_s21 + $0x1a90] sm:$0xff] }
 0x1de   : > { %3009 = vmatpush1.bf16.msra.mxu1 %v3008_v2  ;;  %v1130_v2 = vld [vmem:[%s4033_s21 + $0x1a28] sm:$0xff]  ;;  %v3492_v57 = vpack.c.bf16 %v1143_v26, %v1141_v50  ;;  %v1159_v38 = vld [vmem:[%s4033_s21 + $0x1b10] sm:$0xff]  ;;  %v1161_v50 = vld [vmem:[%s4033_s21 + $0x1b20] sm:$0xff] }
 0x1df   : > { %3457 = vmatpush1.bf16.msra.mxu0 %v3456_v3  ;;  %3011 = vmatprep.subr.bf16.mxu1 %v3010_v58  ;;  %v1132_v3 = vld [vmem:[%s4033_s21 + $0x1a38] sm:$0xff]  ;;  %v4947_v58 = vrot.slane %v1298_v53, %v4146_v12  ;;  %v1163_v26 = vld [vmem:[%s4033_s21 + $0x1b30] sm:$0xff] }
 0x1e0   : > { %3459 = vmatprep.subr.bf16.mxu0 %v3458_v8  ;;  %v681_v8 = vld [vmem:[%s4033_s21 + $0xc20] sm:$0xff]  ;;  %v3478_v47 = vpack.c.bf16 %v1132_v3, %v1130_v2  ;;  %v700_v53 = vld [vmem:[%s4033_s21 + $0xcb8] sm:$0xff]  ;;  %v702_v2 = vld [vmem:[%s4033_s21 + $0xcc8] sm:$0xff] }
 0x1e1   : > { %v1314_v18 = vcombine.high %v4947_v58, %v4947_v58  ;;  %v3032_v19 = vpack.c.bf16 %v683_v9, %v681_v8  ;;  %v3046_v59 = vpack.c.bf16 %v700_v53, %v698_v7  ;;  %v704_v3 = vld [vmem:[%s4033_s21 + $0xcd8] sm:$0xff]  ;;  %v3496_v8 = vpack.c.bf16 %v1147_v56, %v1145_v0  ;;  %v718_v7 = vld [vmem:[%s4033_s21 + $0xd48] sm:$0xff]  ;;  %v1165_v0 = vld [vmem:[%s4033_s21 + $0x1b40] sm:$0xff] }
 0x1e2   : > { %3013 = vmatpush1.bf16.msra.mxu1 %v3012_v14  ;;  %v688_v14 = vld [vmem:[%s4033_s21 + $0xc58] sm:$0xff]  ;;  %v3050_v9 = vpack.c.bf16 %v704_v3, %v702_v2  ;;  %v1167_v56 = vld [vmem:[%s4033_s21 + $0x1b50] sm:$0xff]  ;;  %v722_v2 = vld [vmem:[%s4033_s21 + $0xd68] sm:$0xff] }
 0x1e3   : > { %3461 = vmatpush1.bf16.msra.mxu0 %v3460_v15  ;;  %3015 = vmatprep.subr.bf16.mxu1 %v3014_v16  ;;  %v1262_v15 = vcombine.high %v4942_v35, %v4942_v35  ;;  %v1134_v16 = vld [vmem:[%s4033_s21 + $0x1a48] sm:$0xff]  ;;  %v3034_v21 = vpack.c.bf16 %v688_v14, %v686_v11  ;;  %v1151_v14 = vld [vmem:[%s4033_s21 + $0x1ad0] sm:$0xff]  ;;  %v720_v53 = vld [vmem:[%s4033_s21 + $0xd58] sm:$0xff] }
 0x1e4   : > { %3463 = vmatprep.subr.bf16.mxu0 %v3462_v20  ;;  %v3480_v20 = vpack.c.bf16 %v1131_v10, %v1129_v27  ;;  %v3482_v25 = vpack.c.bf16 %v1136_v17, %v1134_v16  ;;  %v701_v27 = vld [vmem:[%s4033_s21 + $0xcc0] sm:$0xff]  ;;  %v708_v16 = vld [vmem:[%s4033_s21 + $0xcf8] sm:$0xff]  ;;  %v1154_v17 = vld [vmem:[%s4033_s21 + $0x1ae8] sm:$0xff] }
 0x1e5   : > { %v1149_v10 = vld [vmem:[%s4033_s21 + $0x1ac0] sm:$0xff]  ;;  %v724_v3 = vld [vmem:[%s4033_s21 + $0xd78] sm:$0xff] }
 0x1e6   : > { %3017 = vmatpush1.bf16.msra.mxu1 %v3016_v61  ;;  %v690_v61 = vld [vmem:[%s4033_s21 + $0xc68] sm:$0xff] }
 0x1e7   : > { %3465 = vmatpush1.bf16.msra.mxu0 %v3464_v28  ;;  %3019 = vmatprep.subr.bf16.mxu1 %v3018_v29  ;;  %v692_v28 = vld [vmem:[%s4033_s21 + $0xc78] sm:$0xff] }
 0x1e8   : > { %3467 = vmatprep.subr.bf16.mxu0 %v3466_v33  ;;  %v1140_v29 = vld [vmem:[%s4033_s21 + $0x1a78] sm:$0xff]  ;;  %v3038_v51 = vpack.c.bf16 %v692_v28, %v690_v61  ;;  %v689_v33 = vld [vmem:[%s4033_s21 + $0xc60] sm:$0xff]  ;;  %v710_v61 = vld [vmem:[%s4033_s21 + $0xd08] sm:$0xff] }
 0x1e9   : > { %v3040_v43 = vpack.c.bf16 %v691_v34, %v689_v33  ;;  %v712_v28 = vld [vmem:[%s4033_s21 + $0xd18] sm:$0xff]  ;;  %v709_v33 = vld [vmem:[%s4033_s21 + $0xd00] sm:$0xff]  ;;  %v711_v34 = vld [vmem:[%s4033_s21 + $0xd10] sm:$0xff] }
 0x1ea   : > { %3021 = vmatpush1.bf16.msra.mxu1 %v3020_v41  ;;  %v696_v41 = vld [vmem:[%s4033_s21 + $0xc98] sm:$0xff] }
 0x1eb   : > { %3469 = vmatpush1.bf16.msra.mxu0 %v3468_v13  ;;  %3023 = vmatprep.subr.bf16.mxu1 %v3022_v42  ;;  %v1142_v13 = vld [vmem:[%s4033_s21 + $0x1a88] sm:$0xff]  ;;  %v1144_v42 = vld [vmem:[%s4033_s21 + $0x1a98] sm:$0xff]  ;;  %v3042_v48 = vpack.c.bf16 %v696_v41, %v694_v39 }
 0x1ec   : > { %3471 = vmatprep.subr.bf16.mxu0 %v3470_v4  ;;  %v693_v4 = vld [vmem:[%s4033_s21 + $0xc80] sm:$0xff]  ;;  %v3490_v52 = vpack.c.bf16 %v1144_v42, %v1142_v13  ;;  %v714_v39 = vld [vmem:[%s4033_s21 + $0xd28] sm:$0xff]  ;;  %v716_v41 = vld [vmem:[%s4033_s21 + $0xd38] sm:$0xff] }
 0x1ed   : > { %v1162_v13 = vld [vmem:[%s4033_s21 + $0x1b28] sm:$0xff]  ;;  %v1164_v42 = vld [vmem:[%s4033_s21 + $0x1b38] sm:$0xff] }
 0x1ee   : > { %3025 = vmatpush1.bf16.msra.mxu1 %v3024_v54  ;;  %v1146_v54 = vld [vmem:[%s4033_s21 + $0x1aa8] sm:$0xff] }
 0x1ef   : > { %3473 = vmatpush1.bf16.msra.mxu0 %v3472_v55  ;;  %3027 = vmatprep.subr.bf16.mxu1 %v3026_v40  ;;  %v1148_v55 = vld [vmem:[%s4033_s21 + $0x1ab8] sm:$0xff]  ;;  %v3044_v40 = vpack.c.bf16 %v695_v44, %v693_v4  ;;  %v713_v4 = vld [vmem:[%s4033_s21 + $0xd20] sm:$0xff]  ;;  %v715_v44 = vld [vmem:[%s4033_s21 + $0xd30] sm:$0xff] }
 0x1f0   : > { %3475 = vmatprep.subr.bf16.mxu0 %v3474_v62  ;;  %v699_v62 = vld [vmem:[%s4033_s21 + $0xcb0] sm:$0xff]  ;;  %v3494_v1 = vpack.c.bf16 %v1148_v55, %v1146_v54  ;;  %v1166_v54 = vld [vmem:[%s4033_s21 + $0x1b48] sm:$0xff]  ;;  %v1168_v55 = vld [vmem:[%s4033_s21 + $0x1b58] sm:$0xff] }
 0x1f1   : > { %1763 = vmatmul.mubr.f32.vlgmr.msra.gmra.mrb[0].mxu1 %v4799_v46  ;;  %v687_v46 = vld [vmem:[%s4033_s21 + $0xc50] sm:$0xff] }
 0x1f2   : > { %3029 = vmatpush1.bf16.msra.mxu1 %v3028_v30  ;;  %2260 = vmatmul.mubr.f32.vlgmr.msra.gmra.mrb[0].mxu0 %v4805_v49  ;;  %v1138_v49 = vld [vmem:[%s4033_s21 + $0x1a68] sm:$0xff]  ;;  %v3036_v31 = vpack.c.bf16 %v687_v46, %v685_v22  ;;  %v705_v22 = vld [vmem:[%s4033_s21 + $0xce0] sm:$0xff]  ;;  %v707_v46 = vld [vmem:[%s4033_s21 + $0xcf0] sm:$0xff] }
 0x1f3   : > { %3477 = vmatpush1.bf16.msra.mxu0 %v3476_v5  ;;  %3031 = vmatprep.subr.bf16.mxu1 %v3030_v6  ;;  %v3486_v37 = vpack.c.bf16 %v1140_v29, %v1138_v49  ;;  %v1150_v30 = vld [vmem:[%s4033_s21 + $0x1ac8] sm:$0xff]  ;;  %v1152_v5 = vld [vmem:[%s4033_s21 + $0x1ad8] sm:$0xff]  ;;  %v3048_v6 = vpack.c.bf16 %v699_v62, %v697_v60  ;;  %v717_v60 = vld [vmem:[%s4033_s21 + $0xd40] sm:$0xff] }
 0x1f4   : > { %3479 = vmatprep.subr.bf16.mxu0 %v3478_v47  ;;  %1833 = vmatprep.mubr.f32.mxu1 %v1262_v15  ;;  %v703_v47 = vld [vmem:[%s4033_s21 + $0xcd0] sm:$0xff]  ;;  %v3498_v11 = vpack.c.bf16 %v1152_v5, %v1150_v30  ;;  %v706_v15 = vld [vmem:[%s4033_s21 + $0xce8] sm:$0xff]  ;;  %v1160_v29 = vld [vmem:[%s4033_s21 + $0x1b18] sm:$0xff] }
 0x1f5   : > { %2330 = vmatprep.mubr.f32.mxu0 %v1314_v18  ;;  %v1156_v18 = vld [vmem:[%s4033_s21 + $0x1af8] sm:$0xff]  ;;  %v1158_v49 = vld [vmem:[%s4033_s21 + $0x1b08] sm:$0xff]  ;;  %v719_v62 = vld [vmem:[%s4033_s21 + $0xd50] sm:$0xff] }
 0x1f6   : > { %3033 = vmatpush1.bf16.msra.mxu1 %v3032_v19  ;;  %v3052_v19 = vpack.c.bf16 %v703_v47, %v701_v27  ;;  %v1170_v30 = vld [vmem:[%s4033_s21 + $0x1b68] sm:$0xff]  ;;  %v1172_v5 = vld [vmem:[%s4033_s21 + $0x1b78] sm:$0xff]  ;;  %v721_v27 = vld [vmem:[%s4033_s21 + $0xd60] sm:$0xff] }
 0x1f7   : > { %3481 = vmatpush1.bf16.msra.mxu0 %v3480_v20  ;;  %3035 = vmatprep.subr.bf16.mxu1 %v3034_v21  ;;  %v3500_v20 = vpack.c.bf16 %v1151_v14, %v1149_v10  ;;  %v3054_v21 = vpack.c.bf16 %v708_v16, %v706_v15  ;;  %v723_v47 = vld [vmem:[%s4033_s21 + $0xd70] sm:$0xff]  ;;  %v1169_v10 = vld [vmem:[%s4033_s21 + $0x1b60] sm:$0xff]  ;;  %v726_v15 = vld [vmem:[%s4033_s21 + $0xd88] sm:$0xff] }
 0x1f8   : > { %3483 = vmatprep.subr.bf16.mxu0 %v3482_v25  ;;  %v3502_v25 = vpack.c.bf16 %v1156_v18, %v1154_v17  ;;  %v1171_v14 = vld [vmem:[%s4033_s21 + $0x1b70] sm:$0xff]  ;;  %v728_v16 = vld [vmem:[%s4033_s21 + $0xd98] sm:$0xff]  ;;  %v1174_v17 = vld [vmem:[%s4033_s21 + $0x1b88] sm:$0xff] }
 0x1f9   : > { %v1176_v18 = vld [vmem:[%s4033_s21 + $0x1b98] sm:$0xff] }
 0x1fa   : > { %3037 = vmatpush1.bf16.msra.mxu1 %v3036_v31  ;;  %v3056_v31 = vpack.c.bf16 %v707_v46, %v705_v22  ;;  %v725_v22 = vld [vmem:[%s4033_s21 + $0xd80] sm:$0xff]  ;;  %v727_v46 = vld [vmem:[%s4033_s21 + $0xd90] sm:$0xff] }
 0x1fb   : > { %3485 = vmatpush1.bf16.msra.mxu0 %v3484_v32  ;;  %3039 = vmatprep.subr.bf16.mxu1 %v3038_v51  ;;  %v3504_v32 = vpack.c.bf16 %v1155_v23, %v1153_v24  ;;  %v3058_v51 = vpack.c.bf16 %v712_v28, %v710_v61  ;;  %v1173_v24 = vld [vmem:[%s4033_s21 + $0x1b80] sm:$0xff]  ;;  %v1175_v23 = vld [vmem:[%s4033_s21 + $0x1b90] sm:$0xff]  ;;  %v730_v61 = vld [vmem:[%s4033_s21 + $0xda8] sm:$0xff] }
 0x1fc   : > { %3487 = vmatprep.subr.bf16.mxu0 %v3486_v37  ;;  %v3506_v37 = vpack.c.bf16 %v1160_v29, %v1158_v49  ;;  %v732_v28 = vld [vmem:[%s4033_s21 + $0xdb8] sm:$0xff]  ;;  %v1178_v49 = vld [vmem:[%s4033_s21 + $0x1ba8] sm:$0xff] }
 0x1fd   : > { %v1180_v29 = vld [vmem:[%s4033_s21 + $0x1bb8] sm:$0xff] }
 0x1fe   : > { %3041 = vmatpush1.bf16.msra.mxu1 %v3040_v43  ;;  %v3060_v43 = vpack.c.bf16 %v711_v34, %v709_v33  ;;  %v729_v33 = vld [vmem:[%s4033_s21 + $0xda0] sm:$0xff]  ;;  %v731_v34 = vld [vmem:[%s4033_s21 + $0xdb0] sm:$0xff] }
 0x1ff   : > { %3489 = vmatpush1.bf16.msra.mxu0 %v3488_v45  ;;  %3043 = vmatprep.subr.bf16.mxu1 %v3042_v48  ;;  %v3508_v45 = vpack.c.bf16 %v1159_v38, %v1157_v36  ;;  %v3062_v48 = vpack.c.bf16 %v716_v41, %v714_v39  ;;  %v1177_v36 = vld [vmem:[%s4033_s21 + $0x1ba0] sm:$0xff]  ;;  %v1179_v38 = vld [vmem:[%s4033_s21 + $0x1bb0] sm:$0xff]  ;;  %v734_v39 = vld [vmem:[%s4033_s21 + $0xdc8] sm:$0xff] }
 0x200   : > { %3491 = vmatprep.subr.bf16.mxu0 %v3490_v52  ;;  %v3510_v52 = vpack.c.bf16 %v1164_v42, %v1162_v13  ;;  %v736_v41 = vld [vmem:[%s4033_s21 + $0xdd8] sm:$0xff]  ;;  %v1182_v13 = vld [vmem:[%s4033_s21 + $0x1bc8] sm:$0xff] }
 0x201   : > { %v1184_v42 = vld [vmem:[%s4033_s21 + $0x1bd8] sm:$0xff] }
 0x202   : > { %3045 = vmatpush1.bf16.msra.mxu1 %v3044_v40  ;;  %v3064_v40 = vpack.c.bf16 %v715_v44, %v713_v4  ;;  %v733_v4 = vld [vmem:[%s4033_s21 + $0xdc0] sm:$0xff]  ;;  %v735_v44 = vld [vmem:[%s4033_s21 + $0xdd0] sm:$0xff] }
 0x203   : > { %3493 = vmatpush1.bf16.msra.mxu0 %v3492_v57  ;;  %3047 = vmatprep.subr.bf16.mxu1 %v3046_v59  ;;  %v3512_v57 = vpack.c.bf16 %v1163_v26, %v1161_v50  ;;  %v3066_v59 = vpack.c.bf16 %v720_v53, %v718_v7  ;;  %v1181_v50 = vld [vmem:[%s4033_s21 + $0x1bc0] sm:$0xff]  ;;  %v1183_v26 = vld [vmem:[%s4033_s21 + $0x1bd0] sm:$0xff]  ;;  %v738_v7 = vld [vmem:[%s4033_s21 + $0xde8] sm:$0xff] }
 0x204   : > { %3495 = vmatprep.subr.bf16.mxu0 %v3494_v1  ;;  %v3514_v1 = vpack.c.bf16 %v1168_v55, %v1166_v54  ;;  %v740_v53 = vld [vmem:[%s4033_s21 + $0xdf8] sm:$0xff]  ;;  %v1186_v54 = vld [vmem:[%s4033_s21 + $0x1be8] sm:$0xff] }
 0x205   : > { %v1188_v55 = vld [vmem:[%s4033_s21 + $0x1bf8] sm:$0xff] }
 0x206   : > { %3049 = vmatpush1.bf16.msra.mxu1 %v3048_v6  ;;  %v3068_v6 = vpack.c.bf16 %v719_v62, %v717_v60  ;;  %v737_v60 = vld [vmem:[%s4033_s21 + $0xde0] sm:$0xff]  ;;  %v739_v62 = vld [vmem:[%s4033_s21 + $0xdf0] sm:$0xff] }
 0x207   : > { %3497 = vmatpush1.bf16.msra.mxu0 %v3496_v8  ;;  %3051 = vmatprep.subr.bf16.mxu1 %v3050_v9  ;;  %v3516_v8 = vpack.c.bf16 %v1167_v56, %v1165_v0  ;;  %v3070_v9 = vpack.c.bf16 %v724_v3, %v722_v2  ;;  %v3534_v0 = vpack.c.bf16 %v1188_v55, %v1186_v54  ;;  %v1187_v56 = vld [vmem:[%s4033_s21 + $0x1bf0] sm:$0xff] }
 0x208   : > { %3499 = vmatprep.subr.bf16.mxu0 %v3498_v11  ;;  %v3518_v11 = vpack.c.bf16 %v1172_v5, %v1170_v30  ;;  %v3088_v2 = vpack.c.bf16 %v739_v62, %v737_v60  ;;  %v2386_v54 = vld [vmem:[%s5214_s3 + $0x50] sm:$0xff] (!%p2598_p6)  ;;  %v2387_v55 = vld [vmem:[%s5214_s3 + $0x58] sm:$0xff] (!%p2598_p6) }
 0x209   : > { %v3560_v60 = vpack.c.bf16 (!%p2598_p6), %v2387_v55, %v2386_v54 }
 0x20a   : > { %3053 = vmatpush1.bf16.msra.mxu1 %v3052_v19  ;;  %v3072_v19 = vpack.c.bf16 %v723_v47, %v721_v27 }
 0x20b   : > { %3501 = vmatpush1.bf16.msra.mxu0 %v3500_v20  ;;  %3055 = vmatprep.subr.bf16.mxu1 %v3054_v21  ;;  %v3520_v20 = vpack.c.bf16 %v1171_v14, %v1169_v10  ;;  %v3074_v21 = vpack.c.bf16 %v728_v16, %v726_v15  ;;  %v285_v10 = vld [vmem:[#allocation2] sm:$0xf] }
 0x20c   : > { %3503 = vmatprep.subr.bf16.mxu0 %v3502_v25  ;;  %v3522_v25 = vpack.c.bf16 %v1176_v18, %v1174_v17  ;;  %v2376_v15 = vld [vmem:[%s5214_s3] sm:$0xff] (!%p2598_p6)  ;;  %v2377_v17 = vld [vmem:[%s5214_s3 + $0x8] sm:$0xff] (!%p2598_p6)  ;;  %v2394_v18 = vld [vmem:[%s5214_s3 + $0x90] sm:$0xff] (!%p2598_p6) }
 0x20e   : > { %3057 = vmatpush1.bf16.msra.mxu1 %v3056_v31  ;;  %v3076_v31 = vpack.c.bf16 %v727_v46, %v725_v22  ;;  %v2378_v22 = vld [vmem:[%s5214_s3 + $0x10] sm:$0xff] (!%p2598_p6)  ;;  %v2379_v46 = vld [vmem:[%s5214_s3 + $0x18] sm:$0xff] (!%p2598_p6) }
 0x20f   : > { %3505 = vmatpush1.bf16.msra.mxu0 %v3504_v32  ;;  %3059 = vmatprep.subr.bf16.mxu1 %v3058_v51  ;;  %v3524_v32 = vpack.c.bf16 %v1175_v23, %v1173_v24  ;;  %v3078_v51 = vpack.c.bf16 %v732_v28, %v730_v61  ;;  %v2396_v24 = vld [vmem:[%s5214_s3 + $0xa0] sm:$0xff] (!%p2598_p6)  ;;  %v3544_v23 = vpack.c.bf16 (!%p2598_p6), %v2379_v46, %v2378_v22 }
 0x210   : > { %3507 = vmatprep.subr.bf16.mxu0 %v3506_v37  ;;  %v3526_v37 = vpack.c.bf16 %v1180_v29, %v1178_v49  ;;  %v2380_v28 = vld [vmem:[%s5214_s3 + $0x20] sm:$0xff] (!%p2598_p6)  ;;  %v2381_v49 = vld [vmem:[%s5214_s3 + $0x28] sm:$0xff] (!%p2598_p6)  ;;  %v2398_v29 = vld [vmem:[%s5214_s3 + $0xb0] sm:$0xff] (!%p2598_p6) }
 0x212   : > { %3061 = vmatpush1.bf16.msra.mxu1 %v3060_v43  ;;  %v3080_v43 = vpack.c.bf16 %v731_v34, %v729_v33  ;;  %v2363_v33 = vsub.s32 (!%p2598_p6), 1, %v4135_v63 }
 0x213   : > { %3509 = vmatpush1.bf16.msra.mxu0 %v3508_v45  ;;  %3063 = vmatprep.subr.bf16.mxu1 %v3062_v48  ;;  %v3528_v45 = vpack.c.bf16 %v1179_v38, %v1177_v36  ;;  %v3082_v48 = vpack.c.bf16 %v736_v41, %v734_v39  ;;  %v2382_v36 = vld [vmem:[%s5214_s3 + $0x30] sm:$0xff] (!%p2598_p6)  ;;  %v2400_v38 = vld [vmem:[%s5214_s3 + $0xc0] sm:$0xff] (!%p2598_p6)  ;;  %v2401_v39 = vld [vmem:[%s5214_s3 + $0xc8] sm:$0xff] (!%p2598_p6) }
 0x214   : > { %3511 = vmatprep.subr.bf16.mxu0 %v3510_v52  ;;  %v3530_v52 = vpack.c.bf16 %v1184_v42, %v1182_v13  ;;  %v2355_v41 = vld [vmem:[#allocation6] sm:$0x3] (!%p2598_p6) }
 0x215   : > { %v2364_v42 = vrot.slane (!%p2598_p6), %v2355_v41, %v2363_v33 }
 0x216   : > { %3065 = vmatpush1.bf16.msra.mxu1 %v3064_v40  ;;  %v3084_v40 = vpack.c.bf16 %v735_v44, %v733_v4  ;;  %v2402_v4 = vld [vmem:[%s5214_s3 + $0xd0] sm:$0xff] (!%p2598_p6)  ;;  %v2403_v44 = vld [vmem:[%s5214_s3 + $0xd8] sm:$0xff] (!%p2598_p6) }
 0x217   : > { %3513 = vmatpush1.bf16.msra.mxu0 %v3512_v57  ;;  %3067 = vmatprep.subr.bf16.mxu1 %v3066_v59  ;;  %v3532_v57 = vpack.c.bf16 %v1183_v26, %v1181_v50  ;;  %v3086_v59 = vpack.c.bf16 %v740_v53, %v738_v7  ;;  %v3558_v53 = vpack.c.bf16 (!%p2598_p6), %v2403_v44, %v2402_v4 }
 0x218   : > { %3515 = vmatprep.subr.bf16.mxu0 %v3514_v1  ;;  %v1185_v1 = vld [vmem:[%s4033_s21 + $0x1be0] sm:$0xff] }
 0x219   : > { %v3536_v3 = vpack.c.bf16 %v1187_v56, %v1185_v1  ;;  %v2388_v1 = vld [vmem:[%s5214_s3 + $0x60] sm:$0xff] (!%p2598_p6)  ;;  %v2389_v56 = vld [vmem:[%s5214_s3 + $0x68] sm:$0xff] (!%p2598_p6) }
 0x21a   : > { %3069 = vmatpush1.bf16.msra.mxu1 %v3068_v6 }
 0x21b   : > { %3517 = vmatpush1.bf16.msra.mxu0 %v3516_v8  ;;  %3071 = vmatprep.subr.bf16.mxu1 %v3070_v9 }
 0x21c   : > { %3519 = vmatprep.subr.bf16.mxu0 %v3518_v11 }
 0x21e   : > { %3073 = vmatpush1.bf16.msra.mxu1 %v3072_v19  ;;  %v2395_v19 = vld [vmem:[%s5214_s3 + $0x98] sm:$0xff] (!%p2598_p6) }
 0x21f   : > { %3521 = vmatpush1.bf16.msra.mxu0 %v3520_v20  ;;  %3075 = vmatprep.subr.bf16.mxu1 %v3074_v21  ;;  %v3540_v20 = vpack.c.bf16 (!%p2598_p6), %v2377_v17, %v2376_v15  ;;  %v3542_v21 = vpack.c.bf16 (!%p2598_p6), %v2395_v19, %v2394_v18 }
 0x220   : > { %3523 = vmatprep.subr.bf16.mxu0 %v3522_v25  ;;  %v2397_v25 = vld [vmem:[%s5214_s3 + $0xa8] sm:$0xff] (!%p2598_p6) }
 0x221   : > { %v3546_v61 = vpack.c.bf16 (!%p2598_p6), %v2397_v25, %v2396_v24 }
 0x222   : > { %3077 = vmatpush1.bf16.msra.mxu1 %v3076_v31  ;;  %v2399_v31 = vld [vmem:[%s5214_s3 + $0xb8] sm:$0xff] (!%p2598_p6) }
 0x223   : > { %3525 = vmatpush1.bf16.msra.mxu0 %v3524_v32  ;;  %3079 = vmatprep.subr.bf16.mxu1 %v3078_v51  ;;  %v3548_v32 = vpack.c.bf16 (!%p2598_p6), %v2381_v49, %v2380_v28  ;;  %v2359_v51 = vsub.s32 (!%p2598_p6), 0, %v4135_v63  ;;  %v3550_v34 = vpack.c.bf16 (!%p2598_p6), %v2399_v31, %v2398_v29 }
 0x224   : > { %3527 = vmatprep.subr.bf16.mxu0 %v3526_v37  ;;  %v2383_v37 = vld [vmem:[%s5214_s3 + $0x38] sm:$0xff] (!%p2598_p6) }
 0x225   : > { %v3552_v63 = vpack.c.bf16 (!%p2598_p6), %v2383_v37, %v2382_v36  ;;  %v2360_v13 = vrot.slane (!%p2598_p6), %v2355_v41, %v2359_v51 }
 0x226   : > { %3081 = vmatpush1.bf16.msra.mxu1 %v3080_v43  ;;  %v3554_v43 = vpack.c.bf16 (!%p2598_p6), %v2401_v39, %v2400_v38 }
 0x227   : > { %3529 = vmatpush1.bf16.msra.mxu0 %v3528_v45  ;;  %3083 = vmatprep.subr.bf16.mxu1 %v3082_v48  ;;  %v2384_v45 = vld [vmem:[%s5214_s3 + $0x40] sm:$0xff] (!%p2598_p6)  ;;  %v2385_v48 = vld [vmem:[%s5214_s3 + $0x48] sm:$0xff] (!%p2598_p6)  ;;  %v2365_v50 = vcombine.low (!%p2598_p6), %v2360_v13, %v2364_v42 }
 0x228   : > { %3531 = vmatprep.subr.bf16.mxu0 %v3530_v52  ;;  %v3556_v26 = vpack.c.bf16 (!%p2598_p6), %v2385_v48, %v2384_v45 }
 0x229   : > { %v2372_v7 = vrot.slane (!%p2598_p6), %v2365_v50, %v4146_v12 }
 0x22a   : > { %3085 = vmatpush1.bf16.msra.mxu1 %v3084_v40  ;;  %v2404_v40 = vld [vmem:[%s5214_s3 + $0xe0] sm:$0xff] (!%p2598_p6) }
 0x22b   : > { %3533 = vmatpush1.bf16.msra.mxu0 %v3532_v57  ;;  %3087 = vmatprep.subr.bf16.mxu1 %v3086_v59  ;;  %v2405_v57 = vld [vmem:[%s5214_s3 + $0xe8] sm:$0xff] (!%p2598_p6) }
 0x22c   : > { %3535 = vmatprep.subr.bf16.mxu0 %v3534_v0  ;;  %v3562_v0 = vpack.c.bf16 (!%p2598_p6), %v2405_v57, %v2404_v40 }
 0x22e   : > { %3089 = vmatpush1.bf16.msra.mxu1 %v3088_v2  ;;  %v2406_v2 = vld [vmem:[%s5214_s3 + $0xf0] sm:$0xff] (!%p2598_p6) }
 0x22f   : > { %3537 = vmatpush1.bf16.msra.mxu0 %v3536_v3  ;;  %v2407_v3 = vld [vmem:[%s5214_s3 + $0xf8] sm:$0xff] (!%p2598_p6) }
 0x231   : > { %1834 = vmatmul.mubr.f32.vlgmr.msra.gmra.mrb[0].mxu1 %v4942_v35  ;;  %v2392_v35 = vld [vmem:[%s5214_s3 + $0x80] sm:$0xff] (!%p2598_p6) }
 0x232   : > { %2331 = vmatmul.mubr.f32.vlgmr.msra.gmra.mrb[0].mxu0 %v4947_v58  ;;  %v2393_v58 = vld [vmem:[%s5214_s3 + $0x88] sm:$0xff] (!%p2598_p6) }
 0x233   : > { %v3538_v16 = vpack.c.bf16 (!%p2598_p6), %v2393_v58, %v2392_v35 }
 0x235   : > { %3539 = vmatprep.subr.bf16.mxu0 (!%p2598_p6), %v3538_v16 }
 0x236   : > { %3541 = vmatpush3.bf16.msra.mxu0 (!%p2598_p6), %v3540_v20 }
 0x237   : > { %3543 = vmatprep.subr.bf16.mxu0 (!%p2598_p6), %v3542_v21 }
 0x23a   : > { %3545 = vmatpush3.bf16.msra.mxu0 (!%p2598_p6), %v3544_v23 }
 0x23b   : > { %3547 = vmatprep.subr.bf16.mxu0 (!%p2598_p6), %v3546_v61 }
 0x23e   : > { %3549 = vmatpush3.bf16.msra.mxu0 (!%p2598_p6), %v3548_v32 }
 0x23f   : > { %3551 = vmatprep.subr.bf16.mxu0 (!%p2598_p6), %v3550_v34 }
 0x242   : > { %3553 = vmatpush3.bf16.msra.mxu0 (!%p2598_p6), %v3552_v63 }
 0x243   : > { %3555 = vmatprep.subr.bf16.mxu0 (!%p2598_p6), %v3554_v43 }
 0x246   : > { %3557 = vmatpush3.bf16.msra.mxu0 (!%p2598_p6), %v3556_v26 }
 0x247   : > { %3559 = vmatprep.subr.bf16.mxu0 (!%p2598_p6), %v3558_v53 }
 0x24a   : > { %3561 = vmatpush3.bf16.msra.mxu0 (!%p2598_p6), %v3560_v60 }
 0x24b   : > { %3563 = vmatprep.subr.bf16.mxu0 (!%p2598_p6), %v3562_v0 }
 0x304   : > { %v1835_v30 = vpop.f32.mrb[0].mxu1 }
 0x305   : > { %v2332_v5 = vpop.f32.mrb[0].mxu0  ;;  %v1837_v6 = vpop.f32.mrb[1].mxu1 }
 0x306   : > { %v3570_v8 = vadd.f32 %v2332_v5, %v1835_v30  ;;  %v2334_v9 = vpop.f32.mrb[1].mxu0  ;;  %v3564_v5 = vpack.c.bf16 (!%p2598_p6), %v2389_v56, %v2388_v1 }
 0x307   : > { %v3571_v27 = vadd.f32 %v2334_v9, %v1837_v6  ;;  %v2390_v9 = vld [vmem:[%s5214_s3 + $0x70] sm:$0xff] (!%p2598_p6) }
 0x308   : > { %3565 = vmatpush3.bf16.msra.mxu0 (!%p2598_p6), %v3564_v5 }
 0x309   : > { %v2339_v47 = vcombine.low %v3570_v8, %v3571_v27  ;;  %2353 = sbr.rel (%p2598_p6) target bundleno = 1018 (0x3fa), region = 60  ;;  %v3566_v8 = vpack.c.bf16 (!%p2598_p6), %v2407_v3, %v2406_v2  ;;  %v2391_v27 = vld [vmem:[%s5214_s3 + $0x78] sm:$0xff] (!%p2598_p6) }
 0x30b   : > { %v2346_v11 = vrot.slane %v2339_v47, %v4146_v12  ;;  %v3568_v47 = vpack.c.bf16 (!%p2598_p6), %v2391_v27, %v2390_v9  ;;  %3567 = vmatprep.subr.bf16.mxu0 (!%p2598_p6), %v3566_v8 }
 0x30d   : > { %v2348_v14 = vadd.f32 %v2346_v11, %v285_v10  ;;  %3569 = vmatpush3.bf16.msra.mxu0 (!%p2598_p6), %v3568_v47  ;;  %v2599_v10 = vld [vmem:[#allocation8] ss:$0 sm:$0xff] (!%p2598_p6) }
 0x30f   : > { %2349 = vst [vmem:[#allocation2] sm:$0xf] %v2348_v14 }
 0x316   : > { %v2354_v52 = vld [vmem:[#allocation2] sm:$0xf] }
 0x317   : > { %v2374_v59 = vadd.f32 %v2372_v7, %v2354_v52 }
 0x319   : > { %v2375_v62 = vmax.f32 %v2374_v59, 0.0 }
 0x31b   : > { %v2422_v30 = vrot.slane %v2375_v62, %v4146_v12 }
 0x31d   : > { %v2423_v6 = vcombine.high %v2422_v30, %v2422_v30 }
 0x31f   : > { %2490 = vmatprep.mubr.f32.mxu0 %v2423_v6 }
 0x320   : > { %2491 = vmatmul.mubr.f32.vlgmr.msra.gmra.mrb[0].mxu0 %v2422_v30 }
 0x3f3   : > { %v2639_v12 = vpop.f32.mrb[0].mxu0 }
 0x3f4   : > { %v2640_v11 = vpop.f32.mrb[1].mxu0 }
 0x3f5   : > { %v2641_v14 = vadd.f32 %v2640_v11, %v2639_v12 }
 0x3f7   : > { %v2493_v35 = vadd.f32 %v2641_v14, %v2599_v10 }
 0x3f9   : > { %2497 = vst.msk [vmem:[#allocation9] sm:$0x3] %vm2496_vm0, %v2493_v35 }
 0x3fa PF: > { %p3628_p7 = scmp.eq.s32.totalorder %s3891_s22, 6  ;;  %s3841_s17 = smov [#allocation9]  }
 0x3fb   : > { %s2505_s11 = sshll.u32 %s3841_s17, 4  ;;  %s2506_s11 = int_to_ptr.vmem [resolvable:$true] %s2505_s11 }
 0x3fc   : > { %s3764_s18 = scalar_lea.vmem %s2506_s11, 32  ;;  %p3771_p5 = scmp.lt.s32.totalorder %s2506_s11, %s2506_s11 }
 0x3fd   : > { %p3765_p11 = scmp.ne.s32.totalorder %s2506_s11, %s3764_s18  ;;  %p3772_p9 = scmp.lt.s32.totalorder %s3764_s18, %s3764_s18 }
 0x3ff   : > { %p3766_p12 = pnand %p3765_p11, %p3628_p7  ;;  %p3773_p10 = por %p3772_p9, %p3771_p5 }
 0x401   : > { %p3767_p13 = pneg %p3766_p12 }
 0x403   : > { %p3774_p1 = pnand %p3773_p10, %p3767_p13 }
 0x405   : > { %3777 = shalt.err (!%p3774_p1)
}
 0x406   : > { %s3778_s27 = scalar_lea.hbm %s5216_s5, 32 }
 0x407   : > { %p3779_p8 = scmp.ne.s32.totalorder %s5216_s5, %s3778_s27  ;;  %p3784_p3 = scmp.lt.u32.totalorder %s3778_s27, %s5216_s5 }
 0x409   : > { %p3780_p0 = pnand %p3779_p8, %p3628_p7 }
 0x40b   : > { %p3781_p2 = pneg %p3780_p0 }
 0x40d   : > { %p3786_p4 = pnand %p3784_p3, %p3781_p2 }
 0x40f   : > { %3789 = shalt.err (!%p3786_p4)
}
 0x410   : > { %3609 = dma.vmem_to_hbm [thread:$0]  (%p3628_p7), %s2506_s11, 32, %s5216_s5, [#allocation5]  }
 0x411   : > { %3815 = dma.done.wait (%p3628_p7), [#allocation5], 32  }
 0x412   : > { %3817 = vsyncadd (%p3628_p7), [#allocation5], 4294967264 }
 0x413 PF: > { %p17_p6 = scmp.ge.s32.totalorder %s3894_s23, 9   ;;  %s5232_s18 = smov %s3824_s19 }
 0x414   : > { %s5233_s19 = smov %s3828_s20  ;;  %s5234_s20 = smov %s3904_s26 }
 0x415   : > { %s5235_s21 = smov %s3894_s23  ;;  %19 = sbr.rel (!%p17_p6) target bundleno = 5 (0x5), region = 96 }
 0x41c   :  { %2518 = vsyncpa [#allocation4], 1 }
 0x41d   :  { %2520 = vsyncpa [#allocation4 + $0x1], 1 }
 0x41e   :  { %2521 = vsyncpa [#allocation7], 1 }
 0x41f   :  { %2522 = vsyncpa [#allocation5], 1 }
 0x420   :  { %2524 = vsyncpa [#allocation5 + $0x1], 1 }

</bundles_post_ra>
